<compile_context>
chip_gen: v5e
topology: v5e:2x2
jax: 0.10.0
libtpu: 0.0.40
codegen_flags: <defaults>
</compile_context>

<pallas_src>
import jax
import jax.numpy as jnp
from jax.experimental import pallas as pl
from jax.experimental.pallas import tpu as pltpu

# ---- small synthetic hyperparameters consistent with the module ----
EMBED_SIZE = 128          # embed_size (256 in the original source)
NUM_HEAD = 4              # num_head
HEAD_SIZE = EMBED_SIZE // NUM_HEAD
FF_SIZE = 4 * EMBED_SIZE
NUM_LAYERS = 4            # num_layers
BLOCK_SIZE = 128          # block_size (1024 in the original source)
VOCAB_SIZE = 65
VOCAB_PAD = 128           # lm_head output padded to a full lane tile
LN_EPS = 1e-5             # torch.nn.LayerNorm default eps


# ----------------------------- shared math ---------------------------------
def _layernorm(x, g, b):
    mu = jnp.mean(x, axis=-1, keepdims=True)
    var = jnp.mean((x - mu) ** 2, axis=-1, keepdims=True)
    return (x - mu) * jax.lax.rsqrt(var + LN_EPS) * g + b


# ------------------------------- kernel ------------------------------------
def fused_forward_kernel(x_ref, bias_ref,
                         wq_ref, wk_ref, wv_ref, wp_ref,
                         w1_ref, w2_ref, vec_ref, b1_ref,
                         lnf_ref, wlm_ref, blm_ref,
                         o_ref, x_scr):
    """All NUM_LAYERS pre-LN transformer blocks + final LN + lm_head for one
    batch element; the residual stream lives in VMEM scratch across the layer
    ('arbitrary') grid axis."""
    l = pl.program_id(1)
    bf16, f32 = jnp.bfloat16, jnp.float32

    @pl.when(l == 0)
    def _():
        x_scr[...] = x_ref[0]                           # init residual stream

    vecs = vec_ref[0]                                   # (6, C): ln1_g, ln1_b, bp, ln2_g, ln2_b, b2
    scale = 1.0 / float(HEAD_SIZE) ** 0.5

    # ---- multi-head causal self-attention sublayer (pre-LN) ----
    xln = _layernorm(x_scr[...], vecs[0:1], vecs[1:2]).astype(bf16)
    attn = None
    for h in range(NUM_HEAD):                           # static unroll, H = 4
        qh = jnp.dot(xln, wq_ref[0, h], preferred_element_type=f32)   # (T, D)
        kh = jnp.dot(xln, wk_ref[0, h], preferred_element_type=f32)
        vh = jnp.dot(xln, wv_ref[0, h], preferred_element_type=f32)
        # q @ k^T without materializing a transpose
        s = jax.lax.dot_general(qh.astype(bf16), kh.astype(bf16),
                                dimension_numbers=(((1,), (1,)), ((), ())),
                                preferred_element_type=f32)
        s = s * scale + bias_ref[...]                   # additive causal mask
        s = s - jnp.max(s, axis=-1, keepdims=True)
        p = jnp.exp(s)
        p = p * pl.reciprocal(jnp.sum(p, axis=-1, keepdims=True), approx=True)
        oh = jnp.dot(p.astype(bf16), vh.astype(bf16),
                     preferred_element_type=f32)        # (T, D)
        # fold the head concat into the output projection: o_h @ Wp[h rows]
        contrib = jnp.dot(oh.astype(bf16), wp_ref[0, h],
                          preferred_element_type=f32)   # (T, C)
        attn = contrib if attn is None else attn + contrib
    x = x_scr[...] + attn + vecs[2:3]                   # residual + proj bias (dropout = 0)

    # ---- feed-forward sublayer (pre-LN) ----
    xln2 = _layernorm(x, vecs[3:4], vecs[4:5]).astype(bf16)
    h1 = jnp.dot(xln2, w1_ref[0], preferred_element_type=f32) + b1_ref[0]
    h1 = jnp.maximum(h1, 0.0)                           # ReLU
    x = x + jnp.dot(h1.astype(bf16), w2_ref[0],
                    preferred_element_type=f32) + vecs[5:6]
    x_scr[...] = x

    # ---- final LayerNorm + lm_head, only after the last layer ----
    @pl.when(l == pl.num_programs(1) - 1)
    def _():
        lnf = lnf_ref[...]                              # (2, C)
        xf = _layernorm(x, lnf[0:1], lnf[1:2]).astype(bf16)
        o_ref[0] = jnp.dot(xf, wlm_ref[...],
                           preferred_element_type=f32) + blm_ref[...]


# --------------------------- pallas wrapper ---------------------------------
def bigram_forward(idx, params, targets=None):
    """BigramLanguageModel.forward: returns (logits, loss)."""
    B, T = idx.shape
    C, H, D, F, L = EMBED_SIZE, NUM_HEAD, HEAD_SIZE, FF_SIZE, NUM_LAYERS
    VP = params["w_lm"].shape[1]

    # embedding lookup + causal-mask bias (cheap XLA glue, computed once)
    x = jnp.take(params["token_emb"], idx, axis=0) + params["pos_emb"][:T]
    row = jax.lax.broadcasted_iota(jnp.int32, (T, T), 0)
    col = jax.lax.broadcasted_iota(jnp.int32, (T, T), 1)
    bias = jnp.where(col <= row, 0.0, -1e30).astype(jnp.float32)

    layer_w = lambda b, l: (l, 0, 0, 0)     # per-layer 4-D weights
    layer_m = lambda b, l: (l, 0, 0)        # per-layer 3-D weights / vectors
    const2 = lambda b, l: (0, 0)            # resident constants
    batch3 = lambda b, l: (b, 0, 0)         # per-batch activations

    logits_pad = pl.pallas_call(
        fused_forward_kernel,
        out_shape=jax.ShapeDtypeStruct((B, T, VP), jnp.float32),
        grid=(B, L),
        in_specs=[
            pl.BlockSpec((1, T, C), batch3),        # x (read once at l == 0)
            pl.BlockSpec((T, T), const2),           # additive causal mask
            pl.BlockSpec((1, H, C, D), layer_w),    # wq  (bf16)
            pl.BlockSpec((1, H, C, D), layer_w),    # wk  (bf16)
            pl.BlockSpec((1, H, C, D), layer_w),    # wv  (bf16)
            pl.BlockSpec((1, H, D, C), layer_w),    # wp  (bf16)
            pl.BlockSpec((1, C, F), layer_m),       # w1  (bf16)
            pl.BlockSpec((1, F, C), layer_m),       # w2  (bf16)
            pl.BlockSpec((1, 6, C), layer_m),       # packed ln/bias vectors
            pl.BlockSpec((1, 1, F), layer_m),       # b1
            pl.BlockSpec((2, C), const2),           # final LN gamma/beta
            pl.BlockSpec((C, VP), const2),          # lm_head weight (padded, bf16)
            pl.BlockSpec((1, VP), const2),          # lm_head bias (padded)
        ],
        out_specs=pl.BlockSpec((1, T, VP), batch3),
        scratch_shapes=[pltpu.VMEM((T, C), jnp.float32)],   # residual stream
        compiler_params=pltpu.CompilerParams(
            dimension_semantics=("parallel", "arbitrary")),
    )(x, bias,
      params["wq"], params["wk"], params["wv"], params["wp"],
      params["w1"], params["w2"], params["vecs"], params["b1"],
      params["lnf"], params["w_lm"], params["b_lm"])

    logits = logits_pad[..., :VOCAB_SIZE]     # drop the lane-padding columns
    loss = None
    # TODO(synk): cross-entropy loss (targets != None) and the sampling-based
    # generate() loop are host/XLA-side paths, not part of the Pallas hot path.
    return logits, loss


# --------------------------- parameter init ---------------------------------
def init_params(key):
    C, H, D, F, L = EMBED_SIZE, NUM_HEAD, HEAD_SIZE, FF_SIZE, NUM_LAYERS
    V, VP = VOCAB_SIZE, VOCAB_PAD
    bf16 = jnp.bfloat16

    def nrm(k, shape, scale=0.02):
        return (scale * jax.random.normal(k, shape)).astype(jnp.float32)

    ks = jax.random.split(key, 11)
    ones = jnp.ones((L, C), jnp.float32)
    zeros = jnp.zeros((L, C), jnp.float32)
    bp = nrm(ks[6], (L, C))
    w_lm = jnp.zeros((C, VP), jnp.float32).at[:, :V].set(nrm(ks[10], (C, V)))
    return {
        "token_emb": nrm(ks[0], (V, C)),
        "pos_emb":   nrm(ks[1], (BLOCK_SIZE, C)),
        # per-layer tensors stacked on a leading L axis; MXU weights in bf16
        "wq": nrm(ks[2], (L, H, C, D)).astype(bf16),
        "wk": nrm(ks[3], (L, H, C, D)).astype(bf16),
        "wv": nrm(ks[4], (L, H, C, D)).astype(bf16),
        "wp": nrm(ks[5], (L, H, D, C)).astype(bf16),
        "w1": nrm(ks[7], (L, C, F)).astype(bf16),
        "w2": nrm(ks[9], (L, F, C)).astype(bf16),
        "b1": nrm(ks[8], (L, 1, F)),
        # packed per-layer vectors: [ln1_g, ln1_b, proj_bias, ln2_g, ln2_b, ffn_bias2]
        "vecs": jnp.stack([ones, zeros, bp, ones, zeros, zeros], axis=1),
        "lnf":  jnp.stack([jnp.ones((C,), jnp.float32),
                           jnp.zeros((C,), jnp.float32)]),
        "w_lm": w_lm.astype(bf16),                 # vocab padded 65 -> 128
        "b_lm": jnp.zeros((1, VP), jnp.float32),
    }


# --------------------------- pure-JAX reference -----------------------------
def _bf(x):
    """Round to bf16 then compute in f32 — mirrors the kernel's MXU operand
    casts (bf16 inputs, f32 accumulation)."""
    return x.astype(jnp.bfloat16).astype(jnp.float32)


def ref_forward(idx, params):
    B, T = idx.shape
    f32 = jnp.float32
    x = jnp.take(params["token_emb"], idx, axis=0) + params["pos_emb"][:T]
    row = jax.lax.broadcasted_iota(jnp.int32, (T, T), 0)
    col = jax.lax.broadcasted_iota(jnp.int32, (T, T), 1)
    bias = jnp.where(col <= row, 0.0, -1e30).astype(f32)
    scale = 1.0 / float(HEAD_SIZE) ** 0.5
    for l in range(NUM_LAYERS):
        vecs = params["vecs"][l]
        xln = _bf(_layernorm(x, vecs[0:1], vecs[1:2]))
        attn = jnp.zeros_like(x)
        for h in range(NUM_HEAD):
            qh = xln @ params["wq"][l, h].astype(f32)
            kh = xln @ params["wk"][l, h].astype(f32)
            vh = xln @ params["wv"][l, h].astype(f32)
            s = jnp.einsum("bqd,bkd->bqk", _bf(qh), _bf(kh)) * scale + bias
            s = s - jnp.max(s, axis=-1, keepdims=True)
            p = jnp.exp(s)
            p = p / jnp.sum(p, axis=-1, keepdims=True)
            oh = jnp.einsum("bqk,bkd->bqd", _bf(p), _bf(vh))
            attn = attn + _bf(oh) @ params["wp"][l, h].astype(f32)
        x = x + attn + vecs[2:3]
        xln2 = _bf(_layernorm(x, vecs[3:4], vecs[4:5]))
        h1 = jnp.maximum(xln2 @ params["w1"][l].astype(f32) + params["b1"][l], 0.0)
        x = x + _bf(h1) @ params["w2"][l].astype(f32) + vecs[5:6]
    xf = _bf(_layernorm(x, params["lnf"][0:1], params["lnf"][1:2]))
    logits = xf @ params["w_lm"].astype(f32) + params["b_lm"]
    return logits[..., :VOCAB_SIZE]


# --------------------------------- main --------------------------------------
if __name__ == "__main__":
    key = jax.random.PRNGKey(0)
    pkey, ikey = jax.random.split(key)
    params = init_params(pkey)

    B, T = 2, BLOCK_SIZE          # T == block_size (first-call KV-cache fill)
    idx = jax.random.randint(ikey, (B, T), 0, VOCAB_SIZE, dtype=jnp.int32)

    logits, loss = bigram_forward(idx, params, targets=None)
    logits = jax.block_until_ready(logits)

    assert logits.shape == (B, T, VOCAB_SIZE), logits.shape
    assert bool(jnp.all(jnp.isfinite(logits))), "non-finite logits"
    assert loss is None

    ref = jax.block_until_ready(ref_forward(idx, params))
    max_diff = float(jnp.max(jnp.abs(logits - ref)))
    assert bool(jnp.allclose(logits, ref, rtol=2e-2, atol=2e-2)), (
        f"mismatch vs reference, max abs diff = {max_diff}")

    print("KERNEL_OK")
</pallas_src>

<mosaic_0001>
module attributes {stable_mosaic.version = 11 : i64} {
  func.func @fused_forward_kernel(%arg0: i32, %arg1: i32, %arg2: memref<1x128x128xf32, #tpu.memory_space<vmem>>, %arg3: memref<128x128xf32, #tpu.memory_space<vmem>>, %arg4: memref<1x4x128x32xbf16, #tpu.memory_space<vmem>>, %arg5: memref<1x4x128x32xbf16, #tpu.memory_space<vmem>>, %arg6: memref<1x4x128x32xbf16, #tpu.memory_space<vmem>>, %arg7: memref<1x4x32x128xbf16, #tpu.memory_space<vmem>>, %arg8: memref<1x128x512xbf16, #tpu.memory_space<vmem>>, %arg9: memref<1x512x128xbf16, #tpu.memory_space<vmem>>, %arg10: memref<1x6x128xf32, #tpu.memory_space<vmem>>, %arg11: memref<1x1x512xf32, #tpu.memory_space<vmem>>, %arg12: memref<2x128xf32, #tpu.memory_space<vmem>>, %arg13: memref<128x128xbf16, #tpu.memory_space<vmem>>, %arg14: memref<1x128xf32, #tpu.memory_space<vmem>>, %arg15: memref<1x128x128xf32, #tpu.memory_space<vmem>>, %arg16: memref<128x128xf32, #tpu.memory_space<vmem>>) attributes {dimension_semantics = [#tpu.dimension_semantics<parallel>, #tpu.dimension_semantics<arbitrary>], iteration_bounds = array<i64: 2, 4>, scalar_prefetch = 0 : i64, scratch_operands = 1 : i64, tpu.core_type = #tpu.core_type<tc>, window_params = [{transform_indices = @transform_0, window_bounds = array<i64: 1, 128, 128>}, {pipeline_mode = #tpu.pipeline_mode<synchronous>, transform_indices = @transform_1, window_bounds = array<i64: 128, 128>}, {transform_indices = @transform_2, window_bounds = array<i64: 1, 4, 128, 32>}, {transform_indices = @transform_3, window_bounds = array<i64: 1, 4, 128, 32>}, {transform_indices = @transform_4, window_bounds = array<i64: 1, 4, 128, 32>}, {transform_indices = @transform_5, window_bounds = array<i64: 1, 4, 32, 128>}, {transform_indices = @transform_6, window_bounds = array<i64: 1, 128, 512>}, {transform_indices = @transform_7, window_bounds = array<i64: 1, 512, 128>}, {transform_indices = @transform_8, window_bounds = array<i64: 1, 6, 128>}, {transform_indices = @transform_9, window_bounds = array<i64: 1, 1, 512>}, {pipeline_mode = #tpu.pipeline_mode<synchronous>, transform_indices = @transform_10, window_bounds = array<i64: 2, 128>}, {pipeline_mode = #tpu.pipeline_mode<synchronous>, transform_indices = @transform_11, window_bounds = array<i64: 128, 128>}, {pipeline_mode = #tpu.pipeline_mode<synchronous>, transform_indices = @transform_12, window_bounds = array<i64: 1, 128>}, {transform_indices = @transform_13, window_bounds = array<i64: 1, 128, 128>}]} {
    %c0_i32 = arith.constant 0 : i32
    %0 = arith.cmpi eq, %arg1, %c0_i32 : i32
    %1 = arith.extui %0 : i1 to i32
    %c0_i32_0 = arith.constant 0 : i32
    %2 = arith.cmpi ne, %1, %c0_i32_0 : i32
    scf.if %2 {
      %c0_136 = arith.constant 0 : index
      %c0_137 = arith.constant 0 : index
      %c0_138 = arith.constant 0 : index
      %217 = vector.load %arg2[%c0_136, %c0_137, %c0_138] : memref<1x128x128xf32, #tpu.memory_space<vmem>>, vector<1x128x128xf32>
      %218 = vector.shape_cast %217 : vector<1x128x128xf32> to vector<128x128xf32>
      %c0_139 = arith.constant 0 : index
      %c0_140 = arith.constant 0 : index
      %219 = vector.load %arg16[%c0_139, %c0_140] : memref<128x128xf32, #tpu.memory_space<vmem>>, vector<128x128xf32>
      tpu.vector_store %arg16[%c0_139, %c0_140], %218 {strides = array<i32>} : memref<128x128xf32, #tpu.memory_space<vmem>>, vector<128x128xf32>,
    } else {
    }
    %c0 = arith.constant 0 : index
    %c0_1 = arith.constant 0 : index
    %c0_2 = arith.constant 0 : index
    %3 = vector.load %arg10[%c0, %c0_1, %c0_2] : memref<1x6x128xf32, #tpu.memory_space<vmem>>, vector<1x6x128xf32>
    %4 = vector.shape_cast %3 : vector<1x6x128xf32> to vector<6x128xf32>
    %c0_3 = arith.constant 0 : index
    %c0_4 = arith.constant 0 : index
    %5 = vector.load %arg16[%c0_3, %c0_4] : memref<128x128xf32, #tpu.memory_space<vmem>>, vector<128x128xf32>
    %6 = vector.extract_strided_slice %4 {offsets = [0, 0], sizes = [1, 128], strides = [1, 1]} : vector<6x128xf32> to vector<1x128xf32>
    %7 = vector.extract_strided_slice %4 {offsets = [1, 0], sizes = [1, 128], strides = [1, 1]} : vector<6x128xf32> to vector<1x128xf32>
    %cst = arith.constant dense<0.000000e+00> : vector<128xf32>
    %8 = vector.multi_reduction <add>, %5, %cst [1] : vector<128x128xf32> to vector<128xf32>
    %9 = vector.shape_cast %8 : vector<128xf32> to vector<128x1xf32>
    %cst_5 = arith.constant 1.280000e+02 : f32
    %10 = vector.broadcast %cst_5 : f32 to vector<128x1xf32>
    %11 = arith.divf %9, %10 : vector<128x1xf32>
    %12 = vector.broadcast %11 : vector<128x1xf32> to vector<128x128xf32>
    %13 = arith.subf %5, %12 : vector<128x128xf32>
    %14 = arith.mulf %13, %13 : vector<128x128xf32>
    %cst_6 = arith.constant dense<0.000000e+00> : vector<128xf32>
    %15 = vector.multi_reduction <add>, %14, %cst_6 [1] : vector<128x128xf32> to vector<128xf32>
    %16 = vector.shape_cast %15 : vector<128xf32> to vector<128x1xf32>
    %cst_7 = arith.constant 1.280000e+02 : f32
    %17 = vector.broadcast %cst_7 : f32 to vector<128x1xf32>
    %18 = arith.divf %16, %17 : vector<128x1xf32>
    %19 = vector.broadcast %11 : vector<128x1xf32> to vector<128x128xf32>
    %20 = arith.subf %5, %19 : vector<128x128xf32>
    %cst_8 = arith.constant 9.99999974E-6 : f32
    %21 = vector.broadcast %cst_8 : f32 to vector<128x1xf32>
    %22 = arith.addf %18, %21 : vector<128x1xf32>
    %23 = math.rsqrt %22 : vector<128x1xf32>
    %24 = vector.broadcast %23 : vector<128x1xf32> to vector<128x128xf32>
    %25 = arith.mulf %20, %24 : vector<128x128xf32>
    %26 = vector.broadcast %6 : vector<1x128xf32> to vector<128x128xf32>
    %27 = arith.mulf %25, %26 : vector<128x128xf32>
    %28 = vector.broadcast %7 : vector<1x128xf32> to vector<128x128xf32>
    %29 = arith.addf %27, %28 : vector<128x128xf32>
    %30 = arith.truncf %29 : vector<128x128xf32> to vector<128x128xbf16>
    %c0_9 = arith.constant 0 : index
    %c0_10 = arith.constant 0 : index
    %c0_11 = arith.constant 0 : index
    %c0_12 = arith.constant 0 : index
    %31 = vector.load %arg4[%c0_9, %c0_10, %c0_11, %c0_12] : memref<1x4x128x32xbf16, #tpu.memory_space<vmem>>, vector<1x1x128x32xbf16>
    %32 = vector.shape_cast %31 : vector<1x1x128x32xbf16> to vector<128x32xbf16>
    %cst_13 = arith.constant dense<0.000000e+00> : vector<128x32xf32>
    %33 = tpu.matmul %30, %32, %cst_13 {dimension_numbers = #tpu.dot_dimension_numbers<[1], [0], [0], [1], [0, 0, 1, 1], [], []>} : vector<128x128xbf16>, vector<128x32xbf16>, vector<128x32xf32> -> vector<128x32xf32>
    %c0_14 = arith.constant 0 : index
    %c0_15 = arith.constant 0 : index
    %c0_16 = arith.constant 0 : index
    %c0_17 = arith.constant 0 : index
    %34 = vector.load %arg5[%c0_14, %c0_15, %c0_16, %c0_17] : memref<1x4x128x32xbf16, #tpu.memory_space<vmem>>, vector<1x1x128x32xbf16>
    %35 = vector.shape_cast %34 : vector<1x1x128x32xbf16> to vector<128x32xbf16>
    %cst_18 = arith.constant dense<0.000000e+00> : vector<128x32xf32>
    %36 = tpu.matmul %30, %35, %cst_18 {dimension_numbers = #tpu.dot_dimension_numbers<[1], [0], [0], [1], [0, 0, 1, 1], [], []>} : vector<128x128xbf16>, vector<128x32xbf16>, vector<128x32xf32> -> vector<128x32xf32>
    %c0_19 = arith.constant 0 : index
    %c0_20 = arith.constant 0 : index
    %c0_21 = arith.constant 0 : index
    %c0_22 = arith.constant 0 : index
    %37 = vector.load %arg6[%c0_19, %c0_20, %c0_21, %c0_22] : memref<1x4x128x32xbf16, #tpu.memory_space<vmem>>, vector<1x1x128x32xbf16>
    %38 = vector.shape_cast %37 : vector<1x1x128x32xbf16> to vector<128x32xbf16>
    %cst_23 = arith.constant dense<0.000000e+00> : vector<128x32xf32>
    %39 = tpu.matmul %30, %38, %cst_23 {dimension_numbers = #tpu.dot_dimension_numbers<[1], [0], [0], [1], [0, 0, 1, 1], [], []>} : vector<128x128xbf16>, vector<128x32xbf16>, vector<128x32xf32> -> vector<128x32xf32>
    %40 = arith.truncf %33 : vector<128x32xf32> to vector<128x32xbf16>
    %41 = arith.truncf %36 : vector<128x32xf32> to vector<128x32xbf16>
    %cst_24 = arith.constant dense<0.000000e+00> : vector<128x128xf32>
    %42 = tpu.matmul %40, %41, %cst_24 {dimension_numbers = #tpu.dot_dimension_numbers<[1], [1], [0], [0], [0, 0, 1, 0], [], []>} : vector<128x32xbf16>, vector<128x32xbf16>, vector<128x128xf32> -> vector<128x128xf32>
    %cst_25 = arith.constant 0.176776692 : f32
    %43 = vector.broadcast %cst_25 : f32 to vector<128x128xf32>
    %44 = arith.mulf %42, %43 : vector<128x128xf32>
    %c0_26 = arith.constant 0 : index
    %c0_27 = arith.constant 0 : index
    %45 = vector.load %arg3[%c0_26, %c0_27] : memref<128x128xf32, #tpu.memory_space<vmem>>, vector<128x128xf32>
    %46 = arith.addf %44, %45 : vector<128x128xf32>
    %cst_28 = arith.constant dense<0xFF800000> : vector<128xf32>
    %47 = vector.multi_reduction <maximumf>, %46, %cst_28 [1] : vector<128x128xf32> to vector<128xf32>
    %48 = vector.shape_cast %47 : vector<128xf32> to vector<128x1xf32>
    %49 = vector.broadcast %48 : vector<128x1xf32> to vector<128x128xf32>
    %50 = arith.subf %46, %49 : vector<128x128xf32>
    %51 = math.exp %50 : vector<128x128xf32>
    %cst_29 = arith.constant dense<0.000000e+00> : vector<128xf32>
    %52 = vector.multi_reduction <add>, %51, %cst_29 [1] : vector<128x128xf32> to vector<128xf32>
    %53 = vector.shape_cast %52 : vector<128xf32> to vector<128x1xf32>
    %54 = tpu.reciprocal %53 {approx = true} : vector<128x1xf32> -> vector<128x1xf32>
    %55 = vector.broadcast %54 : vector<128x1xf32> to vector<128x128xf32>
    %56 = arith.mulf %51, %55 : vector<128x128xf32>
    %57 = arith.truncf %56 : vector<128x128xf32> to vector<128x128xbf16>
    %58 = arith.truncf %39 : vector<128x32xf32> to vector<128x32xbf16>
    %cst_30 = arith.constant dense<0.000000e+00> : vector<128x32xf32>
    %59 = tpu.matmul %57, %58, %cst_30 {dimension_numbers = #tpu.dot_dimension_numbers<[1], [0], [0], [1], [0, 0, 1, 1], [], []>} : vector<128x128xbf16>, vector<128x32xbf16>, vector<128x32xf32> -> vector<128x32xf32>
    %60 = arith.truncf %59 : vector<128x32xf32> to vector<128x32xbf16>
    %c0_31 = arith.constant 0 : index
    %c0_32 = arith.constant 0 : index
    %c0_33 = arith.constant 0 : index
    %c0_34 = arith.constant 0 : index
    %61 = vector.load %arg7[%c0_31, %c0_32, %c0_33, %c0_34] : memref<1x4x32x128xbf16, #tpu.memory_space<vmem>>, vector<1x1x32x128xbf16>
    %62 = vector.shape_cast %61 : vector<1x1x32x128xbf16> to vector<32x128xbf16>
    %cst_35 = arith.constant dense<0.000000e+00> : vector<128x128xf32>
    %63 = tpu.matmul %60, %62, %cst_35 {dimension_numbers = #tpu.dot_dimension_numbers<[1], [0], [0], [1], [0, 0, 1, 1], [], []>} : vector<128x32xbf16>, vector<32x128xbf16>, vector<128x128xf32> -> vector<128x128xf32>
    %c0_36 = arith.constant 0 : index
    %c1 = arith.constant 1 : index
    %c0_37 = arith.constant 0 : index
    %c0_38 = arith.constant 0 : index
    %64 = vector.load %arg4[%c0_36, %c1, %c0_37, %c0_38] : memref<1x4x128x32xbf16, #tpu.memory_space<vmem>>, vector<1x1x128x32xbf16>
    %65 = vector.shape_cast %64 : vector<1x1x128x32xbf16> to vector<128x32xbf16>
    %cst_39 = arith.constant dense<0.000000e+00> : vector<128x32xf32>
    %66 = tpu.matmul %30, %65, %cst_39 {dimension_numbers = #tpu.dot_dimension_numbers<[1], [0], [0], [1], [0, 0, 1, 1], [], []>} : vector<128x128xbf16>, vector<128x32xbf16>, vector<128x32xf32> -> vector<128x32xf32>
    %c0_40 = arith.constant 0 : index
    %c1_41 = arith.constant 1 : index
    %c0_42 = arith.constant 0 : index
    %c0_43 = arith.constant 0 : index
    %67 = vector.load %arg5[%c0_40, %c1_41, %c0_42, %c0_43] : memref<1x4x128x32xbf16, #tpu.memory_space<vmem>>, vector<1x1x128x32xbf16>
    %68 = vector.shape_cast %67 : vector<1x1x128x32xbf16> to vector<128x32xbf16>
    %cst_44 = arith.constant dense<0.000000e+00> : vector<128x32xf32>
    %69 = tpu.matmul %30, %68, %cst_44 {dimension_numbers = #tpu.dot_dimension_numbers<[1], [0], [0], [1], [0, 0, 1, 1], [], []>} : vector<128x128xbf16>, vector<128x32xbf16>, vector<128x32xf32> -> vector<128x32xf32>
    %c0_45 = arith.constant 0 : index
    %c1_46 = arith.constant 1 : index
    %c0_47 = arith.constant 0 : index
    %c0_48 = arith.constant 0 : index
    %70 = vector.load %arg6[%c0_45, %c1_46, %c0_47, %c0_48] : memref<1x4x128x32xbf16, #tpu.memory_space<vmem>>, vector<1x1x128x32xbf16>
    %71 = vector.shape_cast %70 : vector<1x1x128x32xbf16> to vector<128x32xbf16>
    %cst_49 = arith.constant dense<0.000000e+00> : vector<128x32xf32>
    %72 = tpu.matmul %30, %71, %cst_49 {dimension_numbers = #tpu.dot_dimension_numbers<[1], [0], [0], [1], [0, 0, 1, 1], [], []>} : vector<128x128xbf16>, vector<128x32xbf16>, vector<128x32xf32> -> vector<128x32xf32>
    %73 = arith.truncf %66 : vector<128x32xf32> to vector<128x32xbf16>
    %74 = arith.truncf %69 : vector<128x32xf32> to vector<128x32xbf16>
    %cst_50 = arith.constant dense<0.000000e+00> : vector<128x128xf32>
    %75 = tpu.matmul %73, %74, %cst_50 {dimension_numbers = #tpu.dot_dimension_numbers<[1], [1], [0], [0], [0, 0, 1, 0], [], []>} : vector<128x32xbf16>, vector<128x32xbf16>, vector<128x128xf32> -> vector<128x128xf32>
    %cst_51 = arith.constant 0.176776692 : f32
    %76 = vector.broadcast %cst_51 : f32 to vector<128x128xf32>
    %77 = arith.mulf %75, %76 : vector<128x128xf32>
    %c0_52 = arith.constant 0 : index
    %c0_53 = arith.constant 0 : index
    %78 = vector.load %arg3[%c0_52, %c0_53] : memref<128x128xf32, #tpu.memory_space<vmem>>, vector<128x128xf32>
    %79 = arith.addf %77, %78 : vector<128x128xf32>
    %cst_54 = arith.constant dense<0xFF800000> : vector<128xf32>
    %80 = vector.multi_reduction <maximumf>, %79, %cst_54 [1] : vector<128x128xf32> to vector<128xf32>
    %81 = vector.shape_cast %80 : vector<128xf32> to vector<128x1xf32>
    %82 = vector.broadcast %81 : vector<128x1xf32> to vector<128x128xf32>
    %83 = arith.subf %79, %82 : vector<128x128xf32>
    %84 = math.exp %83 : vector<128x128xf32>
    %cst_55 = arith.constant dense<0.000000e+00> : vector<128xf32>
    %85 = vector.multi_reduction <add>, %84, %cst_55 [1] : vector<128x128xf32> to vector<128xf32>
    %86 = vector.shape_cast %85 : vector<128xf32> to vector<128x1xf32>
    %87 = tpu.reciprocal %86 {approx = true} : vector<128x1xf32> -> vector<128x1xf32>
    %88 = vector.broadcast %87 : vector<128x1xf32> to vector<128x128xf32>
    %89 = arith.mulf %84, %88 : vector<128x128xf32>
    %90 = arith.truncf %89 : vector<128x128xf32> to vector<128x128xbf16>
    %91 = arith.truncf %72 : vector<128x32xf32> to vector<128x32xbf16>
    %cst_56 = arith.constant dense<0.000000e+00> : vector<128x32xf32>
    %92 = tpu.matmul %90, %91, %cst_56 {dimension_numbers = #tpu.dot_dimension_numbers<[1], [0], [0], [1], [0, 0, 1, 1], [], []>} : vector<128x128xbf16>, vector<128x32xbf16>, vector<128x32xf32> -> vector<128x32xf32>
    %93 = arith.truncf %92 : vector<128x32xf32> to vector<128x32xbf16>
    %c0_57 = arith.constant 0 : index
    %c1_58 = arith.constant 1 : index
    %c0_59 = arith.constant 0 : index
    %c0_60 = arith.constant 0 : index
    %94 = vector.load %arg7[%c0_57, %c1_58, %c0_59, %c0_60] : memref<1x4x32x128xbf16, #tpu.memory_space<vmem>>, vector<1x1x32x128xbf16>
    %95 = vector.shape_cast %94 : vector<1x1x32x128xbf16> to vector<32x128xbf16>
    %cst_61 = arith.constant dense<0.000000e+00> : vector<128x128xf32>
    %96 = tpu.matmul %93, %95, %cst_61 {dimension_numbers = #tpu.dot_dimension_numbers<[1], [0], [0], [1], [0, 0, 1, 1], [], []>} : vector<128x32xbf16>, vector<32x128xbf16>, vector<128x128xf32> -> vector<128x128xf32>
    %97 = arith.addf %63, %96 : vector<128x128xf32>
    %c0_62 = arith.constant 0 : index
    %c2 = arith.constant 2 : index
    %c0_63 = arith.constant 0 : index
    %c0_64 = arith.constant 0 : index
    %98 = vector.load %arg4[%c0_62, %c2, %c0_63, %c0_64] : memref<1x4x128x32xbf16, #tpu.memory_space<vmem>>, vector<1x1x128x32xbf16>
    %99 = vector.shape_cast %98 : vector<1x1x128x32xbf16> to vector<128x32xbf16>
    %cst_65 = arith.constant dense<0.000000e+00> : vector<128x32xf32>
    %100 = tpu.matmul %30, %99, %cst_65 {dimension_numbers = #tpu.dot_dimension_numbers<[1], [0], [0], [1], [0, 0, 1, 1], [], []>} : vector<128x128xbf16>, vector<128x32xbf16>, vector<128x32xf32> -> vector<128x32xf32>
    %c0_66 = arith.constant 0 : index
    %c2_67 = arith.constant 2 : index
    %c0_68 = arith.constant 0 : index
    %c0_69 = arith.constant 0 : index
    %101 = vector.load %arg5[%c0_66, %c2_67, %c0_68, %c0_69] : memref<1x4x128x32xbf16, #tpu.memory_space<vmem>>, vector<1x1x128x32xbf16>
    %102 = vector.shape_cast %101 : vector<1x1x128x32xbf16> to vector<128x32xbf16>
    %cst_70 = arith.constant dense<0.000000e+00> : vector<128x32xf32>
    %103 = tpu.matmul %30, %102, %cst_70 {dimension_numbers = #tpu.dot_dimension_numbers<[1], [0], [0], [1], [0, 0, 1, 1], [], []>} : vector<128x128xbf16>, vector<128x32xbf16>, vector<128x32xf32> -> vector<128x32xf32>
    %c0_71 = arith.constant 0 : index
    %c2_72 = arith.constant 2 : index
    %c0_73 = arith.constant 0 : index
    %c0_74 = arith.constant 0 : index
    %104 = vector.load %arg6[%c0_71, %c2_72, %c0_73, %c0_74] : memref<1x4x128x32xbf16, #tpu.memory_space<vmem>>, vector<1x1x128x32xbf16>
    %105 = vector.shape_cast %104 : vector<1x1x128x32xbf16> to vector<128x32xbf16>
    %cst_75 = arith.constant dense<0.000000e+00> : vector<128x32xf32>
    %106 = tpu.matmul %30, %105, %cst_75 {dimension_numbers = #tpu.dot_dimension_numbers<[1], [0], [0], [1], [0, 0, 1, 1], [], []>} : vector<128x128xbf16>, vector<128x32xbf16>, vector<128x32xf32> -> vector<128x32xf32>
    %107 = arith.truncf %100 : vector<128x32xf32> to vector<128x32xbf16>
    %108 = arith.truncf %103 : vector<128x32xf32> to vector<128x32xbf16>
    %cst_76 = arith.constant dense<0.000000e+00> : vector<128x128xf32>
    %109 = tpu.matmul %107, %108, %cst_76 {dimension_numbers = #tpu.dot_dimension_numbers<[1], [1], [0], [0], [0, 0, 1, 0], [], []>} : vector<128x32xbf16>, vector<128x32xbf16>, vector<128x128xf32> -> vector<128x128xf32>
    %cst_77 = arith.constant 0.176776692 : f32
    %110 = vector.broadcast %cst_77 : f32 to vector<128x128xf32>
    %111 = arith.mulf %109, %110 : vector<128x128xf32>
    %c0_78 = arith.constant 0 : index
    %c0_79 = arith.constant 0 : index
    %112 = vector.load %arg3[%c0_78, %c0_79] : memref<128x128xf32, #tpu.memory_space<vmem>>, vector<128x128xf32>
    %113 = arith.addf %111, %112 : vector<128x128xf32>
    %cst_80 = arith.constant dense<0xFF800000> : vector<128xf32>
    %114 = vector.multi_reduction <maximumf>, %113, %cst_80 [1] : vector<128x128xf32> to vector<128xf32>
    %115 = vector.shape_cast %114 : vector<128xf32> to vector<128x1xf32>
    %116 = vector.broadcast %115 : vector<128x1xf32> to vector<128x128xf32>
    %117 = arith.subf %113, %116 : vector<128x128xf32>
    %118 = math.exp %117 : vector<128x128xf32>
    %cst_81 = arith.constant dense<0.000000e+00> : vector<128xf32>
    %119 = vector.multi_reduction <add>, %118, %cst_81 [1] : vector<128x128xf32> to vector<128xf32>
    %120 = vector.shape_cast %119 : vector<128xf32> to vector<128x1xf32>
    %121 = tpu.reciprocal %120 {approx = true} : vector<128x1xf32> -> vector<128x1xf32>
    %122 = vector.broadcast %121 : vector<128x1xf32> to vector<128x128xf32>
    %123 = arith.mulf %118, %122 : vector<128x128xf32>
    %124 = arith.truncf %123 : vector<128x128xf32> to vector<128x128xbf16>
    %125 = arith.truncf %106 : vector<128x32xf32> to vector<128x32xbf16>
    %cst_82 = arith.constant dense<0.000000e+00> : vector<128x32xf32>
    %126 = tpu.matmul %124, %125, %cst_82 {dimension_numbers = #tpu.dot_dimension_numbers<[1], [0], [0], [1], [0, 0, 1, 1], [], []>} : vector<128x128xbf16>, vector<128x32xbf16>, vector<128x32xf32> -> vector<128x32xf32>
    %127 = arith.truncf %126 : vector<128x32xf32> to vector<128x32xbf16>
    %c0_83 = arith.constant 0 : index
    %c2_84 = arith.constant 2 : index
    %c0_85 = arith.constant 0 : index
    %c0_86 = arith.constant 0 : index
    %128 = vector.load %arg7[%c0_83, %c2_84, %c0_85, %c0_86] : memref<1x4x32x128xbf16, #tpu.memory_space<vmem>>, vector<1x1x32x128xbf16>
    %129 = vector.shape_cast %128 : vector<1x1x32x128xbf16> to vector<32x128xbf16>
    %cst_87 = arith.constant dense<0.000000e+00> : vector<128x128xf32>
    %130 = tpu.matmul %127, %129, %cst_87 {dimension_numbers = #tpu.dot_dimension_numbers<[1], [0], [0], [1], [0, 0, 1, 1], [], []>} : vector<128x32xbf16>, vector<32x128xbf16>, vector<128x128xf32> -> vector<128x128xf32>
    %131 = arith.addf %97, %130 : vector<128x128xf32>
    %c0_88 = arith.constant 0 : index
    %c3 = arith.constant 3 : index
    %c0_89 = arith.constant 0 : index
    %c0_90 = arith.constant 0 : index
    %132 = vector.load %arg4[%c0_88, %c3, %c0_89, %c0_90] : memref<1x4x128x32xbf16, #tpu.memory_space<vmem>>, vector<1x1x128x32xbf16>
    %133 = vector.shape_cast %132 : vector<1x1x128x32xbf16> to vector<128x32xbf16>
    %cst_91 = arith.constant dense<0.000000e+00> : vector<128x32xf32>
    %134 = tpu.matmul %30, %133, %cst_91 {dimension_numbers = #tpu.dot_dimension_numbers<[1], [0], [0], [1], [0, 0, 1, 1], [], []>} : vector<128x128xbf16>, vector<128x32xbf16>, vector<128x32xf32> -> vector<128x32xf32>
    %c0_92 = arith.constant 0 : index
    %c3_93 = arith.constant 3 : index
    %c0_94 = arith.constant 0 : index
    %c0_95 = arith.constant 0 : index
    %135 = vector.load %arg5[%c0_92, %c3_93, %c0_94, %c0_95] : memref<1x4x128x32xbf16, #tpu.memory_space<vmem>>, vector<1x1x128x32xbf16>
    %136 = vector.shape_cast %135 : vector<1x1x128x32xbf16> to vector<128x32xbf16>
    %cst_96 = arith.constant dense<0.000000e+00> : vector<128x32xf32>
    %137 = tpu.matmul %30, %136, %cst_96 {dimension_numbers = #tpu.dot_dimension_numbers<[1], [0], [0], [1], [0, 0, 1, 1], [], []>} : vector<128x128xbf16>, vector<128x32xbf16>, vector<128x32xf32> -> vector<128x32xf32>
    %c0_97 = arith.constant 0 : index
    %c3_98 = arith.constant 3 : index
    %c0_99 = arith.constant 0 : index
    %c0_100 = arith.constant 0 : index
    %138 = vector.load %arg6[%c0_97, %c3_98, %c0_99, %c0_100] : memref<1x4x128x32xbf16, #tpu.memory_space<vmem>>, vector<1x1x128x32xbf16>
    %139 = vector.shape_cast %138 : vector<1x1x128x32xbf16> to vector<128x32xbf16>
    %cst_101 = arith.constant dense<0.000000e+00> : vector<128x32xf32>
    %140 = tpu.matmul %30, %139, %cst_101 {dimension_numbers = #tpu.dot_dimension_numbers<[1], [0], [0], [1], [0, 0, 1, 1], [], []>} : vector<128x128xbf16>, vector<128x32xbf16>, vector<128x32xf32> -> vector<128x32xf32>
    %141 = arith.truncf %134 : vector<128x32xf32> to vector<128x32xbf16>
    %142 = arith.truncf %137 : vector<128x32xf32> to vector<128x32xbf16>
    %cst_102 = arith.constant dense<0.000000e+00> : vector<128x128xf32>
    %143 = tpu.matmul %141, %142, %cst_102 {dimension_numbers = #tpu.dot_dimension_numbers<[1], [1], [0], [0], [0, 0, 1, 0], [], []>} : vector<128x32xbf16>, vector<128x32xbf16>, vector<128x128xf32> -> vector<128x128xf32>
    %cst_103 = arith.constant 0.176776692 : f32
    %144 = vector.broadcast %cst_103 : f32 to vector<128x128xf32>
    %145 = arith.mulf %143, %144 : vector<128x128xf32>
    %c0_104 = arith.constant 0 : index
    %c0_105 = arith.constant 0 : index
    %146 = vector.load %arg3[%c0_104, %c0_105] : memref<128x128xf32, #tpu.memory_space<vmem>>, vector<128x128xf32>
    %147 = arith.addf %145, %146 : vector<128x128xf32>
    %cst_106 = arith.constant dense<0xFF800000> : vector<128xf32>
    %148 = vector.multi_reduction <maximumf>, %147, %cst_106 [1] : vector<128x128xf32> to vector<128xf32>
    %149 = vector.shape_cast %148 : vector<128xf32> to vector<128x1xf32>
    %150 = vector.broadcast %149 : vector<128x1xf32> to vector<128x128xf32>
    %151 = arith.subf %147, %150 : vector<128x128xf32>
    %152 = math.exp %151 : vector<128x128xf32>
    %cst_107 = arith.constant dense<0.000000e+00> : vector<128xf32>
    %153 = vector.multi_reduction <add>, %152, %cst_107 [1] : vector<128x128xf32> to vector<128xf32>
    %154 = vector.shape_cast %153 : vector<128xf32> to vector<128x1xf32>
    %155 = tpu.reciprocal %154 {approx = true} : vector<128x1xf32> -> vector<128x1xf32>
    %156 = vector.broadcast %155 : vector<128x1xf32> to vector<128x128xf32>
    %157 = arith.mulf %152, %156 : vector<128x128xf32>
    %158 = arith.truncf %157 : vector<128x128xf32> to vector<128x128xbf16>
    %159 = arith.truncf %140 : vector<128x32xf32> to vector<128x32xbf16>
    %cst_108 = arith.constant dense<0.000000e+00> : vector<128x32xf32>
    %160 = tpu.matmul %158, %159, %cst_108 {dimension_numbers = #tpu.dot_dimension_numbers<[1], [0], [0], [1], [0, 0, 1, 1], [], []>} : vector<128x128xbf16>, vector<128x32xbf16>, vector<128x32xf32> -> vector<128x32xf32>
    %161 = arith.truncf %160 : vector<128x32xf32> to vector<128x32xbf16>
    %c0_109 = arith.constant 0 : index
    %c3_110 = arith.constant 3 : index
    %c0_111 = arith.constant 0 : index
    %c0_112 = arith.constant 0 : index
    %162 = vector.load %arg7[%c0_109, %c3_110, %c0_111, %c0_112] : memref<1x4x32x128xbf16, #tpu.memory_space<vmem>>, vector<1x1x32x128xbf16>
    %163 = vector.shape_cast %162 : vector<1x1x32x128xbf16> to vector<32x128xbf16>
    %cst_113 = arith.constant dense<0.000000e+00> : vector<128x128xf32>
    %164 = tpu.matmul %161, %163, %cst_113 {dimension_numbers = #tpu.dot_dimension_numbers<[1], [0], [0], [1], [0, 0, 1, 1], [], []>} : vector<128x32xbf16>, vector<32x128xbf16>, vector<128x128xf32> -> vector<128x128xf32>
    %165 = arith.addf %131, %164 : vector<128x128xf32>
    %c0_114 = arith.constant 0 : index
    %c0_115 = arith.constant 0 : index
    %166 = vector.load %arg16[%c0_114, %c0_115] : memref<128x128xf32, #tpu.memory_space<vmem>>, vector<128x128xf32>
    %167 = arith.addf %166, %165 : vector<128x128xf32>
    %168 = vector.extract_strided_slice %4 {offsets = [2, 0], sizes = [1, 128], strides = [1, 1]} : vector<6x128xf32> to vector<1x128xf32>
    %169 = vector.broadcast %168 : vector<1x128xf32> to vector<128x128xf32>
    %170 = arith.addf %167, %169 : vector<128x128xf32>
    %171 = vector.extract_strided_slice %4 {offsets = [3, 0], sizes = [1, 128], strides = [1, 1]} : vector<6x128xf32> to vector<1x128xf32>
    %172 = vector.extract_strided_slice %4 {offsets = [4, 0], sizes = [1, 128], strides = [1, 1]} : vector<6x128xf32> to vector<1x128xf32>
    %cst_116 = arith.constant dense<0.000000e+00> : vector<128xf32>
    %173 = vector.multi_reduction <add>, %170, %cst_116 [1] : vector<128x128xf32> to vector<128xf32>
    %174 = vector.shape_cast %173 : vector<128xf32> to vector<128x1xf32>
    %cst_117 = arith.constant 1.280000e+02 : f32
    %175 = vector.broadcast %cst_117 : f32 to vector<128x1xf32>
    %176 = arith.divf %174, %175 : vector<128x1xf32>
    %177 = vector.broadcast %176 : vector<128x1xf32> to vector<128x128xf32>
    %178 = arith.subf %170, %177 : vector<128x128xf32>
    %179 = arith.mulf %178, %178 : vector<128x128xf32>
    %cst_118 = arith.constant dense<0.000000e+00> : vector<128xf32>
    %180 = vector.multi_reduction <add>, %179, %cst_118 [1] : vector<128x128xf32> to vector<128xf32>
    %181 = vector.shape_cast %180 : vector<128xf32> to vector<128x1xf32>
    %cst_119 = arith.constant 1.280000e+02 : f32
    %182 = vector.broadcast %cst_119 : f32 to vector<128x1xf32>
    %183 = arith.divf %181, %182 : vector<128x1xf32>
    %184 = vector.broadcast %176 : vector<128x1xf32> to vector<128x128xf32>
    %185 = arith.subf %170, %184 : vector<128x128xf32>
    %cst_120 = arith.constant 9.99999974E-6 : f32
    %186 = vector.broadcast %cst_120 : f32 to vector<128x1xf32>
    %187 = arith.addf %183, %186 : vector<128x1xf32>
    %188 = math.rsqrt %187 : vector<128x1xf32>
    %189 = vector.broadcast %188 : vector<128x1xf32> to vector<128x128xf32>
    %190 = arith.mulf %185, %189 : vector<128x128xf32>
    %191 = vector.broadcast %171 : vector<1x128xf32> to vector<128x128xf32>
    %192 = arith.mulf %190, %191 : vector<128x128xf32>
    %193 = vector.broadcast %172 : vector<1x128xf32> to vector<128x128xf32>
    %194 = arith.addf %192, %193 : vector<128x128xf32>
    %195 = arith.truncf %194 : vector<128x128xf32> to vector<128x128xbf16>
    %c0_121 = arith.constant 0 : index
    %c0_122 = arith.constant 0 : index
    %c0_123 = arith.constant 0 : index
    %196 = vector.load %arg8[%c0_121, %c0_122, %c0_123] : memref<1x128x512xbf16, #tpu.memory_space<vmem>>, vector<1x128x512xbf16>
    %197 = vector.shape_cast %196 : vector<1x128x512xbf16> to vector<128x512xbf16>
    %cst_124 = arith.constant dense<0.000000e+00> : vector<128x512xf32>
    %198 = tpu.matmul %195, %197, %cst_124 {dimension_numbers = #tpu.dot_dimension_numbers<[1], [0], [0], [1], [0, 0, 1, 1], [], []>} : vector<128x128xbf16>, vector<128x512xbf16>, vector<128x512xf32> -> vector<128x512xf32>
    %c0_125 = arith.constant 0 : index
    %c0_126 = arith.constant 0 : index
    %c0_127 = arith.constant 0 : index
    %199 = vector.load %arg11[%c0_125, %c0_126, %c0_127] : memref<1x1x512xf32, #tpu.memory_space<vmem>>, vector<1x1x512xf32>
    %200 = vector.shape_cast %199 : vector<1x1x512xf32> to vector<1x512xf32>
    %201 = vector.broadcast %200 : vector<1x512xf32> to vector<128x512xf32>
    %202 = arith.addf %198, %201 : vector<128x512xf32>
    %cst_128 = arith.constant 0.000000e+00 : f32
    %203 = vector.broadcast %cst_128 : f32 to vector<128x512xf32>
    %204 = arith.maximumf %202, %203 : vector<128x512xf32>
    %205 = arith.truncf %204 : vector<128x512xf32> to vector<128x512xbf16>
    %c0_129 = arith.constant 0 : index
    %c0_130 = arith.constant 0 : index
    %c0_131 = arith.constant 0 : index
    %206 = vector.load %arg9[%c0_129, %c0_130, %c0_131] : memref<1x512x128xbf16, #tpu.memory_space<vmem>>, vector<1x512x128xbf16>
    %207 = vector.shape_cast %206 : vector<1x512x128xbf16> to vector<512x128xbf16>
    %cst_132 = arith.constant dense<0.000000e+00> : vector<128x128xf32>
    %208 = tpu.matmul %205, %207, %cst_132 {dimension_numbers = #tpu.dot_dimension_numbers<[1], [0], [0], [1], [0, 0, 1, 1], [], []>} : vector<128x512xbf16>, vector<512x128xbf16>, vector<128x128xf32> -> vector<128x128xf32>
    %209 = arith.addf %170, %208 : vector<128x128xf32>
    %210 = vector.extract_strided_slice %4 {offsets = [5, 0], sizes = [1, 128], strides = [1, 1]} : vector<6x128xf32> to vector<1x128xf32>
    %211 = vector.broadcast %210 : vector<1x128xf32> to vector<128x128xf32>
    %212 = arith.addf %209, %211 : vector<128x128xf32>
    %c0_133 = arith.constant 0 : index
    %c0_134 = arith.constant 0 : index
    %213 = vector.load %arg16[%c0_133, %c0_134] : memref<128x128xf32, #tpu.memory_space<vmem>>, vector<128x128xf32>
    tpu.vector_store %arg16[%c0_133, %c0_134], %212 {strides = array<i32>} : memref<128x128xf32, #tpu.memory_space<vmem>>, vector<128x128xf32>,
    %c3_i32 = arith.constant 3 : i32
    %214 = arith.cmpi eq, %arg1, %c3_i32 : i32
    %215 = arith.extui %214 : i1 to i32
    %c0_i32_135 = arith.constant 0 : i32
    %216 = arith.cmpi ne, %215, %c0_i32_135 : i32
    scf.if %216 {
      %c0_136 = arith.constant 0 : index
      %c0_137 = arith.constant 0 : index
      %217 = vector.load %arg12[%c0_136, %c0_137] : memref<2x128xf32, #tpu.memory_space<vmem>>, vector<2x128xf32>
      %218 = vector.extract_strided_slice %217 {offsets = [0, 0], sizes = [1, 128], strides = [1, 1]} : vector<2x128xf32> to vector<1x128xf32>
      %219 = vector.extract_strided_slice %217 {offsets = [1, 0], sizes = [1, 128], strides = [1, 1]} : vector<2x128xf32> to vector<1x128xf32>
      %cst_138 = arith.constant dense<0.000000e+00> : vector<128xf32>
      %220 = vector.multi_reduction <add>, %212, %cst_138 [1] : vector<128x128xf32> to vector<128xf32>
      %221 = vector.shape_cast %220 : vector<128xf32> to vector<128x1xf32>
      %cst_139 = arith.constant 1.280000e+02 : f32
      %222 = vector.broadcast %cst_139 : f32 to vector<128x1xf32>
      %223 = arith.divf %221, %222 : vector<128x1xf32>
      %224 = vector.broadcast %223 : vector<128x1xf32> to vector<128x128xf32>
      %225 = arith.subf %212, %224 : vector<128x128xf32>
      %226 = arith.mulf %225, %225 : vector<128x128xf32>
      %cst_140 = arith.constant dense<0.000000e+00> : vector<128xf32>
      %227 = vector.multi_reduction <add>, %226, %cst_140 [1] : vector<128x128xf32> to vector<128xf32>
      %228 = vector.shape_cast %227 : vector<128xf32> to vector<128x1xf32>
      %cst_141 = arith.constant 1.280000e+02 : f32
      %229 = vector.broadcast %cst_141 : f32 to vector<128x1xf32>
      %230 = arith.divf %228, %229 : vector<128x1xf32>
      %231 = vector.broadcast %223 : vector<128x1xf32> to vector<128x128xf32>
      %232 = arith.subf %212, %231 : vector<128x128xf32>
      %cst_142 = arith.constant 9.99999974E-6 : f32
      %233 = vector.broadcast %cst_142 : f32 to vector<128x1xf32>
      %234 = arith.addf %230, %233 : vector<128x1xf32>
      %235 = math.rsqrt %234 : vector<128x1xf32>
      %236 = vector.broadcast %235 : vector<128x1xf32> to vector<128x128xf32>
      %237 = arith.mulf %232, %236 : vector<128x128xf32>
      %238 = vector.broadcast %218 : vector<1x128xf32> to vector<128x128xf32>
      %239 = arith.mulf %237, %238 : vector<128x128xf32>
      %240 = vector.broadcast %219 : vector<1x128xf32> to vector<128x128xf32>
      %241 = arith.addf %239, %240 : vector<128x128xf32>
      %242 = arith.truncf %241 : vector<128x128xf32> to vector<128x128xbf16>
      %c0_143 = arith.constant 0 : index
      %c0_144 = arith.constant 0 : index
      %243 = vector.load %arg13[%c0_143, %c0_144] : memref<128x128xbf16, #tpu.memory_space<vmem>>, vector<128x128xbf16>
      %cst_145 = arith.constant dense<0.000000e+00> : vector<128x128xf32>
      %244 = tpu.matmul %242, %243, %cst_145 {dimension_numbers = #tpu.dot_dimension_numbers<[1], [0], [0], [1], [0, 0, 1, 1], [], []>} : vector<128x128xbf16>, vector<128x128xbf16>, vector<128x128xf32> -> vector<128x128xf32>
      %c0_146 = arith.constant 0 : index
      %c0_147 = arith.constant 0 : index
      %245 = vector.load %arg14[%c0_146, %c0_147] : memref<1x128xf32, #tpu.memory_space<vmem>>, vector<1x128xf32>
      %246 = vector.broadcast %245 : vector<1x128xf32> to vector<128x128xf32>
      %247 = arith.addf %244, %246 : vector<128x128xf32>
      %c0_148 = arith.constant 0 : index
      %c0_149 = arith.constant 0 : index
      %c0_150 = arith.constant 0 : index
      %248 = vector.load %arg15[%c0_148, %c0_149, %c0_150] : memref<1x128x128xf32, #tpu.memory_space<vmem>>, vector<1x128x128xf32>
      %249 = vector.shape_cast %248 : vector<1x128x128xf32> to vector<128x128xf32>
      %250 = vector.shape_cast %247 : vector<128x128xf32> to vector<1x128x128xf32>
      tpu.vector_store %arg15[%c0_148, %c0_149, %c0_150], %250 {strides = array<i32>} : memref<1x128x128xf32, #tpu.memory_space<vmem>>, vector<1x128x128xf32>,
    } else {
    }
    return
  }
  func.func @transform_0(%arg0: i32, %arg1: i32) -> (i32, i32, i32) {
    %c0_i32 = arith.constant 0 : i32
    %c0_i32_0 = arith.constant 0 : i32
    %c0_i32_1 = arith.constant 0 : i32
    return %arg0, %c0_i32, %c0_i32_0 : i32, i32, i32
  }
  func.func @transform_1(%arg0: i32, %arg1: i32) -> (i32, i32) {
    %c0_i32 = arith.constant 0 : i32
    %c0_i32_0 = arith.constant 0 : i32
    %c0_i32_1 = arith.constant 0 : i32
    return %c0_i32, %c0_i32_0 : i32, i32
  }
  func.func @transform_2(%arg0: i32, %arg1: i32) -> (i32, i32, i32, i32) {
    %c0_i32 = arith.constant 0 : i32
    %c0_i32_0 = arith.constant 0 : i32
    %c0_i32_1 = arith.constant 0 : i32
    %c0_i32_2 = arith.constant 0 : i32
    return %arg1, %c0_i32, %c0_i32_0, %c0_i32_1 : i32, i32, i32, i32
  }
  func.func @transform_3(%arg0: i32, %arg1: i32) -> (i32, i32, i32, i32) {
    %c0_i32 = arith.constant 0 : i32
    %c0_i32_0 = arith.constant 0 : i32
    %c0_i32_1 = arith.constant 0 : i32
    %c0_i32_2 = arith.constant 0 : i32
    return %arg1, %c0_i32, %c0_i32_0, %c0_i32_1 : i32, i32, i32, i32
  }
  func.func @transform_4(%arg0: i32, %arg1: i32) -> (i32, i32, i32, i32) {
    %c0_i32 = arith.constant 0 : i32
    %c0_i32_0 = arith.constant 0 : i32
    %c0_i32_1 = arith.constant 0 : i32
    %c0_i32_2 = arith.constant 0 : i32
    return %arg1, %c0_i32, %c0_i32_0, %c0_i32_1 : i32, i32, i32, i32
  }
  func.func @transform_5(%arg0: i32, %arg1: i32) -> (i32, i32, i32, i32) {
    %c0_i32 = arith.constant 0 : i32
    %c0_i32_0 = arith.constant 0 : i32
    %c0_i32_1 = arith.constant 0 : i32
    %c0_i32_2 = arith.constant 0 : i32
    return %arg1, %c0_i32, %c0_i32_0, %c0_i32_1 : i32, i32, i32, i32
  }
  func.func @transform_6(%arg0: i32, %arg1: i32) -> (i32, i32, i32) {
    %c0_i32 = arith.constant 0 : i32
    %c0_i32_0 = arith.constant 0 : i32
    %c0_i32_1 = arith.constant 0 : i32
    return %arg1, %c0_i32, %c0_i32_0 : i32, i32, i32
  }
  func.func @transform_7(%arg0: i32, %arg1: i32) -> (i32, i32, i32) {
    %c0_i32 = arith.constant 0 : i32
    %c0_i32_0 = arith.constant 0 : i32
    %c0_i32_1 = arith.constant 0 : i32
    return %arg1, %c0_i32, %c0_i32_0 : i32, i32, i32
  }
  func.func @transform_8(%arg0: i32, %arg1: i32) -> (i32, i32, i32) {
    %c0_i32 = arith.constant 0 : i32
    %c0_i32_0 = arith.constant 0 : i32
    %c0_i32_1 = arith.constant 0 : i32
    return %arg1, %c0_i32, %c0_i32_0 : i32, i32, i32
  }
  func.func @transform_9(%arg0: i32, %arg1: i32) -> (i32, i32, i32) {
    %c0_i32 = arith.constant 0 : i32
    %c0_i32_0 = arith.constant 0 : i32
    %c0_i32_1 = arith.constant 0 : i32
    return %arg1, %c0_i32, %c0_i32_0 : i32, i32, i32
  }
  func.func @transform_10(%arg0: i32, %arg1: i32) -> (i32, i32) {
    %c0_i32 = arith.constant 0 : i32
    %c0_i32_0 = arith.constant 0 : i32
    %c0_i32_1 = arith.constant 0 : i32
    return %c0_i32, %c0_i32_0 : i32, i32
  }
  func.func @transform_11(%arg0: i32, %arg1: i32) -> (i32, i32) {
    %c0_i32 = arith.constant 0 : i32
    %c0_i32_0 = arith.constant 0 : i32
    %c0_i32_1 = arith.constant 0 : i32
    return %c0_i32, %c0_i32_0 : i32, i32
  }
  func.func @transform_12(%arg0: i32, %arg1: i32) -> (i32, i32) {
    %c0_i32 = arith.constant 0 : i32
    %c0_i32_0 = arith.constant 0 : i32
    %c0_i32_1 = arith.constant 0 : i32
    return %c0_i32, %c0_i32_0 : i32, i32
  }
  func.func @transform_13(%arg0: i32, %arg1: i32) -> (i32, i32, i32) {
    %c0_i32 = arith.constant 0 : i32
    %c0_i32_0 = arith.constant 0 : i32
    %c0_i32_1 = arith.constant 0 : i32
    return %arg0, %c0_i32, %c0_i32_0 : i32, i32, i32
  }
}

</mosaic_0001>

<bundles_post_ra>
// kernel: tpu_custom_call.1
= control target key start
LH: loop header
LB: loop body
LE: loop exit
PB: predicated region body
PF: predicated region fallthrough
CT: control target
= control target key end

     0   :  { %s10982_s0 = inlined_call_operand.vmem [shape: f32[2,128,128], index: 0, kind: input, shape index: {}]   ;;  %s10983_s1 = inlined_call_operand.vmem [shape: f32[128,128], index: 1, kind: input, shape index: {}]   ;;  %s10984_s2 = inlined_call_operand.vmem [shape: bf16[4,4,128,32], index: 2, kind: input, shape index: {}]   ;;  %s10985_s3 = inlined_call_operand.vmem [shape: bf16[4,4,128,32], index: 3, kind: input, shape index: {}]   ;;  %s10986_s4 = inlined_call_operand.vmem [shape: bf16[4,4,128,32], index: 4, kind: input, shape index: {}]   ;;  %s10987_s5 = inlined_call_operand.vmem [shape: bf16[4,4,32,128], index: 5, kind: input, shape index: {}]   ;;  %s10988_s6 = inlined_call_operand.vmem [shape: bf16[4,128,512], index: 6, kind: input, shape index: {}]   ;;  %s10989_s7 = inlined_call_operand.vmem [shape: bf16[4,512,128], index: 7, kind: input, shape index: {}]   ;;  %s10990_s8 = inlined_call_operand.vmem [shape: f32[4,6,128], index: 8, kind: input, shape index: {}]   ;;  %s10991_s9 = inlined_call_operand.vmem [shape: f32[4,1,512], index: 9, kind: input, shape index: {}]   ;;  %s10992_s10 = inlined_call_operand.vmem [shape: f32[2,128], index: 10, kind: input, shape index: {}]   ;;  %s10993_s11 = inlined_call_operand.vmem [shape: bf16[128,128], index: 11, kind: input, shape index: {}]   ;;  %s10994_s12 = inlined_call_operand.vmem [shape: f32[1,128], index: 12, kind: input, shape index: {}]   ;;  %s10995_s13 = inlined_call_operand.hbm [shape: f32[2,128,128], index: 13, kind: output, shape index: {}]  }
   0x1   :  { %11034 = sst [smem:[#allocation55_spill]] %s10982_s0 }
   0x2   :  { %11035 = sst [smem:[#allocation56_spill]] %s10984_s2 }
   0x3   :  { %11036 = sst [smem:[#allocation57_spill]] %s10985_s3 }
   0x4   :  { %11037 = sst [smem:[#allocation58_spill]] %s10986_s4 }
   0x5   :  { %11038 = sst [smem:[#allocation59_spill]] %s10994_s12 }
   0x6   :  { %11039 = sst [smem:[#allocation60_spill]] %s10995_s13 }
   0x7   :  { %18 = vsyncpa [#allocation4], 0 }
   0x8   :  { %20 = vsyncpa [#allocation4 + $0x1], 0  ;;  %s8125_s25 = smov 0   ;;  %s8127_s26 = smov 0  }
   0x9   :  { %s8129_s27 = smov 0   ;;  %s8131_s28 = smov 0  }
   0xa   :  { %s8133_s29 = smov 0   ;;  %s8135_s30 = smov 0  }
   0xb   :  { %s8137_s14 = smov 0   ;;  %s8139_s15 = smov 0  }
   0xc LB: > { %11040 = sst [smem:[#allocation6_spill]] %s8022_s25  ;;  %s6324_s16 = sadd.s32 4294967295, %s8050_s15   ;;  %s8050_s15 = sphi %s8139_s15, %s26_s15   ;;  %s8046_s14 = sphi %s8137_s14, %s11193_s14   ;;  %s8042_s30 = sphi %s8135_s30, %s11192_s30   ;;  %s8038_s29 = sphi %s8133_s29, %s11191_s29   ;;  %s8034_s28 = sphi %s8131_s28, %s11190_s28   ;;  %s8030_s27 = sphi %s8129_s27, %s11189_s27   ;;  %s8026_s26 = sphi %s8127_s26, %s11188_s26   ;;  %s8022_s25 = sphi %s8125_s25, %s11187_s25  }
   0xd   : > { %11041 = sst [smem:[#allocation7_spill]] %s8026_s26  ;;  %s6325_s17 = sadd.s32 4294967294, %s8050_s15  }
   0xe   : > { %11042 = sst [smem:[#allocation8_spill]] %s8030_s27  ;;  %s35_s18 = sadd.s32 1, %s8042_s30 }
   0xf   : > { %11043 = sst [smem:[#allocation9_spill]] %s8038_s29  ;;  %p36_p0 = scmp.ge.s32.totalorder %s35_s18, 4 }
  0x10   : > { %11044 = sst [smem:[#allocation10_spill]] %s8042_s30  ;;  %s38_s19 = sadd.s32 1, %s8046_s14 }
  0x11   : > { %11045 = sst [smem:[#allocation11_spill]] %s8046_s14  ;;  %p373_p1 = scmp.ne.s32.totalorder %s8030_s27, %s8026_s26 }
  0x12   : > { %11046 = sst [smem:[#allocation12_spill]] %s8050_s15  ;;  %p374_p2 = scmp.eq.s32.totalorder %s6324_s16, 7 }
  0x13   : > { %s11195_s18 = smov (%p36_p0, %s35_s18), 0  ;;  %s11197_s19 = smov (!%p36_p0, %s38_s19), %s8046_s14 }
  0x14   : > { %11047 = sst [smem:[#allocation13_spill]] %s11195_s18  ;;  %p8174_p3 = por %p374_p2, %p373_p1 }
  0x15   : > { %p379_p4 = scmp.ne.s32.totalorder %s8026_s26, %s8022_s25  ;;  %p40_p5 = scmp.ge.s32.totalorder %s11197_s19, 2 }
  0x16   : > { %s11048_s20 = scalar_select %p8174_p3, 1, 0 }
  0x17   : > { %p380_p6 = scmp.eq.s32.totalorder %s6325_s17, 7  ;;  %p6328_p7 = scmp.ge.s32.totalorder %s8050_s15, 1 }
  0x18   : > { %11049 = sst [smem:[#allocation14_spill]] %s11048_s20  ;;  %p480_p8 = scmp.lt.s32.totalorder %s8050_s15, 9 }
  0x19   : > { %s11199_s19 = smov (%p40_p5, %s11197_s19), 0  ;;  %p8184_p9 = por %p380_p6, %p379_p4 }
  0x1a   : > { %11050 = sst [smem:[#allocation15_spill]] %s11199_s19  ;;  %p481_p10 = pnand %p6328_p7, %p480_p8 }
  0x1b   : > { %s11051_s21 = scalar_select %p8184_p9, 1, 0 }
  0x1c   : > { %s360_s22 = ssub.s32 %s8046_s14, %s11199_s19  ;;  %s363_s23 = sadd.s32 1, %s8030_s27 }
  0x1d   : > { %11052 = sst [smem:[#allocation16_spill]] %s11051_s21  ;;  %p361_p11 = scmp.eq.s32.totalorder %s360_s22, 0 }
  0x1e   : > { %484 = sbr.rel (%p481_p10) target bundleno = 4997 (0x1385), region = 72 }
  0x1f   : > { %s8192_s24 = scalar_select %p361_p11, %s8030_s27, %s363_s23  }
  0x21   : > { %11053 = sst [smem:[#allocation17_spill]] %s8192_s24 }
  0x23   : > { %s11007_s16 = sand.u32 1, %s8026_s26   ;;  %p562_p12 = scmp.lt.s32.totalorder %s8038_s29, 1 }
  0x24   : > { %s6329_s17 = sshll.u32 %s11007_s16, 7  ;;  %p567_p13 = scmp.lt.s32.totalorder %s8034_s28, 3 }
  0x25   : > { %s563_s18 = scalar_select %p562_p12, %s8038_s29, 1 }
  0x26   : > { %s568_s30 = scalar_select %p567_p13, %s8034_s28, 3 }
  0x27   : > { %s7277_s21 = sshll.u32 %s563_s18, 7  ;;  %s11054_s0 = sld [smem:[#allocation55_spill]] }
  0x28   : > { %s7278_s23 = sshll.u32 %s568_s30, 8  ;;  %s11055_s2 = sld [smem:[#allocation56_spill]] }
  0x29   : > { %s11056_s3 = sld [smem:[#allocation57_spill]]  ;;  %s7281_s29 = sshll.u32 %s568_s30, 6 }
  0x2a   : > { %s11057_s4 = sld [smem:[#allocation58_spill]]  ;;  %s8229_s24 = scalar_lea.vmem %s10988_s6, %s7278_s23 }
  0x2b   : > { %s8234_s15 = scalar_lea.vmem %s10989_s7, %s7278_s23  ;;  %s6345_s12 = sshll.u32 %s568_s30, 2 }
  0x2c   : > { %s8244_s19 = scalar_lea.vmem %s10991_s9, %s6345_s12  ;;  %p6346_p0 = scmp.ne.s32.totalorder %s8034_s28, 0 }
  0x2d   : > { %s8204_s22 = scalar_lea.vmem %s11054_s0, %s7277_s21  ;;  %s8224_s21 = scalar_lea.vmem %s10987_s5, %s7281_s29 }
  0x2e   : > { %s8209_s25 = scalar_lea.vmem %s11055_s2, %s7278_s23  ;;  %s8246_s0 = scalar_lea.vmem [#allocation3], %s6329_s17 }
  0x2f   : > { %s8214_s20 = scalar_lea.vmem %s11056_s3, %s7278_s23  ;;  %s6344_s3 = sshll.u32 %s568_s30, 3 }
  0x30   : > { %s8219_s18 = scalar_lea.vmem %s11057_s4, %s7278_s23  ;;  %s8239_s4 = scalar_lea.vmem %s10990_s8, %s6344_s3 }
  0x31   : > { %609 = sbr.rel (%p6346_p0) target bundleno = 71 (0x47), region = 76 }
  0x36   : > { %v610_v0 = vld [vmem:[%s8204_s22] sm:$0xff]  ;;  %v611_v1 = vld [vmem:[%s8204_s22 + $0x8] sm:$0xff]  ;;  %v612_v2 = vld [vmem:[%s8204_s22 + $0x10] sm:$0xff] }
  0x37   : > { %626 = vst [vmem:[#allocation2 + $0x30] sm:$0xff] %v610_v0  ;;  %v613_v3 = vld [vmem:[%s8204_s22 + $0x18] sm:$0xff]  ;;  %v614_v4 = vld [vmem:[%s8204_s22 + $0x20] sm:$0xff]  ;;  %v615_v5 = vld [vmem:[%s8204_s22 + $0x28] sm:$0xff] }
  0x38   : > { %627 = vst [vmem:[#allocation2] sm:$0xff] %v611_v1  ;;  %v616_v6 = vld [vmem:[%s8204_s22 + $0x30] sm:$0xff]  ;;  %v617_v7 = vld [vmem:[%s8204_s22 + $0x38] sm:$0xff]  ;;  %v618_v8 = vld [vmem:[%s8204_s22 + $0x40] sm:$0xff] }
  0x39   : > { %628 = vst [vmem:[#allocation2 + $0x58] sm:$0xff] %v612_v2  ;;  %v619_v9 = vld [vmem:[%s8204_s22 + $0x48] sm:$0xff]  ;;  %v620_v10 = vld [vmem:[%s8204_s22 + $0x50] sm:$0xff]  ;;  %v621_v11 = vld [vmem:[%s8204_s22 + $0x58] sm:$0xff] }
  0x3a   : > { %629 = vst [vmem:[#allocation2 + $0x18] sm:$0xff] %v613_v3  ;;  %v622_v12 = vld [vmem:[%s8204_s22 + $0x60] sm:$0xff]  ;;  %v623_v13 = vld [vmem:[%s8204_s22 + $0x68] sm:$0xff]  ;;  %v624_v14 = vld [vmem:[%s8204_s22 + $0x70] sm:$0xff] }
  0x3b   : > { %630 = vst [vmem:[#allocation2 + $0x50] sm:$0xff] %v614_v4  ;;  %v625_v15 = vld [vmem:[%s8204_s22 + $0x78] sm:$0xff] }
  0x3c   : > { %631 = vst [vmem:[#allocation2 + $0x68] sm:$0xff] %v615_v5 }
  0x3d   : > { %632 = vst [vmem:[#allocation2 + $0x8] sm:$0xff] %v616_v6 }
  0x3e   : > { %633 = vst [vmem:[#allocation2 + $0x48] sm:$0xff] %v617_v7 }
  0x3f   : > { %634 = vst [vmem:[#allocation2 + $0x40] sm:$0xff] %v618_v8 }
  0x40   : > { %635 = vst [vmem:[#allocation2 + $0x20] sm:$0xff] %v619_v9 }
  0x41   : > { %636 = vst [vmem:[#allocation2 + $0x10] sm:$0xff] %v620_v10 }
  0x42   : > { %637 = vst [vmem:[#allocation2 + $0x38] sm:$0xff] %v621_v11 }
  0x43   : > { %638 = vst [vmem:[#allocation2 + $0x60] sm:$0xff] %v622_v12 }
  0x44   : > { %639 = vst [vmem:[#allocation2 + $0x70] sm:$0xff] %v623_v13 }
  0x45   : > { %640 = vst [vmem:[#allocation2 + $0x78] sm:$0xff] %v624_v14 }
  0x46   : > { %641 = vst [vmem:[#allocation2 + $0x28] sm:$0xff] %v625_v15 }
  0x47 PF: > { %v645_v16 = vld [vmem:[#allocation2 + $0x58] sm:$0xff]  ;;  %v643_v17 = vld [vmem:[#allocation2 + $0x30] sm:$0xff]  ;;  %v644_v20 = vld [vmem:[#allocation2] sm:$0xff]  ;;  %v8052_v23 = vmov 128.0   ;;  %p7239_p1 = scmp.ne.s32.totalorder %s8034_s28, 3 }
  0x48   : > { %663 = vadd.xlane.f32.xlu1 %v645_v16  ;;  %659 = vadd.xlane.f32.xlu0 %v643_v17  ;;  %v647_v18 = vld [vmem:[#allocation2 + $0x50] sm:$0xff]  ;;  %v646_v19 = vld [vmem:[#allocation2 + $0x18] sm:$0xff]  ;;  %v648_v21 = vld [vmem:[#allocation2 + $0x68] sm:$0xff]  ;;  %7567 = vrcp.f32 %v8052_v23 }
  0x49   : > { %667 = vadd.xlane.f32.xlu2 %v647_v18  ;;  %v649_v22 = vld [vmem:[#allocation2 + $0x8] sm:$0xff]  ;;  %v8294_v52 = vld [vmem:[#allocation2 + $0x40] sm:$0xff]  ;;  %v8304_v58 = vld [vmem:[#allocation2 + $0x38] sm:$0xff] }
  0x4a   : > { %v8280_v44 = vld [vmem:[#allocation2 + $0x48] sm:$0xff]  ;;  %v8306_v59 = vld [vmem:[#allocation2 + $0x20] sm:$0xff]  ;;  %v8316_v63 = vld [vmem:[#allocation2 + $0x10] sm:$0xff] }
  0x4b   : > { %v8314_v62 = vld [vmem:[#allocation2 + $0x60] sm:$0xff]  ;;  %v8320_v0 = vld [vmem:[#allocation2 + $0x70] sm:$0xff]  ;;  %v7291_v2 = vld [vmem:[%s8209_s25 + $0x38] sm:$0xff] }
  0x4c   : > { %v8323_v1 = vld [vmem:[#allocation2 + $0x78] sm:$0xff]  ;;  %1092 = vmatpush.bf16.msra.mxu0 %v7291_v2  ;;  %v7290_v5 = vld [vmem:[%s8209_s25 + $0x30] sm:$0xff]  ;;  %v7289_v8 = vld [vmem:[%s8209_s25 + $0x28] sm:$0xff] }
  0x4d   : > { %v7299_v3 = vld [vmem:[%s8214_s20 + $0x38] sm:$0xff]  ;;  %v7298_v6 = vld [vmem:[%s8214_s20 + $0x30] sm:$0xff]  ;;  %v7297_v9 = vld [vmem:[%s8214_s20 + $0x28] sm:$0xff] }
  0x4e   : > { %v7568_v24 = vpop.eup %7567  ;;  %v7307_v4 = vld [vmem:[%s8219_s18 + $0x38] sm:$0xff]  ;;  %1205 = vmatpush.bf16.msra.mxu1 %v7299_v3  ;;  %v7306_v7 = vld [vmem:[%s8219_s18 + $0x30] sm:$0xff]  ;;  %v7305_v10 = vld [vmem:[%s8219_s18 + $0x28] sm:$0xff] }
  0x4f   : > { %v692_v25 = vmul.f32 128.0, %v7568_v24  ;;  %vm696_vm0 = vweird.f32 %v7568_v24  ;;  %1318 = vmatpush.bf16.msra.mxu2 %v7307_v4  ;;  %v7288_v11 = vld [vmem:[%s8209_s25 + $0x20] sm:$0xff]  ;;  %v7287_v14 = vld [vmem:[%s8209_s25 + $0x18] sm:$0xff] }
  0x50   : > { %665 = vadd.xlane.f32.xlu1 %v646_v19  ;;  %661 = vadd.xlane.f32.xlu0 %v644_v20  ;;  %v7296_v12 = vld [vmem:[%s8214_s20 + $0x20] sm:$0xff]  ;;  %v7295_v15 = vld [vmem:[%s8214_s20 + $0x18] sm:$0xff] }
  0x51   : > { %669 = vadd.xlane.f32.xlu2 %v648_v21  ;;  %v693_v26 = vsub.f32 1.0, %v692_v25  ;;  %1093 = vmatpush.bf16.msra.mxu0 %v7290_v5  ;;  %v7304_v13 = vld [vmem:[%s8219_s18 + $0x20] sm:$0xff] }
  0x52   : > { %1206 = vmatpush.bf16.msra.mxu1 %v7298_v6 }
  0x53   : > { %v694_v27 = vmul.f32 %v7568_v24, %v693_v26  ;;  %1319 = vmatpush.bf16.msra.mxu2 %v7306_v7  ;;  %v7284_v26 = vld [vmem:[%s8209_s25] sm:$0xff] }
  0x55   : > { %v695_v28 = vadd.f32 %v7568_v24, %v694_v27  ;;  %1094 = vmatpush.bf16.msra.mxu0 %v7289_v8  ;;  %v7292_v27 = vld [vmem:[%s8214_s20] sm:$0xff] }
  0x56   : > { %1207 = vmatpush.bf16.msra.mxu1 %v7297_v9 }
  0x57   : > { %v8265_v29 = vsel %vm696_vm0, %v7568_v24, %v695_v28  ;;  %1320 = vmatpush.bf16.msra.mxu2 %v7305_v10  ;;  %v7301_v24 = vld [vmem:[%s8219_s18 + $0x8] sm:$0xff]  ;;  %v7300_v28 = vld [vmem:[%s8219_s18] sm:$0xff] }
  0x58   : > { %11058 = vst [vmem:[#allocation18_spill] sm:$0xff] %v8265_v29 }
  0x59   : > { %671 = vadd.xlane.f32.xlu2 %v649_v22  ;;  %1095 = vmatpush.bf16.msra.mxu0 %v7288_v11 }
  0x5a   : > { %1208 = vmatpush.bf16.msra.mxu1 %v7296_v12 }
  0x5b   : > { %1321 = vmatpush.bf16.msra.mxu2 %v7304_v13 }
  0x5d   : > { %1096 = vmatpush.bf16.msra.mxu0 %v7287_v14  ;;  %v642_v14 = vld [vmem:[%s8239_s4] sm:$0x3f] }
  0x5e   : > { %1209 = vmatpush.bf16.msra.mxu1 %v7295_v15 }
  0xbb   : > { %v664_v30 = vpop.xlane.xlu1 %663  ;;  %v660_v31 = vpop.xlane.xlu0 %659 }
  0xbc   : > { %v698_v32 = vmul.f32 %v8265_v29, %v660_v31  ;;  %v668_v34 = vpop.xlane.xlu2 %667  ;;  %v700_v43 = vmul.f32 %v8265_v29, %v664_v30 }
  0xbd   : > { %v702_v42 = vmul.f32 %v8265_v29, %v668_v34 }
  0xbe   : > { %v8268_v33 = vsub.f32 %v643_v17, %v698_v32  ;;  %v8289_v49 = vsub.f32 %v645_v16, %v700_v43  ;;  %v7303_v16 = vld [vmem:[%s8219_s18 + $0x18] sm:$0xff]  ;;  %v7286_v17 = vld [vmem:[%s8209_s25 + $0x10] sm:$0xff] }
  0xbf   : > { %v8287_v48 = vsub.f32 %v647_v18, %v702_v42  ;;  %1322 = vmatpush.bf16.msra.mxu2 %v7303_v16  ;;  %v7294_v18 = vld [vmem:[%s8214_s20 + $0x10] sm:$0xff]  ;;  %1097 = vmatpush.bf16.msra.mxu0 %v7286_v17 }
  0xc0   : > { %v730_v35 = vmul.f32 %v8268_v33, %v8268_v33  ;;  %v732_v53 = vmul.f32 %v8289_v49, %v8289_v49  ;;  %1210 = vmatpush.bf16.msra.mxu1 %v7294_v18 }
  0xc1   : > { %v734_v50 = vmul.f32 %v8287_v48, %v8287_v48 }
  0xc2   : > { %746 = vadd.xlane.f32.xlu0 %v730_v35 }
  0xc3   : > { %v666_v36 = vpop.xlane.xlu1 %665  ;;  %v662_v37 = vpop.xlane.xlu0 %661 }
  0xc4   : > { %v701_v38 = vmul.f32 %v8265_v29, %v666_v36  ;;  %v699_v39 = vmul.f32 %v8265_v29, %v662_v37  ;;  %v670_v47 = vpop.xlane.xlu2 %669 }
  0xc5   : > { %v703_v51 = vmul.f32 %v8265_v29, %v670_v47 }
  0xc6   : > { %v8274_v40 = vsub.f32 %v646_v19, %v701_v38  ;;  %v8276_v41 = vsub.f32 %v644_v20, %v699_v39  ;;  %v7302_v19 = vld [vmem:[%s8219_s18 + $0x10] sm:$0xff] }
  0xc7   : > { %v8299_v54 = vsub.f32 %v648_v21, %v703_v51  ;;  %1323 = vmatpush.bf16.msra.mxu2 %v7302_v19  ;;  %v7285_v21 = vld [vmem:[%s8209_s25 + $0x8] sm:$0xff] }
  0xc8   : > { %v733_v45 = vmul.f32 %v8274_v40, %v8274_v40  ;;  %v731_v46 = vmul.f32 %v8276_v41, %v8276_v41  ;;  %1098 = vmatpush.bf16.msra.mxu0 %v7285_v21 }
  0xc9   : > { %v735_v56 = vmul.f32 %v8299_v54, %v8299_v54 }
  0xca   : > { %752 = vadd.xlane.f32.xlu2 %v733_v45  ;;  %673 = vadd.xlane.f32.xlu0 %v8280_v44 }
  0xcb   : > { %748 = vadd.xlane.f32.xlu1 %v731_v46  ;;  %1324 = vmatpush.bf16.msra.mxu2 %v7301_v24 }
  0xcc   : > { %v672_v55 = vpop.xlane.xlu2 %671  ;;  %1099 = vmatpush.bf16.msra.mxu0 %v7284_v26  ;;  %v8396_v26 = vperm.slane %v642_v14, 0 }
  0xcd   : > { %v704_v57 = vmul.f32 %v8265_v29, %v672_v55 }
  0xcf   : > { %v8309_v60 = vsub.f32 %v649_v22, %v704_v57  ;;  %v7293_v22 = vld [vmem:[%s8214_s20 + $0x8] sm:$0xff]  ;;  %1325 = vmatpush.bf16.msra.mxu2 %v7300_v28 }
  0xd0   : > { %1211 = vmatpush.bf16.msra.mxu1 %v7293_v22 }
  0xd1   : > { %v736_v61 = vmul.f32 %v8309_v60, %v8309_v60 }
  0xd2   : > { %754 = vadd.xlane.f32.xlu2 %v734_v50  ;;  %675 = vadd.xlane.f32.xlu0 %v8294_v52 }
  0xd3   : > { %750 = vadd.xlane.f32.xlu1 %v732_v53 }
  0xd4   : > { %1212 = vmatpush.bf16.msra.mxu1 %v7292_v27 }
  0xda   : > { %681 = vadd.xlane.f32.xlu2 %v8304_v58  ;;  %756 = vadd.xlane.f32.xlu0 %v735_v56 }
  0xdb   : > { %677 = vadd.xlane.f32.xlu1 %v8306_v59 }
  0xe2   : > { %683 = vadd.xlane.f32.xlu2 %v8314_v62  ;;  %758 = vadd.xlane.f32.xlu0 %v736_v61 }
  0xe3   : > { %679 = vadd.xlane.f32.xlu1 %v8316_v63 }
  0xea   : > { %685 = vadd.xlane.f32.xlu0 %v8320_v0 }
  0xf2   : > { %687 = vadd.xlane.f32.xlu0 %v8323_v1 }
 0x135   : > { %v747_v20 = vpop.xlane.xlu0 %746 }
 0x136   : > { %v778_v23 = vmul.f32 %v747_v20, %v8265_v29 }
 0x138   : > { %v794_v25 = vadd.f32 1e-05, %v778_v23 }
 0x13a   : > { %7569 = vrsqrt.f32 %v794_v25  ;;  %vm816_vm2 = vweird.f32 %v794_v25 }
 0x13d   : > { %v753_v30 = vpop.xlane.xlu2 %752  ;;  %v674_v31 = vpop.xlane.xlu0 %673 }
 0x13e   : > { %v781_v32 = vmul.f32 %v753_v30, %v8265_v29  ;;  %v749_v34 = vpop.xlane.xlu1 %748  ;;  %v705_v35 = vmul.f32 %v8265_v29, %v674_v31 }
 0x13f   : > { %v779_v36 = vmul.f32 %v749_v34, %v8265_v29 }
 0x140   : > { %v7570_v37 = vpop.eup %7569  ;;  %v8354_v38 = vadd.f32 1e-05, %v781_v32  ;;  %v8357_v39 = vsub.f32 %v8280_v44, %v705_v35 }
 0x141   : > { %v811_v42 = vmul.f32 %v7570_v37, %v794_v25  ;;  %v795_v43 = vadd.f32 1e-05, %v779_v36  ;;  %vm817_vm1 = vweird.f32 %v7570_v37 }
 0x142   : > { %7571 = vrsqrt.f32 %v8354_v38  ;;  %v737_v45 = vmul.f32 %v8357_v39, %v8357_v39  ;;  %vm8375_vm3 = vmor %vm816_vm2, %vm817_vm1  ;;  %vm846_vm9 = vweird.f32 %v8354_v38 }
 0x143   : > { %v812_v46 = vmul.f32 %v7570_v37, %v811_v42  ;;  %7573 = vrsqrt.f32 %v795_v43  ;;  %vm826_vm4 = vweird.f32 %v795_v43 }
 0x144   : > { %760 = vadd.xlane.f32.xlu1 %v737_v45 }
 0x145   : > { %v813_v47 = vmul.f32 0.5, %v812_v46  ;;  %v755_v50 = vpop.xlane.xlu2 %754  ;;  %v676_v51 = vpop.xlane.xlu0 %675 }
 0x146   : > { %v751_v53 = vpop.xlane.xlu1 %750  ;;  %v706_v55 = vmul.f32 %v8265_v29, %v676_v51  ;;  %v782_v4 = vmul.f32 %v755_v50, %v8265_v29 }
 0x147   : > { %v814_v56 = vsub.f32 1.5, %v813_v47  ;;  %v780_v44 = vmul.f32 %v751_v53, %v8265_v29 }
 0x148   : > { %v8364_v57 = vpop.eup %7571  ;;  %v8367_v61 = vsub.f32 %v8294_v52, %v706_v55  ;;  %v8383_v11 = vadd.f32 1e-05, %v782_v4 }
 0x149   : > { %v7574_v2 = vpop.eup %7573  ;;  %v815_v3 = vmul.f32 %v7570_v37, %v814_v56  ;;  %v8370_v5 = vadd.f32 1e-05, %v780_v44  ;;  %v841_v6 = vmul.f32 %v8364_v57, %v8354_v38  ;;  %vm847_vm10 = vweird.f32 %v8364_v57 }
 0x14a   : > { %v821_v7 = vmul.f32 %v7574_v2, %v795_v43  ;;  %v738_v9 = vmul.f32 %v8367_v61, %v8367_v61  ;;  %vm827_vm5 = vweird.f32 %v7574_v2  ;;  %vm8446_vm12 = vmor %vm846_vm9, %vm847_vm10  ;;  %vm856_vm15 = vweird.f32 %v8383_v11 }
 0x14b   : > { %7575 = vrsqrt.f32 %v8370_v5  ;;  %v819_v10 = vsel %vm8375_vm3, %v7570_v37, %v815_v3  ;;  %v842_v15 = vmul.f32 %v8364_v57, %v841_v6  ;;  %vm828_vm6 = vmor %vm826_vm4, %vm827_vm5  ;;  %vm836_vm7 = vweird.f32 %v8370_v5 }
 0x14c   : > { %v822_v52 = vmul.f32 %v7574_v2, %v821_v7  ;;  %762 = vadd.xlane.f32.xlu1 %v738_v9  ;;  %v970_v25 = vmul.f32 %v819_v10, %v8268_v33  ;;  %7577 = vrsqrt.f32 %v8383_v11  ;;  %v8408_v33 = vld [vmem:[#allocation2 + $0x28] sm:$0xff] }
 0x14d   : > { %v682_v12 = vpop.xlane.xlu2 %681  ;;  %v757_v13 = vpop.xlane.xlu0 %756  ;;  %v843_v28 = vmul.f32 0.5, %v842_v15 }
 0x14e   : > { %v823_v16 = vmul.f32 0.5, %v822_v52  ;;  %v709_v17 = vmul.f32 %v8265_v29, %v682_v12  ;;  %v678_v18 = vpop.xlane.xlu1 %677  ;;  %v783_v19 = vmul.f32 %v757_v13, %v8265_v29  ;;  %v987_v36 = vmul.f32 %v8396_v26, %v970_v25 }
 0x14f   : > { %v707_v20 = vmul.f32 %v8265_v29, %v678_v18  ;;  %v844_v45 = vsub.f32 1.5, %v843_v28 }
 0x150   : > { %v824_v21 = vsub.f32 1.5, %v823_v16  ;;  %v8390_v22 = vadd.f32 1e-05, %v783_v19  ;;  %v8393_v23 = vsub.f32 %v8304_v58, %v709_v17 }
 0x151   : > { %v7576_v24 = vpop.eup %7575  ;;  %v8402_v27 = vsub.f32 %v8306_v59, %v707_v20  ;;  %v8413_v59 = vperm.slane %v642_v14, 1  ;;  %v845_v38 = vmul.f32 %v8364_v57, %v844_v45 }
 0x152   : > { %v825_v30 = vmul.f32 %v7574_v2, %v824_v21  ;;  %v831_v31 = vmul.f32 %v7576_v24, %v8370_v5  ;;  %7579 = vrsqrt.f32 %v8390_v22  ;;  %v741_v58 = vmul.f32 %v8393_v23, %v8393_v23  ;;  %v8421_v51 = vpop.eup %7577 }
 0x153   : > { %v739_v35 = vmul.f32 %v8402_v27, %v8402_v27  ;;  %vm837_vm8 = vweird.f32 %v7576_v24  ;;  %v851_v7 = vmul.f32 %v8421_v51, %v8383_v11  ;;  %v849_v14 = vsel %vm8446_vm12, %v8364_v57, %v845_v38 }
 0x154   : > { %v829_v32 = vsel %vm828_vm6, %v7574_v2, %v825_v30  ;;  %v832_v34 = vmul.f32 %v7576_v24, %v831_v31  ;;  %768 = vadd.xlane.f32.xlu0 %v741_v58  ;;  %689 = vadd.xlane.f32.xlu1 %v8408_v33  ;;  %v1004_v2 = vadd.f32 %v8413_v59, %v987_v36  ;;  %vm8435_vm11 = vmor %vm836_vm7, %vm837_vm8  ;;  %vm866_vm13 = vweird.f32 %v8390_v22 }
 0x155   : > { %v971_v37 = vmul.f32 %v829_v32, %v8276_v41  ;;  %v684_v42 = vpop.xlane.xlu2 %683  ;;  %v8417_v43 = vpop.xlane.xlu0 %758  ;;  %764 = vadd.xlane.f32.xlu2 %v739_v35  ;;  %v852_v15 = vmul.f32 %v8421_v51, %v851_v7  ;;  %v973_v20 = vmul.f32 %v849_v14, %v8274_v40  ;;  %vm857_vm0 = vweird.f32 %v8421_v51 }
 0x156   : > { %v833_v46 = vmul.f32 0.5, %v832_v34  ;;  %v710_v47 = vmul.f32 %v8265_v29, %v684_v42  ;;  %v680_v50 = vpop.xlane.xlu1 %679  ;;  %vm858_vm2 = vmor %vm856_vm15, %vm857_vm0 }
 0x157   : > { %v988_v53 = vmul.f32 %v8396_v26, %v971_v37  ;;  %v708_v41 = vmul.f32 %v8265_v29, %v680_v50  ;;  %v853_v21 = vmul.f32 0.5, %v852_v15  ;;  %v990_v28 = vmul.f32 %v8396_v26, %v973_v20 }
 0x158   : > { %v7580_v55 = vpop.eup %7579  ;;  %v834_v56 = vsub.f32 1.5, %v833_v46  ;;  %v8428_v44 = vsub.f32 %v8314_v62, %v710_v47 }
 0x159   : > { %v1005_v3 = vadd.f32 %v8413_v59, %v988_v53  ;;  %v861_v6 = vmul.f32 %v7580_v55, %v8390_v22  ;;  %v8444_v8 = vsub.f32 %v8316_v63, %v708_v41  ;;  %v854_v31 = vsub.f32 1.5, %v853_v21 }
 0x15a   : > { %v835_v62 = vmul.f32 %v7576_v24, %v834_v56  ;;  %v742_v9 = vmul.f32 %v8428_v44, %v8428_v44  ;;  %vm867_vm14 = vweird.f32 %v7580_v55  ;;  %v1007_v32 = vadd.f32 %v8413_v59, %v990_v28 }
 0x15b   : > { %v8450_v5 = vpack.c.bf16 %v1005_v3, %v1004_v2  ;;  %v862_v12 = vmul.f32 %v7580_v55, %v861_v6  ;;  %v740_v13 = vmul.f32 %v8444_v8, %v8444_v8  ;;  %vm868_vm1 = vmor %vm866_vm13, %vm867_vm14  ;;  %v855_v34 = vmul.f32 %v8421_v51, %v854_v31 }
 0x15c   : > { %v839_v10 = vsel %vm8435_vm11, %v7576_v24, %v835_v62  ;;  %770 = vadd.xlane.f32.xlu1 %v742_v9 }
 0x15d   : > { %1100 = vmatmul.bf16.vlgmr.msra.gmra.mxu0 %v8450_v5  ;;  %1213 = vmatmul.bf16.vlgmr.msra.gmra.mxu1 %v8450_v5  ;;  %v686_v63 = vpop.xlane.xlu0 %685  ;;  %v972_v17 = vmul.f32 %v839_v10, %v8289_v49  ;;  %v863_v18 = vmul.f32 0.5, %v862_v12 }
 0x15e   : > { %766 = vadd.xlane.f32.xlu2 %v740_v13  ;;  %v711_v16 = vmul.f32 %v8265_v29, %v686_v63  ;;  %1326 = vmatmul.bf16.vlgmr.msra.gmra.mxu2 %v8450_v5 }
 0x15f   : > { %v989_v24 = vmul.f32 %v8396_v26, %v972_v17  ;;  %v864_v25 = vsub.f32 1.5, %v863_v18 }
 0x160   : > { %v8468_v19 = vsub.f32 %v8320_v0, %v711_v16 }
 0x161   : > { %v1006_v0 = vadd.f32 %v8413_v59, %v989_v24  ;;  %v865_v40 = vmul.f32 %v7580_v55, %v864_v25 }
 0x162   : > { %v743_v57 = vmul.f32 %v8468_v19, %v8468_v19 }
 0x163   : > { %v8487_v35 = vpack.c.bf16 %v1007_v32, %v1006_v0  ;;  %v869_v36 = vsel %vm868_vm1, %v7580_v55, %v865_v40 }
 0x164   : > { %v975_v11 = vmul.f32 %v869_v36, %v8299_v54  ;;  %v784_v54 = vmul.f32 %v8417_v43, %v8265_v29 }
 0x165   : > { %v688_v30 = vpop.xlane.xlu0 %687 }
 0x166   : > { %772 = vadd.xlane.f32.xlu2 %v743_v57  ;;  %v712_v49 = vmul.f32 %v8265_v29, %v688_v30  ;;  %v992_v42 = vmul.f32 %v8396_v26, %v975_v11 }
 0x168   : > { %v8481_v58 = vsub.f32 %v8323_v1, %v712_v49  ;;  %v859_v1 = vsel %vm858_vm2, %v8421_v51, %v855_v34  ;;  %v1009_v46 = vadd.f32 %v8413_v59, %v992_v42 }
 0x169   : > { %v974_v37 = vmul.f32 %v859_v1, %v8287_v48  ;;  %v800_v48 = vadd.f32 1e-05, %v784_v54 }
 0x16a   : > { %v744_v22 = vmul.f32 %v8481_v58, %v8481_v58 }
 0x16b   : > { %v991_v45 = vmul.f32 %v8396_v26, %v974_v37  ;;  %7581 = vrsqrt.f32 %v800_v48  ;;  %vm876_vm3 = vweird.f32 %v800_v48 }
 0x16c   : > { %774 = vadd.xlane.f32.xlu0 %v744_v22 }
 0x16d   : > { %1105 = vmatmul.bf16.gmra.mxu0 %v8487_v35  ;;  %1218 = vmatmul.bf16.gmra.mxu1 %v8487_v35  ;;  %v1008_v47 = vadd.f32 %v8413_v59, %v991_v45 }
 0x16e   : > { %1331 = vmatmul.bf16.gmra.mxu2 %v8487_v35 }
 0x16f   : > { %v8499_v50 = vpack.c.bf16 %v1009_v46, %v1008_v47 }
 0x171   : > { %v7582_v51 = vpop.eup %7581 }
 0x172   : > { %v871_v53 = vmul.f32 %v7582_v51, %v800_v48  ;;  %vm877_vm4 = vweird.f32 %v7582_v51 }
 0x173   : > { %vm878_vm5 = vmor %vm876_vm3, %vm877_vm4 }
 0x174   : > { %v872_v41 = vmul.f32 %v7582_v51, %v871_v53 }
 0x176   : > { %v873_v3 = vmul.f32 0.5, %v872_v41 }
 0x178   : > { %v874_v4 = vsub.f32 1.5, %v873_v3 }
 0x17a   : > { %v875_v62 = vmul.f32 %v7582_v51, %v874_v4 }
 0x17c   : > { %v879_v10 = vsel %vm878_vm5, %v7582_v51, %v875_v62 }
 0x17d   : > { %1110 = vmatmul.bf16.gmra.mxu0 %v8499_v50  ;;  %1223 = vmatmul.bf16.gmra.mxu1 %v8499_v50  ;;  %v976_v17 = vmul.f32 %v879_v10, %v8309_v60 }
 0x17e   : > { %1336 = vmatmul.bf16.gmra.mxu2 %v8499_v50 }
 0x17f   : > { %v993_v60 = vmul.f32 %v8396_v26, %v976_v17 }
 0x181   : > { %v1010_v36 = vadd.f32 %v8413_v59, %v993_v60 }
 0x1b7   : > { %v761_v55 = vpop.xlane.xlu1 %760 }
 0x1b8   : > { %v785_v56 = vmul.f32 %v761_v55, %v8265_v29 }
 0x1ba   : > { %v801_v2 = vadd.f32 1e-05, %v785_v56 }
 0x1bc   : > { %7583 = vrsqrt.f32 %v801_v2  ;;  %vm886_vm7 = vweird.f32 %v801_v2 }
 0x1bf   : > { %v763_v6 = vpop.xlane.xlu1 %762 }
 0x1c0   : > { %v786_v7 = vmul.f32 %v763_v6, %v8265_v29 }
 0x1c2   : > { %v7584_v38 = vpop.eup %7583  ;;  %v802_v52 = vadd.f32 1e-05, %v786_v7 }
 0x1c3   : > { %v881_v43 = vmul.f32 %v7584_v38, %v801_v2  ;;  %vm887_vm6 = vweird.f32 %v7584_v38 }
 0x1c4   : > { %7585 = vrsqrt.f32 %v802_v52  ;;  %vm888_vm8 = vmor %vm886_vm7, %vm887_vm6  ;;  %vm896_vm10 = vweird.f32 %v802_v52 }
 0x1c5   : > { %v882_v9 = vmul.f32 %v7584_v38, %v881_v43 }
 0x1c7   : > { %v883_v12 = vmul.f32 0.5, %v882_v9  ;;  %v769_v13 = vpop.xlane.xlu0 %768  ;;  %v690_v15 = vpop.xlane.xlu1 %689 }
 0x1c8   : > { %v765_v14 = vpop.xlane.xlu2 %764  ;;  %v789_v16 = vmul.f32 %v769_v13, %v8265_v29  ;;  %v713_v20 = vmul.f32 %v8265_v29, %v690_v15 }
 0x1c9   : > { %v884_v63 = vsub.f32 1.5, %v883_v12  ;;  %v787_v18 = vmul.f32 %v765_v14, %v8265_v29 }
 0x1ca   : > { %v8512_v57 = vadd.f32 1e-05, %v789_v16  ;;  %v7586_v24 = vpop.eup %7585  ;;  %v8515_v28 = vsub.f32 %v8408_v33, %v713_v20 }
 0x1cb   : > { %v885_v21 = vmul.f32 %v7584_v38, %v884_v63  ;;  %v803_v25 = vadd.f32 1e-05, %v787_v18  ;;  %v891_v31 = vmul.f32 %v7586_v24, %v802_v52  ;;  %vm897_vm9 = vweird.f32 %v7586_v24 }
 0x1cc   : > { %7587 = vrsqrt.f32 %v8512_v57  ;;  %v745_v40 = vmul.f32 %v8515_v28, %v8515_v28  ;;  %vm898_vm11 = vmor %vm896_vm10, %vm897_vm9  ;;  %vm926_vm1 = vweird.f32 %v8512_v57 }
 0x1cd   : > { %v889_v30 = vsel %vm888_vm8, %v7584_v38, %v885_v21  ;;  %7589 = vrsqrt.f32 %v803_v25  ;;  %v892_v0 = vmul.f32 %v7586_v24, %v891_v31  ;;  %vm906_vm12 = vweird.f32 %v803_v25 }
 0x1ce   : > { %v977_v49 = vmul.f32 %v889_v30, %v8357_v39  ;;  %776 = vadd.xlane.f32.xlu1 %v745_v40 }
 0x1cf   : > { %v893_v34 = vmul.f32 0.5, %v892_v0  ;;  %v771_v33 = vpop.xlane.xlu1 %770 }
 0x1d0   : > { %v994_v32 = vmul.f32 %v8396_v26, %v977_v49  ;;  %v790_v47 = vmul.f32 %v771_v33, %v8265_v29 }
 0x1d1   : > { %v767_v22 = vpop.xlane.xlu2 %766  ;;  %v894_v39 = vsub.f32 1.5, %v893_v34 }
 0x1d2   : > { %v1011_v1 = vadd.f32 %v8413_v59, %v994_v32  ;;  %v788_v11 = vmul.f32 %v767_v22, %v8265_v29  ;;  %v8526_v37 = vpop.eup %7587  ;;  %v8536_v41 = vadd.f32 1e-05, %v790_v47 }
 0x1d3   : > { %v7590_v42 = vpop.eup %7589  ;;  %v895_v54 = vmul.f32 %v7586_v24, %v894_v39  ;;  %v921_v51 = vmul.f32 %v8526_v37, %v8512_v57  ;;  %vm927_vm2 = vweird.f32 %v8526_v37 }
 0x1d4   : > { %v8528_v45 = vpack.c.bf16 %v1011_v1, %v1010_v36  ;;  %v804_v46 = vadd.f32 1e-05, %v788_v11  ;;  %v901_v48 = vmul.f32 %v7590_v42, %v803_v25  ;;  %vm907_vm13 = vweird.f32 %v7590_v42  ;;  %vm928_vm4 = vmor %vm926_vm1, %vm927_vm2 }
 0x1d5   : > { %v899_v55 = vsel %vm898_vm11, %v7586_v24, %v895_v54  ;;  %v922_v2 = vmul.f32 %v8526_v37, %v921_v51  ;;  %vm908_vm14 = vmor %vm906_vm12, %vm907_vm13  ;;  %vm936_vm7 = vweird.f32 %v8536_v41  ;;  %vm1383_vm1 = vcmask 261120  }
 0x1d6   : > { %7591 = vrsqrt.f32 %v804_v46  ;;  %1115 = vmatmul.bf16.gmra.mxu0 %v8528_v45  ;;  %1228 = vmatmul.bf16.gmra.mxu1 %v8528_v45  ;;  %v902_v53 = vmul.f32 %v7590_v42, %v901_v48  ;;  %v978_v7 = vmul.f32 %v899_v55, %v8367_v61  ;;  %vm916_vm15 = vweird.f32 %v804_v46 }
 0x1d7   : > { %1341 = vmatmul.bf16.gmra.mxu2 %v8528_v45  ;;  %7593 = vrsqrt.f32 %v8536_v41  ;;  %v923_v52 = vmul.f32 0.5, %v922_v2  ;;  %v7317_v2 = vld [vmem:[%s8209_s25 + $0x78] sm:$0xff] }
 0x1d8   : > { %v903_v56 = vmul.f32 0.5, %v902_v53  ;;  %v995_v13 = vmul.f32 %v8396_v26, %v978_v7  ;;  %1815 = vmatpush.bf16.msrb.mxu1 %v7317_v2  ;;  %v7315_v7 = vld [vmem:[%s8209_s25 + $0x68] sm:$0xff] }
 0x1d9   : > { %v773_v3 = vpop.xlane.xlu2 %772  ;;  %v924_v14 = vsub.f32 1.5, %v923_v52  ;;  %v7314_v52 = vld [vmem:[%s8209_s25 + $0x60] sm:$0xff] }
 0x1da   : > { %v791_v4 = vmul.f32 %v773_v3, %v8265_v29  ;;  %v904_v6 = vsub.f32 1.5, %v903_v56  ;;  %v1012_v20 = vadd.f32 %v8413_v59, %v995_v13  ;;  %v7325_v3 = vld [vmem:[%s8214_s20 + $0x78] sm:$0xff] }
 0x1db   : > { %1929 = vmatpush.bf16.msrb.mxu2 %v7325_v3  ;;  %v7321_v13 = vld [vmem:[%s8214_s20 + $0x58] sm:$0xff] }
 0x1dc   : > { %v7592_v38 = vpop.eup %7591  ;;  %v807_v62 = vadd.f32 1e-05, %v791_v4  ;;  %v905_v43 = vmul.f32 %v7590_v42, %v904_v6  ;;  %v7316_v6 = vld [vmem:[%s8209_s25 + $0x70] sm:$0xff] }
 0x1dd   : > { %v911_v9 = vmul.f32 %v7592_v38, %v804_v46  ;;  %vm917_vm0 = vweird.f32 %v7592_v38  ;;  %v7594_v16 = vpop.eup %7593  ;;  %1816 = vmatpush.bf16.msrb.mxu1 %v7316_v6 }
 0x1de   : > { %7595 = vrsqrt.f32 %v807_v62  ;;  %v909_v10 = vsel %vm908_vm14, %v7590_v42, %v905_v43  ;;  %vm918_vm3 = vmor %vm916_vm15, %vm917_vm0  ;;  %v931_v25 = vmul.f32 %v7594_v16, %v8536_v41  ;;  %vm946_vm5 = vweird.f32 %v807_v62 }
 0x1df   : > { %v912_v12 = vmul.f32 %v7592_v38, %v911_v9  ;;  %v979_v63 = vmul.f32 %v909_v10, %v8402_v27  ;;  %v925_v27 = vmul.f32 %v8526_v37, %v924_v14  ;;  %vm937_vm8 = vweird.f32 %v7594_v16  ;;  %v7322_v9 = vld [vmem:[%s8214_s20 + $0x60] sm:$0xff] }
 0x1e0   : > { %v932_v0 = vmul.f32 %v7594_v16, %v931_v25  ;;  %vm938_vm10 = vmor %vm936_vm7, %vm937_vm8  ;;  %v7318_v25 = vld [vmem:[%s8214_s20 + $0x40] sm:$0xff] }
 0x1e1   : > { %v913_v15 = vmul.f32 0.5, %v912_v12  ;;  %v996_v61 = vmul.f32 %v8396_v26, %v979_v63  ;;  %v929_v49 = vsel %vm928_vm4, %v8526_v37, %v925_v27  ;;  %1817 = vmatpush.bf16.msrb.mxu1 %v7315_v7  ;;  %v7313_v12 = vld [vmem:[%s8209_s25 + $0x58] sm:$0xff] }
 0x1e2   : > { %v981_v34 = vmul.f32 %v929_v49, %v8393_v23  ;;  %v933_v22 = vmul.f32 0.5, %v932_v0 }
 0x1e3   : > { %v914_v17 = vsub.f32 1.5, %v913_v15  ;;  %v1013_v21 = vadd.f32 %v8413_v59, %v996_v61  ;;  %v7320_v61 = vld [vmem:[%s8214_s20 + $0x50] sm:$0xff] }
 0x1e4   : > { %v7596_v18 = vpop.eup %7595  ;;  %v998_v1 = vmul.f32 %v8396_v26, %v981_v34  ;;  %v934_v11 = vsub.f32 1.5, %v933_v22  ;;  %v8599_v22 = vpop.f32.mrf.mxu1 }
 0x1e5   : > { %v915_v24 = vmul.f32 %v7592_v38, %v914_v17  ;;  %v941_v30 = vmul.f32 %v7596_v18, %v807_v62  ;;  %v8551_v31 = vpack.c.bf16 %v1013_v21, %v1012_v20  ;;  %vm947_vm6 = vweird.f32 %v7596_v18  ;;  %v7323_v62 = vld [vmem:[%s8214_s20 + $0x68] sm:$0xff]  ;;  %1818 = vmatpush.bf16.msrb.mxu1 %v7314_v52 }
 0x1e6   : > { %vm948_vm9 = vmor %vm946_vm5, %vm947_vm6  ;;  %v935_v42 = vmul.f32 %v7594_v16, %v934_v11  ;;  %v7311_v20 = vld [vmem:[%s8209_s25 + $0x48] sm:$0xff] }
 0x1e7   : > { %v919_v60 = vsel %vm918_vm3, %v7592_v38, %v915_v24  ;;  %v942_v57 = vmul.f32 %v7596_v18, %v941_v30  ;;  %1120 = vmatmul.bf16.gmra.mxu0 %v8551_v31  ;;  %1233 = vmatmul.bf16.gmra.mxu1 %v8551_v31  ;;  %v7324_v38 = vld [vmem:[%s8214_s20 + $0x70] sm:$0xff]  ;;  %v7319_v21 = vld [vmem:[%s8214_s20 + $0x48] sm:$0xff]  ;;  %v7310_v24 = vld [vmem:[%s8209_s25 + $0x40] sm:$0xff] }
 0x1e8   : > { %1346 = vmatmul.bf16.gmra.mxu2 %v8551_v31  ;;  %v980_v40 = vmul.f32 %v919_v60, %v8444_v8  ;;  %v1015_v8 = vadd.f32 %v8413_v59, %v998_v1  ;;  %v939_v47 = vsel %vm938_vm10, %v7594_v16, %v935_v42  ;;  %v7312_v16 = vld [vmem:[%s8209_s25 + $0x50] sm:$0xff] }
 0x1e9   : > { %v943_v32 = vmul.f32 0.5, %v942_v57  ;;  %v982_v48 = vmul.f32 %v939_v47, %v8428_v44  ;;  %v775_v44 = vpop.xlane.xlu0 %774  ;;  %1930 = vmatpush.bf16.msrb.mxu2 %v7324_v38  ;;  %1819 = vmatpush.bf16.msrb.mxu1 %v7313_v12 }
 0x1ea   : > { %v997_v33 = vmul.f32 %v8396_v26, %v980_v40 }
 0x1eb   : > { %v944_v36 = vsub.f32 1.5, %v943_v32  ;;  %v999_v53 = vmul.f32 %v8396_v26, %v982_v48 }
 0x1ec   : > { %v1014_v39 = vadd.f32 %v8413_v59, %v997_v33 }
 0x1ed   : > { %v945_v37 = vmul.f32 %v7596_v18, %v944_v36  ;;  %v1016_v55 = vadd.f32 %v8413_v59, %v999_v53  ;;  %1931 = vmatpush.bf16.msrb.mxu2 %v7323_v62  ;;  %1820 = vmatpush.bf16.msrb.mxu1 %v7312_v16 }
 0x1ee   : > { %v8564_v23 = vpack.c.bf16 %v1015_v8, %v1014_v39  ;;  %v8605_v8 = vpop.f32.mrf.mxu2 }
 0x1ef   : > { %v949_v46 = vsel %vm948_vm9, %v7596_v18, %v945_v37 }
 0x1f0   : > { %v983_v54 = vmul.f32 %v949_v46, %v8468_v19  ;;  %v792_v19 = vmul.f32 %v775_v44, %v8265_v29 }
 0x1f1   : > { %1932 = vmatpush.bf16.msrb.mxu2 %v7322_v9  ;;  %1821 = vmatpush.bf16.msrb.mxu1 %v7311_v20 }
 0x1f2   : > { %v1000_v51 = vmul.f32 %v8396_v26, %v983_v54  ;;  %v808_v4 = vadd.f32 1e-05, %v792_v19 }
 0x1f4   : > { %v1017_v41 = vadd.f32 %v8413_v59, %v1000_v51  ;;  %7597 = vrsqrt.f32 %v808_v4  ;;  %vm956_vm11 = vweird.f32 %v808_v4 }
 0x1f5   : > { %1933 = vmatpush.bf16.msrb.mxu2 %v7321_v13  ;;  %1822 = vmatpush.bf16.msrb.mxu1 %v7310_v24 }
 0x1f6   : > { %v8575_v56 = vpack.c.bf16 %v1017_v41, %v1016_v55  ;;  %v8615_v47 = vpop.f32.mrf.mxu2 }
 0x1f7   : > { %1125 = vmatmul.bf16.gmra.mxu0 %v8564_v23  ;;  %1238 = vmatmul.bf16.gmra.mxu1 %v8564_v23 }
 0x1f8   : > { %1351 = vmatmul.bf16.gmra.mxu2 %v8564_v23 }
 0x1f9   : > { %1934 = vmatpush.bf16.msrb.mxu2 %v7320_v61 }
 0x1fa   : > { %v7598_v43 = vpop.eup %7597 }
 0x1fb   : > { %v951_v10 = vmul.f32 %v7598_v43, %v808_v4  ;;  %vm957_vm12 = vweird.f32 %v7598_v43 }
 0x1fc   : > { %vm958_vm13 = vmor %vm956_vm11, %vm957_vm12 }
 0x1fd   : > { %v952_v63 = vmul.f32 %v7598_v43, %v951_v10  ;;  %1935 = vmatpush.bf16.msrb.mxu2 %v7319_v21 }
 0x1ff   : > { %v953_v18 = vmul.f32 0.5, %v952_v63 }
 0x201   : > { %v954_v27 = vsub.f32 1.5, %v953_v18  ;;  %1936 = vmatpush.bf16.msrb.mxu2 %v7318_v25 }
 0x203   : > { %v955_v60 = vmul.f32 %v7598_v43, %v954_v27 }
 0x205   : > { %v959_v0 = vsel %vm958_vm13, %v7598_v43, %v955_v60 }
 0x206   : > { %v984_v34 = vmul.f32 %v959_v0, %v8481_v58  ;;  %v8610_v58 = vpop.f32.mrf.mxu1 }
 0x207   : > { %1130 = vmatmul.bf16.gmra.mxu0 %v8575_v56  ;;  %1243 = vmatmul.bf16.gmra.mxu1 %v8575_v56 }
 0x208   : > { %1356 = vmatmul.bf16.gmra.mxu2 %v8575_v56  ;;  %v1001_v1 = vmul.f32 %v8396_v26, %v984_v34  ;;  %v1101_v34 = vpop.f32.mrf.mxu0 }
 0x20a   : > { %v1018_v37 = vadd.f32 %v8413_v59, %v1001_v1 }
 0x241   : > { %v777_v14 = vpop.xlane.xlu1 %776 }
 0x242   : > { %v793_v15 = vmul.f32 %v777_v14, %v8265_v29 }
 0x244   : > { %v809_v17 = vadd.f32 1e-05, %v793_v15 }
 0x246   : > { %7599 = vrsqrt.f32 %v809_v17  ;;  %vm966_vm15 = vweird.f32 %v809_v17 }
 0x24c   : > { %v7600_v30 = vpop.eup %7599 }
 0x24d   : > { %v961_v57 = vmul.f32 %v7600_v30, %v809_v17  ;;  %vm967_vm14 = vweird.f32 %v7600_v30 }
 0x24e   : > { %vm968_vm0 = vmor %vm966_vm15, %vm967_vm14 }
 0x24f   : > { %v962_v49 = vmul.f32 %v7600_v30, %v961_v57 }
 0x251   : > { %v963_v40 = vmul.f32 0.5, %v962_v49 }
 0x253   : > { %v964_v32 = vsub.f32 1.5, %v963_v40 }
 0x255   : > { %v965_v33 = vmul.f32 %v7600_v30, %v964_v32 }
 0x257   : > { %v969_v36 = vsel %vm968_vm0, %v7600_v30, %v965_v33 }
 0x258   : > { %v985_v11 = vmul.f32 %v969_v36, %v8515_v28  ;;  %v8617_v28 = vpop.f32.mrf.mxu1 }
 0x25a   : > { %v1002_v39 = vmul.f32 %v8396_v26, %v985_v11  ;;  %v8619_v26 = vpop.f32.mrf.mxu2 }
 0x25c   : > { %v1019_v42 = vadd.f32 %v8413_v59, %v1002_v39 }
 0x25e   : > { %v8608_v46 = vpack.c.bf16 %v1019_v42, %v1018_v37  ;;  %v1681_v37 = vpack.c.bf16 %v8615_v47, %v8605_v8  ;;  %v1103_v42 = vpop.f32.mrf.mxu0  ;;  %v1375_v8 = vpack.c.bf16 %v8610_v58, %v8599_v22 }
 0x260   : > { %1135 = vmatmul.bf16.gmra.mxu0 %v8608_v46  ;;  %1248 = vmatmul.bf16.gmra.mxu1 %v8608_v46  ;;  %v8623_v59 = vpop.f32.mrf.mxu1 }
 0x261   : > { %1361 = vmatmul.bf16.gmra.mxu2 %v8608_v46 }
 0x262   : > { %v8625_v54 = vpop.f32.mrf.mxu2 }
 0x263   : > { %v1682_v11 = vpack.c.bf16 %v8625_v54, %v8619_v26  ;;  %v1376_v26 = vpack.c.bf16 %v8623_v59, %v8617_v28 }
 0x268   : > { %v8627_v48 = vpop.f32.mrf.mxu1 }
 0x26a   : > { %v1337_v51 = vpop.f32.mrf.mxu2 }
 0x270   : > { %1823 = vmatmul.bf16.vlgmr.msrb.gmra.mxu1 %v8450_v5  ;;  %v8631_v53 = vpop.f32.mrf.mxu1 }
 0x271   : > { %1937 = vmatmul.bf16.vlgmr.msrb.gmra.mxu2 %v8450_v5 }
 0x272   : > { %v1339_v41 = vpop.f32.mrf.mxu2 }
 0x273   : > { %v1683_v33 = vpack.c.bf16 %v1339_v41, %v1337_v51  ;;  %v1377_v51 = vpack.c.bf16 %v8631_v53, %v8627_v48  ;;  %v1409_v53 = vsel %vm1383_vm1, %v1375_v8, 0 }
 0x278   : > { %v8633_v55 = vpop.f32.mrf.mxu1 }
 0x27a   : > { %v1342_v44 = vpop.f32.mrf.mxu2 }
 0x280   : > { %1828 = vmatmul.bf16.gmra.mxu1 %v8487_v35  ;;  %v1231_v19 = vpop.f32.mrf.mxu1 }
 0x281   : > { %1942 = vmatmul.bf16.gmra.mxu2 %v8487_v35  ;;  %v1378_v36 = vpack.c.bf16 %v1231_v19, %v8633_v55  ;;  %v1415_v55 = vsel %vm1383_vm1, %v1377_v51, 0  ;;  %v1412_v19 = vsel %vm1383_vm1, %v1376_v26, 0 }
 0x282   : > { %v1344_v2 = vpop.f32.mrf.mxu2 }
 0x283   : > { %v1684_v40 = vpack.c.bf16 %v1344_v2, %v1342_v44  ;;  %v1418_v39 = vsel %vm1383_vm1, %v1378_v36, 0  ;;  %v1106_v44 = vpop.f32.mrf.mxu0 }
 0x288   : > { %v1234_v3 = vpop.f32.mrf.mxu1 }
 0x28a   : > { %v1347_v4 = vpop.f32.mrf.mxu2 }
 0x28b   : > { %v1108_v48 = vpop.f32.mrf.mxu0 }
 0x290   : > { %1833 = vmatmul.bf16.gmra.mxu1 %v8499_v50  ;;  %v1236_v6 = vpop.f32.mrf.mxu1 }
 0x291   : > { %1947 = vmatmul.bf16.gmra.mxu2 %v8499_v50  ;;  %v1379_v49 = vpack.c.bf16 %v1236_v6, %v1234_v3  ;;  %v1367_v3 = vpack.c.bf16 %v1103_v42, %v1101_v34  ;;  %v7328_v34 = vld [vmem:[%s8219_s18 + $0x50] sm:$0xff] }
 0x292   : > { %v1349_v38 = vpop.f32.mrf.mxu2 }
 0x293   : > { %v1685_v57 = vpack.c.bf16 %v1349_v38, %v1347_v4  ;;  %v1421_v32 = vsel %vm1383_vm1, %v1379_v49, 0  ;;  %v1111_v28 = vpop.f32.mrf.mxu0  ;;  %v1368_v38 = vpack.c.bf16 %v1108_v48, %v1106_v44 }
 0x298   : > { %v1239_v7 = vpop.f32.mrf.mxu1 }
 0x29a   : > { %v1352_v62 = vpop.f32.mrf.mxu2 }
 0x29b   : > { %v1113_v4 = vpop.f32.mrf.mxu0 }
 0x2a0   : > { %1838 = vmatmul.bf16.gmra.mxu1 %v8528_v45  ;;  %v1241_v43 = vpop.f32.mrf.mxu1 }
 0x2a1   : > { %1952 = vmatmul.bf16.gmra.mxu2 %v8528_v45  ;;  %v1380_v24 = vpack.c.bf16 %v1241_v43, %v1239_v7  ;;  %v1369_v43 = vpack.c.bf16 %v1113_v4, %v1111_v28 }
 0x2a2   : > { %v1354_v52 = vpop.f32.mrf.mxu2 }
 0x2a3   : > { %v1686_v30 = vpack.c.bf16 %v1354_v52, %v1352_v62  ;;  %v1424_v60 = vsel %vm1383_vm1, %v1380_v24, 0  ;;  %v1116_v7 = vpop.f32.mrf.mxu0  ;;  %v7331_v24 = vld [vmem:[%s8219_s18 + $0x68] sm:$0xff] }
 0x2a8   : > { %v1244_v9 = vpop.f32.mrf.mxu1 }
 0x2aa   : > { %v1357_v10 = vpop.f32.mrf.mxu2 }
 0x2ab   : > { %v1118_v62 = vpop.f32.mrf.mxu0 }
 0x2b0   : > { %1843 = vmatmul.bf16.gmra.mxu1 %v8551_v31  ;;  %v1246_v12 = vpop.f32.mrf.mxu1 }
 0x2b1   : > { %1957 = vmatmul.bf16.gmra.mxu2 %v8551_v31  ;;  %v1381_v17 = vpack.c.bf16 %v1246_v12, %v1244_v9  ;;  %v1370_v12 = vpack.c.bf16 %v1118_v62, %v1116_v7 }
 0x2b2   : > { %v1359_v13 = vpop.f32.mrf.mxu2 }
 0x2b3   : > { %v1427_v21 = vsel %vm1383_vm1, %v1381_v17, 0  ;;  %v1687_v27 = vpack.c.bf16 %v1359_v13, %v1357_v10  ;;  %v1121_v9 = vpop.f32.mrf.mxu0  ;;  %v7332_v17 = vld [vmem:[%s8219_s18 + $0x70] sm:$0xff] }
 0x2bb   : > { %v1123_v13 = vpop.f32.mrf.mxu0 }
 0x2c0   : > { %1848 = vmatmul.bf16.gmra.mxu1 %v8564_v23 }
 0x2c1   : > { %1962 = vmatmul.bf16.gmra.mxu2 %v8564_v23 }
 0x2d0   : > { %1853 = vmatmul.bf16.gmra.mxu1 %v8575_v56 }
 0x2d1   : > { %1967 = vmatmul.bf16.gmra.mxu2 %v8575_v56 }
 0x2dd   : > { %v1249_v63 = vpop.f32.mrf.mxu1 }
 0x2e0   : > { %1858 = vmatmul.bf16.gmra.mxu1 %v8608_v46 }
 0x2e1   : > { %1972 = vmatmul.bf16.gmra.mxu2 %v8608_v46 }
 0x2e4   : > { %v1362_v14 = vpop.f32.mrf.mxu2 }
 0x2e5   : > { %v1251_v15 = vpop.f32.mrf.mxu1 }
 0x2e6   : > { %v1382_v16 = vpack.c.bf16 %v1251_v15, %v1249_v63 }
 0x2e8   : > { %v1430_v61 = vsel %vm1383_vm1, %v1382_v16, 0  ;;  %v1371_v16 = vpack.c.bf16 %v1123_v13, %v1121_v9  ;;  %v8747_v13 = vld [vmem:[%s10983_s1 + $0x20] sm:$0xff] }
 0x2e9   : > { %1432 = vmatpush.bf16.xpose.msra.mxu3 %v1430_v61  ;;  %v7333_v61 = vld [vmem:[%s8219_s18 + $0x78] sm:$0xff] }
 0x2ec   : > { %v1364_v18 = vpop.f32.mrf.mxu2 }
 0x2ed   : > { %v1688_v20 = vpack.c.bf16 %v1364_v18, %v1362_v14  ;;  %v1126_v14 = vpop.f32.mrf.mxu0 }
 0x2ef   : > { %1689 = vmatpush.bf16.msrb.mxu0 %v1688_v20 }
 0x2f1   : > { %1433 = vmatpush.bf16.xpose.msra.mxu3 %v1427_v21 }
 0x2f3   : > { %1690 = vmatpush.bf16.msrb.mxu0 %v1687_v27 }
 0x2f4   : > { %v8649_v25 = vpop.f32.mrf.mxu2 }
 0x2f5   : > { %v1128_v20 = vpop.f32.mrf.mxu0 }
 0x2f7   : > { %1691 = vmatpush.bf16.msrb.mxu0 %v1686_v30  ;;  %v7330_v30 = vld [vmem:[%s8219_s18 + $0x60] sm:$0xff] }
 0x2f9   : > { %1434 = vmatpush.bf16.xpose.msra.mxu3 %v1424_v60 }
 0x2fb   : > { %1692 = vmatpush.bf16.msrb.mxu0 %v1685_v57  ;;  %v1372_v57 = vpack.c.bf16 %v1128_v20, %v1126_v14  ;;  %v8766_v20 = vld [vmem:[%s10983_s1 + $0x30] sm:$0xff] }
 0x2fc   : > { %v8652_v0 = vpop.f32.mrf.mxu2 }
 0x2fd   : > { %v1131_v49 = vpop.f32.mrf.mxu0 }
 0x2ff   : > { %1693 = vmatpush.bf16.msrb.mxu0 %v1684_v40 }
 0x301   : > { %1435 = vmatpush.bf16.xpose.msra.mxu3 %v1421_v32  ;;  %v7329_v32 = vld [vmem:[%s8219_s18 + $0x58] sm:$0xff] }
 0x303   : > { %1694 = vmatpush.bf16.msrb.mxu0 %v1683_v33 }
 0x304   : > { %v8656_v1 = vpop.f32.mrf.mxu2 }
 0x307   : > { %1695 = vmatpush.bf16.msrb.mxu0 %v1682_v11  ;;  %v7327_v11 = vld [vmem:[%s8219_s18 + $0x48] sm:$0xff] }
 0x309   : > { %1436 = vmatpush.bf16.xpose.msra.mxu3 %v1418_v39  ;;  %v1133_v39 = vpop.f32.mrf.mxu0 }
 0x30a   : > { %v1373_v51 = vpack.c.bf16 %v1133_v39, %v1131_v49 }
 0x30b   : > { %1696 = vmatpush.bf16.msrb.mxu0 %v1681_v37  ;;  %v7326_v37 = vld [vmem:[%s8219_s18 + $0x40] sm:$0xff] }
 0x30c   : > { %v8665_v41 = vpop.f32.mrf.mxu2 }
 0x30d   : > { %v2101_v28 = vpack.c.bf16 %v8665_v41, %v8656_v1 }
 0x30f   : > { %v2136_v4 = vsel %vm1383_vm1, %v2101_v28, 0 }
 0x311   : > { %1437 = vmatpush.bf16.xpose.msra.mxu3 %v1415_v55  ;;  %v1136_v26 = vpop.f32.mrf.mxu0 }
 0x314   : > { %v8670_v54 = vpop.f32.mrf.mxu2 }
 0x319   : > { %1438 = vmatpush.bf16.xpose.msra.mxu3 %v1412_v19  ;;  %v1138_v8 = vpop.f32.mrf.mxu0 }
 0x31c   : > { %v8675_v47 = vpop.f32.mrf.mxu2 }
 0x31d   : > { %v2102_v48 = vpack.c.bf16 %v8675_v47, %v8670_v54  ;;  %v8715_v47 = vld [vmem:[%s10983_s1] sm:$0xff] }
 0x321   : > { %1439 = vmatpush.bf16.xpose.msra.mxu3 %v1409_v53  ;;  %v1374_v53 = vpack.c.bf16 %v1138_v8, %v1136_v26 }
 0x324   : > { %v8678_v2 = vpop.f32.mrf.mxu2 }
 0x328   : > { %6443 = vmatmul.msk.bf16.vlgmr.msra.gmra.mxu3 %vm1383_vm1, %v1367_v3  ;;  %v2139_v3 = vsel %vm1383_vm1, %v2102_v48, 0 }
 0x329   : > { %2043 = vmatpush.bf16.msrb.mxu3 %v7333_v61 }
 0x32c   : > { %v1955_v59 = vpop.f32.mrf.mxu2 }
 0x32d   : > { %2044 = vmatpush.bf16.msrb.mxu3 %v7332_v17  ;;  %v2103_v44 = vpack.c.bf16 %v1955_v59, %v8678_v2  ;;  %v2100_v2 = vpack.c.bf16 %v8652_v0, %v8649_v25  ;;  %v8721_v25 = vld [vmem:[%s10983_s1 + $0x8] sm:$0xff] }
 0x32f   : > { %v2142_v19 = vsel %vm1383_vm1, %v2103_v44, 0  ;;  %v2133_v59 = vsel %vm1383_vm1, %v2100_v2, 0 }
 0x331   : > { %2045 = vmatpush.bf16.msrb.mxu3 %v7331_v24 }
 0x334   : > { %v1958_v6 = vpop.f32.mrf.mxu2 }
 0x335   : > { %2046 = vmatpush.bf16.msrb.mxu3 %v7330_v30  ;;  %v8775_v30 = vld [vmem:[%s10983_s1 + $0x38] sm:$0xff] }
 0x338   : > { %6444 = vmatmul.msk.bf16.gmra.mxu3 %vm1383_vm1, %v1368_v38 }
 0x339   : > { %2047 = vmatpush.bf16.msrb.mxu3 %v7329_v32 }
 0x33c   : > { %v1960_v22 = vpop.f32.mrf.mxu2 }
 0x33d   : > { %2048 = vmatpush.bf16.msrb.mxu3 %v7328_v34  ;;  %v2104_v42 = vpack.c.bf16 %v1960_v22, %v1958_v6  ;;  %v8728_v22 = vld [vmem:[%s10983_s1 + $0x10] sm:$0xff] }
 0x33f   : > { %v2145_v55 = vsel %vm1383_vm1, %v2104_v42, 0 }
 0x341   : > { %2049 = vmatpush.bf16.msrb.mxu3 %v7327_v11 }
 0x344   : > { %v1963_v58 = vpop.f32.mrf.mxu2 }
 0x345   : > { %2050 = vmatpush.bf16.msrb.mxu3 %v7326_v37 }
 0x348   : > { %6445 = vmatmul.msk.bf16.gmra.mxu3 %vm1383_vm1, %v1369_v43 }
 0x34c   : > { %v1965_v52 = vpop.f32.mrf.mxu2 }
 0x34d   : > { %v2105_v33 = vpack.c.bf16 %v1965_v52, %v1963_v58  ;;  %v8737_v52 = vld [vmem:[%s10983_s1 + $0x18] sm:$0xff] }
 0x34f   : > { %v2148_v36 = vsel %vm1383_vm1, %v2105_v33, 0 }
 0x354   : > { %v1968_v10 = vpop.f32.mrf.mxu2 }
 0x358   : > { %6446 = vmatmul.msk.bf16.gmra.mxu3 %vm1383_vm1, %v1370_v12 }
 0x35c   : > { %v1970_v63 = vpop.f32.mrf.mxu2 }
 0x35d   : > { %v2106_v60 = vpack.c.bf16 %v1970_v63, %v1968_v10 }
 0x35f   : > { %v2151_v40 = vsel %vm1383_vm1, %v2106_v60, 0 }
 0x364   : > { %v1973_v15 = vpop.f32.mrf.mxu2 }
 0x368   : > { %6447 = vmatmul.msk.bf16.gmra.mxu3 %vm1383_vm1, %v1371_v16  ;;  %v8756_v16 = vld [vmem:[%s10983_s1 + $0x28] sm:$0xff] }
 0x36c   : > { %v1975_v18 = vpop.f32.mrf.mxu2 }
 0x36d   : > { %v2107_v21 = vpack.c.bf16 %v1975_v18, %v1973_v15 }
 0x36f   : > { %v2154_v27 = vsel %vm1383_vm1, %v2107_v21, 0 }
 0x370   : > { %2156 = vmatpush.bf16.xpose.msra.mxu0 %v2154_v27 }
 0x378   : > { %2157 = vmatpush.bf16.xpose.msra.mxu0 %v2151_v40  ;;  %6448 = vmatmul.msk.bf16.gmra.mxu3 %vm1383_vm1, %v1372_v57  ;;  %v8785_v40 = vld [vmem:[%s10983_s1 + $0x40] sm:$0xff] }
 0x380   : > { %2158 = vmatpush.bf16.xpose.msra.mxu0 %v2148_v36 }
 0x388   : > { %2159 = vmatpush.bf16.xpose.msra.mxu0 %v2145_v55  ;;  %6449 = vmatmul.msk.bf16.gmra.mxu3 %vm1383_vm1, %v1373_v51 }
 0x390   : > { %2160 = vmatpush.bf16.xpose.msra.mxu0 %v2142_v19 }
 0x398   : > { %2161 = vmatpush.bf16.xpose.msra.mxu0 %v2139_v3  ;;  %6450 = vmatmul.msk.bf16.gmra.mxu3 %vm1383_vm1, %v1374_v53 }
 0x3a0   : > { %2162 = vmatpush.bf16.xpose.msra.mxu0 %v2136_v4  ;;  %v8806_v4 = vld [vmem:[%s10983_s1 + $0x48] sm:$0xff] }
 0x3a8   : > { %2163 = vmatpush.bf16.xpose.msra.mxu0 %v2133_v59  ;;  %2051 = vmatmul.bf16.vlgmr.msrb.gmra.mxu3 %v8450_v5 }
 0x3ab   : > { %v1441_v54 = vpop.f32.mrf.mxu3 }
 0x3ac   : > { %v1481_v6 = vmul.f32 0.17677669, %v1441_v54 }
 0x3ae   : > { %v1513_v1 = vadd.f32 %v8715_v47, %v1481_v6 }
 0x3b0   : > { %1529 = vmax.xlane.f32.xlu2 %v1513_v1 }
 0x3b3   : > { %v1443_v41 = vpop.f32.mrf.mxu3 }
 0x3b4   : > { %v1482_v0 = vmul.f32 0.17677669, %v1443_v41 }
 0x3b6   : > { %v1514_v38 = vadd.f32 %v8721_v25, %v1482_v0 }
 0x3b8   : > { %1531 = vmax.xlane.f32.xlu0 %v1514_v38  ;;  %2056 = vmatmul.bf16.gmra.mxu3 %v8487_v35 }
 0x3bb   : > { %v1446_v7 = vpop.f32.mrf.mxu3 }
 0x3bc   : > { %v1483_v58 = vmul.f32 0.17677669, %v1446_v7 }
 0x3be   : > { %v8731_v62 = vadd.f32 %v8728_v22, %v1483_v58 }
 0x3c0   : > { %1533 = vmax.xlane.f32.xlu1 %v8731_v62 }
 0x3c3   : > { %v1448_v43 = vpop.f32.mrf.mxu3 }
 0x3c4   : > { %v1484_v9 = vmul.f32 0.17677669, %v1448_v43 }
 0x3c6   : > { %v8740_v10 = vadd.f32 %v8737_v52, %v1484_v9 }
 0x3c8   : > { %1535 = vmax.xlane.f32.xlu2 %v8740_v10  ;;  %2061 = vmatmul.bf16.gmra.mxu3 %v8499_v50 }
 0x3cb   : > { %v1451_v12 = vpop.f32.mrf.mxu3 }
 0x3cc   : > { %v1485_v63 = vmul.f32 0.17677669, %v1451_v12 }
 0x3ce   : > { %v8750_v14 = vadd.f32 %v8747_v13, %v1485_v63 }
 0x3d0   : > { %1537 = vmax.xlane.f32.xlu0 %v8750_v14 }
 0x3d3   : > { %v1453_v15 = vpop.f32.mrf.mxu3 }
 0x3d4   : > { %v1486_v61 = vmul.f32 0.17677669, %v1453_v15  ;;  %v8836_v15 = vld [vmem:[%s10983_s1 + $0x58] sm:$0xff] }
 0x3d5   : > { %11065 = vst [vmem:[#allocation19_spill] sm:$0xff] %v8836_v15 }
 0x3d6   : > { %v8759_v17 = vadd.f32 %v8756_v16, %v1486_v61 }
 0x3d8   : > { %1539 = vmax.xlane.f32.xlu1 %v8759_v17  ;;  %2066 = vmatmul.bf16.gmra.mxu3 %v8528_v45 }
 0x3db   : > { %v1456_v18 = vpop.f32.mrf.mxu3 }
 0x3dc   : > { %v1487_v21 = vmul.f32 0.17677669, %v1456_v18 }
 0x3de   : > { %v8769_v27 = vadd.f32 %v8766_v20, %v1487_v21 }
 0x3e0   : > { %1541 = vmax.xlane.f32.xlu2 %v8769_v27 }
 0x3e3   : > { %v1458_v24 = vpop.f32.mrf.mxu3 }
 0x3e4   : > { %v1488_v60 = vmul.f32 0.17677669, %v1458_v24 }
 0x3e6   : > { %v8778_v57 = vadd.f32 %v8775_v30, %v1488_v60 }
 0x3e8   : > { %1543 = vmax.xlane.f32.xlu0 %v8778_v57  ;;  %2071 = vmatmul.bf16.gmra.mxu3 %v8551_v31 }
 0x3eb   : > { %v1461_v49 = vpop.f32.mrf.mxu3 }
 0x3ec   : > { %v1489_v32 = vmul.f32 0.17677669, %v1461_v49 }
 0x3ee   : > { %v8788_v34 = vadd.f32 %v8785_v40, %v1489_v32  ;;  %v8851_v32 = vld [vmem:[%s10983_s1 + $0x60] sm:$0xff] }
 0x3ef   : > { %11066 = vst [vmem:[#allocation20_spill] sm:$0xff] %v8851_v32 }
 0x3f0   : > { %1545 = vmax.xlane.f32.xlu0 %v8788_v34 }
 0x3f3   : > { %v1463_v33 = vpop.f32.mrf.mxu3 }
 0x3f4   : > { %v1490_v28 = vmul.f32 0.17677669, %v1463_v33 }
 0x3f6   : > { %v8812_v6 = vadd.f32 %v8806_v4, %v1490_v28 }
 0x3f8   : > { %2076 = vmatmul.bf16.gmra.mxu3 %v8564_v23 }
 0x3fb   : > { %v1466_v36 = vpop.f32.mrf.mxu3 }
 0x3fc   : > { %v1491_v0 = vmul.f32 0.17677669, %v1466_v36 }
 0x403   : > { %v1468_v11 = vpop.f32.mrf.mxu3 }
 0x404   : > { %v1492_v63 = vmul.f32 0.17677669, %v1468_v11 }
 0x406   : > { %v8842_v21 = vadd.f32 %v8836_v15, %v1492_v63  ;;  %v8896_v63 = vld [vmem:[%s10983_s1 + $0x78] sm:$0xff] }
 0x407   : > { %11069 = vst [vmem:[#allocation23_spill] sm:$0xff] %v8896_v63 }
 0x408   : > { %2081 = vmatmul.bf16.gmra.mxu3 %v8575_v56 }
 0x40b   : > { %v1471_v39 = vpop.f32.mrf.mxu3 }
 0x40c   : > { %v1493_v49 = vmul.f32 0.17677669, %v1471_v39 }
 0x40e   : > { %v8857_v11 = vadd.f32 %v8851_v32, %v1493_v49 }
 0x413   : > { %v1473_v37 = vpop.f32.mrf.mxu3 }
 0x414   : > { %v1494_v39 = vmul.f32 0.17677669, %v1473_v37 }
 0x418   : > { %2086 = vmatmul.bf16.gmra.mxu3 %v8608_v46 }
 0x41b   : > { %v8794_v42 = vpop.f32.mrf.mxu3 }
 0x41c   : > { %v1495_v37 = vmul.f32 0.17677669, %v8794_v42 }
 0x423   : > { %v1530_v51 = vpop.xlane.xlu2 %1529  ;;  %v8796_v55 = vpop.f32.mrf.mxu3 }
 0x424   : > { %v1561_v26 = vsub.f32 %v1513_v1, %v1530_v51  ;;  %v1496_v42 = vmul.f32 0.17677669, %v8796_v55 }
 0x426   : > { %v1577_v44 = vmul.f32 1.442695, %v1561_v26 }
 0x428   : > { %7601 = vpow2.f32 %v1577_v44  ;;  %v8866_v44 = vld [vmem:[%s10983_s1 + $0x68] sm:$0xff] }
 0x429   : > { %11067 = vst [vmem:[#allocation21_spill] sm:$0xff] %v8866_v44 }
 0x42b   : > { %v1532_v19 = vpop.xlane.xlu0 %1531  ;;  %v8798_v8 = vpop.f32.mrf.mxu3 }
 0x42c   : > { %v1562_v48 = vsub.f32 %v1514_v38, %v1532_v19  ;;  %v8821_v38 = vld [vmem:[%s10983_s1 + $0x50] sm:$0xff] }
 0x42d   : > { %v8827_v43 = vadd.f32 %v8821_v38, %v1491_v0 }
 0x42e   : > { %v8800_v53 = vpop.eup %7601  ;;  %v1579_v3 = vmul.f32 1.442695, %v1562_v48 }
 0x42f   : > { %1609 = vadd.xlane.f32.xlu1 %v8800_v53 }
 0x430   : > { %7603 = vpow2.f32 %v1579_v3  ;;  %v8872_v3 = vadd.f32 %v8866_v44, %v1494_v39 }
 0x433   : > { %v1534_v2 = vpop.xlane.xlu1 %1533  ;;  %v8808_v59 = vpop.f32.mrf.mxu3 }
 0x434   : > { %v1563_v54 = vsub.f32 %v8731_v62, %v1534_v2 }
 0x436   : > { %v8814_v1 = vpop.eup %7603  ;;  %v1581_v41 = vmul.f32 1.442695, %v1563_v54  ;;  %v8882_v54 = vld [vmem:[%s10983_s1 + $0x70] sm:$0xff] }
 0x437   : > { %1611 = vadd.xlane.f32.xlu2 %v8814_v1  ;;  %1547 = vmax.xlane.f32.xlu1 %v8812_v6  ;;  %11068 = vst [vmem:[#allocation22_spill] sm:$0xff] %v8882_v54 }
 0x438   : > { %7605 = vpow2.f32 %v1581_v41 }
 0x43b   : > { %v1536_v7 = vpop.xlane.xlu2 %1535  ;;  %v8823_v58 = vpop.f32.mrf.mxu3 }
 0x43c   : > { %v1564_v62 = vsub.f32 %v8740_v10, %v1536_v7  ;;  %v8886_v7 = vadd.f32 %v8882_v54, %v1495_v37 }
 0x43e   : > { %v8829_v9 = vpop.eup %7605  ;;  %v1583_v12 = vmul.f32 1.442695, %v1564_v62 }
 0x43f   : > { %1613 = vadd.xlane.f32.xlu2 %v8829_v9  ;;  %1549 = vmax.xlane.f32.xlu1 %v8827_v43 }
 0x440   : > { %7607 = vpow2.f32 %v1583_v12 }
 0x443   : > { %v1538_v61 = vpop.xlane.xlu0 %1537  ;;  %v8838_v18 = vpop.f32.mrf.mxu3 }
 0x444   : > { %v1565_v10 = vsub.f32 %v8750_v14, %v1538_v61 }
 0x446   : > { %v8844_v24 = vpop.eup %7607  ;;  %v1585_v60 = vmul.f32 1.442695, %v1565_v10 }
 0x447   : > { %1615 = vadd.xlane.f32.xlu0 %v8844_v24  ;;  %1551 = vmax.xlane.f32.xlu2 %v8842_v21 }
 0x448   : > { %7609 = vpow2.f32 %v1585_v60  ;;  %v8900_v60 = vadd.f32 %v8896_v63, %v1496_v42 }
 0x44b   : > { %v1540_v33 = vpop.xlane.xlu1 %1539  ;;  %v8853_v36 = vpop.f32.mrf.mxu3 }
 0x44c   : > { %v1566_v14 = vsub.f32 %v8759_v17, %v1540_v33 }
 0x44e   : > { %v8859_v51 = vpop.eup %7609  ;;  %v1587_v26 = vmul.f32 1.442695, %v1566_v14 }
 0x44f   : > { %1617 = vadd.xlane.f32.xlu0 %v8859_v51  ;;  %1553 = vmax.xlane.f32.xlu2 %v8857_v11 }
 0x450   : > { %7611 = vpow2.f32 %v1587_v26 }
 0x453   : > { %v1542_v19 = vpop.xlane.xlu2 %1541  ;;  %v8868_v48 = vpop.f32.mrf.mxu3 }
 0x454   : > { %v1567_v17 = vsub.f32 %v8769_v27, %v1542_v19 }
 0x456   : > { %v8874_v28 = vpop.eup %7611  ;;  %v1589_v2 = vmul.f32 1.442695, %v1567_v17 }
 0x457   : > { %1619 = vadd.xlane.f32.xlu1 %v8874_v28  ;;  %1555 = vmax.xlane.f32.xlu0 %v8872_v3 }
 0x458   : > { %7613 = vpow2.f32 %v1589_v2 }
 0x45b   : > { %v1544_v41 = vpop.xlane.xlu0 %1543  ;;  %v2067_v27 = vpop.f32.mrf.mxu3 }
 0x45c   : > { %v1568_v0 = vsub.f32 %v8778_v57, %v1544_v41 }
 0x45e   : > { %v8888_v62 = vpop.eup %7613  ;;  %v1591_v12 = vmul.f32 1.442695, %v1568_v0 }
 0x45f   : > { %1621 = vadd.xlane.f32.xlu1 %v8888_v62  ;;  %1557 = vmax.xlane.f32.xlu0 %v8886_v7 }
 0x460   : > { %7615 = vpow2.f32 %v1591_v12 }
 0x463   : > { %v1546_v61 = vpop.xlane.xlu0 %1545  ;;  %v2069_v57 = vpop.f32.mrf.mxu3 }
 0x464   : > { %v1569_v10 = vsub.f32 %v8788_v34, %v1546_v61 }
 0x466   : > { %v8902_v49 = vpop.eup %7615  ;;  %v1593_v33 = vmul.f32 1.442695, %v1569_v10 }
 0x467   : > { %1623 = vadd.xlane.f32.xlu2 %v8902_v49  ;;  %1559 = vmax.xlane.f32.xlu1 %v8900_v60 }
 0x468   : > { %7617 = vpow2.f32 %v1593_v33 }
 0x46b   : > { %v2072_v55 = vpop.f32.mrf.mxu3 }
 0x46e   : > { %v8906_v14 = vpop.eup %7617 }
 0x46f   : > { %1625 = vadd.xlane.f32.xlu2 %v8906_v14 }
 0x473   : > { %v2074_v26 = vpop.f32.mrf.mxu3 }
 0x474   : > { %v2393_v54 = vpack.c.bf16 %v2074_v26, %v2072_v55 }
 0x47b   : > { %v2077_v39 = vpop.f32.mrf.mxu3 }
 0x483   : > { %v2079_v19 = vpop.f32.mrf.mxu3 }
 0x484   : > { %v2394_v33 = vpack.c.bf16 %v2079_v19, %v2077_v39 }
 0x48b   : > { %v2082_v34 = vpop.f32.mrf.mxu3 }
 0x493   : > { %v2084_v17 = vpop.f32.mrf.mxu3 }
 0x494   : > { %v2395_v12 = vpack.c.bf16 %v2084_v17, %v2082_v34 }
 0x49b   : > { %v2087_v2 = vpop.f32.mrf.mxu3 }
 0x4a2   : > { %v1610_v37 = vpop.xlane.xlu1 %1609 }
 0x4a3   : > { %v2089_v41 = vpop.f32.mrf.mxu3  ;;  %7619 = vrcp.f32 %v1610_v37 }
 0x4a4   : > { %v2396_v0 = vpack.c.bf16 %v2089_v41, %v2087_v2 }
 0x4a6   : > { %2397 = vmatpush.bf16.msra.mxu1 %v2396_v0 }
 0x4a9   : > { %v7620_v63 = vpop.eup %7619 }
 0x4aa   : > { %v1612_v42 = vpop.xlane.xlu2 %1611  ;;  %v1548_v61 = vpop.xlane.xlu1 %1547  ;;  %2398 = vmatpush.bf16.msra.mxu1 %v2395_v12  ;;  %v1657_v2 = vmul.f32 %v7620_v63, %v8800_v53 }
 0x4ab   : > { %7621 = vrcp.f32 %v1612_v42  ;;  %v1570_v10 = vsub.f32 %v8812_v6, %v1548_v61  ;;  %v2392_v6 = vpack.c.bf16 %v2069_v57, %v2067_v27 }
 0x4ad   : > { %v1595_v29 = vmul.f32 1.442695, %v1570_v10 }
 0x4ae   : > { %2399 = vmatpush.bf16.msra.mxu1 %v2394_v33 }
 0x4af   : > { %7623 = vpow2.f32 %v1595_v29  ;;  %v2391_v29 = vpack.c.bf16 %v8868_v48, %v8853_v36 }
 0x4b1   : > { %v7622_v44 = vpop.eup %7621 }
 0x4b2   : > { %v1614_v32 = vpop.xlane.xlu2 %1613  ;;  %v1550_v15 = vpop.xlane.xlu1 %1549  ;;  %2400 = vmatpush.bf16.msra.mxu1 %v2393_v54  ;;  %v1658_v34 = vmul.f32 %v7622_v44, %v8814_v1 }
 0x4b3   : > { %v1571_v17 = vsub.f32 %v8827_v43, %v1550_v15  ;;  %v2390_v15 = vpack.c.bf16 %v8838_v18, %v8823_v58 }
 0x4b4   : > { %v1673_v37 = vpack.c.bf16 %v1658_v34, %v1657_v2 }
 0x4b5   : > { %v8913_v41 = vpop.eup %7623  ;;  %v1597_v39 = vmul.f32 1.442695, %v1571_v17 }
 0x4b6   : > { %1697 = vmatmul.bf16.vlgmr.msrb.gmra.mxu0 %v1673_v37  ;;  %1627 = vadd.xlane.f32.xlu0 %v8913_v41 }
 0x4b7   : > { %7625 = vpow2.f32 %v1597_v39  ;;  %2401 = vmatpush.bf16.msra.mxu1 %v2392_v6 }
 0x4b8   : > { %7627 = vrcp.f32 %v1614_v32  ;;  %v2389_v32 = vpack.c.bf16 %v8808_v59, %v8798_v8 }
 0x4ba   : > { %v1616_v54 = vpop.xlane.xlu0 %1615  ;;  %v1552_v53 = vpop.xlane.xlu2 %1551 }
 0x4bb   : > { %7629 = vrcp.f32 %v1616_v54  ;;  %v1572_v1 = vsub.f32 %v8842_v21, %v1552_v53  ;;  %2402 = vmatpush.bf16.msra.mxu1 %v2391_v29 }
 0x4bd   : > { %v8919_v43 = vpop.eup %7625  ;;  %v1599_v44 = vmul.f32 1.442695, %v1572_v1 }
 0x4be   : > { %1629 = vadd.xlane.f32.xlu1 %v8919_v43  ;;  %v7628_v27 = vpop.eup %7627 }
 0x4bf   : > { %7631 = vpow2.f32 %v1599_v44  ;;  %2403 = vmatpush.bf16.msra.mxu1 %v2390_v15  ;;  %v1659_v21 = vmul.f32 %v7628_v27, %v8829_v9  ;;  %v7309_v15 = vld [vmem:[%s8224_s21 + $0x8] sm:$0xff]  ;;  %v7308_v44 = vld [vmem:[%s8224_s21] sm:$0xff] }
 0x4c0   : > { %2586 = vmatpush.bf16.msra.mxu3 %v7309_v15 }
 0x4c1   : > { %v7630_v63 = vpop.eup %7629 }
 0x4c2   : > { %v1618_v36 = vpop.xlane.xlu0 %1617  ;;  %v1554_v48 = vpop.xlane.xlu2 %1553  ;;  %v1660_v57 = vmul.f32 %v7630_v63, %v8844_v24 }
 0x4c3   : > { %v1573_v55 = vsub.f32 %v8857_v11, %v1554_v48  ;;  %2404 = vmatpush.bf16.msra.mxu1 %v2389_v32 }
 0x4c4   : > { %v1674_v58 = vpack.c.bf16 %v1660_v57, %v1659_v21  ;;  %2587 = vmatpush.bf16.msra.mxu3 %v7308_v44 }
 0x4c5   : > { %v8929_v18 = vpop.eup %7631  ;;  %v1601_v26 = vmul.f32 1.442695, %v1573_v55 }
 0x4c6   : > { %1702 = vmatmul.bf16.gmra.mxu0 %v1674_v58  ;;  %1631 = vadd.xlane.f32.xlu2 %v8929_v18 }
 0x4c7   : > { %7633 = vpow2.f32 %v1601_v26 }
 0x4c8   : > { %7635 = vrcp.f32 %v1618_v36 }
 0x4ca   : > { %v1620_v19 = vpop.xlane.xlu1 %1619  ;;  %v1556_v8 = vpop.xlane.xlu0 %1555 }
 0x4cb   : > { %7637 = vrcp.f32 %v1620_v19  ;;  %v1574_v59 = vsub.f32 %v8872_v3, %v1556_v8 }
 0x4cd   : > { %v8933_v9 = vpop.eup %7633  ;;  %v1603_v24 = vmul.f32 1.442695, %v1574_v59 }
 0x4ce   : > { %1633 = vadd.xlane.f32.xlu0 %v8933_v9  ;;  %v7636_v11 = vpop.eup %7635 }
 0x4cf   : > { %7639 = vpow2.f32 %v1603_v24  ;;  %v1661_v61 = vmul.f32 %v7636_v11, %v8859_v51 }
 0x4d1   : > { %v7638_v0 = vpop.eup %7637 }
 0x4d2   : > { %v1622_v12 = vpop.xlane.xlu1 %1621  ;;  %v1558_v42 = vpop.xlane.xlu0 %1557  ;;  %v1662_v10 = vmul.f32 %v7638_v0, %v8874_v28 }
 0x4d3   : > { %v1575_v33 = vsub.f32 %v8886_v7, %v1558_v42  ;;  %v1824_v0 = vpop.f32.mrf.mxu1 }
 0x4d4   : > { %v1675_v2 = vpack.c.bf16 %v1662_v10, %v1661_v61 }
 0x4d5   : > { %v7640_v34 = vpop.eup %7639  ;;  %v1605_v17 = vmul.f32 1.442695, %v1575_v33 }
 0x4d6   : > { %1707 = vmatmul.bf16.gmra.mxu0 %v1675_v2  ;;  %1635 = vadd.xlane.f32.xlu1 %v7640_v34 }
 0x4d7   : > { %7641 = vpow2.f32 %v1605_v17 }
 0x4d8   : > { %7643 = vrcp.f32 %v1622_v12 }
 0x4da   : > { %v1624_v3 = vpop.xlane.xlu2 %1623  ;;  %v1560_v37 = vpop.xlane.xlu1 %1559 }
 0x4db   : > { %7645 = vrcp.f32 %v1624_v3  ;;  %v1576_v6 = vsub.f32 %v8900_v60, %v1560_v37 }
 0x4dd   : > { %v8940_v39 = vpop.eup %7641  ;;  %v1607_v51 = vmul.f32 1.442695, %v1576_v6 }
 0x4de   : > { %1637 = vadd.xlane.f32.xlu2 %v8940_v39  ;;  %v7644_v28 = vpop.eup %7643 }
 0x4df   : > { %7647 = vpow2.f32 %v1607_v51  ;;  %v1663_v29 = vmul.f32 %v7644_v28, %v8888_v62 }
 0x4e1   : > { %v7646_v7 = vpop.eup %7645 }
 0x4e2   : > { %v1664_v54 = vmul.f32 %v7646_v7, %v8902_v49  ;;  %v1626_v60 = vpop.xlane.xlu2 %1625 }
 0x4e3   : > { %7649 = vrcp.f32 %v1626_v60 }
 0x4e4   : > { %v1676_v53 = vpack.c.bf16 %v1664_v54, %v1663_v29 }
 0x4e5   : > { %v7648_v1 = vpop.eup %7647 }
 0x4e6   : > { %1712 = vmatmul.bf16.gmra.mxu0 %v1676_v53  ;;  %1639 = vadd.xlane.f32.xlu0 %v7648_v1 }
 0x4e9   : > { %v7650_v63 = vpop.eup %7649 }
 0x4ea   : > { %v1665_v36 = vmul.f32 %v7650_v63, %v8906_v14 }
 0x529   : > { %v1628_v27 = vpop.xlane.xlu0 %1627 }
 0x52a   : > { %7651 = vrcp.f32 %v1628_v27 }
 0x530   : > { %v7652_v32 = vpop.eup %7651 }
 0x531   : > { %v1666_v62 = vmul.f32 %v7652_v32, %v8913_v41  ;;  %v1630_v21 = vpop.xlane.xlu1 %1629 }
 0x532   : > { %7653 = vrcp.f32 %v1630_v21 }
 0x533   : > { %v1698_v48 = vpop.f32.mrf.mxu0  ;;  %v1677_v49 = vpack.c.bf16 %v1666_v62, %v1665_v36 }
 0x535   : > { %1717 = vmatmul.bf16.gmra.mxu0 %v1677_v49 }
 0x538   : > { %v7654_v26 = vpop.eup %7653 }
 0x539   : > { %v1632_v57 = vpop.xlane.xlu2 %1631  ;;  %v1667_v8 = vmul.f32 %v7654_v26, %v8919_v43  ;;  %v7343_v26 = vld [vmem:[%s8209_s25 + $0xb8] sm:$0xff] }
 0x53a   : > { %7655 = vrcp.f32 %v1632_v57  ;;  %2694 = vmatpush.bf16.msrb.mxu0 %v7343_v26 }
 0x53b   : > { %v1700_v55 = vpop.f32.mrf.mxu0 }
 0x53c   : > { %v1738_v58 = vpack.c.bf16 %v1700_v55, %v1698_v48 }
 0x53e   : > { %6631 = vmatmul.msk.bf16.vlgmr.msra.gmra.mxu3 %vm1383_vm1, %v1738_v58 }
 0x540   : > { %v7656_v19 = vpop.eup %7655 }
 0x541   : > { %v1668_v59 = vmul.f32 %v7656_v19, %v8929_v18  ;;  %v1634_v41 = vpop.xlane.xlu0 %1633  ;;  %v1826_v18 = vpop.f32.mrf.mxu1 }
 0x542   : > { %7657 = vrcp.f32 %v1634_v41  ;;  %v2092_v63 = vpack.c.bf16 %v1826_v18, %v1824_v0  ;;  %v7340_v41 = vld [vmem:[%s8209_s25 + $0xa0] sm:$0xff] }
 0x543   : > { %v1703_v14 = vpop.f32.mrf.mxu0  ;;  %v1678_v24 = vpack.c.bf16 %v1668_v59, %v1667_v8  ;;  %v7342_v8 = vld [vmem:[%s8209_s25 + $0xb0] sm:$0xff] }
 0x544   : > { %2695 = vmatpush.bf16.msrb.mxu0 %v7342_v8 }
 0x545   : > { %1722 = vmatmul.bf16.gmra.mxu0 %v1678_v24  ;;  %v7341_v24 = vld [vmem:[%s8209_s25 + $0xa8] sm:$0xff] }
 0x548   : > { %v7658_v61 = vpop.eup %7657  ;;  %2696 = vmatpush.bf16.msrb.mxu0 %v7341_v24 }
 0x549   : > { %v1636_v11 = vpop.xlane.xlu1 %1635  ;;  %v1669_v33 = vmul.f32 %v7658_v61, %v8933_v9  ;;  %v1829_v7 = vpop.f32.mrf.mxu1  ;;  %v7338_v61 = vld [vmem:[%s8209_s25 + $0x90] sm:$0xff] }
 0x54a   : > { %7659 = vrcp.f32 %v1636_v11 }
 0x54b   : > { %v1705_v12 = vpop.f32.mrf.mxu0 }
 0x54c   : > { %v1739_v42 = vpack.c.bf16 %v1705_v12, %v1703_v14  ;;  %2697 = vmatpush.bf16.msrb.mxu0 %v7340_v41 }
 0x54e   : > { %6632 = vmatmul.msk.bf16.gmra.mxu3 %vm1383_vm1, %v1739_v42  ;;  %v7339_v42 = vld [vmem:[%s8209_s25 + $0x98] sm:$0xff] }
 0x550   : > { %v7660_v10 = vpop.eup %7659  ;;  %2698 = vmatpush.bf16.msrb.mxu0 %v7339_v42 }
 0x551   : > { %v1670_v2 = vmul.f32 %v7660_v10, %v7640_v34  ;;  %v1638_v3 = vpop.xlane.xlu2 %1637  ;;  %v1831_v15 = vpop.f32.mrf.mxu1 }
 0x552   : > { %7661 = vrcp.f32 %v1638_v3  ;;  %v2093_v36 = vpack.c.bf16 %v1831_v15, %v1829_v7 }
 0x553   : > { %v1708_v43 = vpop.f32.mrf.mxu0  ;;  %v1679_v17 = vpack.c.bf16 %v1670_v2, %v1669_v33 }
 0x554   : > { %2699 = vmatpush.bf16.msrb.mxu0 %v7338_v61 }
 0x555   : > { %1727 = vmatmul.bf16.gmra.mxu0 %v1679_v17  ;;  %v7336_v17 = vld [vmem:[%s8209_s25 + $0x80] sm:$0xff] }
 0x558   : > { %v7662_v28 = vpop.eup %7661 }
 0x559   : > { %v1640_v37 = vpop.xlane.xlu0 %1639  ;;  %v1671_v54 = vmul.f32 %v7662_v28, %v8940_v39  ;;  %v1834_v27 = vpop.f32.mrf.mxu1 }
 0x55a   : > { %7663 = vrcp.f32 %v1640_v37 }
 0x55b   : > { %v1710_v6 = vpop.f32.mrf.mxu0 }
 0x55c   : > { %v1740_v51 = vpack.c.bf16 %v1710_v6, %v1708_v43  ;;  %v7337_v43 = vld [vmem:[%s8209_s25 + $0x88] sm:$0xff] }
 0x55d   : > { %2700 = vmatpush.bf16.msrb.mxu0 %v7337_v43 }
 0x55e   : > { %6633 = vmatmul.msk.bf16.gmra.mxu3 %vm1383_vm1, %v1740_v51 }
 0x560   : > { %v7664_v29 = vpop.eup %7663 }
 0x561   : > { %v1672_v53 = vmul.f32 %v7664_v29, %v7648_v1  ;;  %v1836_v32 = vpop.f32.mrf.mxu1  ;;  %2701 = vmatpush.bf16.msrb.mxu0 %v7336_v17 }
 0x562   : > { %v2094_v62 = vpack.c.bf16 %v1836_v32, %v1834_v27 }
 0x563   : > { %v1713_v9 = vpop.f32.mrf.mxu0  ;;  %v1680_v34 = vpack.c.bf16 %v1672_v53, %v1671_v54 }
 0x565   : > { %1732 = vmatmul.bf16.gmra.mxu0 %v1680_v34 }
 0x569   : > { %v1839_v39 = vpop.f32.mrf.mxu1 }
 0x56b   : > { %v1715_v44 = vpop.f32.mrf.mxu0 }
 0x56c   : > { %v1741_v60 = vpack.c.bf16 %v1715_v44, %v1713_v9 }
 0x56e   : > { %6634 = vmatmul.msk.bf16.gmra.mxu3 %vm1383_vm1, %v1741_v60 }
 0x571   : > { %v1841_v1 = vpop.f32.mrf.mxu1 }
 0x572   : > { %v2095_v49 = vpack.c.bf16 %v1841_v1, %v1839_v39 }
 0x575   : > { %6595 = vmatmul.msk.bf16.vlgmr.msra.gmra.mxu0 %vm1383_vm1, %v2092_v63 }
 0x579   : > { %v1844_v48 = vpop.f32.mrf.mxu1 }
 0x581   : > { %v1846_v21 = vpop.f32.mrf.mxu1 }
 0x582   : > { %v2096_v58 = vpack.c.bf16 %v1846_v21, %v1844_v48 }
 0x585   : > { %6596 = vmatmul.msk.bf16.gmra.mxu0 %vm1383_vm1, %v2093_v36 }
 0x589   : > { %v1849_v57 = vpop.f32.mrf.mxu1 }
 0x591   : > { %v1851_v19 = vpop.f32.mrf.mxu1 }
 0x592   : > { %v2097_v12 = vpack.c.bf16 %v1851_v19, %v1849_v57 }
 0x595   : > { %6597 = vmatmul.msk.bf16.gmra.mxu0 %vm1383_vm1, %v2094_v62 }
 0x599   : > { %v1854_v11 = vpop.f32.mrf.mxu1 }
 0x5a1   : > { %v1856_v2 = vpop.f32.mrf.mxu1 }
 0x5a2   : > { %v2098_v3 = vpack.c.bf16 %v1856_v2, %v1854_v11 }
 0x5a5   : > { %6598 = vmatmul.msk.bf16.gmra.mxu0 %vm1383_vm1, %v2095_v49 }
 0x5a9   : > { %v1859_v37 = vpop.f32.mrf.mxu1 }
 0x5b1   : > { %v1861_v28 = vpop.f32.mrf.mxu1 }
 0x5b2   : > { %v1718_v55 = vpop.f32.mrf.mxu0  ;;  %v2099_v29 = vpack.c.bf16 %v1861_v28, %v1859_v37 }
 0x5b5   : > { %6599 = vmatmul.msk.bf16.gmra.mxu0 %vm1383_vm1, %v2096_v58 }
 0x5ba   : > { %v1720_v59 = vpop.f32.mrf.mxu0 }
 0x5bb   : > { %v1742_v14 = vpack.c.bf16 %v1720_v59, %v1718_v55 }
 0x5bd   : > { %6635 = vmatmul.msk.bf16.gmra.mxu3 %vm1383_vm1, %v1742_v14 }
 0x5c2   : > { %v1723_v0 = vpop.f32.mrf.mxu0 }
 0x5c5   : > { %6600 = vmatmul.msk.bf16.gmra.mxu0 %vm1383_vm1, %v2097_v12 }
 0x5ca   : > { %v1725_v10 = vpop.f32.mrf.mxu0 }
 0x5cb   : > { %v1743_v33 = vpack.c.bf16 %v1725_v10, %v1723_v0 }
 0x5cd   : > { %6636 = vmatmul.msk.bf16.gmra.mxu3 %vm1383_vm1, %v1743_v33 }
 0x5d2   : > { %v1728_v18 = vpop.f32.mrf.mxu0 }
 0x5d5   : > { %6601 = vmatmul.msk.bf16.gmra.mxu0 %vm1383_vm1, %v2098_v3 }
 0x5da   : > { %v1730_v6 = vpop.f32.mrf.mxu0 }
 0x5db   : > { %v1744_v51 = vpack.c.bf16 %v1730_v6, %v1728_v18 }
 0x5dd   : > { %6637 = vmatmul.msk.bf16.gmra.mxu3 %vm1383_vm1, %v1744_v51 }
 0x5e2   : > { %v1733_v7 = vpop.f32.mrf.mxu0 }
 0x5e5   : > { %6602 = vmatmul.msk.bf16.gmra.mxu0 %vm1383_vm1, %v2099_v29 }
 0x5ea   : > { %v1735_v54 = vpop.f32.mrf.mxu0 }
 0x5eb   : > { %v1745_v53 = vpack.c.bf16 %v1735_v54, %v1733_v7  ;;  %v11070_v54 = vld [vmem:[#allocation19_spill] sm:$0xff] }
 0x5ed   : > { %6638 = vmatmul.msk.bf16.gmra.mxu3 %vm1383_vm1, %v1745_v53 }
 0x5f2   : > { %v2165_v9 = vpop.f32.mrf.mxu0 }
 0x5f3   : > { %v2205_v34 = vmul.f32 0.17677669, %v2165_v9 }
 0x5f5   : > { %2702 = vmatmul.bf16.vlgmr.msrb.gmra.mxu0 %v8450_v5  ;;  %v2221_v15 = vadd.f32 %v2205_v34, %v8715_v47 }
 0x5f7   : > { %2237 = vmax.xlane.f32.xlu1 %v2221_v15 }
 0x5fa   : > { %v2167_v44 = vpop.f32.mrf.mxu0 }
 0x5fb   : > { %v2206_v60 = vmul.f32 0.17677669, %v2167_v44 }
 0x5fd   : > { %v2222_v27 = vadd.f32 %v2206_v60, %v8721_v25 }
 0x5ff   : > { %2239 = vmax.xlane.f32.xlu2 %v2222_v27 }
 0x602   : > { %v2170_v63 = vpop.f32.mrf.mxu0 }
 0x603   : > { %v2207_v32 = vmul.f32 0.17677669, %v2170_v63 }
 0x605   : > { %2707 = vmatmul.bf16.gmra.mxu0 %v8487_v35  ;;  %v2223_v36 = vadd.f32 %v2207_v32, %v8728_v22 }
 0x607   : > { %2241 = vmax.xlane.f32.xlu0 %v2223_v36 }
 0x60a   : > { %v2172_v39 = vpop.f32.mrf.mxu0 }
 0x60b   : > { %v2208_v1 = vmul.f32 0.17677669, %v2172_v39 }
 0x60d   : > { %v2224_v62 = vadd.f32 %v2208_v1, %v8737_v52 }
 0x60f   : > { %2243 = vmax.xlane.f32.xlu1 %v2224_v62 }
 0x612   : > { %v2175_v48 = vpop.f32.mrf.mxu0 }
 0x613   : > { %v2209_v47 = vmul.f32 0.17677669, %v2175_v48 }
 0x615   : > { %2712 = vmatmul.bf16.gmra.mxu0 %v8499_v50  ;;  %v2225_v49 = vadd.f32 %v2209_v47, %v8747_v13  ;;  %v11072_v47 = vld [vmem:[#allocation21_spill] sm:$0xff] }
 0x617   : > { %2245 = vmax.xlane.f32.xlu2 %v2225_v49 }
 0x61a   : > { %v2177_v25 = vpop.f32.mrf.mxu0 }
 0x61b   : > { %v2210_v21 = vmul.f32 0.17677669, %v2177_v25 }
 0x61d   : > { %v8986_v57 = vadd.f32 %v2210_v21, %v8756_v16 }
 0x61f   : > { %2247 = vmax.xlane.f32.xlu0 %v8986_v57 }
 0x622   : > { %v2180_v22 = vpop.f32.mrf.mxu0 }
 0x623   : > { %v2211_v55 = vmul.f32 0.17677669, %v2180_v22 }
 0x625   : > { %2717 = vmatmul.bf16.gmra.mxu0 %v8528_v45  ;;  %v8991_v52 = vadd.f32 %v2211_v55, %v8766_v20 }
 0x627   : > { %2249 = vmax.xlane.f32.xlu1 %v8991_v52 }
 0x62a   : > { %v2182_v58 = vpop.f32.mrf.mxu0 }
 0x62b   : > { %v2212_v26 = vmul.f32 0.17677669, %v2182_v58  ;;  %v11073_v58 = vld [vmem:[#allocation22_spill] sm:$0xff] }
 0x62d   : > { %v8995_v13 = vadd.f32 %v2212_v26, %v8775_v30 }
 0x62f   : > { %2251 = vmax.xlane.f32.xlu2 %v8995_v13 }
 0x632   : > { %v2185_v16 = vpop.f32.mrf.mxu0 }
 0x633   : > { %v2213_v19 = vmul.f32 0.17677669, %v2185_v16 }
 0x635   : > { %2722 = vmatmul.bf16.gmra.mxu0 %v8551_v31  ;;  %v9000_v8 = vadd.f32 %v2213_v19, %v8785_v40 }
 0x637   : > { %2253 = vmax.xlane.f32.xlu2 %v9000_v8 }
 0x63a   : > { %v2187_v20 = vpop.f32.mrf.mxu0 }
 0x63b   : > { %v2214_v12 = vmul.f32 0.17677669, %v2187_v20 }
 0x63d   : > { %v9010_v10 = vadd.f32 %v2214_v12, %v8806_v4 }
 0x642   : > { %v2190_v41 = vpop.f32.mrf.mxu0 }
 0x643   : > { %v2215_v17 = vmul.f32 0.17677669, %v2190_v41 }
 0x645   : > { %2727 = vmatmul.bf16.gmra.mxu0 %v8564_v23  ;;  %v9017_v37 = vadd.f32 %v2215_v17, %v8821_v38 }
 0x64a   : > { %v2192_v2 = vpop.f32.mrf.mxu0 }
 0x64b   : > { %v2216_v28 = vmul.f32 0.17677669, %v2192_v2 }
 0x64d   : > { %v9024_v53 = vadd.f32 %v2216_v28, %v11070_v54 }
 0x652   : > { %v2195_v4 = vpop.f32.mrf.mxu0 }
 0x653   : > { %v2217_v38 = vmul.f32 0.17677669, %v2195_v4 }
 0x655   : > { %2732 = vmatmul.bf16.gmra.mxu0 %v8575_v56 }
 0x665   : > { %2737 = vmatmul.bf16.gmra.mxu0 %v8608_v46 }
 0x66a   : > { %v2238_v30 = vpop.xlane.xlu1 %2237 }
 0x66b   : > { %v2269_v59 = vsub.f32 %v2221_v15, %v2238_v30  ;;  %v2197_v15 = vpop.f32.mrf.mxu0 }
 0x66c   : > { %v2218_v39 = vmul.f32 0.17677669, %v2197_v15 }
 0x66d   : > { %v2285_v14 = vmul.f32 1.442695, %v2269_v59 }
 0x66f   : > { %7665 = vpow2.f32 %v2285_v14  ;;  %v11074_v14 = vld [vmem:[#allocation23_spill] sm:$0xff] }
 0x672   : > { %v2240_v24 = vpop.xlane.xlu2 %2239 }
 0x673   : > { %v2270_v11 = vsub.f32 %v2222_v27, %v2240_v24  ;;  %v11071_v27 = vld [vmem:[#allocation20_spill] sm:$0xff] }
 0x674   : > { %v9032_v63 = vadd.f32 %v2217_v38, %v11071_v27 }
 0x675   : > { %v9006_v0 = vpop.eup %7665  ;;  %v2287_v40 = vmul.f32 1.442695, %v2270_v11 }
 0x676   : > { %2317 = vadd.xlane.f32.xlu0 %v9006_v0 }
 0x677   : > { %7667 = vpow2.f32 %v2287_v40 }
 0x67a   : > { %v2242_v42 = vpop.xlane.xlu0 %2241 }
 0x67b   : > { %v2271_v61 = vsub.f32 %v2223_v36, %v2242_v42 }
 0x67d   : > { %v9012_v33 = vpop.eup %7667  ;;  %v2289_v43 = vmul.f32 1.442695, %v2271_v61 }
 0x67e   : > { %2319 = vadd.xlane.f32.xlu1 %v9012_v33  ;;  %2255 = vmax.xlane.f32.xlu0 %v9010_v10 }
 0x67f   : > { %7669 = vpow2.f32 %v2289_v43 }
 0x682   : > { %v2244_v18 = vpop.xlane.xlu1 %2243 }
 0x683   : > { %v2272_v3 = vsub.f32 %v2224_v62, %v2244_v18  ;;  %v2200_v62 = vpop.f32.mrf.mxu0 }
 0x685   : > { %v9019_v6 = vpop.eup %7669  ;;  %v2291_v51 = vmul.f32 1.442695, %v2272_v3 }
 0x686   : > { %2321 = vadd.xlane.f32.xlu1 %v9019_v6  ;;  %2257 = vmax.xlane.f32.xlu0 %v9017_v37 }
 0x687   : > { %7671 = vpow2.f32 %v2291_v51 }
 0x68a   : > { %v2246_v7 = vpop.xlane.xlu2 %2245 }
 0x68b   : > { %v2273_v29 = vsub.f32 %v2225_v49, %v2246_v7  ;;  %v9040_v49 = vadd.f32 %v2218_v39, %v11072_v47 }
 0x68d   : > { %v9026_v9 = vpop.eup %7671  ;;  %v2293_v34 = vmul.f32 1.442695, %v2273_v29 }
 0x68e   : > { %2323 = vadd.xlane.f32.xlu2 %v9026_v9  ;;  %2259 = vmax.xlane.f32.xlu1 %v9024_v53 }
 0x68f   : > { %7673 = vpow2.f32 %v2293_v34 }
 0x692   : > { %v2248_v44 = vpop.xlane.xlu0 %2247 }
 0x693   : > { %v2274_v60 = vsub.f32 %v8986_v57, %v2248_v44  ;;  %v2219_v57 = vmul.f32 0.17677669, %v2200_v62 }
 0x695   : > { %v9034_v32 = vpop.eup %7673  ;;  %v2295_v36 = vmul.f32 1.442695, %v2274_v60  ;;  %v9048_v26 = vadd.f32 %v2219_v57, %v11073_v58 }
 0x696   : > { %2325 = vadd.xlane.f32.xlu2 %v9034_v32  ;;  %2261 = vmax.xlane.f32.xlu1 %v9032_v63 }
 0x697   : > { %7675 = vpow2.f32 %v2295_v36 }
 0x69a   : > { %v2250_v1 = vpop.xlane.xlu1 %2249 }
 0x69b   : > { %v2275_v48 = vsub.f32 %v8991_v52, %v2250_v1  ;;  %v2202_v52 = vpop.f32.mrf.mxu0 }
 0x69c   : > { %v2220_v20 = vmul.f32 0.17677669, %v2202_v52 }
 0x69d   : > { %v9042_v25 = vpop.eup %7675  ;;  %v2297_v21 = vmul.f32 1.442695, %v2275_v48 }
 0x69e   : > { %2327 = vadd.xlane.f32.xlu0 %v9042_v25  ;;  %2263 = vmax.xlane.f32.xlu2 %v9040_v49  ;;  %v9056_v24 = vadd.f32 %v2220_v20, %v11074_v14 }
 0x69f   : > { %7677 = vpow2.f32 %v2297_v21 }
 0x6a2   : > { %v2252_v22 = vpop.xlane.xlu2 %2251 }
 0x6a3   : > { %v2276_v55 = vsub.f32 %v8995_v13, %v2252_v22 }
 0x6a5   : > { %v9050_v16 = vpop.eup %7677  ;;  %v2299_v19 = vmul.f32 1.442695, %v2276_v55 }
 0x6a6   : > { %2329 = vadd.xlane.f32.xlu0 %v9050_v16  ;;  %2265 = vmax.xlane.f32.xlu2 %v9048_v26 }
 0x6a7   : > { %7679 = vpow2.f32 %v2299_v19 }
 0x6aa   : > { %v2254_v30 = vpop.xlane.xlu2 %2253 }
 0x6ab   : > { %v2277_v59 = vsub.f32 %v9000_v8, %v2254_v30 }
 0x6ad   : > { %v9058_v13 = vpop.eup %7679  ;;  %v2301_v41 = vmul.f32 1.442695, %v2277_v59 }
 0x6ae   : > { %2331 = vadd.xlane.f32.xlu1 %v9058_v13  ;;  %2267 = vmax.xlane.f32.xlu0 %v9056_v24 }
 0x6af   : > { %7681 = vpow2.f32 %v2301_v41 }
 0x6b5   : > { %v9062_v11 = vpop.eup %7681 }
 0x6b6   : > { %2333 = vadd.xlane.f32.xlu1 %v9062_v11 }
 0x6e9   : > { %v2318_v40 = vpop.xlane.xlu0 %2317 }
 0x6ea   : > { %7683 = vrcp.f32 %v2318_v40 }
 0x6f0   : > { %v7684_v2 = vpop.eup %7683 }
 0x6f1   : > { %v2320_v12 = vpop.xlane.xlu1 %2319  ;;  %v2256_v42 = vpop.xlane.xlu0 %2255  ;;  %v2365_v17 = vmul.f32 %v7684_v2, %v9006_v0  ;;  %v7334_v2 = vld [vmem:[%s8224_s21 + $0x10] sm:$0xff] }
 0x6f2   : > { %7685 = vrcp.f32 %v2320_v12  ;;  %v2278_v8 = vsub.f32 %v9010_v10, %v2256_v42 }
 0x6f4   : > { %v2303_v61 = vmul.f32 1.442695, %v2278_v8 }
 0x6f6   : > { %7687 = vpow2.f32 %v2303_v61  ;;  %v7335_v61 = vld [vmem:[%s8224_s21 + $0x18] sm:$0xff] }
 0x6f7   : > { %2501 = vmatpush.bf16.msra.mxu2 %v7335_v61  ;;  %v7356_v61 = vld [vmem:[%s8219_s18 + $0xa0] sm:$0xff] }
 0x6f8   : > { %v7686_v43 = vpop.eup %7685 }
 0x6f9   : > { %v2366_v18 = vmul.f32 %v7686_v43, %v9012_v33  ;;  %v2322_v3 = vpop.xlane.xlu1 %2321  ;;  %v2258_v51 = vpop.xlane.xlu0 %2257 }
 0x6fa   : > { %v2279_v4 = vsub.f32 %v9017_v37, %v2258_v51 }
 0x6fb   : > { %v2381_v28 = vpack.c.bf16 %v2366_v18, %v2365_v17  ;;  %2502 = vmatpush.bf16.msra.mxu2 %v7334_v2  ;;  %v7350_v17 = vld [vmem:[%s8214_s20 + $0xb0] sm:$0xff] }
 0x6fc   : > { %v9069_v7 = vpop.eup %7687  ;;  %v2305_v29 = vmul.f32 1.442695, %v2279_v4 }
 0x6fd   : > { %2405 = vmatmul.bf16.vlgmr.msra.gmra.mxu1 %v2381_v28  ;;  %2335 = vadd.xlane.f32.xlu2 %v9069_v7 }
 0x6fe   : > { %7689 = vpow2.f32 %v2305_v29 }
 0x6ff   : > { %7691 = vrcp.f32 %v2322_v3 }
 0x701   : > { %v2324_v10 = vpop.xlane.xlu2 %2323  ;;  %v2260_v54 = vpop.xlane.xlu1 %2259 }
 0x702   : > { %7693 = vrcp.f32 %v2324_v10  ;;  %v2280_v0 = vsub.f32 %v9024_v53, %v2260_v54  ;;  %v7349_v10 = vld [vmem:[%s8214_s20 + $0xa8] sm:$0xff] }
 0x704   : > { %v9073_v34 = vpop.eup %7689  ;;  %v2307_v33 = vmul.f32 1.442695, %v2280_v0 }
 0x705   : > { %2337 = vadd.xlane.f32.xlu0 %v9073_v34  ;;  %v7692_v37 = vpop.eup %7691 }
 0x706   : > { %7695 = vpow2.f32 %v2307_v33  ;;  %v2367_v60 = vmul.f32 %v7692_v37, %v9019_v6 }
 0x708   : > { %v7694_v38 = vpop.eup %7693 }
 0x709   : > { %v2326_v15 = vpop.xlane.xlu2 %2325  ;;  %v2262_v44 = vpop.xlane.xlu1 %2261  ;;  %v2368_v27 = vmul.f32 %v7694_v38, %v9026_v9  ;;  %v7348_v38 = vld [vmem:[%s8214_s20 + $0xa0] sm:$0xff] }
 0x70a   : > { %v2281_v36 = vsub.f32 %v9032_v63, %v2262_v44 }
 0x70b   : > { %v2382_v39 = vpack.c.bf16 %v2368_v27, %v2367_v60 }
 0x70c   : > { %v9079_v1 = vpop.eup %7695  ;;  %v2309_v53 = vmul.f32 1.442695, %v2281_v36  ;;  %v7347_v36 = vld [vmem:[%s8214_s20 + $0x98] sm:$0xff] }
 0x70d   : > { %2410 = vmatmul.bf16.gmra.mxu1 %v2382_v39  ;;  %2339 = vadd.xlane.f32.xlu1 %v9079_v1  ;;  %v7346_v39 = vld [vmem:[%s8214_s20 + $0x90] sm:$0xff] }
 0x70e   : > { %7697 = vpow2.f32 %v2309_v53 }
 0x70f   : > { %7699 = vrcp.f32 %v2326_v15 }
 0x711   : > { %v2328_v62 = vpop.xlane.xlu0 %2327  ;;  %v2264_v48 = vpop.xlane.xlu2 %2263 }
 0x712   : > { %7701 = vrcp.f32 %v2328_v62  ;;  %v2282_v47 = vsub.f32 %v9040_v49, %v2264_v48 }
 0x714   : > { %v9083_v21 = vpop.eup %7697  ;;  %v2311_v6 = vmul.f32 1.442695, %v2282_v47  ;;  %v7345_v47 = vld [vmem:[%s8214_s20 + $0x88] sm:$0xff] }
 0x715   : > { %2341 = vadd.xlane.f32.xlu2 %v9083_v21  ;;  %v7700_v9 = vpop.eup %7699 }
 0x716   : > { %7703 = vpow2.f32 %v2311_v6  ;;  %v2369_v55 = vmul.f32 %v7700_v9, %v9034_v32 }
 0x718   : > { %v7702_v63 = vpop.eup %7701 }
 0x719   : > { %v2330_v57 = vpop.xlane.xlu0 %2329  ;;  %v2266_v22 = vpop.xlane.xlu2 %2265  ;;  %v2370_v58 = vmul.f32 %v7702_v63, %v9042_v25 }
 0x71a   : > { %v2283_v52 = vsub.f32 %v9048_v26, %v2266_v22 }
 0x71b   : > { %v2383_v19 = vpack.c.bf16 %v2370_v58, %v2369_v55 }
 0x71c   : > { %v9089_v20 = vpop.eup %7703  ;;  %v2313_v49 = vmul.f32 1.442695, %v2283_v52 }
 0x71d   : > { %2415 = vmatmul.bf16.gmra.mxu1 %v2383_v19  ;;  %2343 = vadd.xlane.f32.xlu0 %v9089_v20 }
 0x71e   : > { %7705 = vpow2.f32 %v2313_v49 }
 0x71f   : > { %7707 = vrcp.f32 %v2330_v57 }
 0x721   : > { %v2332_v30 = vpop.xlane.xlu1 %2331  ;;  %v2268_v59 = vpop.xlane.xlu0 %2267 }
 0x722   : > { %7709 = vrcp.f32 %v2332_v30  ;;  %v2284_v32 = vsub.f32 %v9056_v24, %v2268_v59  ;;  %v7351_v24 = vld [vmem:[%s8214_s20 + $0xb8] sm:$0xff] }
 0x723   : > { %2808 = vmatpush.bf16.msrb.mxu1 %v7351_v24  ;;  %v7357_v24 = vld [vmem:[%s8219_s18 + $0xa8] sm:$0xff] }
 0x724   : > { %v9093_v14 = vpop.eup %7705  ;;  %v2315_v25 = vmul.f32 1.442695, %v2284_v32 }
 0x725   : > { %2345 = vadd.xlane.f32.xlu1 %v9093_v14  ;;  %v7708_v26 = vpop.eup %7707 }
 0x726   : > { %7711 = vpow2.f32 %v2315_v25  ;;  %v2371_v40 = vmul.f32 %v7708_v26, %v9050_v16 }
 0x727   : > { %2809 = vmatpush.bf16.msrb.mxu1 %v7350_v17  ;;  %v7355_v17 = vld [vmem:[%s8219_s18 + $0x98] sm:$0xff] }
 0x728   : > { %v7710_v41 = vpop.eup %7709 }
 0x729   : > { %v2372_v12 = vmul.f32 %v7710_v41, %v9058_v13  ;;  %v2334_v43 = vpop.xlane.xlu1 %2333 }
 0x72a   : > { %7713 = vrcp.f32 %v2334_v43 }
 0x72b   : > { %v2384_v42 = vpack.c.bf16 %v2372_v12, %v2371_v40  ;;  %2810 = vmatpush.bf16.msrb.mxu1 %v7349_v10  ;;  %v7359_v12 = vld [vmem:[%s8219_s18 + $0xb8] sm:$0xff] }
 0x72c   : > { %v9098_v8 = vpop.eup %7711  ;;  %2922 = vmatpush.bf16.msrb.mxu2 %v7359_v12 }
 0x72d   : > { %2420 = vmatmul.bf16.gmra.mxu1 %v2384_v42  ;;  %2347 = vadd.xlane.f32.xlu2 %v9098_v8  ;;  %v7358_v42 = vld [vmem:[%s8219_s18 + $0xb0] sm:$0xff] }
 0x72f   : > { %2811 = vmatpush.bf16.msrb.mxu1 %v7348_v38 }
 0x730   : > { %v7714_v13 = vpop.eup %7713  ;;  %2923 = vmatpush.bf16.msrb.mxu2 %v7358_v42 }
 0x731   : > { %v2373_v3 = vmul.f32 %v7714_v13, %v9062_v11 }
 0x733   : > { %2812 = vmatpush.bf16.msrb.mxu1 %v7347_v36 }
 0x734   : > { %2924 = vmatpush.bf16.msrb.mxu2 %v7357_v24 }
 0x737   : > { %2813 = vmatpush.bf16.msrb.mxu1 %v7346_v39 }
 0x738   : > { %2925 = vmatpush.bf16.msrb.mxu2 %v7356_v61 }
 0x73b   : > { %2814 = vmatpush.bf16.msrb.mxu1 %v7345_v47 }
 0x73c   : > { %2926 = vmatpush.bf16.msrb.mxu2 %v7355_v17 }
 0x770   : > { %v2336_v16 = vpop.xlane.xlu2 %2335 }
 0x771   : > { %7715 = vrcp.f32 %v2336_v16  ;;  %v7354_v16 = vld [vmem:[%s8219_s18 + $0x90] sm:$0xff] }
 0x772   : > { %2927 = vmatpush.bf16.msrb.mxu2 %v7354_v16 }
 0x777   : > { %v7716_v18 = vpop.eup %7715 }
 0x778   : > { %v2374_v51 = vmul.f32 %v7716_v18, %v9069_v7  ;;  %v2338_v29 = vpop.xlane.xlu0 %2337  ;;  %v7353_v18 = vld [vmem:[%s8219_s18 + $0x88] sm:$0xff] }
 0x779   : > { %7717 = vrcp.f32 %v2338_v29  ;;  %2928 = vmatpush.bf16.msrb.mxu2 %v7353_v18 }
 0x77a   : > { %v2406_v4 = vpop.f32.mrf.mxu1  ;;  %v2385_v28 = vpack.c.bf16 %v2374_v51, %v2373_v3  ;;  %v7352_v3 = vld [vmem:[%s8219_s18 + $0x80] sm:$0xff] }
 0x77c   : > { %2425 = vmatmul.bf16.gmra.mxu1 %v2385_v28 }
 0x77d   : > { %2929 = vmatpush.bf16.msrb.mxu2 %v7352_v3 }
 0x77f   : > { %v7718_v37 = vpop.eup %7717 }
 0x780   : > { %v2340_v54 = vpop.xlane.xlu1 %2339  ;;  %v2375_v7 = vmul.f32 %v7718_v37, %v9073_v34  ;;  %v7344_v34 = vld [vmem:[%s8214_s20 + $0x80] sm:$0xff] }
 0x781   : > { %7719 = vrcp.f32 %v2340_v54  ;;  %2815 = vmatpush.bf16.msrb.mxu1 %v7344_v34  ;;  %v7369_v34 = vld [vmem:[%s8209_s25 + $0xf8] sm:$0xff] }
 0x782   : > { %v2408_v0 = vpop.f32.mrf.mxu1 }
 0x783   : > { %v2446_v33 = vpack.c.bf16 %v2408_v0, %v2406_v4 }
 0x785   : > { %6615 = vmatmul.msk.bf16.vlgmr.msra.gmra.mxu2 %vm1383_vm1, %v2446_v33 }
 0x786   : > { %3504 = vmatpush.bf16.msra.mxu2 %v7369_v34 }
 0x787   : > { %v7720_v11 = vpop.eup %7719 }
 0x788   : > { %v2376_v15 = vmul.f32 %v7720_v11, %v9079_v1  ;;  %v2342_v27 = vpop.xlane.xlu2 %2341 }
 0x789   : > { %7721 = vrcp.f32 %v2342_v27 }
 0x78a   : > { %v2411_v44 = vpop.f32.mrf.mxu1  ;;  %v2386_v60 = vpack.c.bf16 %v2376_v15, %v2375_v7 }
 0x78c   : > { %2430 = vmatmul.bf16.gmra.mxu1 %v2386_v60 }
 0x78f   : > { %v7722_v6 = vpop.eup %7721 }
 0x790   : > { %v2344_v53 = vpop.xlane.xlu0 %2343  ;;  %v2377_v9 = vmul.f32 %v7722_v6, %v9083_v21 }
 0x791   : > { %7723 = vrcp.f32 %v2344_v53 }
 0x792   : > { %v2413_v62 = vpop.f32.mrf.mxu1 }
 0x793   : > { %v2447_v48 = vpack.c.bf16 %v2413_v62, %v2411_v44 }
 0x795   : > { %6616 = vmatmul.msk.bf16.gmra.mxu2 %vm1383_vm1, %v2447_v48 }
 0x797   : > { %v7724_v1 = vpop.eup %7723 }
 0x798   : > { %v2378_v63 = vmul.f32 %v7724_v1, %v9089_v20  ;;  %v2346_v55 = vpop.xlane.xlu1 %2345 }
 0x799   : > { %7725 = vrcp.f32 %v2346_v55  ;;  %v7366_v55 = vld [vmem:[%s8209_s25 + $0xe0] sm:$0xff] }
 0x79a   : > { %v2416_v57 = vpop.f32.mrf.mxu1  ;;  %v2387_v22 = vpack.c.bf16 %v2378_v63, %v2377_v9  ;;  %v7368_v9 = vld [vmem:[%s8209_s25 + $0xf0] sm:$0xff] }
 0x79b   : > { %3505 = vmatpush.bf16.msra.mxu2 %v7368_v9 }
 0x79c   : > { %2435 = vmatmul.bf16.gmra.mxu1 %v2387_v22 }
 0x79f   : > { %v7726_v49 = vpop.eup %7725 }
 0x7a0   : > { %v2348_v58 = vpop.xlane.xlu2 %2347  ;;  %v2379_v59 = vmul.f32 %v7726_v49, %v9093_v14  ;;  %v7364_v49 = vld [vmem:[%s8209_s25 + $0xd0] sm:$0xff] }
 0x7a1   : > { %7727 = vrcp.f32 %v2348_v58 }
 0x7a2   : > { %v2418_v52 = vpop.f32.mrf.mxu1 }
 0x7a3   : > { %v2448_v19 = vpack.c.bf16 %v2418_v52, %v2416_v57  ;;  %v7367_v57 = vld [vmem:[%s8209_s25 + $0xe8] sm:$0xff]  ;;  %v7365_v52 = vld [vmem:[%s8209_s25 + $0xd8] sm:$0xff] }
 0x7a4   : > { %3506 = vmatpush.bf16.msra.mxu2 %v7367_v57 }
 0x7a5   : > { %6617 = vmatmul.msk.bf16.gmra.mxu2 %vm1383_vm1, %v2448_v19 }
 0x7a7   : > { %v7728_v30 = vpop.eup %7727 }
 0x7a8   : > { %v2380_v21 = vmul.f32 %v7728_v30, %v9098_v8  ;;  %3507 = vmatpush.bf16.msra.mxu2 %v7366_v55 }
 0x7aa   : > { %v2421_v20 = vpop.f32.mrf.mxu1  ;;  %v2388_v32 = vpack.c.bf16 %v2380_v21, %v2379_v59  ;;  %v7363_v59 = vld [vmem:[%s8209_s25 + $0xc8] sm:$0xff] }
 0x7ac   : > { %2440 = vmatmul.bf16.gmra.mxu1 %v2388_v32  ;;  %3508 = vmatpush.bf16.msra.mxu2 %v7365_v52 }
 0x7b0   : > { %3509 = vmatpush.bf16.msra.mxu2 %v7364_v49 }
 0x7b2   : > { %v2423_v25 = vpop.f32.mrf.mxu1 }
 0x7b3   : > { %v2449_v26 = vpack.c.bf16 %v2423_v25, %v2421_v20  ;;  %v7362_v20 = vld [vmem:[%s8209_s25 + $0xc0] sm:$0xff]  ;;  %s11177_s25 = sld [smem:[#allocation59_spill]] (!%p7239_p1) }
 0x7b4   : > { %3510 = vmatpush.bf16.msra.mxu2 %v7363_v59 }
 0x7b5   : > { %6618 = vmatmul.msk.bf16.gmra.mxu2 %vm1383_vm1, %v2449_v26 }
 0x7b8   : > { %3511 = vmatpush.bf16.msra.mxu2 %v7362_v20 }
 0x7bc   : > { %2816 = vmatmul.bf16.vlgmr.msrb.gmra.mxu1 %v8450_v5 }
 0x7cc   : > { %2821 = vmatmul.bf16.gmra.mxu1 %v8487_v35 }
 0x7dc   : > { %2826 = vmatmul.bf16.gmra.mxu1 %v8499_v50 }
 0x7ec   : > { %2831 = vmatmul.bf16.gmra.mxu1 %v8528_v45 }
 0x7f9   : > { %v2426_v14 = vpop.f32.mrf.mxu1 }
 0x7fc   : > { %2836 = vmatmul.bf16.gmra.mxu1 %v8551_v31 }
 0x801   : > { %v2428_v41 = vpop.f32.mrf.mxu1 }
 0x802   : > { %v2450_v40 = vpack.c.bf16 %v2428_v41, %v2426_v14 }
 0x804   : > { %6619 = vmatmul.msk.bf16.gmra.mxu2 %vm1383_vm1, %v2450_v40 }
 0x808   : > { %v9143_v54 = vpop.f32.mrf.mxu2 }
 0x809   : > { %v2431_v8 = vpop.f32.mrf.mxu1 }
 0x80c   : > { %2841 = vmatmul.bf16.gmra.mxu1 %v8564_v23 }
 0x810   : > { %v9149_v37 = vpop.f32.mrf.mxu2 }
 0x811   : > { %v2433_v2 = vpop.f32.mrf.mxu1  ;;  %11075 = vst [vmem:[#allocation19_spill] sm:$0xff] %v9149_v37 }
 0x812   : > { %v2451_v43 = vpack.c.bf16 %v2433_v2, %v2431_v8 }
 0x814   : > { %6620 = vmatmul.msk.bf16.gmra.mxu2 %vm1383_vm1, %v2451_v43 }
 0x818   : > { %v9154_v11 = vpop.f32.mrf.mxu2 }
 0x819   : > { %v2436_v13 = vpop.f32.mrf.mxu1 }
 0x81c   : > { %2846 = vmatmul.bf16.gmra.mxu1 %v8575_v56 }
 0x820   : > { %v9159_v15 = vpop.f32.mrf.mxu2 }
 0x821   : > { %v2438_v51 = vpop.f32.mrf.mxu1  ;;  %11076 = vst [vmem:[#allocation20_spill] sm:$0xff] %v9159_v15 }
 0x822   : > { %v2452_v4 = vpack.c.bf16 %v2438_v51, %v2436_v13  ;;  %v2703_v13 = vpop.f32.mrf.mxu0 }
 0x824   : > { %6621 = vmatmul.msk.bf16.gmra.mxu2 %vm1383_vm1, %v2452_v4  ;;  %v7373_v4 = vld [vmem:[%s8214_s20 + $0xd8] sm:$0xff] }
 0x828   : > { %v9163_v60 = vpop.f32.mrf.mxu2 }
 0x829   : > { %v2441_v28 = vpop.f32.mrf.mxu1 }
 0x82c   : > { %2851 = vmatmul.bf16.gmra.mxu1 %v8608_v46 }
 0x830   : > { %v9170_v39 = vpop.f32.mrf.mxu2 }
 0x831   : > { %v2443_v29 = vpop.f32.mrf.mxu1  ;;  %11077 = vst [vmem:[#allocation21_spill] sm:$0xff] %v9170_v39 }
 0x832   : > { %v2453_v10 = vpack.c.bf16 %v2443_v29, %v2441_v28  ;;  %v2705_v28 = vpop.f32.mrf.mxu0 }
 0x833   : > { %v2971_v59 = vpack.c.bf16 %v2705_v28, %v2703_v13 }
 0x834   : > { %6622 = vmatmul.msk.bf16.gmra.mxu2 %vm1383_vm1, %v2453_v10 }
 0x838   : > { %v9173_v62 = vpop.f32.mrf.mxu2 }
 0x839   : > { %v9145_v0 = vpop.f32.mrf.mxu1 }
 0x83a   : > { %v2708_v9 = vpop.f32.mrf.mxu0 }
 0x840   : > { %v9175_v47 = vpop.f32.mrf.mxu2 }
 0x841   : > { %v9147_v33 = vpop.f32.mrf.mxu1  ;;  %11078 = vst [vmem:[#allocation22_spill] sm:$0xff] %v9175_v47 }
 0x844   : > { %2930 = vmatmul.bf16.vlgmr.msrb.gmra.mxu2 %v8450_v5 }
 0x849   : > { %v9152_v38 = vpop.f32.mrf.mxu1 }
 0x851   : > { %v9156_v7 = vpop.f32.mrf.mxu1 }
 0x854   : > { %2935 = vmatmul.bf16.gmra.mxu2 %v8487_v35 }
 0x859   : > { %v9161_v44 = vpop.f32.mrf.mxu1 }
 0x861   : > { %v9165_v27 = vpop.f32.mrf.mxu1 }
 0x864   : > { %2940 = vmatmul.bf16.gmra.mxu2 %v8499_v50 }
 0x869   : > { %v9168_v36 = vpop.f32.mrf.mxu1 }
 0x871   : > { %v2834_v53 = vpop.f32.mrf.mxu1 }
 0x872   : > { %v2982_v51 = vpack.c.bf16 %v2834_v53, %v9168_v36  ;;  %v2980_v53 = vpack.c.bf16 %v9156_v7, %v9152_v38 }
 0x874   : > { %2945 = vmatmul.bf16.gmra.mxu2 %v8528_v45  ;;  %v3021_v29 = vsel %vm1383_vm1, %v2982_v51, 0  ;;  %v3015_v57 = vsel %vm1383_vm1, %v2980_v53, 0 }
 0x879   : > { %v2837_v48 = vpop.f32.mrf.mxu1 }
 0x881   : > { %v2839_v6 = vpop.f32.mrf.mxu1 }
 0x882   : > { %v2983_v16 = vpack.c.bf16 %v2839_v6, %v2837_v48  ;;  %v2981_v48 = vpack.c.bf16 %v9165_v27, %v9161_v44  ;;  %v9223_v6 = vpop.f32.mrf.mxu3  ;;  %v2710_v44 = vpop.f32.mrf.mxu0 }
 0x884   : > { %2950 = vmatmul.bf16.gmra.mxu2 %v8551_v31  ;;  %v3024_v18 = vsel %vm1383_vm1, %v2983_v16, 0  ;;  %v3018_v34 = vsel %vm1383_vm1, %v2981_v48, 0 }
 0x887   : > { %v9179_v1 = vpop.f32.mrf.mxu2 }
 0x889   : > { %v2842_v63 = vpop.f32.mrf.mxu1 }
 0x88a   : > { %v9234_v55 = vpop.f32.mrf.mxu3 }
 0x88b   : > { %11085 = vst [vmem:[#allocation29_spill] sm:$0xff] %v9234_v55 }
 0x88f   : > { %v9183_v22 = vpop.f32.mrf.mxu2 }
 0x890   : > { %11079 = vst [vmem:[#allocation23_spill] sm:$0xff] %v9183_v22 }
 0x891   : > { %v2844_v58 = vpop.f32.mrf.mxu1 }
 0x892   : > { %v2984_v2 = vpack.c.bf16 %v2844_v58, %v2842_v63  ;;  %v2979_v58 = vpack.c.bf16 %v9147_v33, %v9145_v0  ;;  %v9241_v38 = vpop.f32.mrf.mxu3  ;;  %v7372_v63 = vld [vmem:[%s8214_s20 + $0xd0] sm:$0xff] }
 0x894   : > { %2955 = vmatmul.bf16.gmra.mxu2 %v8564_v23  ;;  %v3027_v43 = vsel %vm1383_vm1, %v2984_v2, 0  ;;  %v3012_v52 = vsel %vm1383_vm1, %v2979_v58, 0 }
 0x897   : > { %v9188_v19 = vpop.f32.mrf.mxu2 }
 0x899   : > { %v2847_v30 = vpop.f32.mrf.mxu1 }
 0x89f   : > { %v9192_v21 = vpop.f32.mrf.mxu2 }
 0x8a0   : > { %11080 = vst [vmem:[#allocation24_spill] sm:$0xff] %v9192_v21 }
 0x8a1   : > { %v2849_v32 = vpop.f32.mrf.mxu1 }
 0x8a2   : > { %v2985_v8 = vpack.c.bf16 %v2849_v32, %v2847_v30  ;;  %v2713_v30 = vpop.f32.mrf.mxu0  ;;  %v9251_v32 = vpop.f32.mrf.mxu3 }
 0x8a3   : > { %11086 = vst [vmem:[#allocation30_spill] sm:$0xff] %v9251_v32 }
 0x8a4   : > { %2960 = vmatmul.bf16.gmra.mxu2 %v8575_v56  ;;  %v3030_v24 = vsel %vm1383_vm1, %v2985_v8, 0 }
 0x8a7   : > { %v9196_v25 = vpop.f32.mrf.mxu2 }
 0x8a8   : > { %11081 = vst [vmem:[#allocation25_spill] sm:$0xff] %v9196_v25 }
 0x8a9   : > { %v2852_v26 = vpop.f32.mrf.mxu1 }
 0x8aa   : > { %v2715_v0 = vpop.f32.mrf.mxu0 }
 0x8ab   : > { %v2973_v16 = vpack.c.bf16 %v2715_v0, %v2713_v30  ;;  %v7377_v30 = vld [vmem:[%s8214_s20 + $0xf8] sm:$0xff] }
 0x8af   : > { %v9198_v14 = vpop.f32.mrf.mxu2 }
 0x8b0   : > { %11082 = vst [vmem:[#allocation26_spill] sm:$0xff] %v9198_v14 }
 0x8b1   : > { %v2854_v41 = vpop.f32.mrf.mxu1 }
 0x8b2   : > { %v2986_v40 = vpack.c.bf16 %v2854_v41, %v2852_v26  ;;  %v2972_v41 = vpack.c.bf16 %v2710_v44, %v2708_v9 }
 0x8b4   : > { %2965 = vmatmul.bf16.gmra.mxu2 %v8608_v46  ;;  %v3033_v12 = vsel %vm1383_vm1, %v2986_v40, 0  ;;  %v9257_v40 = vpop.f32.mrf.mxu3 }
 0x8b5   : > { %3035 = vmatpush.bf16.xpose.msrb.mxu3 %v3033_v12  ;;  %v2718_v12 = vpop.f32.mrf.mxu0 }
 0x8b7   : > { %v9202_v42 = vpop.f32.mrf.mxu2 }
 0x8b8   : > { %11083 = vst [vmem:[#allocation27_spill] sm:$0xff] %v9202_v42 }
 0x8bd   : > { %3036 = vmatpush.bf16.xpose.msrb.mxu3 %v3030_v24  ;;  %v9261_v24 = vpop.f32.mrf.mxu3  ;;  %v2720_v2 = vpop.f32.mrf.mxu0 }
 0x8be   : > { %11087 = vst [vmem:[#allocation31_spill] sm:$0xff] %v9261_v24  ;;  %v2974_v48 = vpack.c.bf16 %v2720_v2, %v2718_v12  ;;  %v7375_v12 = vld [vmem:[%s8214_s20 + $0xe8] sm:$0xff] }
 0x8bf   : > { %v9205_v61 = vpop.f32.mrf.mxu2 }
 0x8c0   : > { %11084 = vst [vmem:[#allocation28_spill] sm:$0xff] %v9205_v61 }
 0x8c4   : > { %3512 = vmatmul.bf16.vlgmr.msra.gmra.mxu2 %v8450_v5 }
 0x8c5   : > { %3037 = vmatpush.bf16.xpose.msrb.mxu3 %v3027_v43  ;;  %v9265_v13 = vpop.f32.mrf.mxu3  ;;  %v2723_v51 = vpop.f32.mrf.mxu0 }
 0x8c7   : > { %v9209_v17 = vpop.f32.mrf.mxu2 }
 0x8cd   : > { %3038 = vmatpush.bf16.xpose.msrb.mxu3 %v3024_v18 }
 0x8cf   : > { %v9212_v3 = vpop.f32.mrf.mxu2 }
 0x8d4   : > { %3517 = vmatmul.bf16.gmra.mxu2 %v8487_v35 }
 0x8d5   : > { %3039 = vmatpush.bf16.xpose.msrb.mxu3 %v3021_v29  ;;  %v9267_v29 = vpop.f32.mrf.mxu3 }
 0x8d6   : > { %11088 = vst [vmem:[#allocation32_spill] sm:$0xff] %v9267_v29 }
 0x8d7   : > { %v9219_v10 = vpop.f32.mrf.mxu2 }
 0x8dd   : > { %3040 = vmatpush.bf16.xpose.msrb.mxu3 %v3018_v34  ;;  %v2725_v34 = vpop.f32.mrf.mxu0  ;;  %v9271_v53 = vpop.f32.mrf.mxu3 }
 0x8de   : > { %v2975_v58 = vpack.c.bf16 %v2725_v34, %v2723_v51 }
 0x8df   : > { %v9226_v36 = vpop.f32.mrf.mxu2 }
 0x8e4   : > { %3522 = vmatmul.bf16.gmra.mxu2 %v8499_v50 }
 0x8e5   : > { %3041 = vmatpush.bf16.xpose.msrb.mxu3 %v3015_v57  ;;  %v2728_v57 = vpop.f32.mrf.mxu0 }
 0x8e7   : > { %v9236_v27 = vpop.f32.mrf.mxu2 }
 0x8ed   : > { %3042 = vmatpush.bf16.xpose.msrb.mxu3 %v3012_v52  ;;  %v9273_v52 = vpop.f32.mrf.mxu3 }
 0x8ee   : > { %11089 = vst [vmem:[#allocation33_spill] sm:$0xff] %v9273_v52 }
 0x8ef   : > { %v9243_v7 = vpop.f32.mrf.mxu2 }
 0x8f4   : > { %6783 = vmatmul.msk.bf16.vlgmr.msrb.gmra.mxu3 %vm1383_vm1, %v2971_v59  ;;  %3527 = vmatmul.bf16.gmra.mxu2 %v8528_v45  ;;  %v2730_v59 = vpop.f32.mrf.mxu0 }
 0x8f5   : > { %3618 = vmatpush.bf16.msra.mxu3 %v7377_v30  ;;  %v9280_v2 = vpop.f32.mrf.mxu3 }
 0x8f7   : > { %v9249_v20 = vpop.f32.mrf.mxu2 }
 0x8fc   : > { %v2733_v34 = vpop.f32.mrf.mxu0 }
 0x8ff   : > { %v9253_v33 = vpop.f32.mrf.mxu2 }
 0x900   : > { %v3271_v26 = vpack.c.bf16 %v9253_v33, %v9249_v20 }
 0x904   : > { %6784 = vmatmul.msk.bf16.gmra.mxu3 %vm1383_vm1, %v2972_v41  ;;  %3532 = vmatmul.bf16.gmra.mxu2 %v8551_v31  ;;  %v7376_v41 = vld [vmem:[%s8214_s20 + $0xf0] sm:$0xff] }
 0x905   : > { %3619 = vmatpush.bf16.msra.mxu3 %v7376_v41  ;;  %v9285_v41 = vpop.f32.mrf.mxu3 }
 0x906   : > { %11090 = vst [vmem:[#allocation34_spill] sm:$0xff] %v9285_v41 }
 0x907   : > { %v2951_v8 = vpop.f32.mrf.mxu2 }
 0x909   : > { %3620 = vmatpush.bf16.msra.mxu3 %v7375_v12  ;;  %v2735_v12 = vpop.f32.mrf.mxu0 }
 0x90f   : > { %v2953_v43 = vpop.f32.mrf.mxu2 }
 0x914   : > { %6785 = vmatmul.msk.bf16.gmra.mxu3 %vm1383_vm1, %v2973_v16  ;;  %3537 = vmatmul.bf16.gmra.mxu2 %v8564_v23 }
 0x917   : > { %v2956_v18 = vpop.f32.mrf.mxu2 }
 0x91f   : > { %v2958_v28 = vpop.f32.mrf.mxu2 }
 0x920   : > { %v3273_v49 = vpack.c.bf16 %v2958_v28, %v2956_v18  ;;  %v9322_v28 = vld [vmem:[%s10983_s1 + $0x8] sm:$0xff] }
 0x921   : > { %11099 = vst [vmem:[#allocation40_spill] sm:$0xff] %v9322_v28 }
 0x924   : > { %6786 = vmatmul.msk.bf16.gmra.mxu3 %vm1383_vm1, %v2974_v48  ;;  %3542 = vmatmul.bf16.gmra.mxu2 %v8575_v56  ;;  %v7374_v48 = vld [vmem:[%s8214_s20 + $0xe0] sm:$0xff] }
 0x925   : > { %3621 = vmatpush.bf16.msra.mxu3 %v7374_v48 }
 0x927   : > { %v2961_v9 = vpop.f32.mrf.mxu2 }
 0x929   : > { %3622 = vmatpush.bf16.msra.mxu3 %v7373_v4  ;;  %v2738_v4 = vpop.f32.mrf.mxu0 }
 0x92d   : > { %3623 = vmatpush.bf16.msra.mxu3 %v7372_v63  ;;  %v11092_v63 = vpack.c.bf16 %v9243_v7, %v9236_v27 }
 0x92f   : > { %v2963_v44 = vpop.f32.mrf.mxu2 }
 0x930   : > { %v3274_v30 = vpack.c.bf16 %v2963_v44, %v2961_v9  ;;  %v2977_v9 = vpack.c.bf16 %v2735_v12, %v2733_v34  ;;  %v9329_v34 = vld [vmem:[%s10983_s1 + $0x10] sm:$0xff]  ;;  %v9338_v12 = vld [vmem:[%s10983_s1 + $0x18] sm:$0xff] }
 0x931   : > { %v2740_v20 = vpop.f32.mrf.mxu0  ;;  %11100 = vst [vmem:[#allocation41_spill] sm:$0xff] %v9329_v34 }
 0x932   : > { %v2978_v33 = vpack.c.bf16 %v2740_v20, %v2738_v4  ;;  %11101 = vst [vmem:[#allocation42_spill] sm:$0xff] %v9338_v12  ;;  %v9348_v4 = vld [vmem:[%s10983_s1 + $0x20] sm:$0xff]  ;;  %v9357_v20 = vld [vmem:[%s10983_s1 + $0x28] sm:$0xff] }
 0x933   : > { %11102 = vst [vmem:[#allocation43_spill] sm:$0xff] %v9348_v4 }
 0x934   : > { %6787 = vmatmul.msk.bf16.gmra.mxu3 %vm1383_vm1, %v2975_v58  ;;  %3547 = vmatmul.bf16.gmra.mxu2 %v8608_v46  ;;  %v2976_v58 = vpack.c.bf16 %v2730_v59, %v2728_v57  ;;  %v7370_v57 = vld [vmem:[%s8214_s20 + $0xc0] sm:$0xff]  ;;  %v9290_v59 = vpop.f32.mrf.mxu3  ;;  %11103 = vst [vmem:[#allocation44_spill] sm:$0xff] %v9357_v20 }
 0x935   : > { %11091 = vst [vmem:[#allocation35_spill] sm:$0xff] %v9290_v59 }
 0x937   : > { %v2966_v0 = vpop.f32.mrf.mxu2 }
 0x93f   : > { %v2968_v16 = vpop.f32.mrf.mxu2 }
 0x940   : > { %v3275_v51 = vpack.c.bf16 %v2968_v16, %v2966_v0  ;;  %v7371_v0 = vld [vmem:[%s8214_s20 + $0xc8] sm:$0xff]  ;;  %v3272_v16 = vpack.c.bf16 %v2953_v43, %v2951_v8  ;;  %v9302_v8 = vpop.f32.mrf.mxu3  ;;  %v11095_v43 = vpack.c.bf16 %v9212_v3, %v9209_v17 }
 0x941   : > { %3624 = vmatpush.bf16.msra.mxu3 %v7371_v0  ;;  %11094 = vst [vmem:[#allocation36_spill] sm:$0xff] %v9302_v8 }
 0x942   : > { %3276 = vmatpush.bf16.msra.mxu0 %v3275_v51 }
 0x944   : > { %6788 = vmatmul.msk.bf16.gmra.mxu3 %vm1383_vm1, %v2976_v58 }
 0x945   : > { %3625 = vmatpush.bf16.msra.mxu3 %v7370_v57 }
 0x946   : > { %3277 = vmatpush.bf16.msra.mxu0 %v3274_v30 }
 0x94a   : > { %3278 = vmatpush.bf16.msra.mxu0 %v3273_v49  ;;  %v11093_v49 = vpack.c.bf16 %v9226_v36, %v9219_v10  ;;  %v9316_v10 = vld [vmem:[%s10983_s1] sm:$0xff] }
 0x94b   : > { %11098 = vst [vmem:[#allocation39_spill] sm:$0xff] %v9316_v10 }
 0x94e   : > { %3279 = vmatpush.bf16.msra.mxu0 %v3272_v16 }
 0x952   : > { %3280 = vmatpush.bf16.msra.mxu0 %v3271_v26  ;;  %v9308_v26 = vpop.f32.mrf.mxu3 }
 0x953   : > { %11096 = vst [vmem:[#allocation37_spill] sm:$0xff] %v9308_v26 }
 0x954   : > { %6789 = vmatmul.msk.bf16.gmra.mxu3 %vm1383_vm1, %v2977_v9 }
 0x956   : > { %3281 = vmatpush.bf16.msra.mxu0 %v11092_v63 }
 0x95a   : > { %3282 = vmatpush.bf16.msra.mxu0 %v11093_v49  ;;  %v9310_v18 = vpop.f32.mrf.mxu3 }
 0x95b   : > { %11097 = vst [vmem:[#allocation38_spill] sm:$0xff] %v9310_v18 }
 0x95e   : > { %3283 = vmatpush.bf16.msra.mxu0 %v11095_v43 }
 0x964   : > { %6790 = vmatmul.msk.bf16.gmra.mxu3 %vm1383_vm1, %v2978_v33 }
 0x974   : > { %3626 = vmatmul.bf16.vlgmr.msra.gmra.mxu3 %v8450_v5 }
 0x977   : > { %v3044_v27 = vpop.f32.mrf.mxu3 }
 0x978   : > { %v3084_v7 = vmul.f32 0.17677669, %v3044_v27 }
 0x97a   : > { %v3100_v17 = vadd.f32 %v9316_v10, %v3084_v7 }
 0x97c   : > { %3116 = vmax.xlane.f32.xlu0 %v3100_v17 }
 0x97f   : > { %v3046_v3 = vpop.f32.mrf.mxu3 }
 0x980   : > { %v3085_v36 = vmul.f32 0.17677669, %v3046_v3  ;;  %v9367_v3 = vld [vmem:[%s10983_s1 + $0x30] sm:$0xff] }
 0x981   : > { %11104 = vst [vmem:[#allocation45_spill] sm:$0xff] %v9367_v3 }
 0x982   : > { %v3101_v44 = vadd.f32 %v9322_v28, %v3085_v36 }
 0x984   : > { %3631 = vmatmul.bf16.gmra.mxu3 %v8487_v35  ;;  %3118 = vmax.xlane.f32.xlu1 %v3101_v44 }
 0x987   : > { %v3049_v51 = vpop.f32.mrf.mxu3 }
 0x988   : > { %v3086_v48 = vmul.f32 0.17677669, %v3049_v51 }
 0x98a   : > { %v9332_v58 = vadd.f32 %v9329_v34, %v3086_v48 }
 0x98c   : > { %3120 = vmax.xlane.f32.xlu2 %v9332_v58 }
 0x98f   : > { %v3051_v30 = vpop.f32.mrf.mxu3 }
 0x990   : > { %v3087_v0 = vmul.f32 0.17677669, %v3051_v30  ;;  %v9376_v30 = vld [vmem:[%s10983_s1 + $0x38] sm:$0xff] }
 0x991   : > { %11105 = vst [vmem:[#allocation46_spill] sm:$0xff] %v9376_v30 }
 0x992   : > { %v9341_v16 = vadd.f32 %v9338_v12, %v3087_v0 }
 0x994   : > { %3636 = vmatmul.bf16.gmra.mxu3 %v8499_v50  ;;  %3122 = vmax.xlane.f32.xlu0 %v9341_v16 }
 0x997   : > { %v3054_v57 = vpop.f32.mrf.mxu3 }
 0x998   : > { %v3088_v9 = vmul.f32 0.17677669, %v3054_v57 }
 0x99a   : > { %v9351_v63 = vadd.f32 %v9348_v4, %v3088_v9 }
 0x99c   : > { %3124 = vmax.xlane.f32.xlu1 %v9351_v63 }
 0x99f   : > { %v3056_v49 = vpop.f32.mrf.mxu3 }
 0x9a0   : > { %v3089_v43 = vmul.f32 0.17677669, %v3056_v49  ;;  %v9386_v49 = vld [vmem:[%s10983_s1 + $0x40] sm:$0xff] }
 0x9a1   : > { %11106 = vst [vmem:[#allocation47_spill] sm:$0xff] %v9386_v49 }
 0x9a2   : > { %v9360_v33 = vadd.f32 %v9357_v20, %v3089_v43 }
 0x9a4   : > { %3641 = vmatmul.bf16.gmra.mxu3 %v8528_v45  ;;  %3126 = vmax.xlane.f32.xlu2 %v9360_v33 }
 0x9a7   : > { %v3059_v27 = vpop.f32.mrf.mxu3 }
 0x9a8   : > { %v3090_v7 = vmul.f32 0.17677669, %v3059_v27 }
 0x9aa   : > { %v9370_v36 = vadd.f32 %v9367_v3, %v3090_v7 }
 0x9ac   : > { %3128 = vmax.xlane.f32.xlu0 %v9370_v36 }
 0x9af   : > { %v3061_v51 = vpop.f32.mrf.mxu3 }
 0x9b0   : > { %v3091_v48 = vmul.f32 0.17677669, %v3061_v51 }
 0x9b2   : > { %v9379_v0 = vadd.f32 %v9376_v30, %v3091_v48 }
 0x9b4   : > { %3646 = vmatmul.bf16.gmra.mxu3 %v8551_v31  ;;  %3130 = vmax.xlane.f32.xlu1 %v9379_v0 }
 0x9b7   : > { %v3064_v57 = vpop.f32.mrf.mxu3 }
 0x9b8   : > { %v3092_v9 = vmul.f32 0.17677669, %v3064_v57 }
 0x9ba   : > { %v9389_v43 = vadd.f32 %v9386_v49, %v3092_v9  ;;  %v7361_v49 = vld [vmem:[%s8224_s21 + $0x28] sm:$0xff] }
 0x9bb   : > { %3380 = vmatpush.bf16.msra.mxu1 %v7361_v49 }
 0x9bc   : > { %3132 = vmax.xlane.f32.xlu1 %v9389_v43 }
 0x9bf   : > { %v3066_v27 = vpop.f32.mrf.mxu3 }
 0x9c0   : > { %v3093_v47 = vmul.f32 0.17677669, %v3066_v27 }
 0x9c4   : > { %3651 = vmatmul.bf16.gmra.mxu3 %v8564_v23 }
 0x9c7   : > { %v3069_v7 = vpop.f32.mrf.mxu3 }
 0x9cf   : > { %v3071_v51 = vpop.f32.mrf.mxu3 }
 0x9d4   : > { %3656 = vmatmul.bf16.gmra.mxu3 %v8575_v56 }
 0x9d7   : > { %v3074_v48 = vpop.f32.mrf.mxu3 }
 0x9df   : > { %v3076_v18 = vpop.f32.mrf.mxu3 }
 0x9e4   : > { %3661 = vmatmul.bf16.gmra.mxu3 %v8608_v46 }
 0x9e7   : > { %v9395_v57 = vpop.f32.mrf.mxu3 }
 0x9ef   : > { %v3117_v61 = vpop.xlane.xlu0 %3116  ;;  %v9397_v8 = vpop.f32.mrf.mxu3 }
 0x9f0   : > { %v3148_v9 = vsub.f32 %v3100_v17, %v3117_v61 }
 0x9f2   : > { %v3164_v14 = vmul.f32 1.442695, %v3148_v9 }
 0x9f4   : > { %7729 = vpow2.f32 %v3164_v14  ;;  %v9410_v14 = vld [vmem:[%s10983_s1 + $0x48] sm:$0xff] }
 0x9f5   : > { %11107 = vst [vmem:[#allocation48_spill] sm:$0xff] %v9410_v14  ;;  %v9413_v61 = vadd.f32 %v9410_v14, %v3093_v47 }
 0x9f7   : > { %v3119_v41 = vpop.xlane.xlu1 %3118  ;;  %v9399_v21 = vpop.f32.mrf.mxu3 }
 0x9f8   : > { %v3149_v52 = vsub.f32 %v3101_v44, %v3119_v41 }
 0x9fa   : > { %v9401_v22 = vpop.eup %7729  ;;  %v3166_v29 = vmul.f32 1.442695, %v3149_v52 }
 0x9fb   : > { %3196 = vadd.xlane.f32.xlu2 %v9401_v22 }
 0x9fc   : > { %7731 = vpow2.f32 %v3166_v29  ;;  %v3094_v29 = vmul.f32 0.17677669, %v3069_v7  ;;  %v3095_v7 = vmul.f32 0.17677669, %v3071_v51  ;;  %v3096_v51 = vmul.f32 0.17677669, %v3074_v48 }
 0x9ff   : > { %v3121_v24 = vpop.xlane.xlu2 %3120  ;;  %v9404_v39 = vpop.f32.mrf.mxu3 }
 0xa00   : > { %v3150_v32 = vsub.f32 %v9332_v58, %v3121_v24  ;;  %v9425_v58 = vld [vmem:[%s10983_s1 + $0x50] sm:$0xff] }
 0xa01   : > { %11108 = vst [vmem:[#allocation49_spill] sm:$0xff] %v9425_v58  ;;  %v9428_v47 = vadd.f32 %v9425_v58, %v3094_v29 }
 0xa02   : > { %v9415_v41 = vpop.eup %7731  ;;  %v3168_v52 = vmul.f32 1.442695, %v3150_v32 }
 0xa03   : > { %3198 = vadd.xlane.f32.xlu0 %v9415_v41  ;;  %3134 = vmax.xlane.f32.xlu2 %v9413_v61 }
 0xa04   : > { %7733 = vpow2.f32 %v3168_v52 }
 0xa07   : > { %v3123_v17 = vpop.xlane.xlu0 %3122  ;;  %v9419_v44 = vpop.f32.mrf.mxu3 }
 0xa08   : > { %v3151_v24 = vsub.f32 %v9341_v16, %v3123_v17  ;;  %v9440_v17 = vld [vmem:[%s10983_s1 + $0x58] sm:$0xff] }
 0xa09   : > { %11109 = vst [vmem:[#allocation50_spill] sm:$0xff] %v9440_v17  ;;  %v9443_v29 = vadd.f32 %v9440_v17, %v3095_v7 }
 0xa0a   : > { %v9430_v32 = vpop.eup %7733  ;;  %v3170_v27 = vmul.f32 1.442695, %v3151_v24 }
 0xa0b   : > { %3200 = vadd.xlane.f32.xlu0 %v9430_v32  ;;  %3136 = vmax.xlane.f32.xlu2 %v9428_v47 }
 0xa0c   : > { %7735 = vpow2.f32 %v3170_v27 }
 0xa0f   : > { %v3125_v9 = vpop.xlane.xlu1 %3124  ;;  %v9434_v52 = vpop.f32.mrf.mxu3 }
 0xa10   : > { %v3152_v16 = vsub.f32 %v9351_v63, %v3125_v9  ;;  %v9455_v9 = vld [vmem:[%s10983_s1 + $0x60] sm:$0xff] }
 0xa11   : > { %11110 = vst [vmem:[#allocation51_spill] sm:$0xff] %v9455_v9  ;;  %v9458_v7 = vadd.f32 %v9455_v9, %v3096_v51 }
 0xa12   : > { %v9445_v24 = vpop.eup %7735  ;;  %v3172_v15 = vmul.f32 1.442695, %v3152_v16 }
 0xa13   : > { %3202 = vadd.xlane.f32.xlu1 %v9445_v24  ;;  %3138 = vmax.xlane.f32.xlu0 %v9443_v29 }
 0xa14   : > { %7737 = vpow2.f32 %v3172_v15  ;;  %v3097_v15 = vmul.f32 0.17677669, %v3076_v18 }
 0xa17   : > { %v3127_v27 = vpop.xlane.xlu2 %3126  ;;  %v9449_v55 = vpop.f32.mrf.mxu3 }
 0xa18   : > { %v3153_v63 = vsub.f32 %v9360_v33, %v3127_v27  ;;  %v9470_v27 = vld [vmem:[%s10983_s1 + $0x68] sm:$0xff] }
 0xa19   : > { %11111 = vst [vmem:[#allocation52_spill] sm:$0xff] %v9470_v27  ;;  %v9473_v51 = vadd.f32 %v9470_v27, %v3097_v15  ;;  %v9486_v15 = vld [vmem:[%s10983_s1 + $0x70] sm:$0xff] }
 0xa1a   : > { %v9460_v16 = vpop.eup %7737  ;;  %v3174_v37 = vmul.f32 1.442695, %v3153_v63  ;;  %11112 = vst [vmem:[#allocation53_spill] sm:$0xff] %v9486_v15 }
 0xa1b   : > { %3204 = vadd.xlane.f32.xlu1 %v9460_v16  ;;  %3140 = vmax.xlane.f32.xlu0 %v9458_v7 }
 0xa1c   : > { %7739 = vpow2.f32 %v3174_v37  ;;  %v3098_v37 = vmul.f32 0.17677669, %v9395_v57  ;;  %v3099_v57 = vmul.f32 0.17677669, %v9397_v8 }
 0xa1e   : > { %v9489_v27 = vadd.f32 %v9486_v15, %v3098_v37  ;;  %v9502_v37 = vld [vmem:[%s10983_s1 + $0x78] sm:$0xff] }
 0xa1f   : > { %v3129_v48 = vpop.xlane.xlu0 %3128  ;;  %v9464_v17 = vpop.f32.mrf.mxu3  ;;  %11113 = vst [vmem:[#allocation54_spill] sm:$0xff] %v9502_v37 }
 0xa20   : > { %v3154_v33 = vsub.f32 %v9370_v36, %v3129_v48 }
 0xa22   : > { %v9475_v63 = vpop.eup %7739  ;;  %v3176_v9 = vmul.f32 1.442695, %v3154_v33 }
 0xa23   : > { %3206 = vadd.xlane.f32.xlu2 %v9475_v63  ;;  %3142 = vmax.xlane.f32.xlu1 %v9473_v51 }
 0xa24   : > { %7741 = vpow2.f32 %v3176_v9 }
 0xa27   : > { %v3131_v18 = vpop.xlane.xlu1 %3130  ;;  %v9480_v36 = vpop.f32.mrf.mxu3 }
 0xa28   : > { %v3155_v48 = vsub.f32 %v9379_v0, %v3131_v18 }
 0xa2a   : > { %v9491_v33 = vpop.eup %7741  ;;  %v3178_v58 = vmul.f32 1.442695, %v3155_v48  ;;  %v9505_v48 = vadd.f32 %v9502_v37, %v3099_v57  ;;  %v7360_v57 = vld [vmem:[%s8224_s21 + $0x20] sm:$0xff] }
 0xa2b   : > { %3208 = vadd.xlane.f32.xlu2 %v9491_v33  ;;  %3144 = vmax.xlane.f32.xlu1 %v9489_v27 }
 0xa2c   : > { %7743 = vpow2.f32 %v3178_v58  ;;  %3381 = vmatpush.bf16.msra.mxu1 %v7360_v57 }
 0xa2f   : > { %v3133_v0 = vpop.xlane.xlu1 %3132  ;;  %v9496_v9 = vpop.f32.mrf.mxu3 }
 0xa30   : > { %v3156_v18 = vsub.f32 %v9389_v43, %v3133_v0 }
 0xa32   : > { %v9507_v15 = vpop.eup %7743  ;;  %v3180_v58 = vmul.f32 1.442695, %v3156_v18 }
 0xa33   : > { %3210 = vadd.xlane.f32.xlu0 %v9507_v15  ;;  %3146 = vmax.xlane.f32.xlu2 %v9505_v48 }
 0xa34   : > { %7745 = vpow2.f32 %v3180_v58 }
 0xa37   : > { %v3647_v8 = vpop.f32.mrf.mxu3 }
 0xa3a   : > { %v9511_v14 = vpop.eup %7745 }
 0xa3b   : > { %3212 = vadd.xlane.f32.xlu0 %v9511_v14 }
 0xa3f   : > { %v3649_v43 = vpop.f32.mrf.mxu3 }
 0xa47   : > { %v3652_v0 = vpop.f32.mrf.mxu3 }
 0xa4f   : > { %v3654_v30 = vpop.f32.mrf.mxu3 }
 0xa50   : > { %v3794_v25 = vpack.c.bf16 %v3654_v30, %v3652_v0  ;;  %v3792_v0 = vpack.c.bf16 %v9496_v9, %v9480_v36  ;;  %v3791_v36 = vpack.c.bf16 %v9464_v17, %v9449_v55 }
 0xa57   : > { %v3657_v37 = vpop.f32.mrf.mxu3 }
 0xa5f   : > { %v3659_v3 = vpop.f32.mrf.mxu3 }
 0xa60   : > { %v3795_v34 = vpack.c.bf16 %v3659_v3, %v3657_v37 }
 0xa62   : > { %v3840_v42 = vsel %vm1383_vm1, %v3795_v34, 0 }
 0xa67   : > { %v3662_v18 = vpop.f32.mrf.mxu3 }
 0xa6e   : > { %v3197_v20 = vpop.xlane.xlu2 %3196 }
 0xa6f   : > { %v3664_v4 = vpop.f32.mrf.mxu3  ;;  %7747 = vrcp.f32 %v3197_v20 }
 0xa70   : > { %v3796_v12 = vpack.c.bf16 %v3664_v4, %v3662_v18 }
 0xa72   : > { %v3843_v58 = vsel %vm1383_vm1, %v3796_v12, 0 }
 0xa73   : > { %3845 = vmatpush.bf16.xpose.msrb.mxu1 %v3843_v58 }
 0xa75   : > { %v7748_v57 = vpop.eup %7747 }
 0xa76   : > { %v3199_v28 = vpop.xlane.xlu0 %3198  ;;  %v3135_v10 = vpop.xlane.xlu2 %3134  ;;  %v3244_v4 = vmul.f32 %v7748_v57, %v9401_v22 }
 0xa77   : > { %7749 = vrcp.f32 %v3199_v28  ;;  %v3157_v26 = vsub.f32 %v9413_v61, %v3135_v10 }
 0xa79   : > { %v3182_v49 = vmul.f32 1.442695, %v3157_v26  ;;  %v3837_v26 = vsel %vm1383_vm1, %v3794_v25, 0 }
 0xa7b   : > { %7751 = vpow2.f32 %v3182_v49  ;;  %3846 = vmatpush.bf16.xpose.msrb.mxu1 %v3840_v42  ;;  %v3793_v42 = vpack.c.bf16 %v3649_v43, %v3647_v8 }
 0xa7d   : > { %v7750_v59 = vpop.eup %7749 }
 0xa7e   : > { %v3245_v12 = vmul.f32 %v7750_v59, %v9415_v41  ;;  %v3201_v18 = vpop.xlane.xlu0 %3200  ;;  %v3137_v20 = vpop.xlane.xlu2 %3136  ;;  %v3834_v41 = vsel %vm1383_vm1, %v3793_v42, 0 }
 0xa7f   : > { %v3158_v3 = vsub.f32 %v9428_v47, %v3137_v20 }
 0xa80   : > { %v3260_v37 = vpack.c.bf16 %v3245_v12, %v3244_v4 }
 0xa81   : > { %v9522_v28 = vpop.eup %7751  ;;  %v3184_v10 = vmul.f32 1.442695, %v3158_v3  ;;  %v3828_v3 = vsel %vm1383_vm1, %v3791_v36, 0 }
 0xa82   : > { %3284 = vmatmul.bf16.vlgmr.msra.gmra.mxu0 %v3260_v37  ;;  %3214 = vadd.xlane.f32.xlu1 %v9522_v28 }
 0xa83   : > { %7753 = vpow2.f32 %v3184_v10  ;;  %3847 = vmatpush.bf16.xpose.msrb.mxu1 %v3837_v26  ;;  %v3790_v26 = vpack.c.bf16 %v9434_v52, %v9419_v44  ;;  %v3789_v44 = vpack.c.bf16 %v9404_v39, %v9399_v21 }
 0xa84   : > { %7755 = vrcp.f32 %v3201_v18  ;;  %v3831_v18 = vsel %vm1383_vm1, %v3792_v0, 0 }
 0xa86   : > { %v3203_v22 = vpop.xlane.xlu1 %3202  ;;  %v3139_v34 = vpop.xlane.xlu0 %3138 }
 0xa87   : > { %7757 = vrcp.f32 %v3203_v22  ;;  %v3159_v59 = vsub.f32 %v9443_v29, %v3139_v34 }
 0xa89   : > { %v9527_v30 = vpop.eup %7753  ;;  %v3186_v61 = vmul.f32 1.442695, %v3159_v59 }
 0xa8a   : > { %3216 = vadd.xlane.f32.xlu2 %v9527_v30  ;;  %v7756_v47 = vpop.eup %7755 }
 0xa8b   : > { %7759 = vpow2.f32 %v3186_v61  ;;  %3848 = vmatpush.bf16.xpose.msrb.mxu1 %v3834_v41  ;;  %v3246_v58 = vmul.f32 %v7756_v47, %v9430_v32  ;;  %v3825_v41 = vsel %vm1383_vm1, %v3790_v26, 0 }
 0xa8d   : > { %v7758_v25 = vpop.eup %7757 }
 0xa8e   : > { %v3205_v8 = vpop.xlane.xlu1 %3204  ;;  %v3141_v43 = vpop.xlane.xlu0 %3140  ;;  %v3247_v29 = vmul.f32 %v7758_v25, %v9445_v24  ;;  %v3822_v25 = vsel %vm1383_vm1, %v3789_v44, 0 }
 0xa8f   : > { %v3160_v49 = vsub.f32 %v9458_v7, %v3141_v43 }
 0xa90   : > { %v3261_v57 = vpack.c.bf16 %v3247_v29, %v3246_v58 }
 0xa91   : > { %v9536_v4 = vpop.eup %7759  ;;  %v3188_v12 = vmul.f32 1.442695, %v3160_v49 }
 0xa92   : > { %3289 = vmatmul.bf16.gmra.mxu0 %v3261_v57  ;;  %3218 = vadd.xlane.f32.xlu0 %v9536_v4 }
 0xa93   : > { %7761 = vpow2.f32 %v3188_v12  ;;  %3849 = vmatpush.bf16.xpose.msrb.mxu1 %v3831_v18 }
 0xa94   : > { %7763 = vrcp.f32 %v3205_v8 }
 0xa96   : > { %v3207_v32 = vpop.xlane.xlu2 %3206  ;;  %v3143_v9 = vpop.xlane.xlu1 %3142 }
 0xa97   : > { %7765 = vrcp.f32 %v3207_v32  ;;  %v3161_v24 = vsub.f32 %v9473_v51, %v3143_v9  ;;  %v7385_v32 = vld [vmem:[%s8219_s18 + $0xf8] sm:$0xff] }
 0xa98   : > { %3732 = vmatpush.bf16.msrb.mxu0 %v7385_v32 }
 0xa99   : > { %v9543_v7 = vpop.eup %7761  ;;  %v3190_v20 = vmul.f32 1.442695, %v3161_v24  ;;  %v7384_v24 = vld [vmem:[%s8219_s18 + $0xf0] sm:$0xff] }
 0xa9a   : > { %3220 = vadd.xlane.f32.xlu1 %v9543_v7  ;;  %v7764_v37 = vpop.eup %7763 }
 0xa9b   : > { %7767 = vpow2.f32 %v3190_v20  ;;  %3850 = vmatpush.bf16.xpose.msrb.mxu1 %v3828_v3  ;;  %v3248_v42 = vmul.f32 %v7764_v37, %v9460_v16  ;;  %v7383_v37 = vld [vmem:[%s8219_s18 + $0xe8] sm:$0xff] }
 0xa9c   : > { %3733 = vmatpush.bf16.msrb.mxu0 %v7384_v24 }
 0xa9d   : > { %v7766_v10 = vpop.eup %7765 }
 0xa9e   : > { %v3209_v55 = vpop.xlane.xlu2 %3208  ;;  %v3145_v17 = vpop.xlane.xlu1 %3144  ;;  %v3249_v51 = vmul.f32 %v7766_v10, %v9475_v63 }
 0xa9f   : > { %v3162_v22 = vsub.f32 %v9489_v27, %v3145_v17 }
 0xaa0   : > { %v3262_v34 = vpack.c.bf16 %v3249_v51, %v3248_v42  ;;  %3734 = vmatpush.bf16.msrb.mxu0 %v7383_v37 }
 0xaa1   : > { %v9552_v59 = vpop.eup %7767  ;;  %v3192_v61 = vmul.f32 1.442695, %v3162_v22  ;;  %v7381_v22 = vld [vmem:[%s8219_s18 + $0xd8] sm:$0xff] }
 0xaa2   : > { %3294 = vmatmul.bf16.gmra.mxu0 %v3262_v34  ;;  %3222 = vadd.xlane.f32.xlu2 %v9552_v59  ;;  %v7380_v34 = vld [vmem:[%s8219_s18 + $0xd0] sm:$0xff] }
 0xaa3   : > { %7769 = vpow2.f32 %v3192_v61  ;;  %3851 = vmatpush.bf16.xpose.msrb.mxu1 %v3825_v41 }
 0xaa4   : > { %7771 = vrcp.f32 %v3209_v55 }
 0xaa6   : > { %v3211_v52 = vpop.xlane.xlu0 %3210  ;;  %v3147_v16 = vpop.xlane.xlu2 %3146 }
 0xaa7   : > { %7773 = vrcp.f32 %v3211_v52  ;;  %v3163_v27 = vsub.f32 %v9505_v48, %v3147_v16  ;;  %v7379_v52 = vld [vmem:[%s8219_s18 + $0xc8] sm:$0xff] }
 0xaa9   : > { %v9559_v63 = vpop.eup %7769  ;;  %v3194_v47 = vmul.f32 1.442695, %v3163_v27 }
 0xaaa   : > { %3224 = vadd.xlane.f32.xlu0 %v9559_v63  ;;  %v7772_v0 = vpop.eup %7771 }
 0xaab   : > { %7775 = vpow2.f32 %v3194_v47  ;;  %3852 = vmatpush.bf16.xpose.msrb.mxu1 %v3822_v25  ;;  %v3250_v43 = vmul.f32 %v7772_v0, %v9491_v33 }
 0xaad   : > { %v7774_v8 = vpop.eup %7773 }
 0xaae   : > { %v3251_v39 = vmul.f32 %v7774_v8, %v9507_v15  ;;  %v3213_v48 = vpop.xlane.xlu0 %3212 }
 0xaaf   : > { %7777 = vrcp.f32 %v3213_v48 }
 0xab0   : > { %v3263_v21 = vpack.c.bf16 %v3251_v39, %v3250_v43 }
 0xab1   : > { %v9565_v58 = vpop.eup %7775 }
 0xab2   : > { %3299 = vmatmul.bf16.gmra.mxu0 %v3263_v21  ;;  %3226 = vadd.xlane.f32.xlu1 %v9565_v58 }
 0xab5   : > { %v7778_v49 = vpop.eup %7777 }
 0xab6   : > { %v3252_v12 = vmul.f32 %v7778_v49, %v9511_v14 }
 0xaf5   : > { %v3215_v29 = vpop.xlane.xlu1 %3214 }
 0xaf6   : > { %7779 = vrcp.f32 %v3215_v29 }
 0xafc   : > { %v7780_v57 = vpop.eup %7779 }
 0xafd   : > { %v3253_v33 = vmul.f32 %v7780_v57, %v9522_v28  ;;  %v3217_v36 = vpop.xlane.xlu2 %3216  ;;  %v7382_v28 = vld [vmem:[%s8219_s18 + $0xe0] sm:$0xff] }
 0xafe   : > { %7781 = vrcp.f32 %v3217_v36  ;;  %3735 = vmatpush.bf16.msrb.mxu0 %v7382_v28 }
 0xaff   : > { %v3285_v15 = vpop.f32.mrf.mxu0  ;;  %v3264_v18 = vpack.c.bf16 %v3253_v33, %v3252_v12 }
 0xb01   : > { %3304 = vmatmul.bf16.gmra.mxu0 %v3264_v18 }
 0xb02   : > { %3736 = vmatpush.bf16.msrb.mxu0 %v7381_v22 }
 0xb04   : > { %v7782_v14 = vpop.eup %7781 }
 0xb05   : > { %v3219_v9 = vpop.xlane.xlu0 %3218  ;;  %v3254_v26 = vmul.f32 %v7782_v14, %v9527_v30 }
 0xb06   : > { %7783 = vrcp.f32 %v3219_v9  ;;  %3737 = vmatpush.bf16.msrb.mxu0 %v7380_v34 }
 0xb07   : > { %v3287_v20 = vpop.f32.mrf.mxu0 }
 0xb08   : > { %v3325_v3 = vpack.c.bf16 %v3287_v20, %v3285_v15 }
 0xb0a   : > { %6803 = vmatmul.msk.bf16.vlgmr.msra.gmra.mxu1 %vm1383_vm1, %v3325_v3  ;;  %3738 = vmatpush.bf16.msrb.mxu0 %v7379_v52  ;;  %v2600_v3 = vadd.f32 %v9257_v40, %v9163_v60 }
 0xb0c   : > { %v7784_v10 = vpop.eup %7783 }
 0xb0d   : > { %v3255_v55 = vmul.f32 %v7784_v10, %v9536_v4  ;;  %v3221_v51 = vpop.xlane.xlu1 %3220  ;;  %v7378_v4 = vld [vmem:[%s8219_s18 + $0xc0] sm:$0xff] }
 0xb0e   : > { %7785 = vrcp.f32 %v3221_v51  ;;  %3739 = vmatpush.bf16.msrb.mxu0 %v7378_v4 }
 0xb0f   : > { %v3290_v17 = vpop.f32.mrf.mxu0  ;;  %v3265_v42 = vpack.c.bf16 %v3255_v55, %v3254_v26 }
 0xb11   : > { %3309 = vmatmul.bf16.gmra.mxu0 %v3265_v42 }
 0xb14   : > { %v7786_v30 = vpop.eup %7785 }
 0xb15   : > { %v3223_v61 = vpop.xlane.xlu2 %3222  ;;  %v3256_v27 = vmul.f32 %v7786_v30, %v9543_v7 }
 0xb16   : > { %7787 = vrcp.f32 %v3223_v61 }
 0xb17   : > { %v3292_v41 = vpop.f32.mrf.mxu0 }
 0xb18   : > { %v3326_v44 = vpack.c.bf16 %v3292_v41, %v3290_v17 }
 0xb1a   : > { %6804 = vmatmul.msk.bf16.gmra.mxu1 %vm1383_vm1, %v3326_v44 }
 0xb1c   : > { %v7788_v16 = vpop.eup %7787 }
 0xb1d   : > { %v3257_v47 = vmul.f32 %v7788_v16, %v9552_v59  ;;  %v3225_v8 = vpop.xlane.xlu0 %3224 }
 0xb1e   : > { %7789 = vrcp.f32 %v3225_v8 }
 0xb1f   : > { %v3295_v25 = vpop.f32.mrf.mxu0  ;;  %v3266_v0 = vpack.c.bf16 %v3257_v47, %v3256_v27 }
 0xb21   : > { %3314 = vmatmul.bf16.gmra.mxu0 %v3266_v0 }
 0xb24   : > { %v7790_v48 = vpop.eup %7789 }
 0xb25   : > { %v3227_v43 = vpop.xlane.xlu1 %3226  ;;  %v3258_v49 = vmul.f32 %v7790_v48, %v9559_v63  ;;  %v2590_v63 = vadd.f32 %v9223_v6, %v9143_v54  ;;  %v3513_v54 = vpop.f32.mrf.mxu2  ;;  %v2610_v48 = vadd.f32 %v9271_v53, %v9179_v1 }
 0xb26   : > { %7791 = vrcp.f32 %v3227_v43 }
 0xb27   : > { %v3297_v39 = vpop.f32.mrf.mxu0 }
 0xb28   : > { %v3327_v21 = vpack.c.bf16 %v3297_v39, %v3295_v25 }
 0xb2a   : > { %6805 = vmatmul.msk.bf16.gmra.mxu1 %vm1383_vm1, %v3327_v21 }
 0xb2c   : > { %v7792_v29 = vpop.eup %7791 }
 0xb2d   : > { %v3259_v7 = vmul.f32 %v7792_v29, %v9565_v58  ;;  %v3515_v37 = vpop.f32.mrf.mxu2 }
 0xb2e   : > { %v3781_v61 = vpack.c.bf16 %v3515_v37, %v3513_v54 }
 0xb2f   : > { %v3300_v57 = vpop.f32.mrf.mxu0  ;;  %v3267_v59 = vpack.c.bf16 %v3259_v7, %v3258_v49 }
 0xb31   : > { %3319 = vmatmul.bf16.gmra.mxu0 %v3267_v59 }
 0xb35   : > { %v3518_v26 = vpop.f32.mrf.mxu2 }
 0xb37   : > { %v3302_v12 = vpop.f32.mrf.mxu0 }
 0xb38   : > { %v3328_v33 = vpack.c.bf16 %v3302_v12, %v3300_v57 }
 0xb3a   : > { %6806 = vmatmul.msk.bf16.gmra.mxu1 %vm1383_vm1, %v3328_v33 }
 0xb3d   : > { %v3520_v42 = vpop.f32.mrf.mxu2 }
 0xb41   : > { %3740 = vmatmul.bf16.vlgmr.msrb.gmra.mxu0 %v8450_v5 }
 0xb45   : > { %v3523_v22 = vpop.f32.mrf.mxu2 }
 0xb4d   : > { %v3525_v41 = vpop.f32.mrf.mxu2 }
 0xb4e   : > { %v3783_v16 = vpack.c.bf16 %v3525_v41, %v3523_v22 }
 0xb51   : > { %3745 = vmatmul.bf16.gmra.mxu0 %v8487_v35  ;;  %v2595_v35 = vadd.f32 %v9241_v38, %v9154_v11 }
 0xb55   : > { %v3528_v44 = vpop.f32.mrf.mxu2 }
 0xb5d   : > { %v3530_v30 = vpop.f32.mrf.mxu2 }
 0xb5e   : > { %v3784_v0 = vpack.c.bf16 %v3530_v30, %v3528_v44 }
 0xb61   : > { %3750 = vmatmul.bf16.gmra.mxu0 %v8499_v50 }
 0xb65   : > { %v3533_v27 = vpop.f32.mrf.mxu2 }
 0xb6d   : > { %v3535_v8 = vpop.f32.mrf.mxu2 }
 0xb6e   : > { %v3785_v7 = vpack.c.bf16 %v3535_v8, %v3533_v27  ;;  %v11118_v27 = vld [vmem:[#allocation39_spill] sm:$0xff] }
 0xb71   : > { %3755 = vmatmul.bf16.gmra.mxu0 %v8528_v45 }
 0xb75   : > { %v3538_v21 = vpop.f32.mrf.mxu2 }
 0xb7d   : > { %v3540_v59 = vpop.f32.mrf.mxu2 }
 0xb7e   : > { %v3305_v15 = vpop.f32.mrf.mxu0 }
 0xb81   : > { %3760 = vmatmul.bf16.gmra.mxu0 %v8551_v31 }
 0xb86   : > { %v3307_v58 = vpop.f32.mrf.mxu0 }
 0xb87   : > { %v3329_v18 = vpack.c.bf16 %v3307_v58, %v3305_v15  ;;  %v3383_v36 = vpop.f32.mrf.mxu1  ;;  %v2615_v15 = vadd.f32 %v9280_v2, %v9188_v19 }
 0xb88   : > { %v9595_v32 = vadd.f32 %v3383_v36, %v2590_v63  ;;  %v3543_v63 = vpop.f32.mrf.mxu2  ;;  %v3786_v36 = vpack.c.bf16 %v3540_v59, %v3538_v21  ;;  %v11120_v59 = vld [vmem:[#allocation41_spill] sm:$0xff] }
 0xb89   : > { %6807 = vmatmul.msk.bf16.gmra.mxu1 %vm1383_vm1, %v3329_v18 }
 0xb8e   : > { %v3310_v5 = vpop.f32.mrf.mxu0 }
 0xb8f   : > { %v9598_v9 = vpop.f32.mrf.mxu1 }
 0xb91   : > { %3765 = vmatmul.bf16.gmra.mxu0 %v8564_v23 }
 0xb96   : > { %v3312_v50 = vpop.f32.mrf.mxu0 }
 0xb97   : > { %v3330_v45 = vpack.c.bf16 %v3312_v50, %v3310_v5  ;;  %v3388_v31 = vpop.f32.mrf.mxu1  ;;  %v11114_v50 = vld [vmem:[#allocation25_spill] sm:$0xff] }
 0xb98   : > { %v9603_v24 = vadd.f32 %v3388_v31, %v2595_v35  ;;  %v3545_v35 = vpop.f32.mrf.mxu2 }
 0xb99   : > { %6808 = vmatmul.msk.bf16.gmra.mxu1 %vm1383_vm1, %v3330_v45  ;;  %v11115_v45 = vld [vmem:[#allocation35_spill] sm:$0xff] }
 0xb9a   : > { %v2620_v31 = vadd.f32 %v11115_v45, %v11114_v50  ;;  %v11124_v45 = vld [vmem:[#allocation45_spill] sm:$0xff] }
 0xb9e   : > { %v3315_v6 = vpop.f32.mrf.mxu0 }
 0xb9f   : > { %v9606_v20 = vpop.f32.mrf.mxu1 }
 0xba0   : > { %v3548_v19 = vpop.f32.mrf.mxu2 }
 0xba1   : > { %3770 = vmatmul.bf16.gmra.mxu0 %v8575_v56  ;;  %v2605_v56 = vadd.f32 %v9265_v13, %v9173_v62  ;;  %v3782_v13 = vpack.c.bf16 %v3520_v42, %v3518_v26 }
 0xba6   : > { %v3317_v23 = vpop.f32.mrf.mxu0 }
 0xba7   : > { %v3331_v14 = vpack.c.bf16 %v3317_v23, %v3315_v6  ;;  %v3393_v11 = vpop.f32.mrf.mxu1 }
 0xba8   : > { %v9611_v38 = vadd.f32 %v3393_v11, %v2600_v3  ;;  %v3787_v3 = vpack.c.bf16 %v3545_v35, %v3543_v63  ;;  %v11116_v11 = vld [vmem:[#allocation27_spill] sm:$0xff] }
 0xba9   : > { %6809 = vmatmul.msk.bf16.gmra.mxu1 %vm1383_vm1, %v3331_v14  ;;  %v3550_v14 = vpop.f32.mrf.mxu2 }
 0xbae   : > { %v3320_v28 = vpop.f32.mrf.mxu0 }
 0xbaf   : > { %v9614_v10 = vpop.f32.mrf.mxu1 }
 0xbb1   : > { %3775 = vmatmul.bf16.gmra.mxu0 %v8608_v46 }
 0xbb6   : > { %v3322_v55 = vpop.f32.mrf.mxu0 }
 0xbb7   : > { %v3332_v17 = vpack.c.bf16 %v3322_v55, %v3320_v28  ;;  %v3398_v60 = vpop.f32.mrf.mxu1  ;;  %v11117_v28 = vld [vmem:[#allocation37_spill] sm:$0xff] }
 0xbb8   : > { %v9619_v40 = vadd.f32 %v3398_v60, %v2605_v56  ;;  %v2625_v26 = vadd.f32 %v11117_v28, %v11116_v11  ;;  %v11126_v11 = vld [vmem:[#allocation47_spill] sm:$0xff] }
 0xbb9   : > { %6810 = vmatmul.msk.bf16.gmra.mxu1 %vm1383_vm1, %v3332_v17  ;;  %v3788_v17 = vpack.c.bf16 %v3550_v14, %v3548_v19 }
 0xbbe   : > { %v9622_v51 = vpop.f32.mrf.mxu0 }
 0xbbf   : > { %v9638_v43 = vpop.f32.mrf.mxu1 }
 0xbc6   : > { %v9624_v34 = vpop.f32.mrf.mxu0 }
 0xbc9   : > { %6955 = vmatmul.msk.bf16.vlgmr.msrb.gmra.mxu1 %vm1383_vm1, %v3781_v61 }
 0xbce   : > { %v9627_v46 = vpop.f32.mrf.mxu0 }
 0xbd6   : > { %v9629_v62 = vpop.f32.mrf.mxu0 }
 0xbd9   : > { %6956 = vmatmul.msk.bf16.gmra.mxu1 %vm1383_vm1, %v3782_v13 }
 0xbde   : > { %v9632_v52 = vpop.f32.mrf.mxu0 }
 0xbe6   : > { %v9634_v4 = vpop.f32.mrf.mxu0 }
 0xbe7   : > { %v4080_v8 = vpack.c.bf16 %v9634_v4, %v9632_v52 }
 0xbe9   : > { %6957 = vmatmul.msk.bf16.gmra.mxu1 %vm1383_vm1, %v3783_v16 }
 0xbee   : > { %v3756_v47 = vpop.f32.mrf.mxu0 }
 0xbf6   : > { %v3758_v25 = vpop.f32.mrf.mxu0 }
 0xbf7   : > { %v4081_v30 = vpack.c.bf16 %v3758_v25, %v3756_v47  ;;  %v4078_v47 = vpack.c.bf16 %v9624_v34, %v9622_v51  ;;  %v11123_v51 = vld [vmem:[#allocation44_spill] sm:$0xff] }
 0xbf9   : > { %6958 = vmatmul.msk.bf16.gmra.mxu1 %vm1383_vm1, %v3784_v0 }
 0xbfe   : > { %v3761_v39 = vpop.f32.mrf.mxu0 }
 0xc06   : > { %v3403_v29 = vpop.f32.mrf.mxu1  ;;  %v3763_v49 = vpop.f32.mrf.mxu0 }
 0xc07   : > { %v9642_v57 = vadd.f32 %v3403_v29, %v2610_v48  ;;  %v4082_v13 = vpack.c.bf16 %v3763_v49, %v3761_v39  ;;  %v4079_v48 = vpack.c.bf16 %v9629_v62, %v9627_v46 }
 0xc09   : > { %6959 = vmatmul.msk.bf16.gmra.mxu1 %vm1383_vm1, %v3785_v7  ;;  %v11119_v7 = vld [vmem:[#allocation40_spill] sm:$0xff] }
 0xc0e   : > { %v9645_v12 = vpop.f32.mrf.mxu1  ;;  %v3766_v33 = vpop.f32.mrf.mxu0 }
 0xc16   : > { %v3408_v58 = vpop.f32.mrf.mxu1  ;;  %v3768_v18 = vpop.f32.mrf.mxu0 }
 0xc17   : > { %v9649_v5 = vadd.f32 %v3408_v58, %v2615_v15  ;;  %v4083_v41 = vpack.c.bf16 %v3768_v18, %v3766_v33  ;;  %v11121_v15 = vld [vmem:[#allocation42_spill] sm:$0xff]  ;;  %v11122_v58 = vld [vmem:[#allocation43_spill] sm:$0xff] }
 0xc19   : > { %6960 = vmatmul.msk.bf16.gmra.mxu1 %vm1383_vm1, %v3786_v36 }
 0xc1e   : > { %v9652_v1 = vpop.f32.mrf.mxu1  ;;  %v3771_v53 = vpop.f32.mrf.mxu0 }
 0xc26   : > { %v3413_v54 = vpop.f32.mrf.mxu1  ;;  %v3773_v6 = vpop.f32.mrf.mxu0 }
 0xc27   : > { %v9656_v23 = vadd.f32 %v3413_v54, %v2620_v31  ;;  %v4084_v22 = vpack.c.bf16 %v3773_v6, %v3771_v53 }
 0xc29   : > { %6961 = vmatmul.msk.bf16.gmra.mxu1 %vm1383_vm1, %v3787_v3  ;;  %v11125_v3 = vld [vmem:[#allocation46_spill] sm:$0xff] }
 0xc2e   : > { %v9659_v2 = vpop.f32.mrf.mxu1  ;;  %v3776_v37 = vpop.f32.mrf.mxu0 }
 0xc36   : > { %v3418_v56 = vpop.f32.mrf.mxu1  ;;  %v3778_v55 = vpop.f32.mrf.mxu0 }
 0xc37   : > { %v9663_v60 = vadd.f32 %v3418_v56, %v2625_v26  ;;  %v4085_v42 = vpack.c.bf16 %v3778_v55, %v3776_v37 }
 0xc39   : > { %6962 = vmatmul.msk.bf16.gmra.mxu1 %vm1383_vm1, %v3788_v17  ;;  %4086 = vmatpush.bf16.msrb.mxu2 %v4085_v42 }
 0xc3d   : > { %4087 = vmatpush.bf16.msrb.mxu2 %v4084_v22 }
 0xc3e   : > { %v9666_v61 = vpop.f32.mrf.mxu1 }
 0xc41   : > { %4088 = vmatpush.bf16.msrb.mxu2 %v4083_v41 }
 0xc45   : > { %4089 = vmatpush.bf16.msrb.mxu2 %v4082_v13 }
 0xc46   : > { %v3854_v44 = vpop.f32.mrf.mxu1 }
 0xc47   : > { %v3894_v16 = vmul.f32 0.17677669, %v3854_v44 }
 0xc49   : > { %4090 = vmatpush.bf16.msrb.mxu2 %v4081_v30  ;;  %v3910_v0 = vadd.f32 %v11118_v27, %v3894_v16 }
 0xc4b   : > { %3926 = vmax.xlane.f32.xlu2 %v3910_v0 }
 0xc4d   : > { %4091 = vmatpush.bf16.msrb.mxu2 %v4080_v8  ;;  %v11127_v8 = vld [vmem:[#allocation48_spill] sm:$0xff] }
 0xc4e   : > { %v3856_v21 = vpop.f32.mrf.mxu1 }
 0xc4f   : > { %v3895_v29 = vmul.f32 0.17677669, %v3856_v21 }
 0xc51   : > { %4092 = vmatpush.bf16.msrb.mxu2 %v4079_v48  ;;  %v3911_v39 = vadd.f32 %v11119_v7, %v3895_v29 }
 0xc53   : > { %3928 = vmax.xlane.f32.xlu0 %v3911_v39 }
 0xc55   : > { %4093 = vmatpush.bf16.msrb.mxu2 %v4078_v47 }
 0xc56   : > { %v3859_v25 = vpop.f32.mrf.mxu1 }
 0xc57   : > { %v3896_v49 = vmul.f32 0.17677669, %v3859_v25  ;;  %v11128_v25 = vld [vmem:[#allocation49_spill] sm:$0xff] }
 0xc59   : > { %v3912_v33 = vadd.f32 %v11120_v59, %v3896_v49 }
 0xc5b   : > { %3930 = vmax.xlane.f32.xlu1 %v3912_v33 }
 0xc5e   : > { %v3861_v52 = vpop.f32.mrf.mxu1 }
 0xc5f   : > { %v3897_v4 = vmul.f32 0.17677669, %v3861_v52 }
 0xc61   : > { %v3913_v63 = vadd.f32 %v11121_v15, %v3897_v4 }
 0xc63   : > { %3932 = vmax.xlane.f32.xlu2 %v3913_v63 }
 0xc66   : > { %v3864_v46 = vpop.f32.mrf.mxu1 }
 0xc67   : > { %v3898_v62 = vmul.f32 0.17677669, %v3864_v46 }
 0xc69   : > { %v3914_v18 = vadd.f32 %v11122_v58, %v3898_v62  ;;  %v11129_v62 = vld [vmem:[#allocation50_spill] sm:$0xff] }
 0xc6b   : > { %3934 = vmax.xlane.f32.xlu0 %v3914_v18 }
 0xc6e   : > { %v3866_v36 = vpop.f32.mrf.mxu1 }
 0xc6f   : > { %v3899_v53 = vmul.f32 0.17677669, %v3866_v36 }
 0xc71   : > { %v3915_v34 = vadd.f32 %v11123_v51, %v3899_v53 }
 0xc73   : > { %3936 = vmax.xlane.f32.xlu1 %v3915_v34 }
 0xc76   : > { %v3869_v35 = vpop.f32.mrf.mxu1 }
 0xc77   : > { %v3900_v50 = vmul.f32 0.17677669, %v3869_v35 }
 0xc79   : > { %v9681_v31 = vadd.f32 %v11124_v45, %v3900_v50  ;;  %v11130_v45 = vld [vmem:[#allocation51_spill] sm:$0xff] }
 0xc7b   : > { %3938 = vmax.xlane.f32.xlu2 %v9681_v31 }
 0xc7e   : > { %v3871_v54 = vpop.f32.mrf.mxu1 }
 0xc7f   : > { %v3901_v6 = vmul.f32 0.17677669, %v3871_v54 }
 0xc81   : > { %v9685_v19 = vadd.f32 %v11125_v3, %v3901_v6 }
 0xc83   : > { %3940 = vmax.xlane.f32.xlu0 %v9685_v19 }
 0xc86   : > { %v3874_v37 = vpop.f32.mrf.mxu1 }
 0xc87   : > { %v3902_v14 = vmul.f32 0.17677669, %v3874_v37 }
 0xc89   : > { %v9689_v28 = vadd.f32 %v11126_v11, %v3902_v14 }
 0xc8b   : > { %3942 = vmax.xlane.f32.xlu0 %v9689_v28 }
 0xc8e   : > { %v3876_v26 = vpop.f32.mrf.mxu1 }
 0xc8f   : > { %v3903_v30 = vmul.f32 0.17677669, %v3876_v26  ;;  %v11131_v26 = vld [vmem:[#allocation52_spill] sm:$0xff] }
 0xc91   : > { %v9696_v21 = vadd.f32 %v11127_v8, %v3903_v30 }
 0xc96   : > { %v3879_v22 = vpop.f32.mrf.mxu1 }
 0xc97   : > { %v3904_v7 = vmul.f32 0.17677669, %v3879_v22 }
 0xc99   : > { %v9703_v49 = vadd.f32 %v11128_v25, %v3904_v7 }
 0xcbe   : > { %v3927_v56 = vpop.xlane.xlu2 %3926 }
 0xcbf   : > { %v3958_v55 = vsub.f32 %v3910_v0, %v3927_v56  ;;  %v3881_v0 = vpop.f32.mrf.mxu1 }
 0xcc0   : > { %v3905_v4 = vmul.f32 0.17677669, %v3881_v0 }
 0xcc1   : > { %v3974_v17 = vmul.f32 1.442695, %v3958_v55 }
 0xcc2   : > { %v9710_v58 = vadd.f32 %v11129_v62, %v3905_v4 }
 0xcc3   : > { %7793 = vpow2.f32 %v3974_v17 }
 0xcc6   : > { %v3929_v42 = vpop.xlane.xlu0 %3928 }
 0xcc7   : > { %v3959_v41 = vsub.f32 %v3911_v39, %v3929_v42  ;;  %v3884_v52 = vpop.f32.mrf.mxu1 }
 0xcc8   : > { %v3906_v53 = vmul.f32 0.17677669, %v3884_v52 }
 0xcc9   : > { %v9692_v13 = vpop.eup %7793  ;;  %v3976_v44 = vmul.f32 1.442695, %v3959_v41  ;;  %v11132_v41 = vld [vmem:[#allocation53_spill] sm:$0xff] }
 0xcca   : > { %4006 = vadd.xlane.f32.xlu1 %v9692_v13  ;;  %v9717_v54 = vadd.f32 %v11130_v45, %v3906_v53 }
 0xccb   : > { %7795 = vpow2.f32 %v3976_v44 }
 0xcce   : > { %v3931_v16 = vpop.xlane.xlu1 %3930 }
 0xccf   : > { %v3960_v27 = vsub.f32 %v3912_v33, %v3931_v16  ;;  %v3886_v51 = vpop.f32.mrf.mxu1 }
 0xcd0   : > { %v3907_v3 = vmul.f32 0.17677669, %v3886_v51 }
 0xcd1   : > { %v9698_v48 = vpop.eup %7795  ;;  %v3978_v29 = vmul.f32 1.442695, %v3960_v27 }
 0xcd2   : > { %4008 = vadd.xlane.f32.xlu2 %v9698_v48  ;;  %3944 = vmax.xlane.f32.xlu1 %v9696_v21  ;;  %v9725_v56 = vadd.f32 %v11131_v26, %v3907_v3 }
 0xcd3   : > { %7797 = vpow2.f32 %v3978_v29  ;;  %v11133_v29 = vld [vmem:[#allocation54_spill] sm:$0xff] }
 0xcd6   : > { %v3933_v39 = vpop.xlane.xlu2 %3932 }
 0xcd7   : > { %v3961_v47 = vsub.f32 %v3913_v63, %v3933_v39  ;;  %v3889_v14 = vpop.f32.mrf.mxu1 }
 0xcd8   : > { %v3908_v17 = vmul.f32 0.17677669, %v3889_v14 }
 0xcd9   : > { %v9705_v59 = vpop.eup %7797  ;;  %v3980_v33 = vmul.f32 1.442695, %v3961_v47 }
 0xcda   : > { %4010 = vadd.xlane.f32.xlu2 %v9705_v59  ;;  %3946 = vmax.xlane.f32.xlu1 %v9703_v49  ;;  %v9733_v44 = vadd.f32 %v11132_v41, %v3908_v17 }
 0xcdb   : > { %7799 = vpow2.f32 %v3980_v33 }
 0xcde   : > { %v3935_v15 = vpop.xlane.xlu0 %3934 }
 0xcdf   : > { %v3962_v46 = vsub.f32 %v3914_v18, %v3935_v15 }
 0xce1   : > { %v9712_v36 = vpop.eup %7799  ;;  %v3982_v63 = vmul.f32 1.442695, %v3962_v46 }
 0xce2   : > { %4012 = vadd.xlane.f32.xlu0 %v9712_v36  ;;  %3948 = vmax.xlane.f32.xlu2 %v9710_v58 }
 0xce3   : > { %7801 = vpow2.f32 %v3982_v63 }
 0xce6   : > { %v3937_v35 = vpop.xlane.xlu1 %3936 }
 0xce7   : > { %v3963_v50 = vsub.f32 %v3915_v34, %v3937_v35 }
 0xce9   : > { %v9719_v6 = vpop.eup %7801  ;;  %v3984_v18 = vmul.f32 1.442695, %v3963_v50 }
 0xcea   : > { %4014 = vadd.xlane.f32.xlu0 %v9719_v6  ;;  %3950 = vmax.xlane.f32.xlu2 %v9717_v54 }
 0xceb   : > { %7803 = vpow2.f32 %v3984_v18 }
 0xcee   : > { %v3939_v37 = vpop.xlane.xlu2 %3938 }
 0xcef   : > { %v3964_v11 = vsub.f32 %v9681_v31, %v3939_v37  ;;  %v3891_v31 = vpop.f32.mrf.mxu1 }
 0xcf0   : > { %v3909_v27 = vmul.f32 0.17677669, %v3891_v31  ;;  %v7387_v31 = vld [vmem:[%s8224_s21 + $0x38] sm:$0xff] }
 0xcf1   : > { %v9727_v34 = vpop.eup %7803  ;;  %v3986_v55 = vmul.f32 1.442695, %v3964_v11  ;;  %4190 = vmatpush.bf16.msrb.mxu3 %v7387_v31 }
 0xcf2   : > { %4016 = vadd.xlane.f32.xlu1 %v9727_v34  ;;  %3952 = vmax.xlane.f32.xlu0 %v9725_v56  ;;  %v9741_v7 = vadd.f32 %v11133_v29, %v3909_v27 }
 0xcf3   : > { %7805 = vpow2.f32 %v3986_v55 }
 0xcf6   : > { %v3941_v42 = vpop.xlane.xlu0 %3940 }
 0xcf7   : > { %v3965_v22 = vsub.f32 %v9685_v19, %v3941_v42 }
 0xcf9   : > { %v9735_v30 = vpop.eup %7805  ;;  %v3988_v16 = vmul.f32 1.442695, %v3965_v22 }
 0xcfa   : > { %4018 = vadd.xlane.f32.xlu1 %v9735_v30  ;;  %3954 = vmax.xlane.f32.xlu0 %v9733_v44 }
 0xcfb   : > { %7807 = vpow2.f32 %v3988_v16 }
 0xcfe   : > { %v3943_v8 = vpop.xlane.xlu0 %3942 }
 0xcff   : > { %v3966_v0 = vsub.f32 %v9689_v28, %v3943_v8 }
 0xd01   : > { %v9743_v19 = vpop.eup %7807  ;;  %v3990_v39 = vmul.f32 1.442695, %v3966_v0 }
 0xd02   : > { %4020 = vadd.xlane.f32.xlu2 %v9743_v19  ;;  %3956 = vmax.xlane.f32.xlu1 %v9741_v7 }
 0xd03   : > { %7809 = vpow2.f32 %v3990_v39 }
 0xd09   : > { %v9747_v47 = vpop.eup %7809 }
 0xd0a   : > { %4022 = vadd.xlane.f32.xlu2 %v9747_v47 }
 0xd3d   : > { %v4007_v25 = vpop.xlane.xlu1 %4006 }
 0xd3e   : > { %7811 = vrcp.f32 %v4007_v25 }
 0xd44   : > { %v7812_v15 = vpop.eup %7811 }
 0xd45   : > { %v4009_v33 = vpop.xlane.xlu2 %4008  ;;  %v3945_v52 = vpop.xlane.xlu1 %3944  ;;  %v4054_v62 = vmul.f32 %v7812_v15, %v9692_v13 }
 0xd46   : > { %7813 = vrcp.f32 %v4009_v33  ;;  %v3967_v28 = vsub.f32 %v9696_v21, %v3945_v52 }
 0xd48   : > { %v3992_v4 = vmul.f32 1.442695, %v3967_v28 }
 0xd4a   : > { %7815 = vpow2.f32 %v3992_v4 }
 0xd4c   : > { %v7814_v46 = vpop.eup %7813 }
 0xd4d   : > { %v4055_v63 = vmul.f32 %v7814_v46, %v9698_v48  ;;  %v4011_v53 = vpop.xlane.xlu2 %4010  ;;  %v3947_v51 = vpop.xlane.xlu1 %3946 }
 0xd4e   : > { %v3968_v35 = vsub.f32 %v9703_v49, %v3947_v51 }
 0xd4f   : > { %v4070_v50 = vpack.c.bf16 %v4055_v63, %v4054_v62 }
 0xd50   : > { %v9754_v45 = vpop.eup %7815  ;;  %v3994_v18 = vmul.f32 1.442695, %v3968_v35 }
 0xd51   : > { %4094 = vmatmul.bf16.vlgmr.msrb.gmra.mxu2 %v4070_v50  ;;  %4024 = vadd.xlane.f32.xlu0 %v9754_v45 }
 0xd52   : > { %7817 = vpow2.f32 %v3994_v18  ;;  %v7386_v18 = vld [vmem:[%s8224_s21 + $0x30] sm:$0xff] }
 0xd53   : > { %7819 = vrcp.f32 %v4011_v53  ;;  %4191 = vmatpush.bf16.msrb.mxu3 %v7386_v18 }
 0xd55   : > { %v4013_v21 = vpop.xlane.xlu0 %4012  ;;  %v3949_v3 = vpop.xlane.xlu2 %3948 }
 0xd56   : > { %7821 = vrcp.f32 %v4013_v21  ;;  %v3969_v13 = vsub.f32 %v9710_v58, %v3949_v3 }
 0xd58   : > { %v9758_v37 = vpop.eup %7817  ;;  %v3996_v48 = vmul.f32 1.442695, %v3969_v13 }
 0xd59   : > { %4026 = vadd.xlane.f32.xlu1 %v9758_v37  ;;  %v7820_v49 = vpop.eup %7819 }
 0xd5a   : > { %7823 = vpow2.f32 %v3996_v48  ;;  %v4056_v55 = vmul.f32 %v7820_v49, %v9705_v59 }
 0xd5c   : > { %v7822_v14 = vpop.eup %7821 }
 0xd5d   : > { %v4015_v11 = vpop.xlane.xlu0 %4014  ;;  %v3951_v26 = vpop.xlane.xlu2 %3950  ;;  %v4057_v17 = vmul.f32 %v7822_v14, %v9712_v36 }
 0xd5e   : > { %v3970_v42 = vsub.f32 %v9717_v54, %v3951_v26 }
 0xd5f   : > { %v4071_v22 = vpack.c.bf16 %v4057_v17, %v4056_v55 }
 0xd60   : > { %v9764_v41 = vpop.eup %7823  ;;  %v3998_v58 = vmul.f32 1.442695, %v3970_v42 }
 0xd61   : > { %4099 = vmatmul.bf16.gmra.mxu2 %v4071_v22  ;;  %4028 = vadd.xlane.f32.xlu2 %v9764_v41 }
 0xd62   : > { %7825 = vpow2.f32 %v3998_v58 }
 0xd63   : > { %7827 = vrcp.f32 %v4015_v11 }
 0xd65   : > { %v4017_v16 = vpop.xlane.xlu1 %4016  ;;  %v3953_v27 = vpop.xlane.xlu0 %3952 }
 0xd66   : > { %7829 = vrcp.f32 %v4017_v16  ;;  %v3971_v59 = vsub.f32 %v9725_v56, %v3953_v27 }
 0xd68   : > { %v9769_v8 = vpop.eup %7825  ;;  %v4000_v36 = vmul.f32 1.442695, %v3971_v59 }
 0xd69   : > { %4030 = vadd.xlane.f32.xlu0 %v9769_v8  ;;  %v7828_v54 = vpop.eup %7827 }
 0xd6a   : > { %7831 = vpow2.f32 %v4000_v36  ;;  %v4058_v25 = vmul.f32 %v7828_v54, %v9719_v6 }
 0xd6c   : > { %v7830_v0 = vpop.eup %7829 }
 0xd6d   : > { %v4019_v29 = vpop.xlane.xlu1 %4018  ;;  %v3955_v39 = vpop.xlane.xlu0 %3954  ;;  %v4059_v33 = vmul.f32 %v7830_v0, %v9727_v34 }
 0xd6e   : > { %v3972_v52 = vsub.f32 %v9733_v44, %v3955_v39 }
 0xd6f   : > { %v4072_v28 = vpack.c.bf16 %v4059_v33, %v4058_v25 }
 0xd70   : > { %v7832_v4 = vpop.eup %7831  ;;  %v4002_v15 = vmul.f32 1.442695, %v3972_v52 }
 0xd71   : > { %4104 = vmatmul.bf16.gmra.mxu2 %v4072_v28  ;;  %4032 = vadd.xlane.f32.xlu1 %v7832_v4 }
 0xd72   : > { %7833 = vpow2.f32 %v4002_v15 }
 0xd73   : > { %7835 = vrcp.f32 %v4019_v29 }
 0xd75   : > { %v4021_v56 = vpop.xlane.xlu2 %4020  ;;  %v3957_v46 = vpop.xlane.xlu1 %3956 }
 0xd76   : > { %7837 = vrcp.f32 %v4021_v56  ;;  %v3973_v62 = vsub.f32 %v9741_v7, %v3957_v46 }
 0xd78   : > { %v7834_v63 = vpop.eup %7833  ;;  %v4004_v53 = vmul.f32 1.442695, %v3973_v62 }
 0xd79   : > { %4034 = vadd.xlane.f32.xlu2 %v7834_v63  ;;  %v7836_v6 = vpop.eup %7835 }
 0xd7a   : > { %7839 = vpow2.f32 %v4004_v53  ;;  %v4060_v44 = vmul.f32 %v7836_v6, %v9735_v30 }
 0xd7c   : > { %v7838_v34 = vpop.eup %7837 }
 0xd7d   : > { %v4061_v51 = vmul.f32 %v7838_v34, %v9743_v19  ;;  %v4023_v21 = vpop.xlane.xlu2 %4022 }
 0xd7e   : > { %7841 = vrcp.f32 %v4023_v21  ;;  %v7906_v21 = vld [vmem:[#allocation2 + $0x30] sm:$0xff] }
 0xd7f   : > { %v4073_v35 = vpack.c.bf16 %v4061_v51, %v4060_v44 }
 0xd80   : > { %v7840_v50 = vpop.eup %7839 }
 0xd81   : > { %4109 = vmatmul.bf16.gmra.mxu2 %v4073_v35  ;;  %4036 = vadd.xlane.f32.xlu0 %v7840_v50 }
 0xd84   : > { %v7842_v7 = vpop.eup %7841 }
 0xd85   : > { %v4062_v48 = vmul.f32 %v7842_v7, %v9747_v47  ;;  %v11134_v7 = vld [vmem:[#allocation19_spill] sm:$0xff] }
 0xdc4   : > { %v4025_v3 = vpop.xlane.xlu0 %4024 }
 0xdc5   : > { %7843 = vrcp.f32 %v4025_v3 }
 0xdcb   : > { %v7844_v13 = vpop.eup %7843 }
 0xdcc   : > { %v4063_v49 = vmul.f32 %v7844_v13, %v9754_v45  ;;  %v4027_v30 = vpop.xlane.xlu1 %4026  ;;  %v11135_v13 = vld [vmem:[#allocation29_spill] sm:$0xff] }
 0xdcd   : > { %7845 = vrcp.f32 %v4027_v30 }
 0xdce   : > { %v4074_v14 = vpack.c.bf16 %v4063_v49, %v4062_v48  ;;  %v2592_v48 = vadd.f32 %v11135_v13, %v11134_v7  ;;  %v11140_v13 = vld [vmem:[#allocation22_spill] sm:$0xff] }
 0xdd0   : > { %4114 = vmatmul.bf16.gmra.mxu2 %v4074_v14  ;;  %v3424_v14 = vadd.f32 %v9598_v9, %v2592_v48  ;;  %v7908_v9 = vld [vmem:[#allocation2 + $0x58] sm:$0xff]  ;;  %v11141_v48 = vld [vmem:[#allocation32_spill] sm:$0xff] }
 0xdd3   : > { %v7846_v26 = vpop.eup %7845 }
 0xdd4   : > { %v4095_v19 = vpop.f32.mrf.mxu2  ;;  %v4029_v11 = vpop.xlane.xlu2 %4028  ;;  %v4064_v42 = vmul.f32 %v7846_v26, %v9758_v37  ;;  %v7907_v26 = vld [vmem:[#allocation2] sm:$0xff] }
 0xdd5   : > { %7847 = vrcp.f32 %v4029_v11 }
 0xddb   : > { %v7848_v55 = vpop.eup %7847 }
 0xddc   : > { %v4097_v17 = vpop.f32.mrf.mxu2  ;;  %v4065_v22 = vmul.f32 %v7848_v55, %v9764_v41  ;;  %v4031_v47 = vpop.xlane.xlu0 %4030 }
 0xddd   : > { %v4135_v58 = vpack.c.bf16 %v4097_v17, %v4095_v19  ;;  %7849 = vrcp.f32 %v4031_v47  ;;  %v11136_v47 = vld [vmem:[#allocation20_spill] sm:$0xff] }
 0xdde   : > { %v4075_v31 = vpack.c.bf16 %v4065_v22, %v4064_v42 }
 0xddf   : > { %6975 = vmatmul.msk.bf16.vlgmr.msrb.gmra.mxu3 %vm1383_vm1, %v4135_v58 }
 0xde0   : > { %4119 = vmatmul.bf16.gmra.mxu2 %v4075_v31 }
 0xde3   : > { %v7850_v27 = vpop.eup %7849 }
 0xde4   : > { %v4100_v45 = vpop.f32.mrf.mxu2  ;;  %v4033_v16 = vpop.xlane.xlu1 %4032  ;;  %v4066_v54 = vmul.f32 %v7850_v27, %v9769_v8 }
 0xde5   : > { %7851 = vrcp.f32 %v4033_v16 }
 0xdeb   : > { %v7852_v59 = vpop.eup %7851 }
 0xdec   : > { %v4102_v36 = vpop.f32.mrf.mxu2  ;;  %v4067_v0 = vmul.f32 %v7852_v59, %v7832_v4  ;;  %v4035_v41 = vpop.xlane.xlu2 %4034 }
 0xded   : > { %v4136_v29 = vpack.c.bf16 %v4102_v36, %v4100_v45  ;;  %7853 = vrcp.f32 %v4035_v41  ;;  %v11137_v45 = vld [vmem:[#allocation30_spill] sm:$0xff] }
 0xdee   : > { %v4076_v37 = vpack.c.bf16 %v4067_v0, %v4066_v54  ;;  %v2597_v16 = vadd.f32 %v11137_v45, %v11136_v47 }
 0xdef   : > { %6976 = vmatmul.msk.bf16.gmra.mxu3 %vm1383_vm1, %v4136_v29 }
 0xdf0   : > { %4124 = vmatmul.bf16.gmra.mxu2 %v4076_v37  ;;  %v3426_v59 = vadd.f32 %v9606_v20, %v2597_v16  ;;  %v7909_v37 = vld [vmem:[#allocation2 + $0x18] sm:$0xff]  ;;  %v7910_v20 = vld [vmem:[#allocation2 + $0x50] sm:$0xff] }
 0xdf3   : > { %v7854_v33 = vpop.eup %7853 }
 0xdf4   : > { %v4105_v39 = vpop.f32.mrf.mxu2  ;;  %v4037_v25 = vpop.xlane.xlu0 %4036  ;;  %v4068_v15 = vmul.f32 %v7854_v33, %v7834_v63 }
 0xdf5   : > { %7855 = vrcp.f32 %v4037_v25 }
 0xdfb   : > { %v7856_v52 = vpop.eup %7855 }
 0xdfc   : > { %v4107_v28 = vpop.f32.mrf.mxu2  ;;  %v4069_v56 = vmul.f32 %v7856_v52, %v7840_v50  ;;  %v9791_v50 = vld [vmem:[%s8239_s4] sm:$0x3f] }
 0xdfd   : > { %v4137_v46 = vpack.c.bf16 %v4107_v28, %v4105_v39  ;;  %v9794_v18 = vperm.slane %v9791_v50, 2  ;;  %v11138_v28 = vld [vmem:[#allocation21_spill] sm:$0xff] }
 0xdfe   : > { %v4077_v62 = vpack.c.bf16 %v4069_v56, %v4068_v15  ;;  %v11139_v15 = vld [vmem:[#allocation31_spill] sm:$0xff] }
 0xdff   : > { %6977 = vmatmul.msk.bf16.gmra.mxu3 %vm1383_vm1, %v4137_v46  ;;  %v2602_v56 = vadd.f32 %v11139_v15, %v11138_v28  ;;  %v7915_v15 = vld [vmem:[#allocation2 + $0x20] sm:$0xff] }
 0xe00   : > { %4129 = vmatmul.bf16.gmra.mxu2 %v4077_v62 }
 0xe01   : > { %v3428_v62 = vadd.f32 %v9614_v10, %v2602_v56 }
 0xe04   : > { %v4110_v8 = vpop.f32.mrf.mxu2 }
 0xe0c   : > { %v4112_v4 = vpop.f32.mrf.mxu2 }
 0xe0d   : > { %v4138_v53 = vpack.c.bf16 %v4112_v4, %v4110_v8 }
 0xe0f   : > { %6978 = vmatmul.msk.bf16.gmra.mxu3 %vm1383_vm1, %v4138_v53 }
 0xe53   : > { %v4115_v6 = vpop.f32.mrf.mxu2 }
 0xe5b   : > { %v4117_v34 = vpop.f32.mrf.mxu2 }
 0xe5c   : > { %v4139_v44 = vpack.c.bf16 %v4117_v34, %v4115_v6  ;;  %v7911_v34 = vld [vmem:[#allocation2 + $0x68] sm:$0xff] }
 0xe5e   : > { %6979 = vmatmul.msk.bf16.gmra.mxu3 %vm1383_vm1, %v4139_v44 }
 0xe62   : > { %v4193_v51 = vpop.f32.mrf.mxu3 }
 0xe63   : > { %v4233_v63 = vadd.f32 %v4193_v51, %v9595_v32  ;;  %v4120_v35 = vpop.f32.mrf.mxu2 }
 0xe65   : > { %v4249_v3 = vadd.f32 %v7906_v21, %v4233_v63 }
 0xe67   : > { %v9799_v49 = vadd.f32 %v9794_v18, %v4249_v3 }
 0xe69   : > { %4282 = vadd.xlane.f32.xlu1 %v9799_v49 }
 0xe6a   : > { %v4195_v30 = vpop.f32.mrf.mxu3 }
 0xe6b   : > { %v4234_v32 = vadd.f32 %v4195_v30, %v3424_v14  ;;  %v4122_v19 = vpop.f32.mrf.mxu2  ;;  %v2607_v14 = vadd.f32 %v11141_v48, %v11140_v13  ;;  %v11142_v30 = vld [vmem:[#allocation18_spill] sm:$0xff] }
 0xe6c   : > { %v4140_v11 = vpack.c.bf16 %v4122_v19, %v4120_v35  ;;  %v7912_v35 = vld [vmem:[#allocation2 + $0x8] sm:$0xff] }
 0xe6d   : > { %v4250_v55 = vadd.f32 %v7907_v26, %v4234_v32  ;;  %v3430_v19 = vadd.f32 %v9638_v43, %v2607_v14 }
 0xe6e   : > { %6980 = vmatmul.msk.bf16.gmra.mxu3 %vm1383_vm1, %v4140_v11 }
 0xe6f   : > { %v9805_v17 = vadd.f32 %v9794_v18, %v4250_v55 }
 0xe71   : > { %4284 = vadd.xlane.f32.xlu2 %v9805_v17 }
 0xe72   : > { %v4198_v42 = vpop.f32.mrf.mxu3 }
 0xe73   : > { %v4235_v22 = vadd.f32 %v4198_v42, %v9603_v24  ;;  %v4125_v58 = vpop.f32.mrf.mxu2 }
 0xe75   : > { %v4251_v31 = vadd.f32 %v7908_v9, %v4235_v22  ;;  %v7913_v22 = vld [vmem:[#allocation2 + $0x48] sm:$0xff] }
 0xe77   : > { %v9812_v27 = vadd.f32 %v9794_v18, %v4251_v31 }
 0xe79   : > { %4286 = vadd.xlane.f32.xlu0 %v9812_v27 }
 0xe7a   : > { %v4200_v36 = vpop.f32.mrf.mxu3 }
 0xe7b   : > { %v4236_v54 = vadd.f32 %v4200_v36, %v3426_v59  ;;  %v4127_v0 = vpop.f32.mrf.mxu2  ;;  %v11143_v36 = vld [vmem:[#allocation23_spill] sm:$0xff] }
 0xe7c   : > { %v4141_v29 = vpack.c.bf16 %v4127_v0, %v4125_v58 }
 0xe7d   : > { %v4252_v41 = vadd.f32 %v7909_v37, %v4236_v54  ;;  %v11144_v54 = vld [vmem:[#allocation33_spill] sm:$0xff] }
 0xe7e   : > { %6981 = vmatmul.msk.bf16.gmra.mxu3 %vm1383_vm1, %v4141_v29  ;;  %v2612_v0 = vadd.f32 %v11144_v54, %v11143_v36  ;;  %v7914_v29 = vld [vmem:[#allocation2 + $0x40] sm:$0xff] }
 0xe7f   : > { %v9818_v24 = vadd.f32 %v9794_v18, %v4252_v41  ;;  %v7918_v36 = vld [vmem:[#allocation2 + $0x60] sm:$0xff] }
 0xe81   : > { %4288 = vadd.xlane.f32.xlu1 %v9818_v24 }
 0xe82   : > { %v4203_v39 = vpop.f32.mrf.mxu3 }
 0xe83   : > { %v4237_v25 = vadd.f32 %v4203_v39, %v9611_v38  ;;  %v4130_v33 = vpop.f32.mrf.mxu2 }
 0xe85   : > { %v4253_v52 = vadd.f32 %v7910_v20, %v4237_v25 }
 0xe87   : > { %v9825_v46 = vadd.f32 %v9794_v18, %v4253_v52 }
 0xe89   : > { %4290 = vadd.xlane.f32.xlu2 %v9825_v46 }
 0xe8a   : > { %v4205_v8 = vpop.f32.mrf.mxu3 }
 0xe8b   : > { %v4238_v4 = vadd.f32 %v4205_v8, %v3428_v62  ;;  %v4132_v53 = vpop.f32.mrf.mxu2 }
 0xe8c   : > { %v4142_v6 = vpack.c.bf16 %v4132_v53, %v4130_v33 }
 0xe8d   : > { %v4254_v44 = vadd.f32 %v7911_v34, %v4238_v4 }
 0xe8e   : > { %6982 = vmatmul.msk.bf16.gmra.mxu3 %vm1383_vm1, %v4142_v6 }
 0xe8f   : > { %v9831_v38 = vadd.f32 %v9794_v18, %v4254_v44  ;;  %v11145_v44 = vld [vmem:[#allocation24_spill] sm:$0xff] }
 0xe91   : > { %4292 = vadd.xlane.f32.xlu0 %v9831_v38 }
 0xe92   : > { %v4208_v51 = vpop.f32.mrf.mxu3 }
 0xe93   : > { %v4239_v63 = vadd.f32 %v4208_v51, %v9619_v40  ;;  %v11146_v51 = vld [vmem:[#allocation34_spill] sm:$0xff] }
 0xe95   : > { %v4255_v10 = vadd.f32 %v7912_v35, %v4239_v63  ;;  %v2617_v63 = vadd.f32 %v11146_v51, %v11145_v44  ;;  %v7916_v35 = vld [vmem:[#allocation2 + $0x10] sm:$0xff]  ;;  %v7105_v44 = vld [vmem:[%s8229_s24 + $0xe8] sm:$0xf]  ;;  %v7419_v51 = vld [vmem:[%s8229_s24 + $0xf4] sm:$0xf0] }
 0xe97   : > { %v9836_v21 = vadd.f32 %v9794_v18, %v4255_v10 }
 0xe99   : > { %4294 = vadd.xlane.f32.xlu0 %v9836_v21 }
 0xe9a   : > { %v4210_v3 = vpop.f32.mrf.mxu3 }
 0xe9b   : > { %v4240_v40 = vadd.f32 %v4210_v3, %v3430_v19 }
 0xe9d   : > { %v4256_v58 = vadd.f32 %v7913_v22, %v4240_v40  ;;  %v7917_v40 = vld [vmem:[#allocation2 + $0x38] sm:$0xff] }
 0xe9f   : > { %v9856_v16 = vadd.f32 %v9794_v18, %v4256_v58 }
 0xedc   : > { %v4283_v7 = vpop.xlane.xlu1 %4282 }
 0xedd   : > { %v4314_v32 = vmul.f32 %v4283_v7, %v11142_v30 }
 0xedf   : > { %v9844_v11 = vsub.f32 %v9799_v49, %v4314_v32 }
 0xee1   : > { %v4213_v26 = vpop.f32.mrf.mxu3  ;;  %v4346_v55 = vmul.f32 %v9844_v11, %v9844_v11 }
 0xee2   : > { %v4241_v47 = vadd.f32 %v4213_v26, %v9642_v57  ;;  %v3432_v57 = vadd.f32 %v9645_v12, %v2612_v0 }
 0xee3   : > { %4362 = vadd.xlane.f32.xlu1 %v4346_v55 }
 0xee4   : > { %v4285_v42 = vpop.xlane.xlu2 %4284  ;;  %v4257_v37 = vadd.f32 %v7914_v29, %v4241_v47 }
 0xee5   : > { %v4315_v9 = vmul.f32 %v4285_v42, %v11142_v30 }
 0xee6   : > { %v9869_v52 = vadd.f32 %v9794_v18, %v4257_v37 }
 0xee7   : > { %v9850_v31 = vsub.f32 %v9805_v17, %v4315_v9 }
 0xee9   : > { %v4215_v43 = vpop.f32.mrf.mxu3  ;;  %v4347_v45 = vmul.f32 %v9850_v31, %v9850_v31 }
 0xeea   : > { %v4242_v25 = vadd.f32 %v4215_v43, %v3432_v57  ;;  %v11147_v43 = vld [vmem:[#allocation26_spill] sm:$0xff] }
 0xeeb   : > { %4364 = vadd.xlane.f32.xlu2 %v4347_v45  ;;  %4296 = vadd.xlane.f32.xlu1 %v9856_v16  ;;  %v11148_v45 = vld [vmem:[#allocation36_spill] sm:$0xff] }
 0xeec   : > { %v4287_v59 = vpop.xlane.xlu0 %4286  ;;  %v4258_v56 = vadd.f32 %v7915_v15, %v4242_v25  ;;  %v7919_v25 = vld [vmem:[#allocation2 + $0x70] sm:$0xff]  ;;  %v7920_v15 = vld [vmem:[#allocation2 + $0x78] sm:$0xff] }
 0xeed   : > { %v4316_v41 = vmul.f32 %v4287_v59, %v11142_v30  ;;  %v2622_v59 = vadd.f32 %v11148_v45, %v11147_v43  ;;  %v7065_v45 = vld [vmem:[%s8229_s24 + $0xa0] sm:$0xf] }
 0xeee   : > { %v9878_v53 = vadd.f32 %v9794_v18, %v4258_v56 }
 0xeef   : > { %v9864_v39 = vsub.f32 %v9812_v27, %v4316_v41 }
 0xef1   : > { %v4218_v33 = vpop.f32.mrf.mxu3  ;;  %v4348_v20 = vmul.f32 %v9864_v39, %v9864_v39 }
 0xef2   : > { %v4243_v8 = vadd.f32 %v4218_v33, %v9649_v5  ;;  %v3434_v5 = vadd.f32 %v9652_v1, %v2617_v63 }
 0xef3   : > { %4366 = vadd.xlane.f32.xlu2 %v4348_v20  ;;  %4298 = vadd.xlane.f32.xlu1 %v9869_v52 }
 0xef4   : > { %v4289_v28 = vpop.xlane.xlu1 %4288  ;;  %v4259_v10 = vadd.f32 %v7916_v35, %v4243_v8  ;;  %v7097_v8 = vld [vmem:[%s8229_s24 + $0xe0] sm:$0xf]  ;;  %v7106_v35 = vor.u32 %v7419_v51, %v7105_v44 }
 0xef5   : > { %v4317_v62 = vmul.f32 %v4289_v28, %v11142_v30 }
 0xef6   : > { %v9891_v48 = vadd.f32 %v9794_v18, %v4259_v10  ;;  %v7417_v10 = vld [vmem:[%s8229_s24 + $0xec] sm:$0xf]  ;;  %4944 = vmatpush.bf16.msra.mxu2 %v7106_v35  ;;  %v7059_v35 = vld [vmem:[%s8229_s24 + $0x98] sm:$0xf0] }
 0xef7   : > { %v9874_v12 = vsub.f32 %v9818_v24, %v4317_v62 }
 0xef9   : > { %v4220_v4 = vpop.f32.mrf.mxu3  ;;  %v4349_v6 = vmul.f32 %v9874_v12, %v9874_v12 }
 0xefa   : > { %v4244_v13 = vadd.f32 %v4220_v4, %v3434_v5  ;;  %v7418_v4 = vld [vmem:[%s8229_s24 + $0xec] sm:$0xf0] }
 0xefb   : > { %4300 = vadd.xlane.f32.xlu2 %v9878_v53  ;;  %4368 = vadd.xlane.f32.xlu0 %v4349_v6  ;;  %v7098_v6 = vor.u32 %v7418_v4, %v7097_v8  ;;  %v7404_v8 = vld [vmem:[%s8229_s24 + $0x84] sm:$0xf] }
 0xefc   : > { %v4291_v34 = vpop.xlane.xlu2 %4290  ;;  %v4260_v26 = vadd.f32 %v7917_v40, %v4244_v13  ;;  %v7081_v13 = vld [vmem:[%s8229_s24 + $0xc0] sm:$0xf]  ;;  %v7083_v40 = vld [vmem:[%s8229_s24 + $0xd0] sm:$0xf0] }
 0xefd   : > { %v4318_v3 = vmul.f32 %v4291_v34, %v11142_v30  ;;  %v7099_v34 = vld [vmem:[%s8229_s24 + $0xf0] sm:$0xf0]  ;;  %4846 = vmatpush.bf16.msra.mxu0 %v7098_v6  ;;  %v7057_v6 = vld [vmem:[%s8229_s24 + $0x88] sm:$0xf] }
 0xefe   : > { %v9904_v58 = vadd.f32 %v9794_v18, %v4260_v26  ;;  %v7089_v26 = vld [vmem:[%s8229_s24 + $0xc8] sm:$0xf] }
 0xeff   : > { %v9888_v7 = vsub.f32 %v9825_v46, %v4318_v3  ;;  %v7107_v3 = vld [vmem:[%s8229_s24 + $0xf8] sm:$0xf0] }
 0xf00   : > { %v7110_v5 = vor.u32 %v7417_v10, %v7107_v3  ;;  %v7033_v3 = vld [vmem:[%s8229_s24 + $0x60] sm:$0xf] }
 0xf01   : > { %v4350_v14 = vmul.f32 %v9888_v7, %v9888_v7  ;;  %v4223_v32 = vpop.f32.mrf.mxu3 }
 0xf02   : > { %v4245_v42 = vadd.f32 %v4223_v32, %v9656_v23  ;;  %v3436_v23 = vadd.f32 %v9659_v2, %v2622_v59  ;;  %v7412_v32 = vld [vmem:[%s8229_s24 + $0xc4] sm:$0xf]  ;;  %4993 = vmatpush.bf16.msra.mxu3 %v7110_v5  ;;  %v7410_v59 = vld [vmem:[%s8229_s24 + $0xac] sm:$0xf0] }
 0xf03   : > { %4302 = vadd.xlane.f32.xlu2 %v9891_v48  ;;  %4370 = vadd.xlane.f32.xlu0 %v4350_v14  ;;  %v7414_v14 = vld [vmem:[%s8229_s24 + $0xcc] sm:$0xf0] }
 0xf04   : > { %v4293_v19 = vpop.xlane.xlu0 %4292  ;;  %v4261_v54 = vadd.f32 %v7918_v36, %v4245_v42  ;;  %v7086_v42 = vor.u32 %v7412_v32, %v7083_v40  ;;  %v7408_v36 = vld [vmem:[%s8229_s24 + $0xa4] sm:$0xf]  ;;  %v7402_v5 = vld [vmem:[%s8229_s24 + $0x6c] sm:$0xf0]  ;;  %v7035_v32 = vld [vmem:[%s8229_s24 + $0x70] sm:$0xf0] }
 0xf05   : > { %v4319_v55 = vmul.f32 %v4293_v19, %v11142_v30  ;;  %v7082_v19 = vor.u32 %v7414_v14, %v7081_v13  ;;  %v7400_v13 = vld [vmem:[%s8229_s24 + $0x64] sm:$0xf]  ;;  %v7034_v14 = vor.u32 %v7402_v5, %v7033_v3  ;;  %v7403_v40 = vld [vmem:[%s8229_s24 + $0x74] sm:$0xf0]  ;;  %v6985_v3 = vld [vmem:[%s8229_s24] sm:$0xf] }
 0xf06   : > { %v9917_v57 = vadd.f32 %v9794_v18, %v4261_v54  ;;  %v7066_v54 = vor.u32 %v7410_v59, %v7065_v45  ;;  %v7396_v45 = vld [vmem:[%s8229_s24 + $0x44] sm:$0xf]  ;;  %v7390_v5 = vld [vmem:[%s8229_s24 + $0xc] sm:$0xf0] }
 0xf07   : > { %v9898_v1 = vsub.f32 %v9831_v38, %v4319_v55  ;;  %v7415_v55 = vld [vmem:[%s8229_s24 + $0xd4] sm:$0xf0]  ;;  %4847 = vmatpush.bf16.msra.mxu0 %v7082_v19  ;;  %v7041_v19 = vld [vmem:[%s8229_s24 + $0x68] sm:$0xf] }
 0xf09   : > { %v4351_v22 = vmul.f32 %v9898_v1, %v9898_v1  ;;  %v4225_v9 = vpop.f32.mrf.mxu3 }
 0xf0a   : > { %v4246_v37 = vadd.f32 %v4225_v9, %v3436_v23  ;;  %v7413_v9 = vld [vmem:[%s8229_s24 + $0xcc] sm:$0xf]  ;;  %v7073_v23 = vld [vmem:[%s8229_s24 + $0xa8] sm:$0xf] }
 0xf0b   : > { %4372 = vadd.xlane.f32.xlu1 %v4351_v22  ;;  %4304 = vadd.xlane.f32.xlu0 %v9904_v58  ;;  %v7090_v22 = vor.u32 %v7415_v55, %v7089_v26  ;;  %v7038_v26 = vor.u32 %v7400_v13, %v7035_v32  ;;  %v7042_v55 = vor.u32 %v7403_v40, %v7041_v19  ;;  %v7388_v13 = vld [vmem:[%s8229_s24 + $0x4] sm:$0xf]  ;;  %v6987_v19 = vld [vmem:[%s8229_s24 + $0x10] sm:$0xf0]  ;;  %v6993_v40 = vld [vmem:[%s8229_s24 + $0x8] sm:$0xf] }
 0xf0c   : > { %v4295_v47 = vpop.xlane.xlu0 %4294  ;;  %v4262_v2 = vadd.f32 %v7919_v25, %v4246_v37  ;;  %v7411_v37 = vld [vmem:[%s8229_s24 + $0xb4] sm:$0xf0]  ;;  %4848 = vmatpush.bf16.msra.mxu0 %v7066_v54  ;;  %v7025_v54 = vld [vmem:[%s8229_s24 + $0x48] sm:$0xf]  ;;  %v6986_v32 = vor.u32 %v7390_v5, %v6985_v3 }
 0xf0d   : > { %v4320_v0 = vmul.f32 %v4295_v47, %v11142_v30  ;;  %v7091_v47 = vld [vmem:[%s8229_s24 + $0xd8] sm:$0xf0]  ;;  %4945 = vmatpush.bf16.msra.mxu2 %v7090_v22  ;;  %v7074_v25 = vor.u32 %v7411_v37, %v7073_v23 }
 0xf0e   : > { %v9922_v28 = vadd.f32 %v9794_v18, %v4262_v2  ;;  %v7094_v43 = vor.u32 %v7413_v9, %v7091_v47  ;;  %v7409_v2 = vld [vmem:[%s8229_s24 + $0xac] sm:$0xf]  ;;  %v7043_v22 = vld [vmem:[%s8229_s24 + $0x78] sm:$0xf0]  ;;  %v7017_v47 = vld [vmem:[%s8229_s24 + $0x40] sm:$0xf] }
 0xf0f   : > { %v9912_v29 = vsub.f32 %v9836_v21, %v4320_v0  ;;  %v7067_v0 = vld [vmem:[%s8229_s24 + $0xb0] sm:$0xf0] }
 0xf10   : > { %4994 = vmatpush.bf16.msra.mxu3 %v7094_v43  ;;  %v7398_v43 = vld [vmem:[%s8229_s24 + $0x4c] sm:$0xf0] }
 0xf11   : > { %v4352_v41 = vmul.f32 %v9912_v29, %v9912_v29  ;;  %v4228_v33 = vpop.f32.mrf.mxu3  ;;  %4946 = vmatpush.bf16.msra.mxu2 %v7074_v25  ;;  %v7018_v59 = vor.u32 %v7398_v43, %v7017_v47  ;;  %v7027_v25 = vld [vmem:[%s8229_s24 + $0x58] sm:$0xf0] }
 0xf12   : > { %v4247_v20 = vadd.f32 %v4228_v33, %v9663_v60  ;;  %v7416_v60 = vld [vmem:[%s8229_s24 + $0xe4] sm:$0xf]  ;;  %v7075_v33 = vld [vmem:[%s8229_s24 + $0xb8] sm:$0xf0] }
 0xf13   : > { %4374 = vadd.xlane.f32.xlu1 %v4352_v41  ;;  %4306 = vadd.xlane.f32.xlu0 %v9917_v57  ;;  %v7102_v63 = vor.u32 %v7416_v60, %v7099_v34  ;;  %v7070_v41 = vor.u32 %v7408_v36, %v7067_v0  ;;  %v7051_v60 = vld [vmem:[%s8229_s24 + $0x90] sm:$0xf0]  ;;  %v7407_v34 = vld [vmem:[%s8229_s24 + $0x94] sm:$0xf0] }
 0xf14   : > { %v4263_v56 = vadd.f32 %v7920_v15, %v4247_v20  ;;  %v7078_v20 = vor.u32 %v7409_v2, %v7075_v33  ;;  %v7049_v15 = vld [vmem:[%s8229_s24 + $0x80] sm:$0xf]  ;;  %v7054_v44 = vor.u32 %v7404_v8, %v7051_v60  ;;  %v7058_v51 = vor.u32 %v7407_v34, %v7057_v6  ;;  %v7019_v36 = vld [vmem:[%s8229_s24 + $0x50] sm:$0xf0]  ;;  %v7399_v0 = vld [vmem:[%s8229_s24 + $0x54] sm:$0xf0] }
 0xf15   : > { %4895 = vmatpush.bf16.msra.mxu1 %v7102_v63  ;;  %v7405_v63 = vld [vmem:[%s8229_s24 + $0x8c] sm:$0xf]  ;;  %v7022_v23 = vor.u32 %v7396_v45, %v7019_v36  ;;  %v7026_v37 = vor.u32 %v7399_v0, %v7025_v54  ;;  %v7001_v33 = vld [vmem:[%s8229_s24 + $0x20] sm:$0xf]  ;;  %v7003_v8 = vld [vmem:[%s8229_s24 + $0x30] sm:$0xf0] }
 0xf16   : > { %v9926_v62 = vadd.f32 %v9794_v18, %v4263_v56  ;;  %v7406_v56 = vld [vmem:[%s8229_s24 + $0x8c] sm:$0xf0]  ;;  %4995 = vmatpush.bf16.msra.mxu3 %v7078_v20  ;;  %v7062_v10 = vor.u32 %v7405_v63, %v7059_v35  ;;  %4947 = vmatpush.bf16.msra.mxu2 %v7058_v51  ;;  %v7395_v60 = vld [vmem:[%s8229_s24 + $0x34] sm:$0xf0]  ;;  %v7393_v51 = vld [vmem:[%s8229_s24 + $0x2c] sm:$0xf] }
 0xf17   : > { %v7050_v4 = vor.u32 %v7406_v56, %v7049_v15  ;;  %v7394_v20 = vld [vmem:[%s8229_s24 + $0x2c] sm:$0xf0]  ;;  %v7392_v15 = vld [vmem:[%s8229_s24 + $0x24] sm:$0xf]  ;;  %v7011_v63 = vld [vmem:[%s8229_s24 + $0x38] sm:$0xf0] }
 0xf18   : > { %v7002_v56 = vor.u32 %v7394_v20, %v7001_v33  ;;  %v7006_v34 = vor.u32 %v7392_v15, %v7003_v8  ;;  %v11149_v15 = vld [vmem:[#allocation28_spill] sm:$0xff] }
 0xf19   : > { %4896 = vmatpush.bf16.msra.mxu1 %v7086_v42  ;;  %4849 = vmatpush.bf16.msra.mxu0 %v7050_v4  ;;  %v7401_v42 = vld [vmem:[%s8229_s24 + $0x6c] sm:$0xf]  ;;  %v7009_v4 = vld [vmem:[%s8229_s24 + $0x28] sm:$0xf] }
 0xf1a   : > { %4996 = vmatpush.bf16.msra.mxu3 %v7062_v10  ;;  %v7046_v9 = vor.u32 %v7401_v42, %v7043_v22  ;;  %4948 = vmatpush.bf16.msra.mxu2 %v7042_v55  ;;  %v7014_v10 = vor.u32 %v7393_v51, %v7011_v63  ;;  %v7391_v55 = vld [vmem:[%s8229_s24 + $0x14] sm:$0xf0]  ;;  %v7389_v42 = vld [vmem:[%s8229_s24 + $0xc] sm:$0xf]  ;;  %v6995_v22 = vld [vmem:[%s8229_s24 + $0x18] sm:$0xf0] }
 0xf1b   : > { %4308 = vadd.xlane.f32.xlu1 %v9922_v28  ;;  %v6998_v47 = vor.u32 %v7389_v42, %v6995_v22 }
 0xf1d   : > { %4897 = vmatpush.bf16.msra.mxu1 %v7070_v41  ;;  %4850 = vmatpush.bf16.msra.mxu0 %v7034_v14  ;;  %v7397_v41 = vld [vmem:[%s8229_s24 + $0x4c] sm:$0xf] }
 0xf1e   : > { %4997 = vmatpush.bf16.msra.mxu3 %v7046_v9  ;;  %v7030_v2 = vor.u32 %v7397_v41, %v7027_v25  ;;  %4949 = vmatpush.bf16.msra.mxu2 %v7026_v37  ;;  %v6994_v9 = vor.u32 %v7391_v55, %v6993_v40  ;;  %v7921_v55 = vld [vmem:[#allocation2 + $0x28] sm:$0xff] }
 0xf21   : > { %4898 = vmatpush.bf16.msra.mxu1 %v7054_v44  ;;  %4851 = vmatpush.bf16.msra.mxu0 %v7018_v59  ;;  %v7010_v44 = vor.u32 %v7395_v60, %v7009_v4 }
 0xf22   : > { %4998 = vmatpush.bf16.msra.mxu3 %v7030_v2 }
 0xf23   : > { %4310 = vadd.xlane.f32.xlu1 %v9926_v62  ;;  %4950 = vmatpush.bf16.msra.mxu2 %v7010_v44 }
 0xf25   : > { %4899 = vmatpush.bf16.msra.mxu1 %v7038_v26  ;;  %4852 = vmatpush.bf16.msra.mxu0 %v7002_v56  ;;  %v6990_v26 = vor.u32 %v7388_v13, %v6987_v19  ;;  %v11150_v56 = vld [vmem:[#allocation38_spill] sm:$0xff] }
 0xf26   : > { %4999 = vmatpush.bf16.msra.mxu3 %v7014_v10  ;;  %v2627_v8 = vadd.f32 %v11150_v56, %v11149_v15 }
 0xf27   : > { %4951 = vmatpush.bf16.msra.mxu2 %v6994_v9 }
 0xf28   : > { %v3438_v51 = vadd.f32 %v9666_v61, %v2627_v8 }
 0xf29   : > { %4900 = vmatpush.bf16.msra.mxu1 %v7022_v23  ;;  %4853 = vmatpush.bf16.msra.mxu0 %v6986_v32 }
 0xf2a   : > { %5000 = vmatpush.bf16.msra.mxu3 %v6998_v47 }
 0xf2d   : > { %4901 = vmatpush.bf16.msra.mxu1 %v7006_v34 }
 0xf31   : > { %4902 = vmatpush.bf16.msra.mxu1 %v6990_v26 }
 0xf56   : > { %v4363_v6 = vpop.xlane.xlu1 %4362 }
 0xf57   : > { %v4394_v35 = vmul.f32 %v4363_v6, %v11142_v30  ;;  %v4230_v6 = vpop.f32.mrf.mxu3 }
 0xf58   : > { %v4248_v5 = vadd.f32 %v4230_v6, %v3438_v51 }
 0xf59   : > { %v4410_v14 = vadd.f32 1e-05, %v4394_v35 }
 0xf5a   : > { %v4264_v42 = vadd.f32 %v7921_v55, %v4248_v5 }
 0xf5b   : > { %7857 = vrsqrt.f32 %v4410_v14  ;;  %vm4432_vm3 = vweird.f32 %v4410_v14 }
 0xf5e   : > { %v4365_v43 = vpop.xlane.xlu2 %4364  ;;  %v4297_v45 = vpop.xlane.xlu1 %4296 }
 0xf5f   : > { %v4395_v59 = vmul.f32 %v4365_v43, %v11142_v30  ;;  %v4321_v36 = vmul.f32 %v4297_v45, %v11142_v30  ;;  %v10014_v45 = vperm.slane %v9791_v50, 3 }
 0xf61   : > { %v7858_v54 = vpop.eup %7857  ;;  %v4411_v0 = vadd.f32 1e-05, %v4395_v59  ;;  %v9997_v23 = vsub.f32 %v9856_v16, %v4321_v36 }
 0xf62   : > { %v4427_v37 = vmul.f32 %v7858_v54, %v4410_v14  ;;  %vm4433_vm2 = vweird.f32 %v7858_v54 }
 0xf63   : > { %7859 = vrsqrt.f32 %v4411_v0  ;;  %v4353_v41 = vmul.f32 %v9997_v23, %v9997_v23  ;;  %vm4434_vm4 = vmor %vm4432_vm3, %vm4433_vm2  ;;  %vm4442_vm6 = vweird.f32 %v4411_v0 }
 0xf64   : > { %v4428_v25 = vmul.f32 %v7858_v54, %v4427_v37 }
 0xf65   : > { %4376 = vadd.xlane.f32.xlu2 %v4353_v41 }
 0xf66   : > { %v4429_v2 = vmul.f32 0.5, %v4428_v25  ;;  %v4367_v33 = vpop.xlane.xlu2 %4366  ;;  %v4299_v20 = vpop.xlane.xlu1 %4298  ;;  %v10023_v25 = vadd.f32 %v9794_v18, %v4264_v42 }
 0xf67   : > { %v4396_v4 = vmul.f32 %v4367_v33, %v11142_v30  ;;  %v4322_v60 = vmul.f32 %v4299_v20, %v11142_v30  ;;  %v10026_v20 = vperm.slane %v9791_v50, 4 }
 0xf68   : > { %v4430_v34 = vsub.f32 1.5, %v4429_v2 }
 0xf69   : > { %v7860_v44 = vpop.eup %7859  ;;  %v4412_v63 = vadd.f32 1e-05, %v4396_v4  ;;  %v10007_v35 = vsub.f32 %v9869_v52, %v4322_v60 }
 0xf6a   : > { %v4431_v10 = vmul.f32 %v7858_v54, %v4430_v34  ;;  %v4437_v3 = vmul.f32 %v7860_v44, %v4411_v0  ;;  %vm4443_vm5 = vweird.f32 %v7860_v44 }
 0xf6b   : > { %7861 = vrsqrt.f32 %v4412_v63  ;;  %v4354_v13 = vmul.f32 %v10007_v35, %v10007_v35  ;;  %vm4444_vm7 = vmor %vm4442_vm6, %vm4443_vm5  ;;  %vm4452_vm9 = vweird.f32 %v4412_v63 }
 0xf6c   : > { %v4438_v32 = vmul.f32 %v7860_v44, %v4437_v3  ;;  %v4435_v19 = vsel %vm4434_vm4, %v7858_v54, %v4431_v10 }
 0xf6d   : > { %4378 = vadd.xlane.f32.xlu2 %v4354_v13  ;;  %v4586_v14 = vmul.f32 %v4435_v19, %v9844_v11 }
 0xf6e   : > { %v4439_v40 = vmul.f32 0.5, %v4438_v32  ;;  %v4301_v26 = vpop.xlane.xlu2 %4300  ;;  %v4369_v61 = vpop.xlane.xlu0 %4368 }
 0xf6f   : > { %v4323_v22 = vmul.f32 %v4301_v26, %v11142_v30  ;;  %v4397_v9 = vmul.f32 %v4369_v61, %v11142_v30  ;;  %v4603_v11 = vmul.f32 %v10014_v45, %v4586_v14 }
 0xf70   : > { %v4440_v47 = vsub.f32 1.5, %v4439_v40 }
 0xf71   : > { %v7862_v43 = vpop.eup %7861  ;;  %v10018_v59 = vsub.f32 %v9878_v53, %v4323_v22  ;;  %v4413_v36 = vadd.f32 1e-05, %v4397_v9  ;;  %v4620_v50 = vadd.f32 %v10026_v20, %v4603_v11 }
 0xf72   : > { %v4441_v54 = vmul.f32 %v7860_v44, %v4440_v47  ;;  %v4447_v37 = vmul.f32 %v7862_v43, %v4412_v63  ;;  %vm4453_vm8 = vweird.f32 %v7862_v43 }
 0xf73   : > { %7863 = vrsqrt.f32 %v4413_v36  ;;  %v4355_v41 = vmul.f32 %v10018_v59, %v10018_v59  ;;  %vm4454_vm10 = vmor %vm4452_vm9, %vm4453_vm8  ;;  %vm4462_vm12 = vweird.f32 %v4413_v36 }
 0xf74   : > { %v4445_v2 = vsel %vm4444_vm7, %v7860_v44, %v4441_v54  ;;  %v4448_v33 = vmul.f32 %v7862_v43, %v4447_v37 }
 0xf75   : > { %v4587_v15 = vmul.f32 %v4445_v2, %v9850_v31  ;;  %4380 = vadd.xlane.f32.xlu0 %v4355_v41  ;;  %4312 = vadd.xlane.f32.xlu2 %v10023_v25 }
 0xf76   : > { %v4449_v0 = vmul.f32 0.5, %v4448_v33  ;;  %v4303_v56 = vpop.xlane.xlu2 %4302  ;;  %v4371_v8 = vpop.xlane.xlu0 %4370 }
 0xf77   : > { %v4604_v4 = vmul.f32 %v10014_v45, %v4587_v15  ;;  %v4324_v18 = vmul.f32 %v4303_v56, %v11142_v30  ;;  %v4398_v60 = vmul.f32 %v4371_v8, %v11142_v30 }
 0xf78   : > { %v4450_v6 = vsub.f32 1.5, %v4449_v0 }
 0xf79   : > { %v7864_v34 = vpop.eup %7863  ;;  %v4621_v44 = vadd.f32 %v10026_v20, %v4604_v4  ;;  %v10037_v31 = vsub.f32 %v9891_v48, %v4324_v18  ;;  %v4414_v51 = vadd.f32 1e-05, %v4398_v60 }
 0xf7a   : > { %v4451_v10 = vmul.f32 %v7862_v43, %v4450_v6  ;;  %v4457_v3 = vmul.f32 %v7864_v34, %v4413_v36  ;;  %vm4463_vm11 = vweird.f32 %v7864_v34 }
 0xf7b   : > { %7865 = vrsqrt.f32 %v4414_v51  ;;  %v4356_v5 = vmul.f32 %v10037_v31, %v10037_v31  ;;  %v4636_v13 = vpack.c.bf16 %v4621_v44, %v4620_v50  ;;  %vm4464_vm13 = vmor %vm4462_vm12, %vm4463_vm11  ;;  %vm4472_vm15 = vweird.f32 %v4414_v51 }
 0xf7c   : > { %v4458_v32 = vmul.f32 %v7864_v34, %v4457_v3  ;;  %v4455_v19 = vsel %vm4454_vm10, %v7862_v43, %v4451_v10 }
 0xf7d   : > { %4382 = vadd.xlane.f32.xlu0 %v4356_v5  ;;  %4854 = vmatmul.bf16.vlgmr.msra.gmra.mxu0 %v4636_v13  ;;  %v4588_v63 = vmul.f32 %v4455_v19, %v9864_v39 }
 0xf7e   : > { %v4459_v40 = vmul.f32 0.5, %v4458_v32  ;;  %4903 = vmatmul.bf16.vlgmr.msra.gmra.mxu1 %v4636_v13  ;;  %4952 = vmatmul.bf16.vlgmr.msra.gmra.mxu2 %v4636_v13  ;;  %v4305_v26 = vpop.xlane.xlu0 %4304  ;;  %v4373_v61 = vpop.xlane.xlu1 %4372 }
 0xf7f   : > { %5001 = vmatmul.bf16.vlgmr.msra.gmra.mxu3 %v4636_v13  ;;  %v4325_v55 = vmul.f32 %v4305_v26, %v11142_v30  ;;  %v4399_v42 = vmul.f32 %v4373_v61, %v11142_v30  ;;  %v4605_v11 = vmul.f32 %v10014_v45, %v4588_v63 }
 0xf80   : > { %v4460_v22 = vsub.f32 1.5, %v4459_v40 }
 0xf81   : > { %v7866_v9 = vpop.eup %7865  ;;  %v10045_v47 = vsub.f32 %v9904_v58, %v4325_v55  ;;  %v4415_v14 = vadd.f32 1e-05, %v4399_v42  ;;  %v4622_v60 = vadd.f32 %v10026_v20, %v4605_v11 }
 0xf82   : > { %v4461_v43 = vmul.f32 %v7864_v34, %v4460_v22  ;;  %v4467_v54 = vmul.f32 %v7866_v9, %v4414_v51  ;;  %vm4473_vm14 = vweird.f32 %v7866_v9 }
 0xf83   : > { %7867 = vrsqrt.f32 %v4415_v14  ;;  %v4357_v37 = vmul.f32 %v10045_v47, %v10045_v47  ;;  %vm4474_vm0 = vmor %vm4472_vm15, %vm4473_vm14  ;;  %vm4482_vm2 = vweird.f32 %v4415_v14 }
 0xf84   : > { %v4465_v41 = vsel %vm4464_vm13, %v7864_v34, %v4461_v43  ;;  %v4468_v2 = vmul.f32 %v7866_v9, %v4467_v54 }
 0xf85   : > { %v4589_v33 = vmul.f32 %v4465_v41, %v9874_v12  ;;  %4384 = vadd.xlane.f32.xlu1 %v4357_v37 }
 0xf86   : > { %v4469_v39 = vmul.f32 0.5, %v4468_v2  ;;  %v4307_v15 = vpop.xlane.xlu0 %4306  ;;  %v4375_v0 = vpop.xlane.xlu1 %4374 }
 0xf87   : > { %v4326_v56 = vmul.f32 %v4307_v15, %v11142_v30  ;;  %v4606_v36 = vmul.f32 %v10014_v45, %v4589_v33 }
 0xf88   : > { %v4470_v8 = vsub.f32 1.5, %v4469_v39 }
 0xf89   : > { %v7868_v4 = vpop.eup %7867  ;;  %v10054_v18 = vsub.f32 %v9917_v57, %v4326_v56  ;;  %v4623_v6 = vadd.f32 %v10026_v20, %v4606_v36 }
 0xf8a   : > { %v4471_v12 = vmul.f32 %v7866_v9, %v4470_v8  ;;  %v4477_v34 = vmul.f32 %v7868_v4, %v4415_v14  ;;  %vm4483_vm1 = vweird.f32 %v7868_v4 }
 0xf8b   : > { %v4637_v50 = vpack.c.bf16 %v4623_v6, %v4622_v60  ;;  %v4358_v44 = vmul.f32 %v10054_v18, %v10054_v18  ;;  %vm4484_vm3 = vmor %vm4482_vm2, %vm4483_vm1 }
 0xf8c   : > { %v4478_v10 = vmul.f32 %v7868_v4, %v4477_v34  ;;  %v4475_v3 = vsel %vm4474_vm0, %v7866_v9, %v4471_v12 }
 0xf8d   : > { %4859 = vmatmul.bf16.gmra.mxu0 %v4637_v50  ;;  %4386 = vadd.xlane.f32.xlu2 %v4358_v44  ;;  %v4590_v40 = vmul.f32 %v4475_v3, %v9888_v7 }
 0xf8e   : > { %v4479_v5 = vmul.f32 0.5, %v4478_v10  ;;  %4908 = vmatmul.bf16.gmra.mxu1 %v4637_v50  ;;  %4957 = vmatmul.bf16.gmra.mxu2 %v4637_v50  ;;  %v4309_v13 = vpop.xlane.xlu1 %4308 }
 0xf8f   : > { %5006 = vmatmul.bf16.gmra.mxu3 %v4637_v50  ;;  %v4327_v32 = vmul.f32 %v4309_v13, %v11142_v30  ;;  %v4607_v22 = vmul.f32 %v10014_v45, %v4590_v40 }
 0xf90   : > { %v4480_v19 = vsub.f32 1.5, %v4479_v5 }
 0xf91   : > { %v10063_v26 = vsub.f32 %v9922_v28, %v4327_v32  ;;  %v4624_v14 = vadd.f32 %v10026_v20, %v4607_v22 }
 0xf92   : > { %v4481_v51 = vmul.f32 %v7868_v4, %v4480_v19 }
 0xf93   : > { %v4359_v61 = vmul.f32 %v10063_v26, %v10063_v26 }
 0xf94   : > { %v4485_v55 = vsel %vm4484_vm3, %v7868_v4, %v4481_v51 }
 0xf95   : > { %v4591_v42 = vmul.f32 %v4485_v55, %v9898_v1  ;;  %4388 = vadd.xlane.f32.xlu0 %v4359_v61  ;;  %v4400_v1 = vmul.f32 %v4375_v0, %v11142_v30 }
 0xf96   : > { %v4311_v9 = vpop.xlane.xlu1 %4310 }
 0xf97   : > { %v4328_v63 = vmul.f32 %v4311_v9, %v11142_v30  ;;  %v4608_v7 = vmul.f32 %v10014_v45, %v4591_v42  ;;  %v4416_v2 = vadd.f32 1e-05, %v4400_v1 }
 0xf99   : > { %v10072_v43 = vsub.f32 %v9926_v62, %v4328_v63  ;;  %v4625_v54 = vadd.f32 %v10026_v20, %v4608_v7  ;;  %7869 = vrsqrt.f32 %v4416_v2  ;;  %vm4492_vm5 = vweird.f32 %v4416_v2 }
 0xf9b   : > { %v4638_v37 = vpack.c.bf16 %v4625_v54, %v4624_v14  ;;  %v4360_v41 = vmul.f32 %v10072_v43, %v10072_v43 }
 0xf9d   : > { %4864 = vmatmul.bf16.gmra.mxu0 %v4638_v37  ;;  %4390 = vadd.xlane.f32.xlu1 %v4360_v41 }
 0xf9e   : > { %4913 = vmatmul.bf16.gmra.mxu1 %v4638_v37  ;;  %4962 = vmatmul.bf16.gmra.mxu2 %v4638_v37 }
 0xf9f   : > { %5011 = vmatmul.bf16.gmra.mxu3 %v4638_v37  ;;  %v7870_v33 = vpop.eup %7869 }
 0xfa0   : > { %v4487_v11 = vmul.f32 %v7870_v33, %v4416_v2  ;;  %vm4493_vm4 = vweird.f32 %v7870_v33 }
 0xfa1   : > { %vm4494_vm6 = vmor %vm4492_vm5, %vm4493_vm4 }
 0xfa2   : > { %v4488_v39 = vmul.f32 %v7870_v33, %v4487_v11 }
 0xfa4   : > { %v4489_v8 = vmul.f32 0.5, %v4488_v39 }
 0xfa6   : > { %v4490_v4 = vsub.f32 1.5, %v4489_v8 }
 0xfa8   : > { %v4491_v50 = vmul.f32 %v7870_v33, %v4490_v4 }
 0xfaa   : > { %v4495_v10 = vsel %vm4494_vm6, %v7870_v33, %v4491_v50 }
 0xfab   : > { %v4592_v61 = vmul.f32 %v4495_v10, %v9912_v29 }
 0xfad   : > { %v4609_v37 = vmul.f32 %v10014_v45, %v4592_v61 }
 0xfd8   : > { %v4377_v15 = vpop.xlane.xlu2 %4376 }
 0xfd9   : > { %v4401_v56 = vmul.f32 %v4377_v15, %v11142_v30  ;;  %v4626_v15 = vadd.f32 %v10026_v20, %v4609_v37 }
 0xfdb   : > { %v4417_v36 = vadd.f32 1e-05, %v4401_v56 }
 0xfdd   : > { %7871 = vrsqrt.f32 %v4417_v36  ;;  %vm4502_vm8 = vweird.f32 %v4417_v36 }
 0xfe0   : > { %v4379_v60 = vpop.xlane.xlu2 %4378 }
 0xfe1   : > { %v4402_v6 = vmul.f32 %v4379_v60, %v11142_v30 }
 0xfe3   : > { %v7872_v12 = vpop.eup %7871  ;;  %v4418_v34 = vadd.f32 1e-05, %v4402_v6 }
 0xfe4   : > { %v4497_v0 = vmul.f32 %v7872_v12, %v4417_v36  ;;  %vm4503_vm7 = vweird.f32 %v7872_v12 }
 0xfe5   : > { %7873 = vrsqrt.f32 %v4418_v34  ;;  %vm4504_vm9 = vmor %vm4502_vm8, %vm4503_vm7  ;;  %vm4512_vm11 = vweird.f32 %v4418_v34 }
 0xfe6   : > { %v4498_v44 = vmul.f32 %v7872_v12, %v4497_v0 }
 0xfe8   : > { %v4499_v3 = vmul.f32 0.5, %v4498_v44  ;;  %v4381_v5 = vpop.xlane.xlu0 %4380  ;;  %v4313_v13 = vpop.xlane.xlu2 %4312 }
 0xfe9   : > { %v4403_v32 = vmul.f32 %v4381_v5, %v11142_v30  ;;  %v4329_v19 = vmul.f32 %v4313_v13, %v11142_v30 }
 0xfea   : > { %v4500_v40 = vsub.f32 1.5, %v4499_v3 }
 0xfeb   : > { %v7874_v51 = vpop.eup %7873  ;;  %v4419_v55 = vadd.f32 1e-05, %v4403_v32  ;;  %v10085_v42 = vsub.f32 %v10023_v25, %v4329_v19 }
 0xfec   : > { %v4501_v22 = vmul.f32 %v7872_v12, %v4500_v40  ;;  %v4507_v9 = vmul.f32 %v7874_v51, %v4418_v34  ;;  %vm4513_vm10 = vweird.f32 %v7874_v51 }
 0xfed   : > { %7875 = vrsqrt.f32 %v4419_v55  ;;  %v4361_v63 = vmul.f32 %v10085_v42, %v10085_v42  ;;  %vm4514_vm12 = vmor %vm4512_vm11, %vm4513_vm10  ;;  %vm4522_vm14 = vweird.f32 %v4419_v55 }
 0xfee   : > { %v4505_v7 = vsel %vm4504_vm9, %v7872_v12, %v4501_v22  ;;  %v4508_v14 = vmul.f32 %v7874_v51, %v4507_v9 }
 0xfef   : > { %v4593_v54 = vmul.f32 %v4505_v7, %v9997_v23  ;;  %4392 = vadd.xlane.f32.xlu2 %v4361_v63 }
 0xff0   : > { %v4509_v29 = vmul.f32 0.5, %v4508_v14  ;;  %v4383_v41 = vpop.xlane.xlu0 %4382 }
 0xff1   : > { %v4404_v1 = vmul.f32 %v4383_v41, %v11142_v30  ;;  %v4610_v2 = vmul.f32 %v10014_v45, %v4593_v54 }
 0xff2   : > { %v4510_v33 = vsub.f32 1.5, %v4509_v29 }
 0xff3   : > { %v7876_v11 = vpop.eup %7875  ;;  %v4420_v39 = vadd.f32 1e-05, %v4404_v1  ;;  %v4627_v56 = vadd.f32 %v10026_v20, %v4610_v2 }
 0xff4   : > { %v4517_v36 = vmul.f32 %v7876_v11, %v4419_v55  ;;  %v4511_v8 = vmul.f32 %v7874_v51, %v4510_v33  ;;  %vm4523_vm13 = vweird.f32 %v7876_v11 }
 0xff5   : > { %7877 = vrsqrt.f32 %v4420_v39  ;;  %v4639_v23 = vpack.c.bf16 %v4627_v56, %v4626_v15  ;;  %vm4524_vm15 = vmor %vm4522_vm14, %vm4523_vm13  ;;  %vm4532_vm1 = vweird.f32 %v4420_v39 }
 0xff6   : > { %v4518_v4 = vmul.f32 %v7876_v11, %v4517_v36  ;;  %v4515_v12 = vsel %vm4514_vm12, %v7874_v51, %v4511_v8 }
 0xff7   : > { %4869 = vmatmul.bf16.gmra.mxu0 %v4639_v23  ;;  %4918 = vmatmul.bf16.gmra.mxu1 %v4639_v23  ;;  %v4594_v3 = vmul.f32 %v4515_v12, %v10007_v35 }
 0xff8   : > { %v4519_v60 = vmul.f32 0.5, %v4518_v4  ;;  %4967 = vmatmul.bf16.gmra.mxu2 %v4639_v23  ;;  %5016 = vmatmul.bf16.gmra.mxu3 %v4639_v23  ;;  %v4385_v6 = vpop.xlane.xlu1 %4384  ;;  %v7427_v23 = vld [vmem:[%s8234_s15 + $0x38] sm:$0xff] }
 0xff9   : > { %v4405_v50 = vmul.f32 %v4385_v6, %v11142_v30  ;;  %v4611_v51 = vmul.f32 %v10014_v45, %v4594_v3  ;;  %5394 = vmatpush.bf16.msrb.mxu0 %v7427_v23 }
 0xffa   : > { %v4520_v0 = vsub.f32 1.5, %v4519_v60 }
 0xffb   : > { %v7878_v44 = vpop.eup %7877  ;;  %v4421_v10 = vadd.f32 1e-05, %v4405_v50  ;;  %v4628_v54 = vadd.f32 %v10026_v20, %v4611_v51 }
 0xffc   : > { %v4521_v5 = vmul.f32 %v7876_v11, %v4520_v0  ;;  %v4527_v13 = vmul.f32 %v7878_v44, %v4420_v39  ;;  %vm4533_vm0 = vweird.f32 %v7878_v44 }
 0xffd   : > { %7879 = vrsqrt.f32 %v4421_v10  ;;  %vm4534_vm2 = vmor %vm4532_vm1, %vm4533_vm0  ;;  %vm4542_vm4 = vweird.f32 %v4421_v10 }
 0xffe   : > { %v4525_v34 = vsel %vm4524_vm15, %v7876_v11, %v4521_v5  ;;  %v4528_v32 = vmul.f32 %v7878_v44, %v4527_v13 }
 0xfff   : > { %v4595_v19 = vmul.f32 %v4525_v34, %v10018_v59 }
0x1000   : > { %v4529_v40 = vmul.f32 0.5, %v4528_v32  ;;  %v4387_v61 = vpop.xlane.xlu2 %4386 }
0x1001   : > { %v4406_v22 = vmul.f32 %v4387_v61, %v11142_v30  ;;  %v4612_v9 = vmul.f32 %v10014_v45, %v4595_v19 }
0x1002   : > { %v4530_v63 = vsub.f32 1.5, %v4529_v40 }
0x1003   : > { %v7880_v7 = vpop.eup %7879  ;;  %v4422_v35 = vadd.f32 1e-05, %v4406_v22  ;;  %v4629_v55 = vadd.f32 %v10026_v20, %v4612_v9 }
0x1004   : > { %v4537_v14 = vmul.f32 %v7880_v7, %v4421_v10  ;;  %v4531_v37 = vmul.f32 %v7878_v44, %v4530_v63  ;;  %vm4543_vm3 = vweird.f32 %v7880_v7 }
0x1005   : > { %7881 = vrsqrt.f32 %v4422_v35  ;;  %v4640_v29 = vpack.c.bf16 %v4629_v55, %v4628_v54  ;;  %vm4544_vm5 = vmor %vm4542_vm4, %vm4543_vm3  ;;  %vm4552_vm7 = vweird.f32 %v4422_v35 }
0x1006   : > { %v4538_v59 = vmul.f32 %v7880_v7, %v4537_v14  ;;  %v4535_v2 = vsel %vm4534_vm2, %v7878_v44, %v4531_v37  ;;  %v7443_v37 = vld [vmem:[%s8234_s15 + $0xb8] sm:$0xff] }
0x1007   : > { %4874 = vmatmul.bf16.gmra.mxu0 %v4640_v29  ;;  %4923 = vmatmul.bf16.gmra.mxu1 %v4640_v29  ;;  %v4596_v36 = vmul.f32 %v4535_v2, %v10037_v31  ;;  %v7434_v2 = vld [vmem:[%s8234_s15 + $0x70] sm:$0xff] }
0x1008   : > { %v4539_v41 = vmul.f32 0.5, %v4538_v59  ;;  %v4389_v1 = vpop.xlane.xlu0 %4388  ;;  %4972 = vmatmul.bf16.gmra.mxu2 %v4640_v29  ;;  %5021 = vmatmul.bf16.gmra.mxu3 %v4640_v29  ;;  %v7435_v59 = vld [vmem:[%s8234_s15 + $0x78] sm:$0xff] }
0x1009   : > { %v4407_v33 = vmul.f32 %v4389_v1, %v11142_v30  ;;  %v4613_v50 = vmul.f32 %v10014_v45, %v4596_v36  ;;  %v10123_v29 = vld [vmem:[%s8234_s15 + $0xf8] sm:$0xff]  ;;  %5492 = vmatpush.bf16.msrb.mxu2 %v7443_v37  ;;  %5443 = vmatpush.bf16.msrb.mxu1 %v7435_v59  ;;  %v7426_v1 = vld [vmem:[%s8234_s15 + $0x30] sm:$0xff]  ;;  %v7433_v36 = vld [vmem:[%s8234_s15 + $0x68] sm:$0xff] }
0x100a   : > { %v4540_v11 = vsub.f32 1.5, %v4539_v41  ;;  %v10125_v41 = vpop.f32.mrf.mxu3  ;;  %7461 = vmatpush.bf16.msrb.mxu3 %v10123_v29  ;;  %5395 = vmatpush.bf16.msrb.mxu0 %v7426_v1 }
0x100b   : > { %v7882_v15 = vpop.eup %7881  ;;  %v4423_v56 = vadd.f32 1e-05, %v4407_v33  ;;  %v4630_v13 = vadd.f32 %v10026_v20, %v4613_v50  ;;  %v7442_v33 = vld [vmem:[%s8234_s15 + $0xb0] sm:$0xff]  ;;  %v10153_v50 = vld [vmem:[%s8234_s15 + $0xe0] sm:$0xff] }
0x100c   : > { %v4541_v8 = vmul.f32 %v7880_v7, %v4540_v11  ;;  %v4547_v39 = vmul.f32 %v7882_v15, %v4422_v35  ;;  %vm4553_vm6 = vweird.f32 %v7882_v15  ;;  %v10133_v11 = vld [vmem:[%s8234_s15 + $0xf0] sm:$0xff] }
0x100d   : > { %7883 = vrsqrt.f32 %v4423_v56  ;;  %vm4554_vm8 = vmor %vm4552_vm7, %vm4553_vm6  ;;  %vm4562_vm10 = vweird.f32 %v4423_v56  ;;  %5444 = vmatpush.bf16.msrb.mxu1 %v7434_v2  ;;  %5493 = vmatpush.bf16.msrb.mxu2 %v7442_v33  ;;  %v7420_v33 = vld [vmem:[%s8234_s15] sm:$0xff] }
0x100e   : > { %v4545_v4 = vsel %vm4544_vm5, %v7880_v7, %v4541_v8  ;;  %v4548_v60 = vmul.f32 %v7882_v15, %v4547_v39  ;;  %7462 = vmatpush.bf16.msrb.mxu3 %v10133_v11  ;;  %v7441_v8 = vld [vmem:[%s8234_s15 + $0xa8] sm:$0xff] }
0x100f   : > { %v4597_v6 = vmul.f32 %v4545_v4, %v10045_v47  ;;  %v10142_v39 = vld [vmem:[%s8234_s15 + $0xe8] sm:$0xff] }
0x1010   : > { %v4549_v12 = vmul.f32 0.5, %v4548_v60  ;;  %v7424_v60 = vld [vmem:[%s8234_s15 + $0x20] sm:$0xff] }
0x1011   : > { %v4614_v0 = vmul.f32 %v10014_v45, %v4597_v6  ;;  %5445 = vmatpush.bf16.msrb.mxu1 %v7433_v36  ;;  %5494 = vmatpush.bf16.msrb.mxu2 %v7441_v8  ;;  %v7432_v6 = vld [vmem:[%s8234_s15 + $0x60] sm:$0xff] }
0x1012   : > { %v4550_v44 = vsub.f32 1.5, %v4549_v12  ;;  %7463 = vmatpush.bf16.msrb.mxu3 %v10142_v39  ;;  %v10147_v4 = vpop.f32.mrf.mxu3  ;;  %v7440_v12 = vld [vmem:[%s8234_s15 + $0xa0] sm:$0xff] }
0x1013   : > { %v7884_v3 = vpop.eup %7883  ;;  %v4631_v31 = vadd.f32 %v10026_v20, %v4614_v0  ;;  %v7436_v8 = vld [vmem:[%s8234_s15 + $0x80] sm:$0xff] }
0x1014   : > { %v4551_v5 = vmul.f32 %v7882_v15, %v4550_v44  ;;  %v4557_v10 = vmul.f32 %v7884_v3, %v4423_v56  ;;  %vm4563_vm9 = vweird.f32 %v7884_v3  ;;  %v7425_v56 = vld [vmem:[%s8234_s15 + $0x28] sm:$0xff] }
0x1015   : > { %v4641_v32 = vpack.c.bf16 %v4631_v31, %v4630_v13  ;;  %vm4564_vm11 = vmor %vm4562_vm10, %vm4563_vm9  ;;  %5396 = vmatpush.bf16.msrb.mxu0 %v7425_v56  ;;  %5446 = vmatpush.bf16.msrb.mxu1 %v7432_v6  ;;  %v7423_v31 = vld [vmem:[%s8234_s15 + $0x18] sm:$0xff]  ;;  %v10161_v13 = vpop.f32.mrf.mxu0  ;;  %v7428_v56 = vld [vmem:[%s8234_s15 + $0x40] sm:$0xff] }
0x1016   : > { %v4558_v34 = vmul.f32 %v7884_v3, %v4557_v10  ;;  %v4555_v47 = vsel %vm4554_vm8, %v7882_v15, %v4551_v5  ;;  %5495 = vmatpush.bf16.msrb.mxu2 %v7440_v12  ;;  %7464 = vmatpush.bf16.msrb.mxu3 %v10153_v50  ;;  %v7431_v5 = vld [vmem:[%s8234_s15 + $0x58] sm:$0xff] }
0x1017   : > { %4879 = vmatmul.bf16.gmra.mxu0 %v4641_v32  ;;  %4928 = vmatmul.bf16.gmra.mxu1 %v4641_v32  ;;  %v4598_v61 = vmul.f32 %v4555_v47, %v10054_v18  ;;  %v4391_v18 = vpop.xlane.xlu1 %4390  ;;  %v7439_v10 = vld [vmem:[%s8234_s15 + $0x98] sm:$0xff]  ;;  %v10168_v47 = vpop.f32.mrf.mxu2 }
0x1018   : > { %v4559_v19 = vmul.f32 0.5, %v4558_v34  ;;  %4977 = vmatmul.bf16.gmra.mxu2 %v4641_v32  ;;  %5026 = vmatmul.bf16.gmra.mxu3 %v4641_v32  ;;  %v10163_v34 = vpop.f32.mrf.mxu1  ;;  %v10166_v32 = vld [vmem:[%s8234_s15 + $0xd8] sm:$0xff] }
0x1019   : > { %v4615_v63 = vmul.f32 %v10014_v45, %v4598_v61  ;;  %5397 = vmatpush.bf16.msrb.mxu0 %v7424_v60  ;;  %5447 = vmatpush.bf16.msrb.mxu1 %v7431_v5  ;;  %v7430_v61 = vld [vmem:[%s8234_s15 + $0x50] sm:$0xff] }
0x101a   : > { %v4560_v40 = vsub.f32 1.5, %v4559_v19  ;;  %5496 = vmatpush.bf16.msrb.mxu2 %v7439_v10  ;;  %7465 = vmatpush.bf16.msrb.mxu3 %v10166_v32 }
0x101b   : > { %v4632_v35 = vadd.f32 %v10026_v20, %v4615_v63 }
0x101c   : > { %v4561_v51 = vmul.f32 %v7884_v3, %v4560_v40  ;;  %v7422_v40 = vld [vmem:[%s8234_s15 + $0x10] sm:$0xff] }
0x101d   : > { %5398 = vmatpush.bf16.msrb.mxu0 %v7423_v31  ;;  %5448 = vmatpush.bf16.msrb.mxu1 %v7430_v61  ;;  %v4676_v61 = vld [vmem:[%s8244_s19] sm:$0xf] }
0x101e   : > { %v4565_v22 = vsel %vm4564_vm11, %v7884_v3, %v4561_v51  ;;  %v7438_v51 = vld [vmem:[%s8234_s15 + $0x90] sm:$0xff] }
0x101f   : > { %v4599_v9 = vmul.f32 %v4565_v22, %v10063_v26  ;;  %v4408_v26 = vmul.f32 %v4391_v18, %v11142_v30  ;;  %v10175_v22 = vld [vmem:[%s8234_s15 + $0xd0] sm:$0xff]  ;;  %5497 = vmatpush.bf16.msrb.mxu2 %v7438_v51  ;;  %v4955_v2 = vpop.f32.mrf.mxu2 }
0x1020   : > { %7466 = vmatpush.bf16.msrb.mxu3 %v10175_v22  ;;  %v4906_v37 = vpop.f32.mrf.mxu1 }
0x1021   : > { %v4616_v7 = vmul.f32 %v10014_v45, %v4599_v9  ;;  %v10118_v54 = vadd.f32 1e-05, %v4408_v26  ;;  %v10177_v9 = vpop.f32.mrf.mxu3  ;;  %5399 = vmatpush.bf16.msrb.mxu0 %v7422_v40  ;;  %v4857_v26 = vpop.f32.mrf.mxu0 }
0x1023   : > { %v4633_v55 = vadd.f32 %v10026_v20, %v4616_v7  ;;  %7885 = vrsqrt.f32 %v10118_v54  ;;  %v7421_v7 = vld [vmem:[%s8234_s15 + $0x8] sm:$0xff]  ;;  %vm4572_vm13 = vweird.f32 %v10118_v54 }
0x1025   : > { %v4642_v14 = vpack.c.bf16 %v4633_v55, %v4632_v35  ;;  %v7429_v35 = vld [vmem:[%s8234_s15 + $0x48] sm:$0xff]  ;;  %5400 = vmatpush.bf16.msrb.mxu0 %v7421_v7  ;;  %v10220_v7 = vperm.slane %v4676_v61, 2 }
0x1026   : > { %v7437_v55 = vld [vmem:[%s8234_s15 + $0x88] sm:$0xff]  ;;  %5449 = vmatpush.bf16.msrb.mxu1 %v7429_v35 }
0x1027   : > { %4884 = vmatmul.bf16.gmra.mxu0 %v4642_v14  ;;  %4933 = vmatmul.bf16.gmra.mxu1 %v4642_v14  ;;  %v10205_v5 = vpop.f32.mrf.mxu2 }
0x1028   : > { %4982 = vmatmul.bf16.gmra.mxu2 %v4642_v14  ;;  %5031 = vmatmul.bf16.gmra.mxu3 %v4642_v14  ;;  %v10184_v14 = vld [vmem:[%s8234_s15 + $0xc8] sm:$0xff] }
0x1029   : > { %v10136_v15 = vpop.eup %7885  ;;  %5498 = vmatpush.bf16.msrb.mxu2 %v7437_v55  ;;  %7467 = vmatpush.bf16.msrb.mxu3 %v10184_v14  ;;  %v5009_v12 = vpop.f32.mrf.mxu3 }
0x102a   : > { %v4567_v23 = vmul.f32 %v10136_v15, %v10118_v54  ;;  %vm4573_vm12 = vweird.f32 %v10136_v15  ;;  %5401 = vmatpush.bf16.msrb.mxu0 %v7420_v33  ;;  %5450 = vmatpush.bf16.msrb.mxu1 %v7428_v56  ;;  %v4954_v33 = vadd.f32 %v10168_v47, %v10220_v7 }
0x102b   : > { %vm4574_vm14 = vmor %vm4572_vm13, %vm4573_vm12 }
0x102c   : > { %v4568_v0 = vmul.f32 %v10136_v15, %v4567_v23  ;;  %v10194_v23 = vld [vmem:[%s8234_s15 + $0xc0] sm:$0xff] }
0x102d   : > { %5499 = vmatpush.bf16.msrb.mxu2 %v7436_v8  ;;  %7468 = vmatpush.bf16.msrb.mxu3 %v10194_v23 }
0x102e   : > { %5541 = vmatpush.bf16.msra.mxu0 %v10123_v29 }
0x1032   : > { %5542 = vmatpush.bf16.msra.mxu0 %v10133_v11 }
0x1036   : > { %5543 = vmatpush.bf16.msra.mxu0 %v10142_v39  ;;  %v10218_v39 = vperm.slane %v4676_v61, 1 }
0x1038   : > { %v4907_v35 = vadd.f32 %v4906_v37, %v10218_v39 }
0x103a   : > { %5544 = vmatpush.bf16.msra.mxu0 %v10153_v50  ;;  %v5047_v56 = vmax.f32 %v4907_v35, 0.0 }
0x103e   : > { %5545 = vmatpush.bf16.msra.mxu0 %v10166_v32 }
0x1042   : > { %5546 = vmatpush.bf16.msra.mxu0 %v10175_v22 }
0x1046   : > { %5547 = vmatpush.bf16.msra.mxu0 %v10184_v14 }
0x104a   : > { %5548 = vmatpush.bf16.msra.mxu0 %v10194_v23 }
0x1062   : > { %v4393_v44 = vpop.xlane.xlu2 %4392 }
0x1063   : > { %v4409_v3 = vmul.f32 %v4393_v44, %v11142_v30  ;;  %v4569_v30 = vmul.f32 0.5, %v4568_v0 }
0x1065   : > { %v4425_v19 = vadd.f32 1e-05, %v4409_v3  ;;  %v4570_v63 = vsub.f32 1.5, %v4569_v30  ;;  %v10201_v3 = vpop.f32.mrf.mxu0 }
0x1067   : > { %7887 = vrsqrt.f32 %v4425_v19  ;;  %v4571_v59 = vmul.f32 %v10136_v15, %v4570_v63  ;;  %vm4582_vm0 = vweird.f32 %v4425_v19 }
0x1069   : > { %v4575_v60 = vsel %vm4574_vm14, %v10136_v15, %v4571_v59  ;;  %v10203_v15 = vpop.f32.mrf.mxu1 }
0x106a   : > { %v4600_v54 = vmul.f32 %v4575_v60, %v10072_v43  ;;  %v5012_v43 = vpop.f32.mrf.mxu3 }
0x106c   : > { %v4617_v29 = vmul.f32 %v10014_v45, %v4600_v54 }
0x106d   : > { %v7888_v18 = vpop.eup %7887  ;;  %v4862_v51 = vpop.f32.mrf.mxu0 }
0x106e   : > { %v4577_v1 = vmul.f32 %v7888_v18, %v4425_v19  ;;  %vm4583_vm15 = vweird.f32 %v7888_v18  ;;  %v4634_v19 = vadd.f32 %v10026_v20, %v4617_v29 }
0x106f   : > { %vm4584_vm1 = vmor %vm4582_vm0, %vm4583_vm15 }
0x1070   : > { %v4578_v36 = vmul.f32 %v7888_v18, %v4577_v1  ;;  %v4905_v1 = vadd.f32 %v10163_v34, %v10218_v39 }
0x1071   : > { %v4911_v63 = vpop.f32.mrf.mxu1 }
0x1072   : > { %v4579_v6 = vmul.f32 0.5, %v4578_v36  ;;  %v5014_v55 = vpop.f32.mrf.mxu3  ;;  %v4912_v29 = vadd.f32 %v4911_v63, %v10218_v39 }
0x1074   : > { %v4580_v0 = vsub.f32 1.5, %v4579_v6  ;;  %v5043_v6 = vmax.f32 %v4905_v1, 0.0 }
0x1075   : > { %v4865_v36 = vpop.f32.mrf.mxu0 }
0x1076   : > { %v4581_v44 = vmul.f32 %v7888_v18, %v4580_v0  ;;  %v5107_v54 = vpack.c.bf16 %v5047_v56, %v5043_v6 }
0x1078   : > { %v4585_v31 = vsel %vm4584_vm1, %v7888_v18, %v4581_v44  ;;  %v4956_v18 = vadd.f32 %v4955_v2, %v10220_v7 }
0x1079   : > { %v4601_v10 = vmul.f32 %v4585_v31, %v10085_v42  ;;  %v4960_v42 = vpop.f32.mrf.mxu2  ;;  %v4914_v8 = vpop.f32.mrf.mxu1 }
0x107a   : > { %v5048_v22 = vmax.f32 %v4956_v18, 0.0  ;;  %v5055_v18 = vmax.f32 %v4912_v29, 0.0 }
0x107b   : > { %v4618_v30 = vmul.f32 %v10014_v45, %v4601_v10  ;;  %v10216_v45 = vperm.slane %v4676_v61, 0  ;;  %v5017_v44 = vpop.f32.mrf.mxu3 }
0x107d   : > { %v4635_v11 = vadd.f32 %v10026_v20, %v4618_v30  ;;  %v10222_v20 = vperm.slane %v4676_v61, 3  ;;  %v4858_v50 = vadd.f32 %v4857_v26, %v10216_v45  ;;  %v4856_v32 = vadd.f32 %v10161_v13, %v10216_v45  ;;  %v4867_v14 = vpop.f32.mrf.mxu0 }
0x107e   : > { %v4863_v10 = vadd.f32 %v4862_v51, %v10216_v45  ;;  %v4861_v23 = vadd.f32 %v10201_v3, %v10216_v45 }
0x107f   : > { %v4643_v40 = vpack.c.bf16 %v4635_v11, %v4634_v19  ;;  %v5010_v59 = vadd.f32 %v5009_v12, %v10222_v20  ;;  %v5008_v26 = vadd.f32 %v10177_v9, %v10222_v20  ;;  %v5046_v37 = vmax.f32 %v4858_v50, 0.0 }
0x1080   : > { %v5042_v60 = vmax.f32 %v4856_v32, 0.0  ;;  %v5044_v12 = vmax.f32 %v4954_v33, 0.0  ;;  %v4961_v19 = vadd.f32 %v4960_v42, %v10220_v7  ;;  %v5015_v11 = vadd.f32 %v5014_v55, %v10222_v20 }
0x1081   : > { %4889 = vmatmul.bf16.gmra.mxu0 %v4643_v40  ;;  %4938 = vmatmul.bf16.gmra.mxu1 %v4643_v40  ;;  %v5057_v2 = vmax.f32 %v5010_v59, 0.0  ;;  %v4963_v13 = vpop.f32.mrf.mxu2  ;;  %v5053_v0 = vmax.f32 %v5008_v26, 0.0  ;;  %v4916_v31 = vpop.f32.mrf.mxu1  ;;  %v4959_v50 = vadd.f32 %v10205_v5, %v10220_v7  ;;  %v5013_v35 = vadd.f32 %v5012_v43, %v10222_v20 }
0x1082   : > { %4987 = vmatmul.bf16.gmra.mxu2 %v4643_v40  ;;  %5036 = vmatmul.bf16.gmra.mxu3 %v4643_v40  ;;  %v5106_v34 = vpack.c.bf16 %v5046_v37, %v5042_v60  ;;  %v5108_v47 = vpack.c.bf16 %v5048_v22, %v5044_v12  ;;  %v4910_v40 = vadd.f32 %v10203_v15, %v10218_v39  ;;  %v5054_v51 = vmax.f32 %v4863_v10, 0.0 }
0x1083   : > { %v5113_v9 = vpack.c.bf16 %v5057_v2, %v5053_v0  ;;  %v5019_v61 = vpop.f32.mrf.mxu3  ;;  %v5056_v63 = vmax.f32 %v4961_v19, 0.0  ;;  %v5065_v59 = vmax.f32 %v5015_v11, 0.0  ;;  %v5050_v32 = vmax.f32 %v4861_v23, 0.0 }
0x1084   : > { %v5051_v42 = vmax.f32 %v4910_v40, 0.0  ;;  %v5052_v1 = vmax.f32 %v4959_v50, 0.0  ;;  %v5061_v55 = vmax.f32 %v5013_v35, 0.0  ;;  %v4868_v43 = vadd.f32 %v4867_v14, %v10216_v45 }
0x1085   : > { %v4870_v33 = vpop.f32.mrf.mxu0  ;;  %v5110_v37 = vpack.c.bf16 %v5054_v51, %v5050_v32  ;;  %v4917_v2 = vadd.f32 %v4916_v31, %v10218_v39  ;;  %v5020_v0 = vadd.f32 %v5019_v61, %v10222_v20  ;;  %v5018_v10 = vadd.f32 %v5017_v44, %v10222_v20 }
0x1086   : > { %v5111_v56 = vpack.c.bf16 %v5055_v18, %v5051_v42  ;;  %v5112_v15 = vpack.c.bf16 %v5056_v63, %v5052_v1  ;;  %v5117_v22 = vpack.c.bf16 %v5065_v59, %v5061_v55  ;;  %v5062_v29 = vmax.f32 %v4868_v43, 0.0 }
0x1087   : > { %v5063_v19 = vmax.f32 %v4917_v2, 0.0  ;;  %v5073_v11 = vmax.f32 %v5020_v0, 0.0  ;;  %v5069_v50 = vmax.f32 %v5018_v10, 0.0  ;;  %v4871_v1 = vadd.f32 %v4870_v33, %v10216_v45 }
0x1089   : > { %v4965_v30 = vpop.f32.mrf.mxu2  ;;  %v4919_v26 = vpop.f32.mrf.mxu1  ;;  %v5121_v51 = vpack.c.bf16 %v5073_v11, %v5069_v50 }
0x108a   : > { %v4966_v60 = vadd.f32 %v4965_v30, %v10220_v7  ;;  %v4920_v55 = vadd.f32 %v4919_v26, %v10218_v39 }
0x108b   : > { %v5022_v5 = vpop.f32.mrf.mxu3 }
0x108c   : > { %v5064_v14 = vmax.f32 %v4966_v60, 0.0  ;;  %v5067_v0 = vmax.f32 %v4920_v55, 0.0 }
0x108d   : > { %v4872_v6 = vpop.f32.mrf.mxu0 }
0x108e   : > { %v4873_v44 = vadd.f32 %v4872_v6, %v10216_v45 }
0x1091   : > { %5402 = vmatmul.bf16.vlgmr.msrb.gmra.mxu0 %v5106_v34  ;;  %5451 = vmatmul.bf16.vlgmr.msrb.gmra.mxu1 %v5107_v54  ;;  %v4968_v3 = vpop.f32.mrf.mxu2  ;;  %v4921_v12 = vpop.f32.mrf.mxu1  ;;  %v4866_v34 = vadd.f32 %v4865_v36, %v10216_v45  ;;  %v4915_v54 = vadd.f32 %v4914_v8, %v10218_v39 }
0x1092   : > { %5500 = vmatmul.bf16.vlgmr.msrb.gmra.mxu2 %v5108_v47  ;;  %5554 = vmatmul.bf16.vlgmr.msrb.gmra.mxu3 %v5113_v9  ;;  %v4964_v9 = vadd.f32 %v4963_v13, %v10220_v7  ;;  %v4922_v63 = vadd.f32 %v4921_v12, %v10218_v39  ;;  %v5066_v12 = vmax.f32 %v4871_v1, 0.0 }
0x1093   : > { %v5058_v31 = vmax.f32 %v4866_v34, 0.0  ;;  %v5059_v23 = vmax.f32 %v4915_v54, 0.0  ;;  %v5024_v30 = vpop.f32.mrf.mxu3 }
0x1094   : > { %v5060_v40 = vmax.f32 %v4964_v9, 0.0  ;;  %v5025_v42 = vadd.f32 %v5024_v30, %v10222_v20 }
0x1095   : > { %v5114_v35 = vpack.c.bf16 %v5062_v29, %v5058_v31  ;;  %v5115_v61 = vpack.c.bf16 %v5063_v19, %v5059_v23  ;;  %v4875_v8 = vpop.f32.mrf.mxu0 }
0x1096   : > { %v5116_v36 = vpack.c.bf16 %v5064_v14, %v5060_v40  ;;  %v5081_v6 = vmax.f32 %v5025_v42, 0.0  ;;  %v4876_v30 = vadd.f32 %v4875_v8, %v10216_v45 }
0x1099   : > { %v4970_v47 = vpop.f32.mrf.mxu2  ;;  %v4924_v18 = vpop.f32.mrf.mxu1 }
0x109a   : > { %v4971_v32 = vadd.f32 %v4970_v47, %v10220_v7  ;;  %v4925_v40 = vadd.f32 %v4924_v18, %v10218_v39 }
0x109b   : > { %v5027_v59 = vpop.f32.mrf.mxu3 }
0x109c   : > { %v5072_v43 = vmax.f32 %v4971_v32, 0.0  ;;  %v5074_v32 = vmax.f32 %v4876_v30, 0.0  ;;  %v5075_v42 = vmax.f32 %v4925_v40, 0.0 }
0x109d   : > { %v4877_v2 = vpop.f32.mrf.mxu0 }
0x109e   : > { %v4878_v19 = vadd.f32 %v4877_v2, %v10216_v45 }
0x10a1   : > { %5407 = vmatmul.bf16.gmra.mxu0 %v5110_v37  ;;  %5456 = vmatmul.bf16.gmra.mxu1 %v5111_v56  ;;  %v4973_v13 = vpop.f32.mrf.mxu2  ;;  %v4969_v37 = vadd.f32 %v4968_v3, %v10220_v7  ;;  %v5023_v56 = vadd.f32 %v5022_v5, %v10222_v20  ;;  %v4926_v60 = vpop.f32.mrf.mxu1 }
0x10a2   : > { %5505 = vmatmul.bf16.gmra.mxu2 %v5112_v15  ;;  %5559 = vmatmul.bf16.gmra.mxu3 %v5117_v22  ;;  %v5070_v15 = vmax.f32 %v4873_v44, 0.0  ;;  %v5071_v22 = vmax.f32 %v4922_v63, 0.0  ;;  %v4927_v14 = vadd.f32 %v4926_v60, %v10218_v39  ;;  %v4974_v50 = vadd.f32 %v4973_v13, %v10220_v7 }
0x10a3   : > { %v5068_v54 = vmax.f32 %v4969_v37, 0.0  ;;  %v5077_v47 = vmax.f32 %v5023_v56, 0.0  ;;  %v5029_v26 = vpop.f32.mrf.mxu3 }
0x10a4   : > { %v5118_v9 = vpack.c.bf16 %v5070_v15, %v5066_v12  ;;  %v5119_v10 = vpack.c.bf16 %v5071_v22, %v5067_v0  ;;  %v5030_v23 = vadd.f32 %v5029_v26, %v10222_v20  ;;  %v5076_v1 = vmax.f32 %v4974_v50, 0.0 }
0x10a5   : > { %v5125_v33 = vpack.c.bf16 %v5081_v6, %v5077_v47  ;;  %v5120_v29 = vpack.c.bf16 %v5072_v43, %v5068_v54  ;;  %v4880_v3 = vpop.f32.mrf.mxu0 }
0x10a6   : > { %v5089_v63 = vmax.f32 %v5030_v23, 0.0  ;;  %v4881_v12 = vadd.f32 %v4880_v3, %v10216_v45 }
0x10a9   : > { %v4975_v34 = vpop.f32.mrf.mxu2  ;;  %v4929_v5 = vpop.f32.mrf.mxu1 }
0x10aa   : > { %v4976_v31 = vadd.f32 %v4975_v34, %v10220_v7  ;;  %v4930_v0 = vadd.f32 %v4929_v5, %v10218_v39 }
0x10ac   : > { %v5080_v44 = vmax.f32 %v4976_v31, 0.0  ;;  %v5083_v31 = vmax.f32 %v4930_v0, 0.0 }
0x10ad   : > { %v4882_v22 = vpop.f32.mrf.mxu0 }
0x10ae   : > { %v5124_v15 = vpack.c.bf16 %v5080_v44, %v5076_v1 }
0x10b1   : > { %5412 = vmatmul.bf16.gmra.mxu0 %v5114_v35  ;;  %5461 = vmatmul.bf16.gmra.mxu1 %v5115_v61  ;;  %v4978_v11 = vpop.f32.mrf.mxu2  ;;  %v5028_v35 = vadd.f32 %v5027_v59, %v10222_v20  ;;  %v5078_v61 = vmax.f32 %v4878_v19, 0.0  ;;  %v4931_v8 = vpop.f32.mrf.mxu1  ;;  %v4883_v59 = vadd.f32 %v4882_v22, %v10216_v45 }
0x10b2   : > { %5510 = vmatmul.bf16.gmra.mxu2 %v5116_v36  ;;  %5564 = vmatmul.bf16.gmra.mxu3 %v5121_v51  ;;  %v5079_v51 = vmax.f32 %v4927_v14, 0.0  ;;  %v5032_v36 = vpop.f32.mrf.mxu3  ;;  %v4932_v2 = vadd.f32 %v4931_v8, %v10218_v39  ;;  %v4979_v34 = vadd.f32 %v4978_v11, %v10220_v7  ;;  %v5082_v14 = vmax.f32 %v4881_v12, 0.0 }
0x10b3   : > { %v5085_v55 = vmax.f32 %v5028_v35, 0.0  ;;  %v5122_v56 = vpack.c.bf16 %v5078_v61, %v5074_v32 }
0x10b4   : > { %v5123_v37 = vpack.c.bf16 %v5079_v51, %v5075_v42  ;;  %v5084_v23 = vmax.f32 %v4979_v34, 0.0 }
0x10b5   : > { %v5129_v43 = vpack.c.bf16 %v5089_v63, %v5085_v55  ;;  %v4885_v54 = vpop.f32.mrf.mxu0 }
0x10b6   : > { %v4886_v63 = vadd.f32 %v4885_v54, %v10216_v45 }
0x10b9   : > { %v4980_v18 = vpop.f32.mrf.mxu2  ;;  %v4934_v47 = vpop.f32.mrf.mxu1 }
0x10ba   : > { %v5034_v13 = vpop.f32.mrf.mxu3  ;;  %v4981_v60 = vadd.f32 %v4980_v18, %v10220_v7  ;;  %v4935_v32 = vadd.f32 %v4934_v47, %v10218_v39 }
0x10bb   : > { %v5035_v6 = vadd.f32 %v5034_v13, %v10222_v20 }
0x10bc   : > { %v5088_v26 = vmax.f32 %v4981_v60, 0.0 }
0x10bd   : > { %v5097_v19 = vmax.f32 %v5035_v6, 0.0  ;;  %v4887_v5 = vpop.f32.mrf.mxu0 }
0x10be   : > { %v5128_v3 = vpack.c.bf16 %v5088_v26, %v5084_v23  ;;  %v4888_v51 = vadd.f32 %v4887_v5, %v10216_v45 }
0x10c0   : > { %v5094_v1 = vmax.f32 %v4888_v51, 0.0 }
0x10c1   : > { %5417 = vmatmul.bf16.gmra.mxu0 %v5118_v9  ;;  %5466 = vmatmul.bf16.gmra.mxu1 %v5119_v10  ;;  %v5033_v9 = vadd.f32 %v5032_v36, %v10222_v20  ;;  %v5086_v10 = vmax.f32 %v4883_v59, 0.0  ;;  %v4936_v11 = vpop.f32.mrf.mxu1 }
0x10c2   : > { %5515 = vmatmul.bf16.gmra.mxu2 %v5120_v29  ;;  %5569 = vmatmul.bf16.gmra.mxu3 %v5125_v33  ;;  %v5087_v33 = vmax.f32 %v4932_v2, 0.0  ;;  %v4983_v29 = vpop.f32.mrf.mxu2  ;;  %v4937_v36 = vadd.f32 %v4936_v11, %v10218_v39 }
0x10c3   : > { %v5093_v30 = vmax.f32 %v5033_v9, 0.0  ;;  %v5126_v40 = vpack.c.bf16 %v5086_v10, %v5082_v14  ;;  %v4984_v42 = vadd.f32 %v4983_v29, %v10220_v7 }
0x10c4   : > { %v5127_v50 = vpack.c.bf16 %v5087_v33, %v5083_v31  ;;  %v5095_v55 = vmax.f32 %v4937_v36, 0.0 }
0x10c5   : > { %v5133_v35 = vpack.c.bf16 %v5097_v19, %v5093_v30  ;;  %v5092_v22 = vmax.f32 %v4984_v42, 0.0 }
0x10ca   : > { %v4985_v61 = vpop.f32.mrf.mxu2 }
0x10cb   : > { %v4986_v44 = vadd.f32 %v4985_v61, %v10220_v7 }
0x10d1   : > { %5422 = vmatmul.bf16.gmra.mxu0 %v5122_v56  ;;  %5471 = vmatmul.bf16.gmra.mxu1 %v5123_v37  ;;  %v5096_v37 = vmax.f32 %v4986_v44, 0.0  ;;  %v5090_v56 = vmax.f32 %v4886_v63, 0.0  ;;  %v5005_v44 = vadd.f32 %v10147_v4, %v10222_v20  ;;  %v5003_v63 = vadd.f32 %v10125_v41, %v10222_v20 }
0x10d2   : > { %5520 = vmatmul.bf16.gmra.mxu2 %v5124_v15  ;;  %5574 = vmatmul.bf16.gmra.mxu3 %v5129_v43  ;;  %v5091_v15 = vmax.f32 %v4935_v32, 0.0 }
0x10d3   : > { %v5130_v8 = vpack.c.bf16 %v5094_v1, %v5090_v56  ;;  %v5132_v18 = vpack.c.bf16 %v5096_v37, %v5092_v22  ;;  %v5049_v37 = vmax.f32 %v5005_v44, 0.0 }
0x10d4   : > { %v5131_v43 = vpack.c.bf16 %v5095_v55, %v5091_v15  ;;  %v5045_v15 = vmax.f32 %v5003_v63, 0.0 }
0x10d6   : > { %v5109_v22 = vpack.c.bf16 %v5049_v37, %v5045_v15 }
0x10e1   : > { %5427 = vmatmul.bf16.gmra.mxu0 %v5126_v40  ;;  %5476 = vmatmul.bf16.gmra.mxu1 %v5127_v50 }
0x10e2   : > { %5525 = vmatmul.bf16.gmra.mxu2 %v5128_v3  ;;  %5579 = vmatmul.bf16.gmra.mxu3 %v5133_v35 }
0x10f1   : > { %5432 = vmatmul.bf16.gmra.mxu0 %v5130_v8  ;;  %5481 = vmatmul.bf16.gmra.mxu1 %v5131_v43 }
0x10f2   : > { %5530 = vmatmul.bf16.gmra.mxu2 %v5132_v18 }
0x10fe   : > { %v4890_v13 = vpop.f32.mrf.mxu0  ;;  %v4939_v59 = vpop.f32.mrf.mxu1 }
0x10ff   : > { %v4891_v2 = vadd.f32 %v4890_v13, %v10216_v45  ;;  %v4940_v60 = vadd.f32 %v4939_v59, %v10218_v39 }
0x1101   : > { %v5098_v9 = vmax.f32 %v4891_v2, 0.0  ;;  %v5099_v10 = vmax.f32 %v4940_v60, 0.0 }
0x1105   : > { %v4988_v6 = vpop.f32.mrf.mxu2  ;;  %v5037_v12 = vpop.f32.mrf.mxu3 }
0x1106   : > { %v4892_v0 = vpop.f32.mrf.mxu0  ;;  %v4941_v34 = vpop.f32.mrf.mxu1  ;;  %v4989_v14 = vadd.f32 %v4988_v6, %v10220_v7  ;;  %v5038_v31 = vadd.f32 %v5037_v12, %v10222_v20 }
0x1107   : > { %v4893_v54 = vadd.f32 %v4892_v0, %v10216_v45  ;;  %v4942_v47 = vadd.f32 %v4941_v34, %v10218_v39  ;;  %v7922_v0 = vld [vmem:[%s8239_s4] sm:$0x3f] }
0x1108   : > { %v5100_v35 = vmax.f32 %v4989_v14, 0.0  ;;  %v5101_v5 = vmax.f32 %v5038_v31, 0.0  ;;  %v10305_v34 = vperm.slane %v7922_v0, 5 }
0x1109   : > { %v5102_v33 = vmax.f32 %v4893_v54, 0.0  ;;  %v5103_v29 = vmax.f32 %v4942_v47, 0.0 }
0x110b   : > { %v5134_v26 = vpack.c.bf16 %v5102_v33, %v5098_v9  ;;  %v5135_v19 = vpack.c.bf16 %v5103_v29, %v5099_v10 }
0x110d   : > { %v4990_v23 = vpop.f32.mrf.mxu2  ;;  %v5039_v30 = vpop.f32.mrf.mxu3  ;;  %5437 = vmatmul.bf16.gmra.mxu0 %v5134_v26  ;;  %5486 = vmatmul.bf16.gmra.mxu1 %v5135_v19 }
0x110e   : > { %v4991_v40 = vadd.f32 %v4990_v23, %v10220_v7  ;;  %v5040_v45 = vadd.f32 %v5039_v30, %v10222_v20  ;;  %v5403_v50 = vpop.f32.mrf.mxu0  ;;  %v5452_v39 = vpop.f32.mrf.mxu1 }
0x110f   : > { %v5453_v3 = vadd.f32 %v5452_v39, %v5403_v50 }
0x1110   : > { %v5104_v11 = vmax.f32 %v4991_v40, 0.0  ;;  %v5105_v61 = vmax.f32 %v5040_v45, 0.0 }
0x1112   : > { %v5136_v51 = vpack.c.bf16 %v5104_v11, %v5100_v35  ;;  %v5137_v36 = vpack.c.bf16 %v5105_v61, %v5101_v5 }
0x1114   : > { %5535 = vmatmul.bf16.gmra.mxu2 %v5136_v51  ;;  %5584 = vmatmul.bf16.gmra.mxu3 %v5137_v36 }
0x1115   : > { %v5501_v7 = vpop.f32.mrf.mxu2  ;;  %v5555_v32 = vpop.f32.mrf.mxu3 }
0x1116   : > { %v10300_v42 = vadd.f32 %v5501_v7, %v5453_v3  ;;  %v5405_v1 = vpop.f32.mrf.mxu0  ;;  %v5454_v55 = vpop.f32.mrf.mxu1 }
0x1117   : > { %v5455_v56 = vadd.f32 %v5454_v55, %v5405_v1 }
0x111d   : > { %v5503_v8 = vpop.f32.mrf.mxu2  ;;  %v5557_v43 = vpop.f32.mrf.mxu3  ;;  %5549 = vmatmul.bf16.vlgmr.msra.gmra.mxu0 %v5109_v22 }
0x111e   : > { %v10302_v4 = vadd.f32 %v5503_v8, %v5455_v56  ;;  %v5408_v18 = vpop.f32.mrf.mxu0  ;;  %v5457_v13 = vpop.f32.mrf.mxu1 }
0x111f   : > { %v5458_v59 = vadd.f32 %v5457_v13, %v5408_v18 }
0x1125   : > { %v5506_v41 = vpop.f32.mrf.mxu2  ;;  %v5560_v20 = vpop.f32.mrf.mxu3 }
0x1126   : > { %v5507_v2 = vadd.f32 %v5506_v41, %v5458_v59  ;;  %v5410_v60 = vpop.f32.mrf.mxu0  ;;  %v5459_v6 = vpop.f32.mrf.mxu1 }
0x1127   : > { %v5460_v9 = vadd.f32 %v5459_v6, %v5410_v60 }
0x1128   : > { %v5556_v12 = vadd.f32 %v5555_v32, %v5507_v2 }
0x112a   : > { %v5592_v54 = vadd.f32 %v5556_v12, %v9812_v27 }
0x112c   : > { %v10309_v47 = vadd.f32 %v10305_v34, %v5592_v54 }
0x112d   : > { %v5508_v10 = vpop.f32.mrf.mxu2  ;;  %v5562_v19 = vpop.f32.mrf.mxu3 }
0x112e   : > { %5625 = vst [vmem:[#allocation2 + $0x58] sm:$0xff] %v10309_v47  ;;  %v5509_v33 = vadd.f32 %v5508_v10, %v5460_v9  ;;  %v5413_v29 = vpop.f32.mrf.mxu0  ;;  %v5462_v26 = vpop.f32.mrf.mxu1 }
0x112f   : > { %v5463_v30 = vadd.f32 %v5462_v26, %v5413_v29 }
0x1130   : > { %v5558_v14 = vadd.f32 %v5557_v43, %v5509_v33 }
0x1132   : > { %v5593_v31 = vadd.f32 %v5558_v14, %v9818_v24 }
0x1134   : > { %v10314_v23 = vadd.f32 %v10305_v34, %v5593_v31 }
0x1135   : > { %v5511_v40 = vpop.f32.mrf.mxu2  ;;  %v5565_v3 = vpop.f32.mrf.mxu3 }
0x1136   : > { %5626 = vst [vmem:[#allocation2 + $0x18] sm:$0xff] %v10314_v23  ;;  %v5512_v27 = vadd.f32 %v5511_v40, %v5463_v30  ;;  %v5415_v45 = vpop.f32.mrf.mxu0  ;;  %v5464_v50 = vpop.f32.mrf.mxu1 }
0x1137   : > { %v5465_v11 = vadd.f32 %v5464_v50, %v5415_v45 }
0x1138   : > { %v5561_v39 = vadd.f32 %v5560_v20, %v5512_v27 }
0x113a   : > { %v5594_v35 = vadd.f32 %v5561_v39, %v9825_v46 }
0x113c   : > { %v10319_v5 = vadd.f32 %v10305_v34, %v5594_v35 }
0x113d   : > { %v5513_v61 = vpop.f32.mrf.mxu2  ;;  %v5567_v7 = vpop.f32.mrf.mxu3 }
0x113e   : > { %5627 = vst [vmem:[#allocation2 + $0x50] sm:$0xff] %v10319_v5  ;;  %v5514_v24 = vadd.f32 %v5513_v61, %v5465_v11  ;;  %v5418_v51 = vpop.f32.mrf.mxu0  ;;  %v5467_v36 = vpop.f32.mrf.mxu1 }
0x113f   : > { %v5468_v1 = vadd.f32 %v5467_v36, %v5418_v51 }
0x1140   : > { %v5563_v44 = vadd.f32 %v5562_v19, %v5514_v24 }
0x1142   : > { %v5595_v63 = vadd.f32 %v5563_v44, %v9831_v38 }
0x1144   : > { %v10324_v32 = vadd.f32 %v10305_v34, %v5595_v63 }
0x1145   : > { %v5516_v55 = vpop.f32.mrf.mxu2  ;;  %v5570_v18 = vpop.f32.mrf.mxu3 }
0x1146   : > { %5628 = vst [vmem:[#allocation2 + $0x68] sm:$0xff] %v10324_v32  ;;  %v5517_v46 = vadd.f32 %v5516_v55, %v5468_v1  ;;  %v5420_v37 = vpop.f32.mrf.mxu0  ;;  %v5469_v56 = vpop.f32.mrf.mxu1 }
0x1147   : > { %v5470_v43 = vadd.f32 %v5469_v56, %v5420_v37 }
0x1148   : > { %v5566_v15 = vadd.f32 %v5565_v3, %v5517_v46 }
0x114a   : > { %v5596_v22 = vadd.f32 %v5566_v15, %v9836_v21 }
0x114c   : > { %v10329_v8 = vadd.f32 %v10305_v34, %v5596_v22 }
0x114d   : > { %v5518_v38 = vpop.f32.mrf.mxu2  ;;  %v5572_v9 = vpop.f32.mrf.mxu3 }
0x114e   : > { %5629 = vst [vmem:[#allocation2 + $0x8] sm:$0xff] %v10329_v8  ;;  %v5519_v13 = vadd.f32 %v5518_v38, %v5470_v43  ;;  %v5423_v59 = vpop.f32.mrf.mxu0  ;;  %v5472_v41 = vpop.f32.mrf.mxu1 }
0x114f   : > { %v5473_v6 = vadd.f32 %v5472_v41, %v5423_v59 }
0x1150   : > { %v5568_v20 = vadd.f32 %v5567_v7, %v5519_v13 }
0x1152   : > { %v5597_v2 = vadd.f32 %v5568_v20, %v9856_v16 }
0x1154   : > { %v10334_v60 = vadd.f32 %v10305_v34, %v5597_v2 }
0x1155   : > { %v5521_v12 = vpop.f32.mrf.mxu2  ;;  %v5575_v40 = vpop.f32.mrf.mxu3 }
0x1156   : > { %5630 = vst [vmem:[#allocation2 + $0x48] sm:$0xff] %v10334_v60  ;;  %v5522_v21 = vadd.f32 %v5521_v12, %v5473_v6  ;;  %v5425_v0 = vpop.f32.mrf.mxu0  ;;  %v5474_v54 = vpop.f32.mrf.mxu1 }
0x1157   : > { %v5475_v26 = vadd.f32 %v5474_v54, %v5425_v0 }
0x1158   : > { %v5571_v10 = vadd.f32 %v5570_v18, %v5522_v21 }
0x115a   : > { %v5598_v33 = vadd.f32 %v5571_v10, %v9869_v52 }
0x115c   : > { %v10339_v29 = vadd.f32 %v10305_v34, %v5598_v33 }
0x115d   : > { %v5523_v19 = vpop.f32.mrf.mxu2  ;;  %v5577_v24 = vpop.f32.mrf.mxu3 }
0x115e   : > { %5631 = vst [vmem:[#allocation2 + $0x40] sm:$0xff] %v10339_v29  ;;  %v5524_v16 = vadd.f32 %v5523_v19, %v5475_v26  ;;  %v5428_v14 = vpop.f32.mrf.mxu0  ;;  %v5477_v31 = vpop.f32.mrf.mxu1 }
0x115f   : > { %v5478_v50 = vadd.f32 %v5477_v31, %v5428_v14 }
0x1160   : > { %v5573_v30 = vadd.f32 %v5572_v9, %v5524_v16 }
0x1162   : > { %v5599_v27 = vadd.f32 %v5573_v30, %v9878_v53 }
0x1164   : > { %v10344_v45 = vadd.f32 %v10305_v34, %v5599_v27 }
0x1165   : > { %v5526_v39 = vpop.f32.mrf.mxu2  ;;  %v5580_v56 = vpop.f32.mrf.mxu3 }
0x1166   : > { %5632 = vst [vmem:[#allocation2 + $0x20] sm:$0xff] %v10344_v45  ;;  %v5527_v52 = vadd.f32 %v5526_v39, %v5478_v50  ;;  %v5430_v3 = vpop.f32.mrf.mxu0  ;;  %v5479_v35 = vpop.f32.mrf.mxu1 }
0x1167   : > { %v5480_v36 = vadd.f32 %v5479_v35, %v5430_v3 }
0x1168   : > { %v5576_v11 = vadd.f32 %v5575_v40, %v5527_v52 }
0x116a   : > { %v5600_v61 = vadd.f32 %v5576_v11, %v9891_v48 }
0x116c   : > { %v10349_v51 = vadd.f32 %v10305_v34, %v5600_v61 }
0x116d   : > { %v5528_v44 = vpop.f32.mrf.mxu2  ;;  %v5582_v20 = vpop.f32.mrf.mxu3 }
0x116e   : > { %5633 = vst [vmem:[#allocation2 + $0x10] sm:$0xff] %v10349_v51  ;;  %v5529_v53 = vadd.f32 %v5528_v44, %v5480_v36  ;;  %v5433_v63 = vpop.f32.mrf.mxu0  ;;  %v5482_v7 = vpop.f32.mrf.mxu1 }
0x116f   : > { %v5483_v37 = vadd.f32 %v5482_v7, %v5433_v63 }
0x1170   : > { %v5578_v1 = vadd.f32 %v5577_v24, %v5529_v53 }
0x1172   : > { %v5601_v55 = vadd.f32 %v5578_v1, %v9904_v58 }
0x1174   : > { %v10354_v46 = vadd.f32 %v10305_v34, %v5601_v55 }
0x1175   : > { %v5531_v48 = vpop.f32.mrf.mxu2 }
0x1176   : > { %5634 = vst [vmem:[#allocation2 + $0x38] sm:$0xff] %v10354_v46  ;;  %v5532_v15 = vadd.f32 %v5531_v48, %v5483_v37  ;;  %v5435_v43 = vpop.f32.mrf.mxu0  ;;  %v5484_v18 = vpop.f32.mrf.mxu1 }
0x1177   : > { %v5485_v59 = vadd.f32 %v5484_v18, %v5435_v43 }
0x1178   : > { %v5581_v22 = vadd.f32 %v5580_v56, %v5532_v15 }
0x117a   : > { %v5602_v38 = vadd.f32 %v5581_v22, %v9917_v57 }
0x117c   : > { %v10359_v13 = vadd.f32 %v10305_v34, %v5602_v38 }
0x117d   : > { %v5533_v41 = vpop.f32.mrf.mxu2 }
0x117e   : > { %5635 = vst [vmem:[#allocation2 + $0x60] sm:$0xff] %v10359_v13  ;;  %v5534_v58 = vadd.f32 %v5533_v41, %v5485_v59 }
0x1180   : > { %v5583_v2 = vadd.f32 %v5582_v20, %v5534_v58 }
0x1182   : > { %v5603_v6 = vadd.f32 %v5583_v2, %v9922_v28 }
0x1184   : > { %v10364_v12 = vadd.f32 %v10305_v34, %v5603_v6 }
0x1186   : > { %5636 = vst [vmem:[#allocation2 + $0x70] sm:$0xff] %v10364_v12 }
0x118a   : > { %v5438_v21 = vpop.f32.mrf.mxu0  ;;  %v5487_v0 = vpop.f32.mrf.mxu1 }
0x118b   : > { %v5488_v54 = vadd.f32 %v5487_v0, %v5438_v21 }
0x1192   : > { %v5440_v57 = vpop.f32.mrf.mxu0  ;;  %v5489_v16 = vpop.f32.mrf.mxu1 }
0x1193   : > { %v5490_v30 = vadd.f32 %v5489_v16, %v5440_v57 }
0x1197   : > { %v5536_v9 = vpop.f32.mrf.mxu2  ;;  %v5585_v10 = vpop.f32.mrf.mxu3 }
0x1198   : > { %v5537_v33 = vadd.f32 %v5536_v9, %v5488_v54 }
0x119a   : > { %v5586_v26 = vadd.f32 %v5585_v10, %v5537_v33  ;;  %v5550_v19 = vpop.f32.mrf.mxu0 }
0x119b   : > { %v5551_v14 = vadd.f32 %v5550_v19, %v10300_v42 }
0x119c   : > { %v5604_v31 = vadd.f32 %v5586_v26, %v9926_v62 }
0x119d   : > { %v5590_v28 = vadd.f32 %v5551_v14, %v9799_v49 }
0x119e   : > { %v10371_v40 = vadd.f32 %v10305_v34, %v5604_v31 }
0x119f   : > { %v10374_v27 = vadd.f32 %v10305_v34, %v5590_v28  ;;  %v5538_v50 = vpop.f32.mrf.mxu2  ;;  %v5587_v52 = vpop.f32.mrf.mxu3 }
0x11a0   : > { %5637 = vst [vmem:[#allocation2 + $0x78] sm:$0xff] %v10371_v40  ;;  %v5539_v39 = vadd.f32 %v5538_v50, %v5490_v30 }
0x11a1   : > { %5623 = vst [vmem:[#allocation2 + $0x30] sm:$0xff] %v10374_v27 }
0x11a2   : > { %v5588_v3 = vadd.f32 %v5587_v52, %v5539_v39  ;;  %v5552_v42 = vpop.f32.mrf.mxu0 }
0x11a3   : > { %v5553_v62 = vadd.f32 %v5552_v42, %v10302_v4 }
0x11a4   : > { %v5605_v49 = vadd.f32 %v5588_v3, %v10023_v25 }
0x11a5   : > { %v5591_v35 = vadd.f32 %v5553_v62, %v9805_v17  ;;  %5642 = sbr.rel (%p7239_p1) target bundleno = 4974 (0x136e), region = 80 }
0x11a6   : > { %v10382_v11 = vadd.f32 %v10305_v34, %v5605_v49 }
0x11a7   : > { %v5608_v61 = vadd.f32 %v10305_v34, %v5591_v35 }
0x11a8   : > { %5638 = vst [vmem:[#allocation2 + $0x28] sm:$0xff] %v10382_v11 }
0x11a9   : > { %5624 = vst [vmem:[#allocation2] sm:$0xff] %v5608_v61 }
0x11aa   : > { %5644 = vadd.xlane.f32.xlu2 %v10374_v27  ;;  %5668 = vadd.xlane.f32.xlu1 %v10359_v13  ;;  %v11151_v4 = vld [vmem:[#allocation18_spill] sm:$0xff] }
0x11ab   : > { %5660 = vadd.xlane.f32.xlu0 %v10339_v29 }
0x11b2   : > { %5646 = vadd.xlane.f32.xlu2 %v5608_v61  ;;  %5670 = vadd.xlane.f32.xlu1 %v10364_v12 }
0x11b3   : > { %5662 = vadd.xlane.f32.xlu0 %v10344_v45 }
0x11ba   : > { %5664 = vadd.xlane.f32.xlu2 %v10349_v51  ;;  %5654 = vadd.xlane.f32.xlu1 %v10324_v32 }
0x11bb   : > { %5652 = vadd.xlane.f32.xlu0 %v10319_v5 }
0x11c2   : > { %5674 = vadd.xlane.f32.xlu2 %v10382_v11  ;;  %5672 = vadd.xlane.f32.xlu1 %v10371_v40 }
0x11c3   : > { %5666 = vadd.xlane.f32.xlu0 %v10354_v46 }
0x11ca   : > { %5656 = vadd.xlane.f32.xlu2 %v10329_v8  ;;  %5650 = vadd.xlane.f32.xlu1 %v10314_v23 }
0x11cb   : > { %5648 = vadd.xlane.f32.xlu0 %v10309_v47 }
0x11d3   : > { %5658 = vadd.xlane.f32.xlu0 %v10334_v60 }
0x121d   : > { %v5645_v17 = vpop.xlane.xlu2 %5644  ;;  %v5669_v25 = vpop.xlane.xlu1 %5668 }
0x121e   : > { %v5688_v34 = vmul.f32 %v5669_v25, %v11151_v4  ;;  %v5661_v24 = vpop.xlane.xlu0 %5660 }
0x121f   : > { %v5684_v36 = vmul.f32 %v5661_v24, %v11151_v4  ;;  %v7459_v24 = vld [vmem:[%s10993_s11 + $0x38] sm:$0xff] }
0x1220   : > { %v10405_v44 = vsub.f32 %v10359_v13, %v5688_v34  ;;  %v5676_v13 = vmul.f32 %v5645_v17, %v11151_v4  ;;  %7470 = vmatpush.bf16.msra.mxu2 %v7459_v24  ;;  %7471 = vmatpush.bf16.msra.mxu3 %v7459_v24 }
0x1221   : > { %v10408_v53 = vsub.f32 %v10339_v29, %v5684_v36  ;;  %6074 = vmatpush.bf16.msra.mxu0 %v7459_v24  ;;  %7469 = vmatpush.bf16.msra.mxu1 %v7459_v24  ;;  %v7456_v36 = vld [vmem:[%s10993_s11 + $0x20] sm:$0xff] }
0x1222   : > { %v5720_v63 = vmul.f32 %v10405_v44, %v10405_v44  ;;  %v10434_v2 = vsub.f32 %v10374_v27, %v5676_v13 }
0x1223   : > { %v5716_v7 = vmul.f32 %v10408_v53, %v10408_v53 }
0x1224   : > { %5748 = vadd.xlane.f32.xlu0 %v5720_v63  ;;  %v5708_v54 = vmul.f32 %v10434_v2, %v10434_v2  ;;  %v7455_v63 = vld [vmem:[%s10993_s11 + $0x18] sm:$0xff] }
0x1225   : > { %5740 = vadd.xlane.f32.xlu1 %v5716_v7  ;;  %v5647_v1 = vpop.xlane.xlu2 %5646  ;;  %v5671_v55 = vpop.xlane.xlu1 %5670  ;;  %v7454_v7 = vld [vmem:[%s10993_s11 + $0x10] sm:$0xff] }
0x1226   : > { %v5677_v37 = vmul.f32 %v5647_v1, %v11151_v4  ;;  %v5689_v56 = vmul.f32 %v5671_v55, %v11151_v4  ;;  %v5663_v48 = vpop.xlane.xlu0 %5662 }
0x1227   : > { %v5685_v15 = vmul.f32 %v5663_v48, %v11151_v4 }
0x1228   : > { %v10417_v22 = vsub.f32 %v5608_v61, %v5677_v37  ;;  %v10420_v29 = vsub.f32 %v10364_v12, %v5689_v56 }
0x1229   : > { %v10423_v43 = vsub.f32 %v10344_v45, %v5685_v15  ;;  %v7453_v15 = vld [vmem:[%s10993_s11 + $0x8] sm:$0xff] }
0x122a   : > { %v5709_v18 = vmul.f32 %v10417_v22, %v10417_v22  ;;  %v5721_v38 = vmul.f32 %v10420_v29, %v10420_v29 }
0x122b   : > { %v5717_v59 = vmul.f32 %v10423_v43, %v10423_v43 }
0x122c   : > { %5726 = vadd.xlane.f32.xlu0 %v5709_v18 }
0x122d   : > { %5750 = vadd.xlane.f32.xlu1 %v5721_v38  ;;  %5742 = vadd.xlane.f32.xlu2 %v5717_v59  ;;  %v5665_v41 = vpop.xlane.xlu2 %5664  ;;  %v5655_v58 = vpop.xlane.xlu1 %5654  ;;  %v7452_v38 = vld [vmem:[%s10993_s11] sm:$0xff] }
0x122e   : > { %v5686_v20 = vmul.f32 %v5665_v41, %v11151_v4  ;;  %v5653_v45 = vpop.xlane.xlu0 %5652  ;;  %v5681_v0 = vmul.f32 %v5655_v58, %v11151_v4 }
0x122f   : > { %v5680_v6 = vmul.f32 %v5653_v45, %v11151_v4 }
0x1230   : > { %v10438_v12 = vsub.f32 %v10349_v51, %v5686_v20  ;;  %v10451_v51 = vsub.f32 %v10324_v32, %v5681_v0 }
0x1231   : > { %v10441_v21 = vsub.f32 %v10319_v5, %v5680_v6 }
0x1232   : > { %v5718_v57 = vmul.f32 %v10438_v12, %v10438_v12  ;;  %v5713_v31 = vmul.f32 %v10451_v51, %v10451_v51 }
0x1233   : > { %v5712_v9 = vmul.f32 %v10441_v21, %v10441_v21 }
0x1234   : > { %5744 = vadd.xlane.f32.xlu0 %v5718_v57 }
0x1235   : > { %5724 = vadd.xlane.f32.xlu2 %v5708_v54  ;;  %5732 = vadd.xlane.f32.xlu1 %v5712_v9  ;;  %v5675_v10 = vpop.xlane.xlu2 %5674  ;;  %v5673_v5 = vpop.xlane.xlu1 %5672 }
0x1236   : > { %v5691_v33 = vmul.f32 %v5675_v10, %v11151_v4  ;;  %v5667_v26 = vpop.xlane.xlu0 %5666  ;;  %v5690_v28 = vmul.f32 %v5673_v5, %v11151_v4 }
0x1237   : > { %v5687_v19 = vmul.f32 %v5667_v26, %v11151_v4 }
0x1238   : > { %v10456_v16 = vsub.f32 %v10382_v11, %v5691_v33  ;;  %v10469_v50 = vsub.f32 %v10371_v40, %v5690_v28 }
0x1239   : > { %v10459_v14 = vsub.f32 %v10354_v46, %v5687_v19 }
0x123a   : > { %v5723_v32 = vmul.f32 %v10456_v16, %v10456_v16  ;;  %v5722_v49 = vmul.f32 %v10469_v50, %v10469_v50 }
0x123b   : > { %v5719_v30 = vmul.f32 %v10459_v14, %v10459_v14 }
0x123c   : > { %5754 = vadd.xlane.f32.xlu0 %v5723_v32 }
0x123d   : > { %5734 = vadd.xlane.f32.xlu2 %v5713_v31  ;;  %5746 = vadd.xlane.f32.xlu1 %v5719_v30  ;;  %v5657_v27 = vpop.xlane.xlu2 %5656  ;;  %v5651_v52 = vpop.xlane.xlu1 %5650 }
0x123e   : > { %v5682_v46 = vmul.f32 %v5657_v27, %v11151_v4  ;;  %v5649_v39 = vpop.xlane.xlu0 %5648  ;;  %v5679_v35 = vmul.f32 %v5651_v52, %v11151_v4 }
0x123f   : > { %v5678_v3 = vmul.f32 %v5649_v39, %v11151_v4 }
0x1240   : > { %v10474_v42 = vsub.f32 %v10329_v8, %v5682_v46  ;;  %v10487_v8 = vsub.f32 %v10314_v23, %v5679_v35  ;;  %v7458_v23 = vld [vmem:[%s10993_s11 + $0x30] sm:$0xff] }
0x1241   : > { %v10477_v62 = vsub.f32 %v10309_v47, %v5678_v3  ;;  %7473 = vmatpush.bf16.msra.mxu2 %v7458_v23  ;;  %7474 = vmatpush.bf16.msra.mxu3 %v7458_v23 }
0x1242   : > { %v5714_v40 = vmul.f32 %v10474_v42, %v10474_v42  ;;  %v5711_v25 = vmul.f32 %v10487_v8, %v10487_v8  ;;  %6075 = vmatpush.bf16.msra.mxu0 %v7458_v23  ;;  %7472 = vmatpush.bf16.msra.mxu1 %v7458_v23 }
0x1243   : > { %v5710_v11 = vmul.f32 %v10477_v62, %v10477_v62 }
0x1244   : > { %5736 = vadd.xlane.f32.xlu0 %v5714_v40 }
0x1245   : > { %5752 = vadd.xlane.f32.xlu2 %v5722_v49  ;;  %5728 = vadd.xlane.f32.xlu1 %v5710_v11 }
0x1246   : > { %v5659_v61 = vpop.xlane.xlu0 %5658 }
0x1247   : > { %v5683_v47 = vmul.f32 %v5659_v61, %v11151_v4 }
0x1249   : > { %v10491_v17 = vsub.f32 %v10334_v60, %v5683_v47  ;;  %v7457_v60 = vld [vmem:[%s10993_s11 + $0x28] sm:$0xff]  ;;  %v5643_v47 = vld [vmem:[%s10992_s10] sm:$0x3] }
0x124a   : > { %7476 = vmatpush.bf16.msra.mxu2 %v7457_v60  ;;  %7477 = vmatpush.bf16.msra.mxu3 %v7457_v60 }
0x124b   : > { %v5715_v34 = vmul.f32 %v10491_v17, %v10491_v17  ;;  %6076 = vmatpush.bf16.msra.mxu0 %v7457_v60  ;;  %7475 = vmatpush.bf16.msra.mxu1 %v7457_v60 }
0x124d   : > { %5730 = vadd.xlane.f32.xlu2 %v5711_v25  ;;  %5738 = vadd.xlane.f32.xlu1 %v5715_v34 }
0x124e   : > { %7479 = vmatpush.bf16.msra.mxu2 %v7456_v36  ;;  %7480 = vmatpush.bf16.msra.mxu3 %v7456_v36 }
0x124f   : > { %6077 = vmatpush.bf16.msra.mxu0 %v7456_v36  ;;  %7478 = vmatpush.bf16.msra.mxu1 %v7456_v36 }
0x1252   : > { %7482 = vmatpush.bf16.msra.mxu2 %v7455_v63  ;;  %7483 = vmatpush.bf16.msra.mxu3 %v7455_v63 }
0x1253   : > { %6078 = vmatpush.bf16.msra.mxu0 %v7455_v63  ;;  %7481 = vmatpush.bf16.msra.mxu1 %v7455_v63  ;;  %v10579_v63 = vperm.slane %v5643_v47, 0 }
0x1256   : > { %7485 = vmatpush.bf16.msra.mxu2 %v7454_v7  ;;  %7486 = vmatpush.bf16.msra.mxu3 %v7454_v7 }
0x1257   : > { %6079 = vmatpush.bf16.msra.mxu0 %v7454_v7  ;;  %7484 = vmatpush.bf16.msra.mxu1 %v7454_v7 }
0x125a   : > { %7488 = vmatpush.bf16.msra.mxu2 %v7453_v15  ;;  %7489 = vmatpush.bf16.msra.mxu3 %v7453_v15 }
0x125b   : > { %6080 = vmatpush.bf16.msra.mxu0 %v7453_v15  ;;  %7487 = vmatpush.bf16.msra.mxu1 %v7453_v15 }
0x125e   : > { %7491 = vmatpush.bf16.msra.mxu2 %v7452_v38  ;;  %7492 = vmatpush.bf16.msra.mxu3 %v7452_v38 }
0x125f   : > { %6081 = vmatpush.bf16.msra.mxu0 %v7452_v38  ;;  %7490 = vmatpush.bf16.msra.mxu1 %v7452_v38 }
0x1297   : > { %v5749_v1 = vpop.xlane.xlu0 %5748 }
0x1298   : > { %v5741_v55 = vpop.xlane.xlu1 %5740  ;;  %v5768_v37 = vmul.f32 %v5749_v1, %v11151_v4 }
0x1299   : > { %v5764_v56 = vmul.f32 %v5741_v55, %v11151_v4 }
0x129a   : > { %v10517_v48 = vadd.f32 1e-05, %v5768_v37 }
0x129b   : > { %v10522_v18 = vadd.f32 1e-05, %v5764_v56 }
0x129c   : > { %7924 = vrsqrt.f32 %v10517_v48  ;;  %vm5914_vm3 = vweird.f32 %v10517_v48 }
0x129d   : > { %7926 = vrsqrt.f32 %v10522_v18  ;;  %vm5874_vm2 = vweird.f32 %v10522_v18 }
0x129f   : > { %v5727_v13 = vpop.xlane.xlu0 %5726 }
0x12a0   : > { %v5751_v59 = vpop.xlane.xlu1 %5750  ;;  %v5743_v41 = vpop.xlane.xlu2 %5742  ;;  %v5757_v58 = vmul.f32 %v5727_v13, %v11151_v4 }
0x12a1   : > { %v5769_v20 = vmul.f32 %v5751_v59, %v11151_v4  ;;  %v5765_v45 = vmul.f32 %v5743_v41, %v11151_v4 }
0x12a2   : > { %v10532_v6 = vpop.eup %7924  ;;  %v10534_v0 = vadd.f32 1e-05, %v5757_v58 }
0x12a3   : > { %v10536_v57 = vpop.eup %7926  ;;  %v5909_v54 = vmul.f32 %v10532_v6, %v10517_v48  ;;  %v10540_v9 = vadd.f32 1e-05, %v5769_v20  ;;  %v10542_v10 = vadd.f32 1e-05, %v5765_v45  ;;  %vm5915_vm5 = vweird.f32 %v10532_v6 }
0x12a4   : > { %v5869_v5 = vmul.f32 %v10536_v57, %v10522_v18  ;;  %7928 = vrsqrt.f32 %v10534_v0  ;;  %vm5875_vm4 = vweird.f32 %v10536_v57  ;;  %vm10610_vm7 = vmor %vm5914_vm3, %vm5915_vm5  ;;  %vm5804_vm13 = vweird.f32 %v10534_v0 }
0x12a5   : > { %7930 = vrsqrt.f32 %v10540_v9  ;;  %v5910_v33 = vmul.f32 %v10532_v6, %v5909_v54  ;;  %vm10622_vm8 = vmor %vm5874_vm2, %vm5875_vm4  ;;  %vm5884_vm9 = vweird.f32 %v10542_v10  ;;  %vm5924_vm10 = vweird.f32 %v10540_v9 }
0x12a6   : > { %7932 = vrsqrt.f32 %v10542_v10  ;;  %v5870_v26 = vmul.f32 %v10536_v57, %v5869_v5 }
0x12a7   : > { %v5745_v19 = vpop.xlane.xlu0 %5744  ;;  %v5911_v39 = vmul.f32 0.5, %v5910_v33 }
0x12a8   : > { %v5725_v31 = vpop.xlane.xlu2 %5724  ;;  %v5733_v28 = vpop.xlane.xlu1 %5732  ;;  %v5766_v32 = vmul.f32 %v5745_v19, %v11151_v4  ;;  %v5871_v3 = vmul.f32 0.5, %v5870_v26 }
0x12a9   : > { %v5756_v30 = vmul.f32 %v5725_v31, %v11151_v4  ;;  %v5760_v27 = vmul.f32 %v5733_v28, %v11151_v4  ;;  %v5912_v24 = vsub.f32 1.5, %v5911_v39 }
0x12aa   : > { %v10554_v46 = vpop.eup %7928  ;;  %v10560_v35 = vadd.f32 1e-05, %v5766_v32  ;;  %v5872_v23 = vsub.f32 1.5, %v5871_v3 }
0x12ab   : > { %v10556_v52 = vpop.eup %7930  ;;  %v10558_v49 = vadd.f32 1e-05, %v5756_v30  ;;  %v5799_v11 = vmul.f32 %v10554_v46, %v10534_v0  ;;  %v10566_v61 = vadd.f32 1e-05, %v5760_v27  ;;  %v5913_v59 = vmul.f32 %v10532_v6, %v5912_v24 }
0x12ac   : > { %v10562_v40 = vpop.eup %7932  ;;  %v5919_v25 = vmul.f32 %v10556_v52, %v10540_v9  ;;  %v5873_v20 = vmul.f32 %v10536_v57, %v5872_v23  ;;  %vm5925_vm12 = vweird.f32 %v10556_v52  ;;  %vm5805_vm14 = vweird.f32 %v10554_v46 }
0x12ad   : > { %v5879_v34 = vmul.f32 %v10562_v40, %v10542_v10  ;;  %7934 = vrsqrt.f32 %v10558_v49  ;;  %v5800_v7 = vmul.f32 %v10554_v46, %v5799_v11  ;;  %vm5885_vm6 = vweird.f32 %v10562_v40  ;;  %vm10697_vm2 = vmor %vm5924_vm10, %vm5925_vm12 }
0x12ae   : > { %7936 = vrsqrt.f32 %v10566_v61  ;;  %v5920_v56 = vmul.f32 %v10556_v52, %v5919_v25  ;;  %v10630_v11 = vperm.slane %v5643_v47, 1  ;;  %v5917_v10 = vsel %vm10610_vm7, %v10532_v6, %v5913_v59  ;;  %vm10643_vm11 = vmor %vm5884_vm9, %vm5885_vm6 }
0x12af   : > { %v5880_v60 = vmul.f32 %v10562_v40, %v5879_v34  ;;  %7938 = vrsqrt.f32 %v10560_v35  ;;  %v5755_v36 = vpop.xlane.xlu0 %5754  ;;  %v5801_v26 = vmul.f32 0.5, %v5800_v7  ;;  %v5877_v34 = vsel %vm10622_vm8, %v10536_v57, %v5873_v20  ;;  %vm10748_vm12 = vmor %vm5804_vm13, %vm5805_vm14 }
0x12b0   : > { %v5735_v1 = vpop.xlane.xlu2 %5734  ;;  %v5747_v55 = vpop.xlane.xlu1 %5746  ;;  %v5771_v37 = vmul.f32 %v5755_v36, %v11151_v4  ;;  %v5921_v32 = vmul.f32 0.5, %v5920_v56  ;;  %vm5794_vm1 = vweird.f32 %v10558_v49  ;;  %vm5834_vm3 = vweird.f32 %v10566_v61 }
0x12b1   : > { %v5881_v15 = vmul.f32 0.5, %v5880_v60  ;;  %v5761_v38 = vmul.f32 %v5735_v1, %v11151_v4  ;;  %v5767_v13 = vmul.f32 %v5747_v55, %v11151_v4  ;;  %v5802_v24 = vsub.f32 1.5, %v5801_v26 }
0x12b2   : > { %v10591_v41 = vadd.f32 1e-05, %v5771_v37  ;;  %v5922_v55 = vsub.f32 1.5, %v5921_v32  ;;  %vm5894_vm6 = vweird.f32 %v10560_v35 }
0x12b3   : > { %v10593_v58 = vpop.eup %7934  ;;  %v5882_v45 = vsub.f32 1.5, %v5881_v15  ;;  %v10596_v54 = vadd.f32 1e-05, %v5761_v38  ;;  %v10598_v5 = vadd.f32 1e-05, %v5767_v13  ;;  %v5956_v38 = vmul.f32 %v5877_v34, %v10408_v53 }
0x12b4   : > { %v10600_v33 = vpop.eup %7936  ;;  %v5789_v19 = vmul.f32 %v10593_v58, %v10558_v49  ;;  %7940 = vrsqrt.f32 %v10591_v41  ;;  %v5960_v13 = vmul.f32 %v5917_v10, %v10405_v44  ;;  %vm5795_vm15 = vweird.f32 %v10593_v58 }
0x12b5   : > { %v10606_v31 = vpop.eup %7938  ;;  %v5883_v30 = vmul.f32 %v10562_v40, %v5882_v45  ;;  %v5829_v27 = vmul.f32 %v10600_v33, %v10566_v61  ;;  %7942 = vrsqrt.f32 %v10596_v54  ;;  %vm5835_vm0 = vweird.f32 %v10600_v33 }
0x12b6   : > { %v5790_v48 = vmul.f32 %v10593_v58, %v5789_v19  ;;  %v5889_v3 = vmul.f32 %v10606_v31, %v10560_v35  ;;  %7944 = vrsqrt.f32 %v10598_v5  ;;  %vm5844_vm4 = vweird.f32 %v10596_v54  ;;  %vm10775_vm14 = vmor %vm5834_vm3, %vm5835_vm0 }
0x12b7   : > { %v5830_v25 = vmul.f32 %v10600_v33, %v5829_v27  ;;  %v5737_v18 = vpop.xlane.xlu0 %5736  ;;  %v5887_v6 = vsel %vm10643_vm11, %v10562_v40, %v5883_v30  ;;  %v10668_v40 = vmul.f32 %v10554_v46, %v5802_v24  ;;  %v5923_v30 = vmul.f32 %v10556_v52, %v5922_v55  ;;  %vm10762_vm11 = vmor %vm5794_vm1, %vm5795_vm15 }
0x12b8   : > { %v5791_v23 = vmul.f32 0.5, %v5790_v48  ;;  %v5890_v60 = vmul.f32 %v10606_v31, %v5889_v3  ;;  %v5753_v36 = vpop.xlane.xlu2 %5752  ;;  %v5729_v7 = vpop.xlane.xlu1 %5728  ;;  %v5762_v1 = vmul.f32 %v5737_v18, %v11151_v4  ;;  %v5957_v28 = vmul.f32 %v5887_v6, %v10423_v43 }
0x12b9   : > { %v5770_v57 = vmul.f32 %v5753_v36, %v11151_v4  ;;  %v5831_v56 = vmul.f32 0.5, %v5830_v25  ;;  %v5758_v15 = vmul.f32 %v5729_v7, %v11151_v4  ;;  %v5973_v43 = vmul.f32 %v10579_v63, %v5956_v38 }
0x12ba   : > { %v10654_v37 = vpop.eup %7940  ;;  %v5792_v20 = vsub.f32 1.5, %v5791_v23  ;;  %v10665_v19 = vadd.f32 1e-05, %v5762_v1  ;;  %v5891_v53 = vmul.f32 0.5, %v5890_v60  ;;  %v5974_v60 = vmul.f32 %v10579_v63, %v5957_v28 }
0x12bb   : > { %v10659_v59 = vpop.eup %7942  ;;  %v5939_v45 = vmul.f32 %v10654_v37, %v10591_v41  ;;  %v10663_v26 = vadd.f32 1e-05, %v5770_v57  ;;  %v5832_v39 = vsub.f32 1.5, %v5831_v56  ;;  %v10690_v34 = vadd.f32 1e-05, %v5758_v15 }
0x12bc   : > { %v5839_v44 = vmul.f32 %v10659_v59, %v10596_v54  ;;  %v10675_v32 = vpop.eup %7944  ;;  %v10687_v25 = vmul.f32 %v10593_v58, %v5792_v20  ;;  %v5892_v47 = vsub.f32 1.5, %v5891_v53  ;;  %vm5845_vm5 = vweird.f32 %v10659_v59 }
0x12bd   : > { %v5940_v27 = vmul.f32 %v10654_v37, %v5939_v45  ;;  %7946 = vrsqrt.f32 %v10663_v26  ;;  %v5899_v3 = vmul.f32 %v10675_v32, %v10598_v5  ;;  %v5927_v9 = vsel %vm10697_vm2, %v10556_v52, %v5923_v30  ;;  %vm10790_vm0 = vmor %vm5844_vm4, %vm5845_vm5 }
0x12be   : > { %v5840_v48 = vmul.f32 %v10659_v59, %v5839_v44  ;;  %7948 = vrsqrt.f32 %v10665_v19  ;;  %vm5895_vm7 = vweird.f32 %v10606_v31  ;;  %v5991_v6 = vadd.f32 %v10630_v11, %v5974_v60 }
0x12bf   : > { %v5941_v18 = vmul.f32 0.5, %v5940_v27  ;;  %v5900_v23 = vmul.f32 %v10675_v32, %v5899_v3  ;;  %7950 = vrsqrt.f32 %v10690_v34  ;;  %v5961_v56 = vmul.f32 %v5927_v9, %v10420_v29  ;;  %vm10816_vm5 = vmor %vm5894_vm6, %vm5895_vm7 }
0x12c0   : > { %v5841_v24 = vmul.f32 0.5, %v5840_v48  ;;  %v5731_v36 = vpop.xlane.xlu2 %5730  ;;  %v5739_v7 = vpop.xlane.xlu1 %5738  ;;  %v5990_v38 = vadd.f32 %v10630_v11, %v5973_v43  ;;  %v5977_v20 = vmul.f32 %v10579_v63, %v5960_v13  ;;  %v5833_v53 = vmul.f32 %v10600_v33, %v5832_v39 }
0x12c1   : > { %v5942_v1 = vsub.f32 1.5, %v5941_v18  ;;  %v5901_v57 = vmul.f32 0.5, %v5900_v23  ;;  %v5759_v45 = vmul.f32 %v5731_v36, %v11151_v4  ;;  %v5763_v52 = vmul.f32 %v5739_v7, %v11151_v4 }
0x12c2   : > { %v5842_v55 = vsub.f32 1.5, %v5841_v24  ;;  %v10722_v44 = vmul.f32 %v10606_v31, %v5892_v47  ;;  %vm5944_vm8 = vweird.f32 %v10591_v41  ;;  %vm5945_vm9 = vweird.f32 %v10654_v37 }
0x12c3   : > { %v10714_v15 = vpop.eup %7946  ;;  %v5902_v28 = vsub.f32 1.5, %v5901_v57  ;;  %vm5854_vm10 = vweird.f32 %v10665_v19  ;;  %v6002_v13 = vpack.c.bf16 %v5991_v6, %v5990_v38  ;;  %v5978_v4 = vmul.f32 %v10579_v63, %v5961_v56  ;;  %vm10836_vm6 = vmor %vm5944_vm8, %vm5945_vm9 }
0x12c4   : > { %v5929_v29 = vmul.f32 %v10714_v15, %v10663_v26  ;;  %v10728_v30 = vpop.eup %7948  ;;  %v10732_v27 = vadd.f32 1e-05, %v5759_v45  ;;  %v5843_v39 = vmul.f32 %v10659_v59, %v5842_v55  ;;  %v10737_v48 = vmul.f32 %v10654_v37, %v5942_v1 }
0x12c5   : > { %v5849_v43 = vmul.f32 %v10728_v30, %v10665_v19  ;;  %v10742_v18 = vpop.eup %7950  ;;  %vm5935_vm2 = vweird.f32 %v10714_v15  ;;  %6102 = vmatmul.bf16.vlgmr.msra.gmra.mxu2 %v6002_v13  ;;  %v5994_v47 = vadd.f32 %v10630_v11, %v5977_v20  ;;  %v5995_v24 = vadd.f32 %v10630_v11, %v5978_v4 }
0x12c6   : > { %v5930_v3 = vmul.f32 %v10714_v15, %v5929_v29  ;;  %7952 = vrsqrt.f32 %v10732_v27  ;;  %v10756_v23 = vadd.f32 1e-05, %v5763_v52  ;;  %v5903_v60 = vmul.f32 %v10675_v32, %v5902_v28 }
0x12c7   : > { %vm5904_vm13 = vweird.f32 %v10598_v5  ;;  %v5809_v7 = vmul.f32 %v10742_v18, %v10690_v34  ;;  %v5850_v1 = vmul.f32 %v10728_v30, %v5849_v43  ;;  %vm5934_vm15 = vweird.f32 %v10663_v26 }
0x12c8   : > { %v5931_v36 = vmul.f32 0.5, %v5930_v3  ;;  %vm5855_vm1 = vweird.f32 %v10728_v30  ;;  %v6004_v9 = vpack.c.bf16 %v5995_v24, %v5994_v47  ;;  %7954 = vrsqrt.f32 %v10756_v23 }
0x12c9   : > { %v5797_v55 = vsel %vm10762_vm11, %v10593_v58, %v10687_v25  ;;  %v5810_v6 = vmul.f32 %v10742_v18, %v5809_v7  ;;  %v5851_v56 = vmul.f32 0.5, %v5850_v1  ;;  %v5807_v38 = vsel %vm10748_vm12, %v10554_v46, %v10668_v40  ;;  %vm10849_vm7 = vmor %vm5854_vm10, %vm5855_vm1 }
0x12ca   : > { %v5932_v57 = vsub.f32 1.5, %v5931_v36  ;;  %vm5814_vm3 = vweird.f32 %v10690_v34  ;;  %6112 = vmatmul.bf16.vlgmr.msra.gmra.mxu3 %v6004_v9  ;;  %v5948_v58 = vmul.f32 %v5797_v55, %v10434_v2  ;;  %v5949_v54 = vmul.f32 %v5807_v38, %v10417_v22  ;;  %vm5936_vm10 = vmor %vm5934_vm15, %vm5935_vm2 }
0x12cb   : > { %v5837_v25 = vsel %vm10775_vm14, %v10600_v33, %v5833_v53  ;;  %v5847_v20 = vsel %vm10790_vm0, %v10659_v59, %v5843_v39  ;;  %v5811_v45 = vmul.f32 0.5, %v5810_v6  ;;  %vm5815_vm4 = vweird.f32 %v10742_v18 }
0x12cc   : > { %v5852_v52 = vsub.f32 1.5, %v5851_v56  ;;  %v5952_v46 = vmul.f32 %v5837_v25, %v10441_v21  ;;  %v10810_v40 = vpop.eup %7952  ;;  %v5933_v2 = vmul.f32 %v10714_v15, %v5932_v57  ;;  %v5965_v33 = vmul.f32 %v10579_v63, %v5948_v58  ;;  %vm10881_vm2 = vmor %vm5814_vm3, %vm5815_vm4 }
0x12cd   : > { %v5966_v59 = vmul.f32 %v10579_v63, %v5949_v54  ;;  %v5953_v53 = vmul.f32 %v5847_v20, %v10451_v51  ;;  %v5812_v28 = vsub.f32 1.5, %v5811_v45  ;;  %v5819_v29 = vmul.f32 %v10810_v40, %v10732_v27 }
0x12ce   : > { %v5853_v21 = vmul.f32 %v10728_v30, %v5852_v52  ;;  %vm5824_vm11 = vweird.f32 %v10732_v27  ;;  %v5897_v35 = vsel %vm10816_vm5, %v10606_v31, %v10722_v44  ;;  %v7955_v13 = vpop.eup %7954  ;;  %v5982_v4 = vadd.f32 %v10630_v11, %v5965_v33 }
0x12cf   : > { %v5983_v39 = vadd.f32 %v10630_v11, %v5966_v59  ;;  %v5969_v3 = vmul.f32 %v10579_v63, %v5952_v46  ;;  %v5970_v43 = vmul.f32 %v10579_v63, %v5953_v53  ;;  %v5813_v10 = vmul.f32 %v10742_v18, %v5812_v28 }
0x12d0   : > { %v5820_v31 = vmul.f32 %v10810_v40, %v5819_v29  ;;  %vm5825_vm8 = vweird.f32 %v10810_v40  ;;  %v5859_v44 = vmul.f32 %v7955_v13, %v10756_v23  ;;  %vm11174_vm9 = vweird.f32 %v10675_v32 }
0x12d1   : > { %vm5906_vm12 = vmor %vm5904_vm13, %vm11174_vm9  ;;  %v5857_v47 = vsel %vm10849_vm7, %v10728_v30, %v5853_v21  ;;  %v5998_v19 = vpack.c.bf16 %v5983_v39, %v5982_v4  ;;  %v5986_v24 = vadd.f32 %v10630_v11, %v5969_v3  ;;  %v5987_v0 = vadd.f32 %v10630_v11, %v5970_v43 }
0x12d2   : > { %v5821_v36 = vmul.f32 0.5, %v5820_v31  ;;  %v5860_v7 = vmul.f32 %v7955_v13, %v5859_v44  ;;  %v5907_v1 = vsel %vm5906_vm12, %v10675_v32, %v5903_v60  ;;  %v5958_v5 = vmul.f32 %v5897_v35, %v10438_v12  ;;  %vm5826_vm14 = vmor %vm5824_vm11, %vm5825_vm8 }
0x12d3   : > { %6082 = vmatmul.bf16.vlgmr.msra.gmra.mxu0 %v5998_v19  ;;  %v6000_v49 = vpack.c.bf16 %v5987_v0, %v5986_v24  ;;  %v5959_v30 = vmul.f32 %v5907_v1, %v10459_v14  ;;  %v5937_v9 = vsel %vm5936_vm10, %v10714_v15, %v5933_v2  ;;  %v5947_v55 = vsel %vm10836_vm6, %v10654_v37, %v10737_v48 }
0x12d4   : > { %v5822_v12 = vsub.f32 1.5, %v5821_v36  ;;  %v5861_v32 = vmul.f32 0.5, %v5860_v7  ;;  %v5975_v60 = vmul.f32 %v10579_v63, %v5958_v5  ;;  %v5962_v14 = vmul.f32 %v5937_v9, %v10469_v50 }
0x12d5   : > { %vm5865_vm13 = vweird.f32 %v7955_v13  ;;  %6092 = vmatmul.bf16.vlgmr.msra.gmra.mxu1 %v6000_v49  ;;  %v5976_v15 = vmul.f32 %v10579_v63, %v5959_v30  ;;  %v5963_v37 = vmul.f32 %v5947_v55, %v10456_v16  ;;  %v5817_v34 = vsel %vm10881_vm2, %v10742_v18, %v5813_v10 }
0x12d6   : > { %v5823_v48 = vmul.f32 %v10810_v40, %v5822_v12  ;;  %v5862_v61 = vsub.f32 1.5, %v5861_v32  ;;  %v5979_v57 = vmul.f32 %v10579_v63, %v5962_v14  ;;  %v5954_v6 = vmul.f32 %v5857_v47, %v10474_v42 }
0x12d7   : > { %v5992_v50 = vadd.f32 %v10630_v11, %v5975_v60  ;;  %v5993_v16 = vadd.f32 %v10630_v11, %v5976_v15  ;;  %v5980_v56 = vmul.f32 %v10579_v63, %v5963_v37  ;;  %v5950_v18 = vmul.f32 %v5817_v34, %v10477_v62 }
0x12d8   : > { %v5827_v38 = vsel %vm5826_vm14, %v10810_v40, %v5823_v48  ;;  %v5863_v58 = vmul.f32 %v7955_v13, %v5862_v61  ;;  %vm5864_vm15 = vweird.f32 %v10756_v23  ;;  %v5996_v42 = vadd.f32 %v10630_v11, %v5979_v57 }
0x12d9   : > { %vm5866_vm1 = vmor %vm5864_vm15, %vm5865_vm13  ;;  %v6003_v54 = vpack.c.bf16 %v5993_v16, %v5992_v50  ;;  %v5997_v27 = vadd.f32 %v10630_v11, %v5980_v56  ;;  %v5951_v25 = vmul.f32 %v5827_v38, %v10487_v8  ;;  %v5967_v20 = vmul.f32 %v10579_v63, %v5950_v18 }
0x12da   : > { %v5867_v45 = vsel %vm5866_vm1, %v7955_v13, %v5863_v58  ;;  %v5971_v23 = vmul.f32 %v10579_v63, %v5954_v6 }
0x12db   : > { %6107 = vmatmul.bf16.gmra.mxu2 %v6003_v54  ;;  %v6005_v52 = vpack.c.bf16 %v5997_v27, %v5996_v42  ;;  %v5968_v62 = vmul.f32 %v10579_v63, %v5951_v25  ;;  %v5955_v46 = vmul.f32 %v5867_v45, %v10491_v17  ;;  %v5984_v40 = vadd.f32 %v10630_v11, %v5967_v20  ;;  %v7923_v17 = vld [vmem:[%s11177_s25] ss:$0 sm:$0xff] }
0x12dc   : > { %v5988_v33 = vadd.f32 %v10630_v11, %v5971_v23 }
0x12dd   : > { %6117 = vmatmul.bf16.gmra.mxu3 %v6005_v52  ;;  %v5985_v22 = vadd.f32 %v10630_v11, %v5968_v62  ;;  %v5972_v8 = vmul.f32 %v10579_v63, %v5955_v46 }
0x12df   : > { %v5999_v2 = vpack.c.bf16 %v5985_v22, %v5984_v40  ;;  %v5989_v59 = vadd.f32 %v10630_v11, %v5972_v8 }
0x12e1   : > { %v6001_v53 = vpack.c.bf16 %v5989_v59, %v5988_v33 }
0x12e3   : > { %6087 = vmatmul.bf16.gmra.mxu0 %v5999_v2 }
0x12e5   : > { %6097 = vmatmul.bf16.gmra.mxu1 %v6001_v53 }
0x1348   : > { %v6103_v28 = vpop.f32.mrf.mxu2 }
0x1349   : > { %v6104_v21 = vadd.f32 %v7923_v17, %v6103_v28 }
0x134b   : > { %6131 = vst [vmem:[%s8246_s0 + $0x40] sm:$0xff] %v6104_v21 }
0x134d   : > { %v6113_v63 = vpop.f32.mrf.mxu3 }
0x134e   : > { %v6114_v29 = vadd.f32 %v7923_v17, %v6113_v63 }
0x1350   : > { %v6083_v35 = vpop.f32.mrf.mxu0  ;;  %6135 = vst [vmem:[%s8246_s0 + $0x60] sm:$0xff] %v6114_v29  ;;  %v6105_v11 = vpop.f32.mrf.mxu2 }
0x1351   : > { %v6084_v13 = vadd.f32 %v7923_v17, %v6083_v35  ;;  %v6106_v4 = vadd.f32 %v7923_v17, %v6105_v11 }
0x1352   : > { %v6093_v51 = vpop.f32.mrf.mxu1 }
0x1353   : > { %6123 = vst [vmem:[%s8246_s0] sm:$0xff] %v6084_v13  ;;  %v6094_v39 = vadd.f32 %v7923_v17, %v6093_v51 }
0x1354   : > { %6132 = vst [vmem:[%s8246_s0 + $0x48] sm:$0xff] %v6106_v4 }
0x1355   : > { %v6115_v3 = vpop.f32.mrf.mxu3  ;;  %6127 = vst [vmem:[%s8246_s0 + $0x20] sm:$0xff] %v6094_v39 }
0x1356   : > { %v6116_v43 = vadd.f32 %v7923_v17, %v6115_v3 }
0x1358   : > { %v6085_v10 = vpop.f32.mrf.mxu0  ;;  %6136 = vst [vmem:[%s8246_s0 + $0x68] sm:$0xff] %v6116_v43 }
0x1359   : > { %v6086_v41 = vadd.f32 %v7923_v17, %v6085_v10 }
0x135a   : > { %v6095_v31 = vpop.f32.mrf.mxu1 }
0x135b   : > { %6124 = vst [vmem:[%s8246_s0 + $0x8] sm:$0xff] %v6086_v41  ;;  %v6096_v44 = vadd.f32 %v7923_v17, %v6095_v31 }
0x135d   : > { %6128 = vst [vmem:[%s8246_s0 + $0x28] sm:$0xff] %v6096_v44 }
0x135e   : > { %v6108_v47 = vpop.f32.mrf.mxu2 }
0x135f   : > { %v6109_v19 = vadd.f32 %v7923_v17, %v6108_v47 }
0x1360   : > { %v6118_v24 = vpop.f32.mrf.mxu3  ;;  %v6088_v0 = vpop.f32.mrf.mxu0 }
0x1361   : > { %6133 = vst [vmem:[%s8246_s0 + $0x50] sm:$0xff] %v6109_v19  ;;  %v6119_v36 = vadd.f32 %v7923_v17, %v6118_v24  ;;  %v6089_v7 = vadd.f32 %v7923_v17, %v6088_v0 }
0x1362   : > { %v6098_v1 = vpop.f32.mrf.mxu1 }
0x1363   : > { %6137 = vst [vmem:[%s8246_s0 + $0x70] sm:$0xff] %v6119_v36  ;;  %v6099_v5 = vadd.f32 %v7923_v17, %v6098_v1 }
0x1364   : > { %6125 = vst [vmem:[%s8246_s0 + $0x10] sm:$0xff] %v6089_v7 }
0x1365   : > { %6129 = vst [vmem:[%s8246_s0 + $0x30] sm:$0xff] %v6099_v5 }
0x1366   : > { %v6110_v49 = vpop.f32.mrf.mxu2 }
0x1367   : > { %v6111_v30 = vadd.f32 %v7923_v17, %v6110_v49 }
0x1368   : > { %v6120_v9 = vpop.f32.mrf.mxu3  ;;  %v6090_v55 = vpop.f32.mrf.mxu0 }
0x1369   : > { %6134 = vst [vmem:[%s8246_s0 + $0x58] sm:$0xff] %v6111_v30  ;;  %v6121_v26 = vadd.f32 %v7923_v17, %v6120_v9  ;;  %v6091_v12 = vadd.f32 %v7923_v17, %v6090_v55 }
0x136a   : > { %v6100_v32 = vpop.f32.mrf.mxu1 }
0x136b   : > { %6138 = vst [vmem:[%s8246_s0 + $0x78] sm:$0xff] %v6121_v26  ;;  %v6101_v60 = vadd.f32 %v7923_v17, %v6100_v32 }
0x136c   : > { %6126 = vst [vmem:[%s8246_s0 + $0x18] sm:$0xff] %v6091_v12 }
0x136d   : > { %6130 = vst [vmem:[%s8246_s0 + $0x38] sm:$0xff] %v6101_v60 }
0x136e PF: > { %s11178_s20 = sld [smem:[#allocation9_spill]]  ;;  %s6152_s27 = sshll.u32 %s8246_s0, 4  ;;  %s6153_s27 = int_to_ptr.vmem [resolvable:$true] %s6152_s27 }
0x136f   : > { %s11179_s4 = sld [smem:[#allocation7_spill]] }
0x1370   : > { %s11181_s15 = sld [smem:[#allocation60_spill]] }
0x1374   : > { %s7460_s18 = sshll.u32 %s11178_s20, 7 }
0x1375   : > { %s11183_s26 = sand.u32 1, %s11179_s4  }
0x1376   : > { %s11182_s19 = smov %s11181_s15  ;;  %s6151_s23 = scalar_lea.hbm %s11181_s15, %s7460_s18 }
0x1377   : > { %s6154_s13 = sshll.u32 %s6151_s23, 4  ;;  %s6140_s16 = scalar_lea.sflag [#allocation4], %s11183_s26  ;;  %s6155_s13 = int_to_ptr.hbm [resolvable:$true] %s6154_s13 }
0x1378   : > { %s7970_s14 = sshra.s32 %s6155_s13, 4  ;;  %s7976_s12 = scalar_lea.hbm %s11182_s19, 256  ;;  %s7971_s14 = int_to_ptr.hbm [resolvable:$true] %s7970_s14 }
0x1379   : > { %s7972_s29 = scalar_lea.hbm %s7971_s14, 128  ;;  %p7977_p6 = scmp.lt.s32.totalorder %s7971_s14, %s11182_s19 }
0x137a   : > { %p7973_p2 = scmp.ne.s32.totalorder %s7971_s14, %s7972_s29  ;;  %p7978_p7 = scmp.lt.s32.totalorder %s7976_s12, %s7972_s29 }
0x137c   : > { %p7974_p4 = pnand %p7973_p2, %p8174_p3  ;;  %p7979_p8 = por %p7978_p7, %p7977_p6 }
0x137e   : > { %p7975_p5 = pneg %p7974_p4 }
0x1380   : > { %p7980_p10 = pnand %p7979_p8, %p7975_p5 }
0x1382   : > { %7983 = shalt.err (!%p7980_p10)
}
0x1383   : > { %s8053_s0 = smov 128   ;;  %s8054_s22 = smov 8  }
0x1384   : > { %7493 = dma.vmem_to_hbm [thread:$0]  (%p8174_p3), %s6153_s27, 2048, %s6155_s13, %s6140_s16, %s8053_s0, %s8053_s0, %s8054_s22  }
0x1385 PF: > { %s11184_s25 = sld [smem:[#allocation12_spill]] }
0x1386   : > { %s11185_s20 = sld [smem:[#allocation6_spill]] }
0x138b   : > { %p7499_p11 = scmp.ge.s32.totalorder %s11184_s25, 2 }
0x138c   : > { %s6169_s18 = sand.u32 1, %s11185_s20  }
0x138d   : > { %p7496_p12 = pnand %p7499_p11, %p8184_p9  ;;  %s6170_s21 = scalar_lea.sflag [#allocation4], %s6169_s18 }
0x138f   : > { %p7497_p13 = pneg %p7496_p12 }
0x1391   : > { %8017 = dma.done.wait (%p7497_p13), %s6170_s21, 2048  }
0x1392   : > { %8019 = vsyncadd (%p7497_p13), %s6170_s21, 4294965248  ;;  %s26_s15 = sadd.s32 1, %s11184_s25   ;;  %s11187_s25 = sld [smem:[#allocation7_spill]] }
0x1393   : > { %p23_p0 = scmp.ge.s32.totalorder %s26_s15, 10   ;;  %s11188_s26 = sld [smem:[#allocation8_spill]] }
0x1394   : > { %s11189_s27 = sld [smem:[#allocation17_spill]] }
0x1395   : > { %s11190_s28 = sld [smem:[#allocation10_spill]]  ;;  %25 = sbr.rel (!%p23_p0) target bundleno = 12 (0xc), region = 151 }
0x1396   : > { %s11191_s29 = sld [smem:[#allocation11_spill]] }
0x1397   : > { %s11192_s30 = sld [smem:[#allocation13_spill]] }
0x1398   : > { %s11193_s14 = sld [smem:[#allocation15_spill]] }
0x139a   :  { %6176 = vsyncpa [#allocation4], 1 }
0x139b   :  { %6178 = vsyncpa [#allocation4 + $0x1], 1 }

</bundles_post_ra>
